<compile_context>
chip_gen: v7x
topology: tpu7x:2x2x1
jax: 0.10.0
libtpu: 0.0.40
codegen_flags: <defaults>
</compile_context>

<pallas_src>
import jax
import jax.numpy as jnp
import numpy as np
from jax.experimental import pallas as pl
from jax.experimental.pallas import tpu as pltpu


def _upsample_conv3x3_kernel(xm_ref, xh_ref, w_ref, b_ref, o_ref, up_ref, acc_ref):
    # xm_ref: (TH,  W+2, C)  main rows of the zero-padded ORIGINAL-res input
    # xh_ref: (2,   W+2, C)  2-row halo (rows just below the main block)
    # w_ref:  (3, 3, C, C)   conv weights, (kh, kw, c_in, c_out)
    # b_ref:  (1, C)         bias
    # o_ref:  (THo, Wo, C)   output row band (THo = 2*TH, Wo = 2*W)
    # up_ref: (2*TH+4, 2W+4, C) VMEM scratch: 2x-upsampled tile (+1px halo)
    # acc_ref:(THo*Wo, C) f32 VMEM accumulator
    THo, Wo, C = o_ref.shape
    TH = xm_ref.shape[0]

    # --- 2x nearest upsample into VMEM (never materialized in HBM). The zero
    # 'same'-conv halo comes for free from the zero-padded original input. ---
    up_ref[0:2 * TH, :, :] = jnp.repeat(
        jnp.repeat(xm_ref[...], 2, axis=0), 2, axis=1)
    up_ref[2 * TH:2 * TH + 4, :, :] = jnp.repeat(
        jnp.repeat(xh_ref[...], 2, axis=0), 2, axis=1)

    # --- 3x3 'same' conv: 9 accumulated MXU matmuls on (pixels, C) tiles. ---
    acc_ref[...] = jnp.zeros_like(acc_ref)
    for kh in range(3):                        # statically unrolled taps
        for kw in range(3):
            patch = up_ref[kh + 1:kh + 1 + THo, kw + 1:kw + 1 + Wo, :]
            acc_ref[...] += jnp.dot(patch.reshape(THo * Wo, C), w_ref[kh, kw],
                                    preferred_element_type=jnp.float32)

    out = acc_ref[...] + b_ref[...].astype(jnp.float32)
    o_ref[...] = out.reshape(THo, Wo, C).astype(o_ref.dtype)


def _pick_row_tile(H, W, C, itemsize):
    """Largest even divisor of H that is <= 8 and keeps per-step VMEM small."""
    budget = 8 * 1024 * 1024
    best = 0
    for cand in range(2, min(H, 8) + 1, 2):
        if H % cand:
            continue
        up_bytes = (2 * cand + 4) * (2 * W + 4) * C * itemsize
        acc_bytes = (2 * cand) * (2 * W) * C * 4
        io_bytes = 2 * ((cand + 4) * (W + 2) * C * itemsize
                        + (2 * cand) * (2 * W) * C * itemsize)
        if best == 0 or (up_bytes + acc_bytes + io_bytes) <= budget:
            best = cand
    return best


def upsample_forward(x_nchw, weight, bias, *, compute_dtype=None):
    """Upsample.forward: 2x nearest upsample then Conv2d(C, C, 3, padding=1).

    x_nchw: (N, C, H, W)   weight: (C, C, 3, 3) [PyTorch OIHW]   bias: (C,)
    returns: (N, C, 2H, 2W)

    compute_dtype: optionally jnp.bfloat16 on v6e/v7x to halve activation DMA
    bytes and double MXU throughput (accumulation stays f32).
    """
    N, C, H, W = x_nchw.shape
    Ho, Wo = 2 * H, 2 * W

    # TODO(synk): odd H would need a single whole-image-tile fallback.
    assert H % 2 == 0, "row tiling requires an even H"

    cdt = compute_dtype if compute_dtype is not None else x_nchw.dtype
    TH = _pick_row_tile(H, W, C, jnp.dtype(cdt).itemsize)
    THo = 2 * TH
    T = H // TH

    # --- small-tensor glue (1/4 the size of the output): NCHW -> NHWC + 1px
    # zero halo.  The 4x upsampled tensor itself is never written to HBM. ---
    x_pad = jnp.pad(jnp.transpose(x_nchw, (0, 2, 3, 1)).astype(cdt),
                    ((0, 0), (1, 1), (1, 1), (0, 0)))        # (N, H+2, W+2, C)
    w_hwio = jnp.transpose(weight, (2, 3, 1, 0)).astype(cdt)  # (3,3,Cin,Cout)
    b2d = bias.reshape(1, C).astype(jnp.float32)

    out_nhwc = pl.pallas_call(
        _upsample_conv3x3_kernel,
        out_shape=jax.ShapeDtypeStruct((N, Ho, Wo, C), x_nchw.dtype),
        grid_spec=pltpu.PrefetchScalarGridSpec(
            num_scalar_prefetch=0,
            grid=(N, T),
            in_specs=[
                # main TH-row band of the padded original-resolution input
                pl.BlockSpec((pl.Squeezed(), TH, W + 2, C),
                             lambda n, t: (n, t, 0, 0)),
                # 2-row halo just below it (overlapping read of the same array)
                pl.BlockSpec((pl.Squeezed(), 2, W + 2, C),
                             lambda n, t: (n, (t + 1) * (TH // 2), 0, 0)),
                pl.BlockSpec((3, 3, C, C), lambda n, t: (0, 0, 0, 0)),
                pl.BlockSpec((1, C), lambda n, t: (0, 0)),
            ],
            out_specs=pl.BlockSpec((pl.Squeezed(), THo, Wo, C),
                                   lambda n, t: (n, t, 0, 0)),
            scratch_shapes=[
                pltpu.VMEM((2 * TH + 4, 2 * W + 4, C), cdt),     # upsampled tile
                pltpu.VMEM((THo * Wo, C), jnp.float32),          # accumulator
            ],
        ),
        compiler_params=pltpu.CompilerParams(
            dimension_semantics=("parallel", "parallel")),
    )(x_pad, x_pad, w_hwio, b2d)

    # TODO(synk): drop this full-size transpose if the UNet stays NHWC.
    return jnp.transpose(out_nhwc, (0, 3, 1, 2))                 # back to NCHW


def _reference(x_nchw, weight, bias):
    x_up = jnp.repeat(jnp.repeat(x_nchw, 2, axis=2), 2, axis=3)
    out = jax.lax.conv_general_dilated(
        x_up, weight, window_strides=(1, 1), padding=((1, 1), (1, 1)),
        dimension_numbers=('NCHW', 'OIHW', 'NCHW'))
    return out + bias[None, :, None, None]


if __name__ == "__main__":
    N, C, H, W = 2, 4, 16, 16
    key = jax.random.PRNGKey(0)
    kx, kw, kb = jax.random.split(key, 3)

    x = jax.random.normal(kx, (N, C, H, W), dtype=jnp.float32)

    # Deterministic Conv2d(C, C, 3) params, PyTorch-style uniform(-k, k) init.
    fan_in = C * 3 * 3
    k = 1.0 / np.sqrt(fan_in)
    weight = jax.random.uniform(kw, (C, C, 3, 3), jnp.float32, -k, k)
    bias = jax.random.uniform(kb, (C,), jnp.float32, -k, k)

    out = jax.block_until_ready(upsample_forward(x, weight, bias))
    ref = jax.block_until_ready(_reference(x, weight, bias))

    assert out.shape == (N, C, 2 * H, 2 * W), out.shape
    np.testing.assert_allclose(np.asarray(out), np.asarray(ref),
                               rtol=1e-4, atol=1e-4)
    print("KERNEL_OK")
</pallas_src>

<mosaic_0001>
module attributes {stable_mosaic.version = 11 : i64} {
  func.func @_upsample_conv3x3_kernel(%arg0: i32, %arg1: i32, %arg2: memref<1x8x18x4xf32, #tpu.memory_space<vmem>>, %arg3: memref<1x2x18x4xf32, #tpu.memory_space<vmem>>, %arg4: memref<3x3x4x4xf32, #tpu.memory_space<vmem>>, %arg5: memref<1x4xf32, #tpu.memory_space<vmem>>, %arg6: memref<1x16x32x4xf32, #tpu.memory_space<vmem>>, %arg7: memref<20x36x4xf32, #tpu.memory_space<vmem>>, %arg8: memref<512x4xf32, #tpu.memory_space<vmem>>) attributes {dimension_semantics = [#tpu.dimension_semantics<parallel>, #tpu.dimension_semantics<parallel>], iteration_bounds = array<i64: 2, 2>, scalar_prefetch = 0 : i64, scratch_operands = 2 : i64, tpu.core_type = #tpu.core_type<tc>, window_params = [{transform_indices = @transform_0, window_bounds = array<i64: 1, 8, 18, 4>}, {transform_indices = @transform_1, window_bounds = array<i64: 1, 2, 18, 4>}, {pipeline_mode = #tpu.pipeline_mode<synchronous>, transform_indices = @transform_2, window_bounds = array<i64: 3, 3, 4, 4>}, {pipeline_mode = #tpu.pipeline_mode<synchronous>, transform_indices = @transform_3, window_bounds = array<i64: 1, 4>}, {transform_indices = @transform_4, window_bounds = array<i64: 1, 16, 32, 4>}]} {
    %c0 = arith.constant 0 : index
    %c0_0 = arith.constant 0 : index
    %c0_1 = arith.constant 0 : index
    %c0_2 = arith.constant 0 : index
    %0 = vector.load %arg2[%c0, %c0_0, %c0_1, %c0_2] : memref<1x8x18x4xf32, #tpu.memory_space<vmem>>, vector<1x8x18x4xf32>
    %1 = vector.shape_cast %0 : vector<1x8x18x4xf32> to vector<8x18x4xf32>
    %2 = vector.shape_cast %1 : vector<8x18x4xf32> to vector<8x1x18x4xf32>
    %3 = vector.broadcast %2 : vector<8x1x18x4xf32> to vector<8x2x18x4xf32>
    %4 = vector.shape_cast %3 : vector<8x2x18x4xf32> to vector<16x18x4xf32>
    %5 = vector.shape_cast %4 : vector<16x18x4xf32> to vector<16x18x1x4xf32>
    %6 = vector.broadcast %5 : vector<16x18x1x4xf32> to vector<16x18x2x4xf32>
    %7 = vector.shape_cast %6 : vector<16x18x2x4xf32> to vector<16x36x4xf32>
    %c0_3 = arith.constant 0 : index
    %c0_4 = arith.constant 0 : index
    %c0_5 = arith.constant 0 : index
    %8 = vector.load %arg7[%c0_3, %c0_4, %c0_5] : memref<20x36x4xf32, #tpu.memory_space<vmem>>, vector<16x36x4xf32>
    tpu.vector_store %arg7[%c0_3, %c0_4, %c0_5], %7 {strides = array<i32>} : memref<20x36x4xf32, #tpu.memory_space<vmem>>, vector<16x36x4xf32>,
    %c0_6 = arith.constant 0 : index
    %c0_7 = arith.constant 0 : index
    %c0_8 = arith.constant 0 : index
    %c0_9 = arith.constant 0 : index
    %9 = vector.load %arg3[%c0_6, %c0_7, %c0_8, %c0_9] : memref<1x2x18x4xf32, #tpu.memory_space<vmem>>, vector<1x2x18x4xf32>
    %10 = vector.shape_cast %9 : vector<1x2x18x4xf32> to vector<2x18x4xf32>
    %11 = vector.shape_cast %10 : vector<2x18x4xf32> to vector<2x1x18x4xf32>
    %12 = vector.broadcast %11 : vector<2x1x18x4xf32> to vector<2x2x18x4xf32>
    %13 = vector.shape_cast %12 : vector<2x2x18x4xf32> to vector<4x18x4xf32>
    %14 = vector.shape_cast %13 : vector<4x18x4xf32> to vector<4x18x1x4xf32>
    %15 = vector.broadcast %14 : vector<4x18x1x4xf32> to vector<4x18x2x4xf32>
    %16 = vector.shape_cast %15 : vector<4x18x2x4xf32> to vector<4x36x4xf32>
    %c16 = arith.constant 16 : index
    %c0_10 = arith.constant 0 : index
    %c0_11 = arith.constant 0 : index
    %17 = vector.load %arg7[%c16, %c0_10, %c0_11] : memref<20x36x4xf32, #tpu.memory_space<vmem>>, vector<4x36x4xf32>
    tpu.vector_store %arg7[%c16, %c0_10, %c0_11], %16 {strides = array<i32>} : memref<20x36x4xf32, #tpu.memory_space<vmem>>, vector<4x36x4xf32>,
    %cst = arith.constant 0.000000e+00 : f32
    %18 = vector.broadcast %cst : f32 to vector<512x4xf32>
    %c0_12 = arith.constant 0 : index
    %c0_13 = arith.constant 0 : index
    %19 = vector.load %arg8[%c0_12, %c0_13] : memref<512x4xf32, #tpu.memory_space<vmem>>, vector<512x4xf32>
    tpu.vector_store %arg8[%c0_12, %c0_13], %18 {strides = array<i32>} : memref<512x4xf32, #tpu.memory_space<vmem>>, vector<512x4xf32>,
    %c1 = arith.constant 1 : index
    %c1_14 = arith.constant 1 : index
    %c0_15 = arith.constant 0 : index
    %20 = vector.load %arg7[%c1, %c1_14, %c0_15] : memref<20x36x4xf32, #tpu.memory_space<vmem>>, vector<16x32x4xf32>
    %c0_16 = arith.constant 0 : index
    %c0_17 = arith.constant 0 : index
    %21 = vector.load %arg8[%c0_16, %c0_17] : memref<512x4xf32, #tpu.memory_space<vmem>>, vector<512x4xf32>
    %22 = vector.shape_cast %20 : vector<16x32x4xf32> to vector<512x4xf32>
    %c0_18 = arith.constant 0 : index
    %c0_19 = arith.constant 0 : index
    %c0_20 = arith.constant 0 : index
    %c0_21 = arith.constant 0 : index
    %23 = vector.load %arg4[%c0_18, %c0_19, %c0_20, %c0_21] : memref<3x3x4x4xf32, #tpu.memory_space<vmem>>, vector<1x1x4x4xf32>
    %24 = vector.shape_cast %23 : vector<1x1x4x4xf32> to vector<4x4xf32>
    %cst_22 = arith.constant dense<0.000000e+00> : vector<512x4xf32>
    %25 = tpu.matmul %22, %24, %cst_22 {dimension_numbers = #tpu.dot_dimension_numbers<[1], [0], [0], [1], [0, 0, 1, 1], [], []>} : vector<512x4xf32>, vector<4x4xf32>, vector<512x4xf32> -> vector<512x4xf32>
    %26 = arith.addf %21, %25 : vector<512x4xf32>
    %c0_23 = arith.constant 0 : index
    %c0_24 = arith.constant 0 : index
    %27 = vector.load %arg8[%c0_23, %c0_24] : memref<512x4xf32, #tpu.memory_space<vmem>>, vector<512x4xf32>
    tpu.vector_store %arg8[%c0_23, %c0_24], %26 {strides = array<i32>} : memref<512x4xf32, #tpu.memory_space<vmem>>, vector<512x4xf32>,
    %c1_25 = arith.constant 1 : index
    %c2 = arith.constant 2 : index
    %c0_26 = arith.constant 0 : index
    %28 = vector.load %arg7[%c1_25, %c2, %c0_26] : memref<20x36x4xf32, #tpu.memory_space<vmem>>, vector<16x32x4xf32>
    %c0_27 = arith.constant 0 : index
    %c0_28 = arith.constant 0 : index
    %29 = vector.load %arg8[%c0_27, %c0_28] : memref<512x4xf32, #tpu.memory_space<vmem>>, vector<512x4xf32>
    %30 = vector.shape_cast %28 : vector<16x32x4xf32> to vector<512x4xf32>
    %c0_29 = arith.constant 0 : index
    %c1_30 = arith.constant 1 : index
    %c0_31 = arith.constant 0 : index
    %c0_32 = arith.constant 0 : index
    %31 = vector.load %arg4[%c0_29, %c1_30, %c0_31, %c0_32] : memref<3x3x4x4xf32, #tpu.memory_space<vmem>>, vector<1x1x4x4xf32>
    %32 = vector.shape_cast %31 : vector<1x1x4x4xf32> to vector<4x4xf32>
    %cst_33 = arith.constant dense<0.000000e+00> : vector<512x4xf32>
    %33 = tpu.matmul %30, %32, %cst_33 {dimension_numbers = #tpu.dot_dimension_numbers<[1], [0], [0], [1], [0, 0, 1, 1], [], []>} : vector<512x4xf32>, vector<4x4xf32>, vector<512x4xf32> -> vector<512x4xf32>
    %34 = arith.addf %29, %33 : vector<512x4xf32>
    %c0_34 = arith.constant 0 : index
    %c0_35 = arith.constant 0 : index
    %35 = vector.load %arg8[%c0_34, %c0_35] : memref<512x4xf32, #tpu.memory_space<vmem>>, vector<512x4xf32>
    tpu.vector_store %arg8[%c0_34, %c0_35], %34 {strides = array<i32>} : memref<512x4xf32, #tpu.memory_space<vmem>>, vector<512x4xf32>,
    %c1_36 = arith.constant 1 : index
    %c3 = arith.constant 3 : index
    %c0_37 = arith.constant 0 : index
    %36 = vector.load %arg7[%c1_36, %c3, %c0_37] : memref<20x36x4xf32, #tpu.memory_space<vmem>>, vector<16x32x4xf32>
    %c0_38 = arith.constant 0 : index
    %c0_39 = arith.constant 0 : index
    %37 = vector.load %arg8[%c0_38, %c0_39] : memref<512x4xf32, #tpu.memory_space<vmem>>, vector<512x4xf32>
    %38 = vector.shape_cast %36 : vector<16x32x4xf32> to vector<512x4xf32>
    %c0_40 = arith.constant 0 : index
    %c2_41 = arith.constant 2 : index
    %c0_42 = arith.constant 0 : index
    %c0_43 = arith.constant 0 : index
    %39 = vector.load %arg4[%c0_40, %c2_41, %c0_42, %c0_43] : memref<3x3x4x4xf32, #tpu.memory_space<vmem>>, vector<1x1x4x4xf32>
    %40 = vector.shape_cast %39 : vector<1x1x4x4xf32> to vector<4x4xf32>
    %cst_44 = arith.constant dense<0.000000e+00> : vector<512x4xf32>
    %41 = tpu.matmul %38, %40, %cst_44 {dimension_numbers = #tpu.dot_dimension_numbers<[1], [0], [0], [1], [0, 0, 1, 1], [], []>} : vector<512x4xf32>, vector<4x4xf32>, vector<512x4xf32> -> vector<512x4xf32>
    %42 = arith.addf %37, %41 : vector<512x4xf32>
    %c0_45 = arith.constant 0 : index
    %c0_46 = arith.constant 0 : index
    %43 = vector.load %arg8[%c0_45, %c0_46] : memref<512x4xf32, #tpu.memory_space<vmem>>, vector<512x4xf32>
    tpu.vector_store %arg8[%c0_45, %c0_46], %42 {strides = array<i32>} : memref<512x4xf32, #tpu.memory_space<vmem>>, vector<512x4xf32>,
    %c2_47 = arith.constant 2 : index
    %c1_48 = arith.constant 1 : index
    %c0_49 = arith.constant 0 : index
    %44 = vector.load %arg7[%c2_47, %c1_48, %c0_49] : memref<20x36x4xf32, #tpu.memory_space<vmem>>, vector<16x32x4xf32>
    %c0_50 = arith.constant 0 : index
    %c0_51 = arith.constant 0 : index
    %45 = vector.load %arg8[%c0_50, %c0_51] : memref<512x4xf32, #tpu.memory_space<vmem>>, vector<512x4xf32>
    %46 = vector.shape_cast %44 : vector<16x32x4xf32> to vector<512x4xf32>
    %c1_52 = arith.constant 1 : index
    %c0_53 = arith.constant 0 : index
    %c0_54 = arith.constant 0 : index
    %c0_55 = arith.constant 0 : index
    %47 = vector.load %arg4[%c1_52, %c0_53, %c0_54, %c0_55] : memref<3x3x4x4xf32, #tpu.memory_space<vmem>>, vector<1x1x4x4xf32>
    %48 = vector.shape_cast %47 : vector<1x1x4x4xf32> to vector<4x4xf32>
    %cst_56 = arith.constant dense<0.000000e+00> : vector<512x4xf32>
    %49 = tpu.matmul %46, %48, %cst_56 {dimension_numbers = #tpu.dot_dimension_numbers<[1], [0], [0], [1], [0, 0, 1, 1], [], []>} : vector<512x4xf32>, vector<4x4xf32>, vector<512x4xf32> -> vector<512x4xf32>
    %50 = arith.addf %45, %49 : vector<512x4xf32>
    %c0_57 = arith.constant 0 : index
    %c0_58 = arith.constant 0 : index
    %51 = vector.load %arg8[%c0_57, %c0_58] : memref<512x4xf32, #tpu.memory_space<vmem>>, vector<512x4xf32>
    tpu.vector_store %arg8[%c0_57, %c0_58], %50 {strides = array<i32>} : memref<512x4xf32, #tpu.memory_space<vmem>>, vector<512x4xf32>,
    %c2_59 = arith.constant 2 : index
    %c2_60 = arith.constant 2 : index
    %c0_61 = arith.constant 0 : index
    %52 = vector.load %arg7[%c2_59, %c2_60, %c0_61] : memref<20x36x4xf32, #tpu.memory_space<vmem>>, vector<16x32x4xf32>
    %c0_62 = arith.constant 0 : index
    %c0_63 = arith.constant 0 : index
    %53 = vector.load %arg8[%c0_62, %c0_63] : memref<512x4xf32, #tpu.memory_space<vmem>>, vector<512x4xf32>
    %54 = vector.shape_cast %52 : vector<16x32x4xf32> to vector<512x4xf32>
    %c1_64 = arith.constant 1 : index
    %c1_65 = arith.constant 1 : index
    %c0_66 = arith.constant 0 : index
    %c0_67 = arith.constant 0 : index
    %55 = vector.load %arg4[%c1_64, %c1_65, %c0_66, %c0_67] : memref<3x3x4x4xf32, #tpu.memory_space<vmem>>, vector<1x1x4x4xf32>
    %56 = vector.shape_cast %55 : vector<1x1x4x4xf32> to vector<4x4xf32>
    %cst_68 = arith.constant dense<0.000000e+00> : vector<512x4xf32>
    %57 = tpu.matmul %54, %56, %cst_68 {dimension_numbers = #tpu.dot_dimension_numbers<[1], [0], [0], [1], [0, 0, 1, 1], [], []>} : vector<512x4xf32>, vector<4x4xf32>, vector<512x4xf32> -> vector<512x4xf32>
    %58 = arith.addf %53, %57 : vector<512x4xf32>
    %c0_69 = arith.constant 0 : index
    %c0_70 = arith.constant 0 : index
    %59 = vector.load %arg8[%c0_69, %c0_70] : memref<512x4xf32, #tpu.memory_space<vmem>>, vector<512x4xf32>
    tpu.vector_store %arg8[%c0_69, %c0_70], %58 {strides = array<i32>} : memref<512x4xf32, #tpu.memory_space<vmem>>, vector<512x4xf32>,
    %c2_71 = arith.constant 2 : index
    %c3_72 = arith.constant 3 : index
    %c0_73 = arith.constant 0 : index
    %60 = vector.load %arg7[%c2_71, %c3_72, %c0_73] : memref<20x36x4xf32, #tpu.memory_space<vmem>>, vector<16x32x4xf32>
    %c0_74 = arith.constant 0 : index
    %c0_75 = arith.constant 0 : index
    %61 = vector.load %arg8[%c0_74, %c0_75] : memref<512x4xf32, #tpu.memory_space<vmem>>, vector<512x4xf32>
    %62 = vector.shape_cast %60 : vector<16x32x4xf32> to vector<512x4xf32>
    %c1_76 = arith.constant 1 : index
    %c2_77 = arith.constant 2 : index
    %c0_78 = arith.constant 0 : index
    %c0_79 = arith.constant 0 : index
    %63 = vector.load %arg4[%c1_76, %c2_77, %c0_78, %c0_79] : memref<3x3x4x4xf32, #tpu.memory_space<vmem>>, vector<1x1x4x4xf32>
    %64 = vector.shape_cast %63 : vector<1x1x4x4xf32> to vector<4x4xf32>
    %cst_80 = arith.constant dense<0.000000e+00> : vector<512x4xf32>
    %65 = tpu.matmul %62, %64, %cst_80 {dimension_numbers = #tpu.dot_dimension_numbers<[1], [0], [0], [1], [0, 0, 1, 1], [], []>} : vector<512x4xf32>, vector<4x4xf32>, vector<512x4xf32> -> vector<512x4xf32>
    %66 = arith.addf %61, %65 : vector<512x4xf32>
    %c0_81 = arith.constant 0 : index
    %c0_82 = arith.constant 0 : index
    %67 = vector.load %arg8[%c0_81, %c0_82] : memref<512x4xf32, #tpu.memory_space<vmem>>, vector<512x4xf32>
    tpu.vector_store %arg8[%c0_81, %c0_82], %66 {strides = array<i32>} : memref<512x4xf32, #tpu.memory_space<vmem>>, vector<512x4xf32>,
    %c3_83 = arith.constant 3 : index
    %c1_84 = arith.constant 1 : index
    %c0_85 = arith.constant 0 : index
    %68 = vector.load %arg7[%c3_83, %c1_84, %c0_85] : memref<20x36x4xf32, #tpu.memory_space<vmem>>, vector<16x32x4xf32>
    %c0_86 = arith.constant 0 : index
    %c0_87 = arith.constant 0 : index
    %69 = vector.load %arg8[%c0_86, %c0_87] : memref<512x4xf32, #tpu.memory_space<vmem>>, vector<512x4xf32>
    %70 = vector.shape_cast %68 : vector<16x32x4xf32> to vector<512x4xf32>
    %c2_88 = arith.constant 2 : index
    %c0_89 = arith.constant 0 : index
    %c0_90 = arith.constant 0 : index
    %c0_91 = arith.constant 0 : index
    %71 = vector.load %arg4[%c2_88, %c0_89, %c0_90, %c0_91] : memref<3x3x4x4xf32, #tpu.memory_space<vmem>>, vector<1x1x4x4xf32>
    %72 = vector.shape_cast %71 : vector<1x1x4x4xf32> to vector<4x4xf32>
    %cst_92 = arith.constant dense<0.000000e+00> : vector<512x4xf32>
    %73 = tpu.matmul %70, %72, %cst_92 {dimension_numbers = #tpu.dot_dimension_numbers<[1], [0], [0], [1], [0, 0, 1, 1], [], []>} : vector<512x4xf32>, vector<4x4xf32>, vector<512x4xf32> -> vector<512x4xf32>
    %74 = arith.addf %69, %73 : vector<512x4xf32>
    %c0_93 = arith.constant 0 : index
    %c0_94 = arith.constant 0 : index
    %75 = vector.load %arg8[%c0_93, %c0_94] : memref<512x4xf32, #tpu.memory_space<vmem>>, vector<512x4xf32>
    tpu.vector_store %arg8[%c0_93, %c0_94], %74 {strides = array<i32>} : memref<512x4xf32, #tpu.memory_space<vmem>>, vector<512x4xf32>,
    %c3_95 = arith.constant 3 : index
    %c2_96 = arith.constant 2 : index
    %c0_97 = arith.constant 0 : index
    %76 = vector.load %arg7[%c3_95, %c2_96, %c0_97] : memref<20x36x4xf32, #tpu.memory_space<vmem>>, vector<16x32x4xf32>
    %c0_98 = arith.constant 0 : index
    %c0_99 = arith.constant 0 : index
    %77 = vector.load %arg8[%c0_98, %c0_99] : memref<512x4xf32, #tpu.memory_space<vmem>>, vector<512x4xf32>
    %78 = vector.shape_cast %76 : vector<16x32x4xf32> to vector<512x4xf32>
    %c2_100 = arith.constant 2 : index
    %c1_101 = arith.constant 1 : index
    %c0_102 = arith.constant 0 : index
    %c0_103 = arith.constant 0 : index
    %79 = vector.load %arg4[%c2_100, %c1_101, %c0_102, %c0_103] : memref<3x3x4x4xf32, #tpu.memory_space<vmem>>, vector<1x1x4x4xf32>
    %80 = vector.shape_cast %79 : vector<1x1x4x4xf32> to vector<4x4xf32>
    %cst_104 = arith.constant dense<0.000000e+00> : vector<512x4xf32>
    %81 = tpu.matmul %78, %80, %cst_104 {dimension_numbers = #tpu.dot_dimension_numbers<[1], [0], [0], [1], [0, 0, 1, 1], [], []>} : vector<512x4xf32>, vector<4x4xf32>, vector<512x4xf32> -> vector<512x4xf32>
    %82 = arith.addf %77, %81 : vector<512x4xf32>
    %c0_105 = arith.constant 0 : index
    %c0_106 = arith.constant 0 : index
    %83 = vector.load %arg8[%c0_105, %c0_106] : memref<512x4xf32, #tpu.memory_space<vmem>>, vector<512x4xf32>
    tpu.vector_store %arg8[%c0_105, %c0_106], %82 {strides = array<i32>} : memref<512x4xf32, #tpu.memory_space<vmem>>, vector<512x4xf32>,
    %c3_107 = arith.constant 3 : index
    %c3_108 = arith.constant 3 : index
    %c0_109 = arith.constant 0 : index
    %84 = vector.load %arg7[%c3_107, %c3_108, %c0_109] : memref<20x36x4xf32, #tpu.memory_space<vmem>>, vector<16x32x4xf32>
    %c0_110 = arith.constant 0 : index
    %c0_111 = arith.constant 0 : index
    %85 = vector.load %arg8[%c0_110, %c0_111] : memref<512x4xf32, #tpu.memory_space<vmem>>, vector<512x4xf32>
    %86 = vector.shape_cast %84 : vector<16x32x4xf32> to vector<512x4xf32>
    %c2_112 = arith.constant 2 : index
    %c2_113 = arith.constant 2 : index
    %c0_114 = arith.constant 0 : index
    %c0_115 = arith.constant 0 : index
    %87 = vector.load %arg4[%c2_112, %c2_113, %c0_114, %c0_115] : memref<3x3x4x4xf32, #tpu.memory_space<vmem>>, vector<1x1x4x4xf32>
    %88 = vector.shape_cast %87 : vector<1x1x4x4xf32> to vector<4x4xf32>
    %cst_116 = arith.constant dense<0.000000e+00> : vector<512x4xf32>
    %89 = tpu.matmul %86, %88, %cst_116 {dimension_numbers = #tpu.dot_dimension_numbers<[1], [0], [0], [1], [0, 0, 1, 1], [], []>} : vector<512x4xf32>, vector<4x4xf32>, vector<512x4xf32> -> vector<512x4xf32>
    %90 = arith.addf %85, %89 : vector<512x4xf32>
    %c0_117 = arith.constant 0 : index
    %c0_118 = arith.constant 0 : index
    %91 = vector.load %arg8[%c0_117, %c0_118] : memref<512x4xf32, #tpu.memory_space<vmem>>, vector<512x4xf32>
    tpu.vector_store %arg8[%c0_117, %c0_118], %90 {strides = array<i32>} : memref<512x4xf32, #tpu.memory_space<vmem>>, vector<512x4xf32>,
    %c0_119 = arith.constant 0 : index
    %c0_120 = arith.constant 0 : index
    %92 = vector.load %arg8[%c0_119, %c0_120] : memref<512x4xf32, #tpu.memory_space<vmem>>, vector<512x4xf32>
    %c0_121 = arith.constant 0 : index
    %c0_122 = arith.constant 0 : index
    %93 = vector.load %arg5[%c0_121, %c0_122] : memref<1x4xf32, #tpu.memory_space<vmem>>, vector<1x4xf32>
    %94 = vector.broadcast %93 : vector<1x4xf32> to vector<512x4xf32>
    %95 = arith.addf %92, %94 : vector<512x4xf32>
    %96 = vector.shape_cast %95 : vector<512x4xf32> to vector<16x32x4xf32>
    %c0_123 = arith.constant 0 : index
    %c0_124 = arith.constant 0 : index
    %c0_125 = arith.constant 0 : index
    %c0_126 = arith.constant 0 : index
    %97 = vector.load %arg6[%c0_123, %c0_124, %c0_125, %c0_126] : memref<1x16x32x4xf32, #tpu.memory_space<vmem>>, vector<1x16x32x4xf32>
    %98 = vector.shape_cast %97 : vector<1x16x32x4xf32> to vector<16x32x4xf32>
    %99 = vector.shape_cast %96 : vector<16x32x4xf32> to vector<1x16x32x4xf32>
    tpu.vector_store %arg6[%c0_123, %c0_124, %c0_125, %c0_126], %99 {strides = array<i32>} : memref<1x16x32x4xf32, #tpu.memory_space<vmem>>, vector<1x16x32x4xf32>,
    return
  }
  func.func @transform_0(%arg0: i32, %arg1: i32) -> (i32, i32, i32, i32) {
    %c0_i32 = arith.constant 0 : i32
    %c0_i32_0 = arith.constant 0 : i32
    %c0_i32_1 = arith.constant 0 : i32
    return %arg0, %arg1, %c0_i32, %c0_i32_0 : i32, i32, i32, i32
  }
  func.func @transform_1(%arg0: i32, %arg1: i32) -> (i32, i32, i32, i32) {
    %c1_i32 = arith.constant 1 : i32
    %0 = arith.addi %arg1, %c1_i32 : i32
    %c4_i32 = arith.constant 4 : i32
    %1 = arith.muli %0, %c4_i32 : i32
    %c0_i32 = arith.constant 0 : i32
    %c0_i32_0 = arith.constant 0 : i32
    %c0_i32_1 = arith.constant 0 : i32
    return %arg0, %1, %c0_i32, %c0_i32_0 : i32, i32, i32, i32
  }
  func.func @transform_2(%arg0: i32, %arg1: i32) -> (i32, i32, i32, i32) {
    %c0_i32 = arith.constant 0 : i32
    %c0_i32_0 = arith.constant 0 : i32
    %c0_i32_1 = arith.constant 0 : i32
    %c0_i32_2 = arith.constant 0 : i32
    %c0_i32_3 = arith.constant 0 : i32
    return %c0_i32, %c0_i32_0, %c0_i32_1, %c0_i32_2 : i32, i32, i32, i32
  }
  func.func @transform_3(%arg0: i32, %arg1: i32) -> (i32, i32) {
    %c0_i32 = arith.constant 0 : i32
    %c0_i32_0 = arith.constant 0 : i32
    %c0_i32_1 = arith.constant 0 : i32
    return %c0_i32, %c0_i32_0 : i32, i32
  }
  func.func @transform_4(%arg0: i32, %arg1: i32) -> (i32, i32, i32, i32) {
    %c0_i32 = arith.constant 0 : i32
    %c0_i32_0 = arith.constant 0 : i32
    %c0_i32_1 = arith.constant 0 : i32
    return %arg0, %arg1, %c0_i32, %c0_i32_0 : i32, i32, i32, i32
  }
}

</mosaic_0001>

<bundles_post_ra>
// kernel: tpu_custom_call.1
= control target key start
LH: loop header
LB: loop body
LE: loop exit
PB: predicated region body
PF: predicated region fallthrough
CT: control target
= control target key end

     0   :  { %s13370_s15 = smov 0   ;;  %s13372_s16 = smov 0   ;;  %s16177_s0 = inlined_call_operand.vmem [shape: f32[2,18,18,4], index: 0, kind: input, shape index: {}]   ;;  %s16178_s1 = inlined_call_operand.vmem [shape: f32[2,18,18,4], index: 1, kind: input, shape index: {}]   ;;  %s16179_s2 = inlined_call_operand.vmem [shape: f32[3,3,4,4], index: 2, kind: input, shape index: {}]   ;;  %s16180_s3 = inlined_call_operand.vmem [shape: f32[1,4], index: 3, kind: input, shape index: {}]   ;;  %s16181_s4 = inlined_call_operand.vmem [shape: f32[2,32,32,4], index: 4, kind: output, shape index: {}]  }
   0x1   :  { %s13374_s17 = smov 0   ;;  %s13376_s18 = smov 0  }
   0x2   :  { %s13378_s19 = smov 0  }
   0x3 LB: > { %s23_s20 = sadd.s32 1, %s13332_s17  ;;  %s26_s21 = sadd.s32 1, %s13336_s18  ;;  %s13340_s19 = sphi %s13378_s19, %s14_s19   ;;  %s13336_s18 = sphi %s13376_s18, %s16187_s18   ;;  %s13332_s17 = sphi %s13374_s17, %s16186_s17   ;;  %s13328_s16 = sphi %s13372_s16, %s16185_s16   ;;  %s13324_s15 = sphi %s13370_s15, %s16184_s15  }
   0x4   : > { %p24_p0 = scmp.ge.s32.totalorder %s23_s20, 2  ;;  %p11147_p1 = scmp.ge.s32.totalorder %s13340_s19, 1 }
   0x5   : > { %p220_p2 = scmp.lt.s32.totalorder %s13340_s19, 5 }
   0x6   : > { %s16189_s20 = smov (%p24_p0, %s23_s20), 0  ;;  %s16191_s21 = smov (!%p24_p0, %s26_s21), %s13336_s18 }
   0x7   : > { %p221_p3 = pnand %p11147_p1, %p220_p2  ;;  %p28_p4 = scmp.ge.s32.totalorder %s16191_s21, 2 }
   0x8   : > { %v3406_v0 = vld [vmem:[%s16179_s2] sm:$0xf] (!%p221_p3)  ;;  %vm3599_vm0 = vcmask (!%p221_p3), 1043456   ;;  %s13406_s24 = sshll.u32 (!%p221_p3), %s13324_s15, 3  ;;  %p279_p5 = scmp.lt.s32.totalorder (!%p221_p3), %s13328_s16, 1  ;;  %v372_v1 = vlaneseq (!%p221_p3)  ;;  %vm2552_vm1 = vcmask (!%p221_p3), 31744  }
   0x9   : > { %s16193_s21 = smov (%p28_p4, %s16191_s21), 0  ;;  %224 = sbr.rel (%p221_p3) target bundleno = 953 (0x3b9), region = 36 }
   0xa   : > { %13239 = vmatprep.subr.msk.mxu1 (!%p221_p3), %vm3599_vm0, %v3406_v0  ;;  %p281_p6 = scmp.lt.s32.totalorder (!%p221_p3), %s13406_s24, 17  ;;  %12357 = vmatprep.subr.msk.mxu0 (!%p221_p3), %vm3599_vm0, %v3406_v0  ;;  %v13342_v2 = vmov (!%p221_p3), 1966171168   ;;  %v13343_v4 = vmov (!%p221_p3), 1983009808   ;;  %v373_v7 = vshrl.u32 (!%p221_p3), %v372_v1, 7 }
   0xb   : > { %13240 = vmatpush3.msk.msra.mxu1 (!%p221_p3), %vm3599_vm0, %v3406_v0  ;;  %v370_v3 = vunpack.c.l.s4 (!%p221_p3), %v13342_v2  ;;  %v1907_v5 = vunpack.c.l.s4 (!%p221_p3), %v13343_v4  ;;  %v13417_v6 = vld [vmem:[%s16179_s2 + $0x4] sm:$0xf] (!%p221_p3)  ;;  %12358 = vmatpush3.msk.msra.mxu0 (!%p221_p3), %vm3599_vm0, %v3406_v0  ;;  %v13426_v8 = vld [vmem:[%s16179_s2 + $0x8] sm:$0xf] (!%p221_p3)  ;;  %s11771_s11 = sadd.s32 (!%p221_p3), 8, %s13406_s24  ;;  %vm2557_vm2 = vcmask (!%p221_p3), 27648  }
   0xc   : > { %12455 = vmatprep.subr.msk.mxu1 (!%p221_p3), %vm3599_vm0, %v13417_v6  ;;  %12553 = vmatprep.subr.msk.mxu0 (!%p221_p3), %vm3599_vm0, %v13426_v8  ;;  %v13441_v13 = vsub.s32 (!%p221_p3), 0, %v373_v7  ;;  %p13464_p7 = scmp.lt.s32.totalorder (!%p221_p3), %s11771_s11, 17 }
   0xd   : > { %v371_v9 = vunpack.c.0.s8 (!%p221_p3), %v370_v3  ;;  %v1908_v10 = vunpack.c.0.s8 (!%p221_p3), %v1907_v5 }
   0xf   : > { %v13433_v11 = vsub.s32 (!%p221_p3), %v371_v9, %v373_v7  ;;  %v13443_v14 = vsub.s32 (!%p221_p3), %v1908_v10, %v373_v7 }
  0x10   : > { %s16195_s16 = smov (!%p279_p5, %s13328_s16), 1  ;;  %s16197_s11 = smov (!%p13464_p7, %s11771_s11), 17 }
  0x11   : > { %s282_s27 = scalar_select %p281_p6, %s13406_s24, 17 }
  0x12   : > { %s13242_s30 = smul.u32 54, %s16195_s16 }
  0x13   : > { %s13241_s5 = smul.u32 3, %s282_s27  ;;  %s11153_s27 = sshll.u32 %s13324_s15, 4 }
  0x14   : > { %s13243_s13 = smul.u32 3, %s16197_s11  ;;  %p15811_p8 = scmp.lt.s32.totalorder %s11153_s27, 31 }
  0x15   : > { %s285_s6 = sadd.s32 %s13242_s30, %s13241_s5 }
  0x16   : > { %s11149_s7 = sshll.u32 %s285_s6, 3  ;;  %s13494_s14 = sadd.s32 %s13243_s13, %s13242_s30 }
  0x17   : > { %s13438_s10 = scalar_lea.vmem %s16177_s0, %s11149_s7  ;;  %s11152_s26 = sshll.u32 %s13494_s14, 3 }
  0x18   : > { %v332_v12 = vld [vmem:[%s13438_s10 + $0x60] sm:$0xff]  ;;  %v333_v15 = vld [vmem:[%s13438_s10 + $0x68] sm:$0xff]  ;;  %v13447_v16 = vld [vmem:[%s13438_s10 + $0x78] sm:$0xff]  ;;  %s13947_s29 = scalar_lea.vmem %s16178_s1, %s11152_s26  ;;  %s16199_s27 = smov (!%p15811_p8, %s11153_s27), 31 }
  0x19   : > { %v848_v17 = vcombine.high %v332_v12, %v332_v12  ;;  %v855_v18 = vrot.slane %v332_v12, %v13433_v11  ;;  %v904_v19 = vrot.slane %v333_v15, %v13433_v11  ;;  %v897_v20 = vcombine.high %v333_v15, %v333_v15  ;;  %v11161_v21 = vld.sshfl [vmem:[%s13438_s10 + $0x70] sm:$0x11 pattern:$0x75316420]  ;;  %s11154_s15 = sshll.u32 %s16199_s27, 2 }
  0x1a   : > { %v953_v22 = vcombine.high %v11161_v21, %v11161_v21  ;;  %v960_v23 = vrot.slane %v11161_v21, %v13433_v11  ;;  %v968_v24 = vcombine.high %v13447_v16, %v13447_v16  ;;  %v13458_v25 = vrot.slane %v13447_v16, %v13433_v11 }
  0x1b   : > { %v862_v26 = vrot.slane %v848_v17, %v13433_v11  ;;  %v863_v27 = vcombine.high %v855_v18, %v855_v18  ;;  %v871_v28 = vrot.slane %v855_v18, %v13433_v11  ;;  %v912_v29 = vcombine.high %v904_v19, %v904_v19 }
  0x1c   : > { %v920_v30 = vrot.slane %v904_v19, %v13433_v11  ;;  %v911_v31 = vrot.slane %v897_v20, %v13433_v11  ;;  %v967_v32 = vrot.slane %v953_v22, %v13433_v11  ;;  %v1683_v33 = vrot.slane %v960_v23, %v13441_v13 }
  0x1d   : > { %v864_v34 = vcombine.high %v862_v26, %v862_v26  ;;  %v878_v35 = vrot.slane %v862_v26, %v13433_v11  ;;  %v885_v36 = vrot.slane %v863_v27, %v13433_v11  ;;  %v893_v37 = vcombine.high %v871_v28, %v871_v28  ;;  %v320_v26 = vld [vmem:[%s13438_s10] sm:$0xff] }
  0x1e   : > { %v1619_v38 = vrot.slane %v871_v28, %v13441_v13  ;;  %v934_v39 = vrot.slane %v912_v29, %v13433_v11  ;;  %v942_v40 = vcombine.high %v920_v30, %v920_v30  ;;  %v1651_v41 = vrot.slane %v920_v30, %v13441_v13 }
  0x1f   : > { %v892_v42 = vrot.slane %v864_v34, %v13433_v11  ;;  %v894_v43 = vcombine.high %v878_v35, %v878_v35  ;;  %v895_v44 = vcombine.high %v885_v36, %v885_v36  ;;  %v1623_v45 = vrot.slane %v885_v36, %v13441_v13 }
  0x20   : > { %v1627_v46 = vrot.slane %v893_v37, %v13441_v13  ;;  %v1635_v47 = vrot.slane %v878_v35, %v13441_v13  ;;  %v944_v48 = vcombine.high %v934_v39, %v934_v39  ;;  %v1655_v49 = vrot.slane %v934_v39, %v13441_v13 }
  0x21   : > { %v896_v50 = vcombine.high %v892_v42, %v892_v42  ;;  %v1631_v51 = vrot.slane %v895_v44, %v13441_v13  ;;  %v1639_v52 = vrot.slane %v892_v42, %v13441_v13  ;;  %v1643_v53 = vrot.slane %v894_v43, %v13441_v13  ;;  %v13536_v44 = vld [vmem:[%s13438_s10 + $0x80] sm:$0xff] }
  0x22   : > { %v2208_v54 = vcombine.low %v1619_v38, %v1623_v45  ;;  %v1659_v55 = vrot.slane %v942_v40, %v13441_v13  ;;  %v1663_v56 = vrot.slane %v944_v48, %v13441_v13  ;;  %v2242_v57 = vcombine.low %v1651_v41, %v1655_v49 }
  0x23   : > { %v1647_v58 = vrot.slane %v896_v50, %v13441_v13  ;;  %v2209_v59 = vcombine.low %v1627_v46, %v1631_v51  ;;  %v2225_v60 = vcombine.low %v1635_v47, %v1639_v52  ;;  %v913_v61 = vcombine.high %v911_v31, %v911_v31 }
  0x24   : > { %v2216_v62 = vrot.slane %v2208_v54, %v13443_v14  ;;  %v2243_v63 = vcombine.low %v1659_v55, %v1663_v56  ;;  %v2250_v0 = vrot.slane %v2242_v57, %v13443_v14  ;;  %v927_v1 = vrot.slane %v911_v31, %v13433_v11 }
  0x25   : > { %v2223_v2 = vrot.slane %v2209_v59, %v13443_v14  ;;  %v2226_v3 = vcombine.low %v1643_v53, %v1647_v58  ;;  %v2233_v4 = vrot.slane %v2225_v60, %v13443_v14  ;;  %v941_v5 = vrot.slane %v913_v61, %v13433_v11 }
  0x26   : > { %v2257_v7 = vrot.slane %v2243_v63, %v13443_v14  ;;  %v943_v9 = vcombine.high %v927_v1, %v927_v1  ;;  %v1667_v10 = vrot.slane %v927_v1, %v13441_v13  ;;  %v1687_v12 = vrot.slane %v967_v32, %v13441_v13 }
  0x27   : > { %v2224_v15 = vcombine.low %v2216_v62, %v2223_v2  ;;  %v2240_v17 = vrot.slane %v2226_v3, %v13443_v14  ;;  %v945_v18 = vcombine.high %v941_v5, %v941_v5  ;;  %v1671_v19 = vrot.slane %v941_v5, %v13441_v13 }
  0x28   : > { %v2258_v20 = vcombine.low %v2250_v0, %v2257_v7  ;;  %v1675_v21 = vrot.slane %v943_v9, %v13441_v13  ;;  %v2276_v22 = vcombine.low %v1683_v33, %v1687_v12  ;;  %v982_v23 = vrot.slane %v968_v24, %v13433_v11 }
  0x29   : > { %v2241_v27 = vcombine.low %v2233_v4, %v2240_v17  ;;  %2599 = vst.msk [vmem:[#allocation2 + $0x168] sm:$0xff] %vm2552_vm1, %v2224_v15  ;;  %2594 = vst.msk [vmem:[#allocation2 + $0x140] sm:$0xff] %vm2552_vm1, %v2224_v15  ;;  %v1679_v28 = vrot.slane %v945_v18, %v13441_v13  ;;  %v2259_v29 = vcombine.low %v1667_v10, %v1671_v19 }
  0x2a   : > { %v983_v30 = vcombine.high %v13458_v25, %v13458_v25  ;;  %2601 = vst.msk [vmem:[#allocation2 + $0x178] sm:$0xff] %vm2552_vm1, %v2258_v20  ;;  %2596 = vst.msk [vmem:[#allocation2 + $0x150] sm:$0xff] %vm2552_vm1, %v2258_v20  ;;  %v2283_v31 = vrot.slane %v2276_v22, %v13443_v14  ;;  %v984_v16 = vcombine.high %v982_v23, %v982_v23 }
  0x2b   : > { %v991_v24 = vrot.slane %v13458_v25, %v13433_v11  ;;  %v998_v32 = vrot.slane %v982_v23, %v13433_v11  ;;  %2600 = vst.msk [vmem:[#allocation2 + $0x170] sm:$0xff] %vm2552_vm1, %v2241_v27  ;;  %2595 = vst.msk [vmem:[#allocation2 + $0x148] sm:$0xff] %vm2552_vm1, %v2241_v27  ;;  %v2260_v33 = vcombine.low %v1675_v21, %v1679_v28  ;;  %v321_v21 = vld [vmem:[%s13438_s10 + $0x8] sm:$0xff] }
  0x2c   : > { %v2267_v34 = vrot.slane %v2259_v29, %v13443_v14  ;;  %v1005_v35 = vrot.slane %v983_v30, %v13433_v11  ;;  %v368_v36 = vcombine.high %v320_v26, %v320_v26  ;;  %2603 = vst.msk [vmem:[#allocation2 + $0x188] sm:$0xf] %vm2557_vm2, %v2283_v31  ;;  %2598 = vst.msk [vmem:[#allocation2 + $0x160] sm:$0xf] %vm2557_vm2, %v2283_v31 }
  0x2d   : > { %v1012_v37 = vrot.slane %v984_v16, %v13433_v11  ;;  %v1013_v25 = vcombine.high %v991_v24, %v991_v24  ;;  %v1014_v38 = vcombine.high %v998_v32, %v998_v32  ;;  %v1691_v39 = vrot.slane %v991_v24, %v13441_v13 }
  0x2e   : > { %v2274_v40 = vrot.slane %v2260_v33, %v13443_v14  ;;  %v1015_v41 = vcombine.high %v1005_v35, %v1005_v35  ;;  %v1695_v42 = vrot.slane %v1005_v35, %v13441_v13  ;;  %v1707_v43 = vrot.slane %v998_v32, %v13441_v13 }
  0x2f   : > { %v1016_v45 = vcombine.high %v1012_v37, %v1012_v37  ;;  %v1699_v46 = vrot.slane %v1013_v25, %v13441_v13  ;;  %v1711_v47 = vrot.slane %v1012_v37, %v13441_v13  ;;  %v1715_v48 = vrot.slane %v1014_v38, %v13441_v13 }
  0x30   : > { %v2275_v49 = vcombine.low %v2267_v34, %v2274_v40  ;;  %v1703_v50 = vrot.slane %v1015_v41, %v13441_v13  ;;  %v2284_v51 = vcombine.low %v1691_v39, %v1695_v42  ;;  %v375_v52 = vrot.slane %v320_v26, %v13433_v11 }
  0x31   : > { %v1719_v53 = vrot.slane %v1016_v45, %v13441_v13  ;;  %v2301_v54 = vcombine.low %v1707_v43, %v1711_v47  ;;  %v382_v55 = vrot.slane %v368_v36, %v13433_v11  ;;  %v1024_v56 = vrot.slane %v13536_v44, %v13433_v11 }
  0x32   : > { %2602 = vst.msk [vmem:[#allocation2 + $0x180] sm:$0xff] %vm2552_vm1, %v2275_v49  ;;  %2597 = vst.msk [vmem:[#allocation2 + $0x158] sm:$0xff] %vm2552_vm1, %v2275_v49  ;;  %v2285_v57 = vcombine.low %v1699_v46, %v1703_v50  ;;  %v2292_v58 = vrot.slane %v2284_v51, %v13443_v14  ;;  %v383_v59 = vcombine.high %v375_v52, %v375_v52  ;;  %v3310_v61 = vld [vmem:[#allocation2 + $0x169] sm:$0xff]  ;;  %v3311_v62 = vld [vmem:[#allocation2 + $0x171] sm:$0xff] }
  0x33   : > { %v391_v60 = vrot.slane %v375_v52, %v13433_v11  ;;  %v2302_v63 = vcombine.low %v1715_v48, %v1719_v53  ;;  %v2309_v0 = vrot.slane %v2301_v54, %v13443_v14  ;;  %v384_v1 = vcombine.high %v382_v55, %v382_v55  ;;  %12407 = vmatprep.mubr.msk.f32.mxu1 %vm2552_vm1, %v3310_v61 }
  0x34   : > { %v398_v2 = vrot.slane %v382_v55, %v13433_v11  ;;  %v2299_v3 = vrot.slane %v2285_v57, %v13443_v14  ;;  %v405_v4 = vrot.slane %v383_v59, %v13433_v11  ;;  %12408 = vmatmul.mubr.msk.f32.vlgmr.msra.gmra.mrb[0].mxu1 %vm2552_vm1, %v3311_v62  ;;  %v1032_v29 = vcombine.high %v1024_v56, %v1024_v56 }
  0x35   : > { %v413_v5 = vcombine.high %v391_v60, %v391_v60  ;;  %v1331_v7 = vrot.slane %v391_v60, %v13441_v13  ;;  %v2316_v9 = vrot.slane %v2302_v63, %v13443_v14  ;;  %v412_v10 = vrot.slane %v384_v1, %v13433_v11  ;;  %12456 = vmatpush3.msk.msra.mxu1 %vm3599_vm0, %v13417_v6 }
  0x36   : > { %v414_v12 = vcombine.high %v398_v2, %v398_v2  ;;  %v1347_v15 = vrot.slane %v398_v2, %v13441_v13  ;;  %v2300_v17 = vcombine.low %v2292_v58, %v2299_v3  ;;  %v415_v18 = vcombine.high %v405_v4, %v405_v4  ;;  %v11162_v58 = vld.sshfl [vmem:[%s13438_s10 + $0x88] sm:$0x11 pattern:$0x75316420] }
  0x37   : > { %v1335_v19 = vrot.slane %v405_v4, %v13441_v13  ;;  %v1339_v20 = vrot.slane %v413_v5, %v13441_v13  ;;  %v2317_v22 = vcombine.low %v2309_v0, %v2316_v9  ;;  %v416_v23 = vcombine.high %v412_v10, %v412_v10 }
  0x38   : > { %v1351_v26 = vrot.slane %v412_v10, %v13441_v13  ;;  %v1355_v27 = vrot.slane %v414_v12, %v13441_v13  ;;  %2604 = vst.msk [vmem:[#allocation2 + $0x190] sm:$0xff] %vm2552_vm1, %v2300_v17  ;;  %2609 = vst.msk [vmem:[#allocation2 + $0x1b8] sm:$0xff] %vm2552_vm1, %v2300_v17  ;;  %v1343_v28 = vrot.slane %v415_v18, %v13441_v13 }
  0x39   : > { %v1904_v6 = vcombine.low %v1331_v7, %v1335_v19  ;;  %v1040_v30 = vrot.slane %v1024_v56, %v13433_v11  ;;  %v3312_v31 = vld [vmem:[#allocation2 + $0x179] sm:$0xff]  ;;  %v3313_v16 = vld [vmem:[#allocation2 + $0x181] sm:$0xff]  ;;  %2605 = vst.msk [vmem:[#allocation2 + $0x198] sm:$0xff] %vm2552_vm1, %v2317_v22  ;;  %2610 = vst.msk [vmem:[#allocation2 + $0x1c0] sm:$0xff] %vm2552_vm1, %v2317_v22  ;;  %v1359_v24 = vrot.slane %v416_v23, %v13441_v13 }
  0x3a   : > { %v1921_v32 = vcombine.low %v1347_v15, %v1351_v26  ;;  %v424_v33 = vrot.slane %v321_v21, %v13433_v11  ;;  %v1017_v34 = vcombine.high %v13536_v44, %v13536_v44  ;;  %12410 = vmatprep.mubr.msk.f32.mxu1 %vm2552_vm1, %v3312_v31  ;;  %v1905_v35 = vcombine.low %v1339_v20, %v1343_v28  ;;  %v11157_v31 = vld.sshfl [vmem:[%s13438_s10 + $0x10] sm:$0x11 pattern:$0x75316420] }
  0x3b   : > { %v1912_v36 = vrot.slane %v1904_v6, %v13443_v14  ;;  %v1054_v37 = vrot.slane %v1032_v29, %v13433_v11  ;;  %v1062_v25 = vcombine.high %v1040_v30, %v1040_v30  ;;  %12411 = vmatmul.mubr.msk.f32.gmra.mrb[2].mxu1 %vm2552_vm1, %v3313_v16  ;;  %v1922_v38 = vcombine.low %v1355_v27, %v1359_v24  ;;  %v11364_v16 = vld [vmem:[%s16179_s2 + $0xc] sm:$0xf] }
  0x3c   : > { %v1929_v39 = vrot.slane %v1921_v32, %v13443_v14  ;;  %v1723_v40 = vrot.slane %v1040_v30, %v13441_v13  ;;  %v432_v41 = vcombine.high %v424_v33, %v424_v33  ;;  %v1919_v42 = vrot.slane %v1905_v35, %v13443_v14  ;;  %v323_v35 = vld [vmem:[%s13438_s10 + $0x18] sm:$0xff]  ;;  %12651 = vmatprep.subr.msk.mxu1 %vm3599_vm0, %v11364_v16 }
  0x3d   : > { %v1064_v43 = vcombine.high %v1054_v37, %v1054_v37  ;;  %v1727_v44 = vrot.slane %v1054_v37, %v13441_v13  ;;  %v1731_v45 = vrot.slane %v1062_v25, %v13441_v13  ;;  %v1936_v46 = vrot.slane %v1922_v38, %v13443_v14 }
  0x3e   : > { %v440_v47 = vrot.slane %v424_v33, %v13433_v11  ;;  %v454_v48 = vrot.slane %v432_v41, %v13433_v11  ;;  %v1031_v49 = vrot.slane %v1017_v34, %v13433_v11  ;;  %v1920_v50 = vcombine.low %v1912_v36, %v1919_v42 }
  0x3f   : > { %v1735_v51 = vrot.slane %v1064_v43, %v13441_v13  ;;  %v2318_v52 = vcombine.low %v1723_v40, %v1727_v44  ;;  %v417_v53 = vcombine.high %v321_v21, %v321_v21  ;;  %v1937_v54 = vcombine.low %v1929_v39, %v1936_v46 }
  0x40   : > { %v462_v55 = vcombine.high %v440_v47, %v440_v47  ;;  %v464_v56 = vcombine.high %v454_v48, %v454_v48  ;;  %v1363_v57 = vrot.slane %v440_v47, %v13441_v13  ;;  %v3314_v59 = vld [vmem:[#allocation2 + $0x191] sm:$0xff]  ;;  %2559 = vst.msk [vmem:[#allocation2 + $0x28] sm:$0xff] %vm2552_vm1, %v1920_v50  ;;  %v1367_v62 = vrot.slane %v454_v48, %v13441_v13 }
  0x41   : > { %v2319_v60 = vcombine.low %v1731_v45, %v1735_v51  ;;  %v2326_v61 = vrot.slane %v2318_v52, %v13443_v14  ;;  %v1033_v63 = vcombine.high %v1031_v49, %v1031_v49  ;;  %12413 = vmatprep.mubr.msk.f32.mxu1 %vm2552_vm1, %v3314_v59  ;;  %2560 = vst.msk [vmem:[#allocation2 + $0x30] sm:$0xff] %vm2552_vm1, %v1937_v54  ;;  %v324_v52 = vld [vmem:[%s13438_s10 + $0x20] sm:$0xff] }
  0x42   : > { %v1371_v0 = vrot.slane %v462_v55, %v13441_v13  ;;  %v1375_v1 = vrot.slane %v464_v56, %v13441_v13  ;;  %v1047_v2 = vrot.slane %v1031_v49, %v13433_v11  ;;  %v431_v3 = vrot.slane %v417_v53, %v13433_v11 }
  0x43   : > { %v2333_v4 = vrot.slane %v2319_v60, %v13443_v14  ;;  %v1938_v5 = vcombine.low %v1363_v57, %v1367_v62  ;;  %v1061_v7 = vrot.slane %v1033_v63, %v13433_v11  ;;  %v1073_v9 = vcombine.high %v11162_v58, %v11162_v58 }
  0x44   : > { %v1939_v10 = vcombine.low %v1371_v0, %v1375_v1  ;;  %v1063_v12 = vcombine.high %v1047_v2, %v1047_v2  ;;  %v1739_v15 = vrot.slane %v1047_v2, %v13441_v13  ;;  %v433_v17 = vcombine.high %v431_v3, %v431_v3 }
  0x45   : > { %v2334_v18 = vcombine.low %v2326_v61, %v2333_v4  ;;  %v1946_v19 = vrot.slane %v1938_v5, %v13443_v14  ;;  %v1065_v20 = vcombine.high %v1061_v7, %v1061_v7  ;;  %v1743_v21 = vrot.slane %v1061_v7, %v13441_v13 }
  0x46   : > { %v1953_v22 = vrot.slane %v1939_v10, %v13443_v14  ;;  %v1747_v23 = vrot.slane %v1063_v12, %v13441_v13  ;;  %v447_v26 = vrot.slane %v431_v3, %v13433_v11  ;;  %v461_v27 = vrot.slane %v433_v17, %v13433_v11 }
  0x47   : > { %2606 = vst.msk [vmem:[#allocation2 + $0x1a0] sm:$0xff] %vm2552_vm1, %v2334_v18  ;;  %2611 = vst.msk [vmem:[#allocation2 + $0x1c8] sm:$0xff] %vm2552_vm1, %v2334_v18  ;;  %v1751_v28 = vrot.slane %v1065_v20, %v13441_v13  ;;  %v2335_v6 = vcombine.low %v1739_v15, %v1743_v21  ;;  %v1080_v29 = vrot.slane %v11162_v58, %v13433_v11  ;;  %v13660_v21 = vld.sshfl [vmem:[%s13438_s10 + $0x28] sm:$0x11 pattern:$0x75316420] }
  0x48   : > { %v1087_v30 = vrot.slane %v1073_v9, %v13433_v11  ;;  %v1954_v24 = vcombine.low %v1946_v19, %v1953_v22  ;;  %v463_v32 = vcombine.high %v447_v26, %v447_v26  ;;  %v465_v33 = vcombine.high %v461_v27, %v461_v27  ;;  %v3278_v36 = vld [vmem:[#allocation2 + $0x29] sm:$0xff] }
  0x49   : > { %v1379_v34 = vrot.slane %v447_v26, %v13441_v13  ;;  %v2336_v37 = vcombine.low %v1747_v23, %v1751_v28  ;;  %v2343_v25 = vrot.slane %v2335_v6, %v13443_v14  ;;  %v1383_v38 = vrot.slane %v461_v27, %v13441_v13  ;;  %12359 = vmatprep.mubr.msk.f32.mxu0 %vm2552_vm1, %v3278_v36  ;;  %v11430_v22 = vld [vmem:[%s16179_s2 + $0x10] sm:$0xf] }
  0x4a   : > { %v1755_v39 = vrot.slane %v1080_v29, %v13441_v13  ;;  %2561 = vst.msk [vmem:[#allocation2 + $0x38] sm:$0xff] %vm2552_vm1, %v1954_v24  ;;  %v1387_v40 = vrot.slane %v463_v32, %v13441_v13  ;;  %v1391_v41 = vrot.slane %v465_v33, %v13441_v13  ;;  %v1759_v42 = vrot.slane %v1087_v30, %v13441_v13 }
  0x4b   : > { %v473_v43 = vcombine.high %v11157_v31, %v11157_v31  ;;  %v2350_v44 = vrot.slane %v2336_v37, %v13443_v14  ;;  %v1955_v45 = vcombine.low %v1379_v34, %v1383_v38  ;;  %v480_v46 = vrot.slane %v11157_v31, %v13433_v11  ;;  %v3318_v34 = vld [vmem:[#allocation2 + $0x1b9] sm:$0xff] }
  0x4c   : > { %v488_v47 = vcombine.high %v323_v35, %v323_v35  ;;  %v1956_v48 = vcombine.low %v1387_v40, %v1391_v41  ;;  %v2352_v49 = vcombine.low %v1755_v39, %v1759_v42  ;;  %v495_v51 = vrot.slane %v323_v35, %v13433_v11 }
  0x4d   : > { %v487_v50 = vrot.slane %v473_v43, %v13433_v11  ;;  %v2351_v53 = vcombine.low %v2343_v25, %v2350_v44  ;;  %v1963_v54 = vrot.slane %v1955_v45, %v13443_v14  ;;  %v1395_v55 = vrot.slane %v480_v46, %v13441_v13 }
  0x4e   : > { %v502_v56 = vrot.slane %v488_v47, %v13433_v11  ;;  %v3315_v57 = vld [vmem:[#allocation2 + $0x199] sm:$0xff]  ;;  %v1970_v58 = vrot.slane %v1956_v48, %v13443_v14  ;;  %v2359_v59 = vrot.slane %v2352_v49, %v13443_v14  ;;  %v503_v61 = vcombine.high %v495_v51, %v495_v51  ;;  %v3319_v49 = vld [vmem:[#allocation2 + $0x1c1] sm:$0xff] }
  0x4f   : > { %v1399_v60 = vrot.slane %v487_v50, %v13441_v13  ;;  %12414 = vmatmul.mubr.msk.f32.gmra.mrb[4].mxu1 %vm2552_vm1, %v3315_v57  ;;  %2607 = vst.msk [vmem:[#allocation2 + $0x1a8] sm:$0xff] %vm2552_vm1, %v2351_v53  ;;  %2612 = vst.msk [vmem:[#allocation2 + $0x1d0] sm:$0xff] %vm2552_vm1, %v2351_v53  ;;  %v511_v63 = vrot.slane %v495_v51, %v13433_v11  ;;  %v544_v1 = vrot.slane %v324_v52, %v13433_v11 }
  0x50   : > { %v504_v62 = vcombine.high %v502_v56, %v502_v56  ;;  %v518_v0 = vrot.slane %v502_v56, %v13433_v11  ;;  %v1971_v2 = vcombine.low %v1963_v54, %v1970_v58  ;;  %2608 = vst.msk [vmem:[#allocation2 + $0x1b0] sm:$0xf] %vm2557_vm2, %v2359_v59  ;;  %2613 = vst.msk [vmem:[#allocation2 + $0x1d8] sm:$0xf] %vm2557_vm2, %v2359_v59 }
  0x51   : > { %v1972_v3 = vcombine.low %v1395_v55, %v1399_v60  ;;  %v525_v4 = vrot.slane %v503_v61, %v13433_v11  ;;  %v537_v5 = vcombine.high %v324_v52, %v324_v52  ;;  %v3279_v7 = vld [vmem:[#allocation2 + $0x31] sm:$0xff]  ;;  %v533_v10 = vcombine.high %v511_v63, %v511_v63 }
  0x52   : > { %v532_v9 = vrot.slane %v504_v62, %v13433_v11  ;;  %v534_v12 = vcombine.high %v518_v0, %v518_v0  ;;  %v1403_v15 = vrot.slane %v511_v63, %v13441_v13  ;;  %12360 = vmatmul.mubr.msk.f32.vlgmr.msra.gmra.mrb[0].mxu0 %vm2552_vm1, %v3279_v7  ;;  %2562 = vst.msk [vmem:[#allocation2 + $0x40] sm:$0xff] %vm2552_vm1, %v1971_v2  ;;  %v338_v63 = vld [vmem:[%s13438_s10 + $0x90] sm:$0xff] }
  0x53   : > { %v1979_v17 = vrot.slane %v1972_v3, %v13443_v14  ;;  %v535_v18 = vcombine.high %v525_v4, %v525_v4  ;;  %v1407_v19 = vrot.slane %v525_v4, %v13441_v13  ;;  %v1419_v20 = vrot.slane %v518_v0, %v13441_v13  ;;  %12554 = vmatpush3.msk.msra.mxu0 %vm3599_vm0, %v13426_v8  ;;  %v13705_v3 = vld [vmem:[%s13438_s10 + $0x98] sm:$0xff] }
  0x54   : > { %v536_v23 = vcombine.high %v532_v9, %v532_v9  ;;  %v1411_v26 = vrot.slane %v533_v10, %v13441_v13  ;;  %v1423_v27 = vrot.slane %v532_v9, %v13441_v13  ;;  %v1427_v28 = vrot.slane %v534_v12, %v13441_v13  ;;  %12749 = vmatprep.subr.msk.mxu0 %vm3599_vm0, %v11430_v22 }
  0x55   : > { %2563 = vst.msk [vmem:[#allocation2 + $0x48] sm:$0xf] %vm2557_vm2, %v1979_v17  ;;  %v1415_v6 = vrot.slane %v535_v18, %v13441_v13  ;;  %v1980_v29 = vcombine.low %v1403_v15, %v1407_v19  ;;  %v552_v30 = vcombine.high %v544_v1, %v544_v1  ;;  %v560_v31 = vrot.slane %v544_v1, %v13433_v11 }
  0x56   : > { %v1431_v16 = vrot.slane %v536_v23, %v13441_v13  ;;  %v1997_v8 = vcombine.low %v1419_v20, %v1423_v27  ;;  %v551_v24 = vrot.slane %v537_v5, %v13433_v11  ;;  %v593_v32 = vcombine.high %v13660_v21, %v13660_v21  ;;  %v3316_v33 = vld [vmem:[#allocation2 + $0x1a1] sm:$0xff]  ;;  %v3320_v56 = vld [vmem:[#allocation2 + $0x1c9] sm:$0xff] }
  0x57   : > { %v1981_v35 = vcombine.low %v1411_v26, %v1415_v6  ;;  %v1988_v36 = vrot.slane %v1980_v29, %v13443_v14  ;;  %v574_v37 = vrot.slane %v552_v30, %v13433_v11  ;;  %v582_v25 = vcombine.high %v560_v31, %v560_v31  ;;  %12416 = vmatprep.mubr.msk.f32.mxu1 %vm2552_vm1, %v3316_v33  ;;  %v3317_v38 = vld [vmem:[#allocation2 + $0x1a9] sm:$0xff]  ;;  %v3321_v7 = vld [vmem:[#allocation2 + $0x1d1] sm:$0xff] }
  0x58   : > { %v1998_v39 = vcombine.low %v1427_v28, %v1431_v16  ;;  %v2005_v40 = vrot.slane %v1997_v8, %v13443_v14  ;;  %v1435_v41 = vrot.slane %v560_v31, %v13441_v13  ;;  %v553_v42 = vcombine.high %v551_v24, %v551_v24  ;;  %12417 = vmatmul.mubr.msk.f32.gmra.mrb[6].mxu1 %vm2552_vm1, %v3317_v38 }
  0x59   : > { %v1995_v43 = vrot.slane %v1981_v35, %v13443_v14  ;;  %v584_v44 = vcombine.high %v574_v37, %v574_v37  ;;  %v1439_v45 = vrot.slane %v574_v37, %v13441_v13  ;;  %v1443_v46 = vrot.slane %v582_v25, %v13441_v13  ;;  %v3280_v47 = vld [vmem:[#allocation2 + $0x39] sm:$0xff]  ;;  %12419 = vmatprep.mubr.msk.f32.mxu1 %vm2552_vm1, %v3318_v34 }
  0x5a   : > { %v2012_v48 = vrot.slane %v1998_v39, %v13443_v14  ;;  %v567_v50 = vrot.slane %v551_v24, %v13433_v11  ;;  %v581_v51 = vrot.slane %v553_v42, %v13433_v11  ;;  %v600_v52 = vrot.slane %v13660_v21, %v13433_v11  ;;  %12362 = vmatprep.mubr.msk.f32.mxu0 %vm2552_vm1, %v3280_v47 }
  0x5b   : > { %v1996_v53 = vcombine.low %v1988_v36, %v1995_v43  ;;  %v1447_v54 = vrot.slane %v584_v44, %v13441_v13  ;;  %v2014_v55 = vcombine.low %v1435_v41, %v1439_v45  ;;  %v607_v57 = vrot.slane %v593_v32, %v13433_v11 }
  0x5c   : > { %v3281_v58 = vld [vmem:[#allocation2 + $0x41] sm:$0xff]  ;;  %v2013_v59 = vcombine.low %v2005_v40, %v2012_v48  ;;  %v583_v60 = vcombine.high %v567_v50, %v567_v50  ;;  %v585_v61 = vcombine.high %v581_v51, %v581_v51  ;;  %v1451_v62 = vrot.slane %v567_v50, %v13441_v13  ;;  %12420 = vmatmul.mubr.msk.f32.gmra.mrb[8].mxu1 %vm2552_vm1, %v3319_v49 }
  0x5d   : > { %12363 = vmatmul.mubr.msk.f32.gmra.mrb[2].mxu0 %vm2552_vm1, %v3281_v58  ;;  %2564 = vst.msk [vmem:[#allocation2 + $0x50] sm:$0xff] %vm2552_vm1, %v1996_v53  ;;  %2569 = vst.msk [vmem:[#allocation2 + $0x78] sm:$0xff] %vm2552_vm1, %v1996_v53  ;;  %v2015_v0 = vcombine.low %v1443_v46, %v1447_v54  ;;  %v2022_v1 = vrot.slane %v2014_v55, %v13443_v14  ;;  %v1455_v2 = vrot.slane %v581_v51, %v13441_v13  ;;  %v11163_v49 = vld.sshfl [vmem:[%s13438_s10 + $0xa0] sm:$0x11 pattern:$0x75316420] }
  0x5e   : > { %2565 = vst.msk [vmem:[#allocation2 + $0x58] sm:$0xff] %vm2552_vm1, %v2013_v59  ;;  %2570 = vst.msk [vmem:[#allocation2 + $0x80] sm:$0xff] %vm2552_vm1, %v2013_v59  ;;  %12422 = vmatprep.mubr.msk.f32.mxu1 %vm2552_vm1, %v3320_v56  ;;  %v1459_v4 = vrot.slane %v583_v60, %v13441_v13  ;;  %v1463_v5 = vrot.slane %v585_v61, %v13441_v13  ;;  %v1467_v9 = vrot.slane %v600_v52, %v13441_v13 }
  0x5f   : > { %v1471_v10 = vrot.slane %v607_v57, %v13441_v13  ;;  %v2029_v12 = vrot.slane %v2015_v0, %v13443_v14  ;;  %v2031_v15 = vcombine.low %v1451_v62, %v1455_v2  ;;  %v1088_v17 = vcombine.high %v338_v63, %v338_v63 }
  0x60   : > { %v1095_v18 = vrot.slane %v338_v63, %v13433_v11  ;;  %v2032_v19 = vcombine.low %v1459_v4, %v1463_v5  ;;  %v1144_v21 = vrot.slane %v13705_v3, %v13433_v11  ;;  %v1137_v22 = vcombine.high %v13705_v3, %v13705_v3  ;;  %12423 = vmatmul.mubr.msk.f32.gmra.mrb[10].mxu1 %vm2552_vm1, %v3321_v7 }
  0x61   : > { %v2048_v20 = vcombine.low %v1467_v9, %v1471_v10  ;;  %v2030_v23 = vcombine.low %v2022_v1, %v2029_v12  ;;  %v2039_v26 = vrot.slane %v2031_v15, %v13443_v14  ;;  %v1102_v27 = vrot.slane %v1088_v17, %v13433_v11  ;;  %v326_v9 = vld [vmem:[%s13438_s10 + $0x30] sm:$0xff] }
  0x62   : > { %v1103_v28 = vcombine.high %v1095_v18, %v1095_v18  ;;  %v2046_v6 = vrot.slane %v2032_v19, %v13443_v14  ;;  %v1111_v30 = vrot.slane %v1095_v18, %v13433_v11  ;;  %v1152_v31 = vcombine.high %v1144_v21, %v1144_v21 }
  0x63   : > { %v2055_v29 = vrot.slane %v2048_v20, %v13443_v14  ;;  %2566 = vst.msk [vmem:[#allocation2 + $0x60] sm:$0xff] %vm2552_vm1, %v2030_v23  ;;  %2571 = vst.msk [vmem:[#allocation2 + $0x88] sm:$0xff] %vm2552_vm1, %v2030_v23  ;;  %v1104_v16 = vcombine.high %v1102_v27, %v1102_v27  ;;  %v1118_v8 = vrot.slane %v1102_v27, %v13433_v11  ;;  %v13768_v27 = vld [vmem:[%s13438_s10 + $0x38] sm:$0xff] }
  0x64   : > { %v1125_v24 = vrot.slane %v1103_v28, %v13433_v11  ;;  %v1160_v32 = vrot.slane %v1144_v21, %v13433_v11  ;;  %v2047_v33 = vcombine.low %v2039_v26, %v2046_v6  ;;  %v1133_v34 = vcombine.high %v1111_v30, %v1111_v30 }
  0x65   : > { %2568 = vst.msk [vmem:[#allocation2 + $0x70] sm:$0xf] %vm2557_vm2, %v2055_v29  ;;  %2573 = vst.msk [vmem:[#allocation2 + $0x98] sm:$0xf] %vm2557_vm2, %v2055_v29  ;;  %v1763_v35 = vrot.slane %v1111_v30, %v13441_v13  ;;  %v1174_v36 = vrot.slane %v1152_v31, %v13433_v11  ;;  %v3282_v37 = vld [vmem:[#allocation2 + $0x51] sm:$0xff]  ;;  %v1132_v25 = vrot.slane %v1104_v16, %v13433_v11  ;;  %v3286_v18 = vld [vmem:[#allocation2 + $0x79] sm:$0xff] }
  0x66   : > { %v1134_v38 = vcombine.high %v1118_v8, %v1118_v8  ;;  %v1135_v39 = vcombine.high %v1125_v24, %v1125_v24  ;;  %v1767_v40 = vrot.slane %v1125_v24, %v13441_v13  ;;  %12365 = vmatprep.mubr.msk.f32.mxu0 %vm2552_vm1, %v3282_v37  ;;  %2567 = vst.msk [vmem:[#allocation2 + $0x68] sm:$0xff] %vm2552_vm1, %v2047_v33  ;;  %2572 = vst.msk [vmem:[#allocation2 + $0x90] sm:$0xff] %vm2552_vm1, %v2047_v33 }
  0x67   : > { %v1771_v41 = vrot.slane %v1133_v34, %v13441_v13  ;;  %v1779_v42 = vrot.slane %v1118_v8, %v13441_v13  ;;  %v1182_v43 = vcombine.high %v1160_v32, %v1160_v32  ;;  %v1184_v44 = vcombine.high %v1174_v36, %v1174_v36 }
  0x68   : > { %v1136_v45 = vcombine.high %v1132_v25, %v1132_v25  ;;  %v1775_v46 = vrot.slane %v1135_v39, %v13441_v13  ;;  %v1783_v47 = vrot.slane %v1132_v25, %v13441_v13  ;;  %v1787_v48 = vrot.slane %v1134_v38, %v13441_v13 }
  0x69   : > { %v2360_v50 = vcombine.low %v1763_v35, %v1767_v40  ;;  %v1795_v51 = vrot.slane %v1160_v32, %v13441_v13  ;;  %v1799_v52 = vrot.slane %v1174_v36, %v13441_v13  ;;  %v1803_v53 = vrot.slane %v1182_v43, %v13441_v13 }
  0x6a   : > { %v1791_v54 = vrot.slane %v1136_v45, %v13441_v13  ;;  %v2361_v55 = vcombine.low %v1771_v41, %v1775_v46  ;;  %v2377_v56 = vcombine.low %v1779_v42, %v1783_v47  ;;  %v1807_v57 = vrot.slane %v1184_v44, %v13441_v13  ;;  %v3283_v58 = vld [vmem:[#allocation2 + $0x59] sm:$0xff]  ;;  %v3287_v31 = vld [vmem:[#allocation2 + $0x81] sm:$0xff] }
  0x6b   : > { %v2368_v59 = vrot.slane %v2360_v50, %v13443_v14  ;;  %v2394_v60 = vcombine.low %v1795_v51, %v1799_v52  ;;  %v1151_v61 = vrot.slane %v1137_v22, %v13433_v11  ;;  %v1193_v62 = vcombine.high %v11163_v49, %v11163_v49  ;;  %12366 = vmatmul.mubr.msk.f32.gmra.mrb[4].mxu0 %vm2552_vm1, %v3283_v58 }
  0x6c   : > { %v2375_v63 = vrot.slane %v2361_v55, %v13443_v14  ;;  %v2378_v0 = vcombine.low %v1787_v48, %v1791_v54  ;;  %v2385_v1 = vrot.slane %v2377_v56, %v13443_v14  ;;  %v2395_v2 = vcombine.low %v1803_v53, %v1807_v57 }
  0x6d   : > { %v2402_v3 = vrot.slane %v2394_v60, %v13443_v14  ;;  %v1153_v4 = vcombine.high %v1151_v61, %v1151_v61  ;;  %v1167_v5 = vrot.slane %v1151_v61, %v13433_v11  ;;  %v1200_v7 = vrot.slane %v11163_v49, %v13433_v11  ;;  %v3284_v10 = vld [vmem:[#allocation2 + $0x61] sm:$0xff]  ;;  %v3285_v12 = vld [vmem:[#allocation2 + $0x69] sm:$0xff]  ;;  %v3289_v47 = vld [vmem:[#allocation2 + $0x91] sm:$0xff] }
  0x6e   : > { %v2376_v15 = vcombine.low %v2368_v59, %v2375_v63  ;;  %v2392_v17 = vrot.slane %v2378_v0, %v13443_v14  ;;  %v2409_v19 = vrot.slane %v2395_v2, %v13443_v14  ;;  %v1207_v20 = vrot.slane %v1193_v62, %v13433_v11  ;;  %12368 = vmatprep.mubr.msk.f32.mxu0 %vm2552_vm1, %v3284_v10  ;;  %v3288_v33 = vld [vmem:[#allocation2 + $0x89] sm:$0xff]  ;;  %v11159_v10 = vld.sshfl [vmem:[%s13438_s10 + $0x40] sm:$0x11 pattern:$0x75316420] }
  0x6f   : > { %v1181_v21 = vrot.slane %v1153_v4, %v13433_v11  ;;  %v1183_v22 = vcombine.high %v1167_v5, %v1167_v5  ;;  %v1811_v23 = vrot.slane %v1167_v5, %v13441_v13  ;;  %v1827_v26 = vrot.slane %v1200_v7, %v13441_v13  ;;  %12369 = vmatmul.mubr.msk.f32.gmra.mrb[6].mxu0 %vm2552_vm1, %v3285_v12 }
  0x70   : > { %v2393_v28 = vcombine.low %v2385_v1, %v2392_v17  ;;  %2614 = vst.msk [vmem:[#allocation2 + $0x1e0] sm:$0xff] %vm2552_vm1, %v2376_v15  ;;  %2619 = vst.msk [vmem:[#allocation2 + $0x208] sm:$0xff] %vm2552_vm1, %v2376_v15  ;;  %v2410_v6 = vcombine.low %v2402_v3, %v2409_v19  ;;  %v1831_v29 = vrot.slane %v1207_v20, %v13441_v13  ;;  %12371 = vmatprep.mubr.msk.f32.mxu0 %vm2552_vm1, %v3286_v18 }
  0x71   : > { %v608_v30 = vcombine.high %v326_v9, %v326_v9  ;;  %v1185_v16 = vcombine.high %v1181_v21, %v1181_v21  ;;  %v1815_v8 = vrot.slane %v1181_v21, %v13441_v13  ;;  %v1819_v24 = vrot.slane %v1183_v22, %v13441_v13 }
  0x72   : > { %v615_v32 = vrot.slane %v326_v9, %v13433_v11  ;;  %2615 = vst.msk [vmem:[#allocation2 + $0x1e8] sm:$0xff] %vm2552_vm1, %v2393_v28  ;;  %2620 = vst.msk [vmem:[#allocation2 + $0x210] sm:$0xff] %vm2552_vm1, %v2393_v28  ;;  %v2428_v34 = vcombine.low %v1827_v26, %v1831_v29  ;;  %v664_v36 = vrot.slane %v13768_v27, %v13433_v11 }
  0x73   : > { %2616 = vst.msk [vmem:[#allocation2 + $0x1f0] sm:$0xff] %vm2552_vm1, %v2410_v6  ;;  %2621 = vst.msk [vmem:[#allocation2 + $0x218] sm:$0xff] %vm2552_vm1, %v2410_v6  ;;  %v622_v35 = vrot.slane %v608_v30, %v13433_v11  ;;  %v657_v37 = vcombine.high %v13768_v27, %v13768_v27  ;;  %v1823_v25 = vrot.slane %v1185_v16, %v13441_v13  ;;  %12372 = vmatmul.mubr.msk.f32.gmra.mrb[8].mxu0 %vm2552_vm1, %v3287_v31  ;;  %v341_v16 = vld [vmem:[%s13438_s10 + $0xa8] sm:$0xff] }
  0x74   : > { %v2411_v38 = vcombine.low %v1811_v23, %v1815_v8  ;;  %v623_v39 = vcombine.high %v615_v32, %v615_v32  ;;  %v631_v40 = vrot.slane %v615_v32, %v13433_v11  ;;  %v2435_v41 = vrot.slane %v2428_v34, %v13443_v14  ;;  %12374 = vmatprep.mubr.msk.f32.mxu0 %vm2552_vm1, %v3288_v33 }
  0x75   : > { %v624_v42 = vcombine.high %v622_v35, %v622_v35  ;;  %v638_v43 = vrot.slane %v622_v35, %v13433_v11  ;;  %v672_v44 = vcombine.high %v664_v36, %v664_v36  ;;  %v2412_v45 = vcombine.low %v1819_v24, %v1823_v25  ;;  %v13832_v25 = vld [vmem:[%s13438_s10 + $0xb0] sm:$0xff] }
  0x76   : > { %v2419_v46 = vrot.slane %v2411_v38, %v13443_v14  ;;  %v645_v48 = vrot.slane %v623_v39, %v13433_v11  ;;  %v653_v49 = vcombine.high %v631_v40, %v631_v40  ;;  %2618 = vst.msk [vmem:[#allocation2 + $0x200] sm:$0xf] %vm2557_vm2, %v2435_v41  ;;  %2623 = vst.msk [vmem:[#allocation2 + $0x228] sm:$0xf] %vm2557_vm2, %v2435_v41 }
  0x77   : > { %v652_v50 = vrot.slane %v624_v42, %v13433_v11  ;;  %v654_v51 = vcombine.high %v638_v43, %v638_v43  ;;  %v1475_v52 = vrot.slane %v631_v40, %v13441_v13  ;;  %v1491_v53 = vrot.slane %v638_v43, %v13441_v13  ;;  %12375 = vmatmul.mubr.msk.f32.gmra.mrb[10].mxu0 %vm2552_vm1, %v3289_v47 }
  0x78   : > { %v2426_v54 = vrot.slane %v2412_v45, %v13443_v14  ;;  %v655_v55 = vcombine.high %v645_v48, %v645_v48  ;;  %v1479_v56 = vrot.slane %v645_v48, %v13441_v13  ;;  %v1483_v57 = vrot.slane %v653_v49, %v13441_v13 }
  0x79   : > { %v656_v58 = vcombine.high %v652_v50, %v652_v50  ;;  %v1495_v59 = vrot.slane %v652_v50, %v13441_v13  ;;  %v1499_v60 = vrot.slane %v654_v51, %v13441_v13  ;;  %v680_v61 = vrot.slane %v664_v36, %v13433_v11  ;;  %v3322_v62 = vld [vmem:[#allocation2 + $0x1e1] sm:$0xff] }
  0x7a   : > { %v3323_v63 = vld [vmem:[#allocation2 + $0x1e9] sm:$0xff]  ;;  %v2427_v0 = vcombine.low %v2419_v46, %v2426_v54  ;;  %v1487_v1 = vrot.slane %v655_v55, %v13441_v13  ;;  %v2056_v2 = vcombine.low %v1475_v52, %v1479_v56  ;;  %v694_v3 = vrot.slane %v672_v44, %v13433_v11  ;;  %12425 = vmatprep.mubr.msk.f32.mxu1 %vm2552_vm1, %v3322_v62 }
  0x7b   : > { %v1503_v4 = vrot.slane %v656_v58, %v13441_v13  ;;  %v2073_v5 = vcombine.low %v1491_v53, %v1495_v59  ;;  %v702_v7 = vcombine.high %v680_v61, %v680_v61  ;;  %v1507_v9 = vrot.slane %v680_v61, %v13441_v13  ;;  %12426 = vmatmul.mubr.msk.f32.gmra.mrb[12].mxu1 %vm2552_vm1, %v3323_v63  ;;  %v3326_v44 = vld [vmem:[#allocation2 + $0x209] sm:$0xff] }
  0x7c   : > { %2617 = vst.msk [vmem:[#allocation2 + $0x1f8] sm:$0xff] %vm2552_vm1, %v2427_v0  ;;  %2622 = vst.msk [vmem:[#allocation2 + $0x220] sm:$0xff] %vm2552_vm1, %v2427_v0  ;;  %v2057_v12 = vcombine.low %v1483_v57, %v1487_v1  ;;  %v2064_v15 = vrot.slane %v2056_v2, %v13443_v14  ;;  %v704_v17 = vcombine.high %v694_v3, %v694_v3  ;;  %v3327_v57 = vld [vmem:[#allocation2 + $0x211] sm:$0xff] }
  0x7d   : > { %v1511_v18 = vrot.slane %v694_v3, %v13441_v13  ;;  %v2074_v19 = vcombine.low %v1499_v60, %v1503_v4  ;;  %v2081_v20 = vrot.slane %v2073_v5, %v13443_v14  ;;  %v1515_v21 = vrot.slane %v702_v7, %v13441_v13 }
  0x7e   : > { %v671_v22 = vrot.slane %v657_v37, %v13433_v11  ;;  %v2071_v23 = vrot.slane %v2057_v12, %v13443_v14  ;;  %v1519_v26 = vrot.slane %v704_v17, %v13441_v13  ;;  %v713_v28 = vcombine.high %v11159_v10, %v11159_v10 }
  0x7f   : > { %v2090_v27 = vcombine.low %v1507_v9, %v1511_v18  ;;  %v2088_v6 = vrot.slane %v2074_v19, %v13443_v14  ;;  %v720_v31 = vrot.slane %v11159_v10, %v13433_v11  ;;  %v1208_v41 = vcombine.high %v341_v16, %v341_v16 }
  0x80   : > { %v673_v29 = vcombine.high %v671_v22, %v671_v22  ;;  %v687_v30 = vrot.slane %v671_v22, %v13433_v11  ;;  %v2072_v8 = vcombine.low %v2064_v15, %v2071_v23  ;;  %v2091_v24 = vcombine.low %v1515_v21, %v1519_v26 }
  0x81   : > { %v2098_v32 = vrot.slane %v2090_v27, %v13443_v14  ;;  %v727_v33 = vrot.slane %v713_v28, %v13433_v11  ;;  %v2089_v34 = vcombine.low %v2081_v20, %v2088_v6  ;;  %v1539_v39 = vrot.slane %v720_v31, %v13441_v13 }
  0x82   : > { %v701_v35 = vrot.slane %v673_v29, %v13433_v11  ;;  %v703_v36 = vcombine.high %v687_v30, %v687_v30  ;;  %v1523_v37 = vrot.slane %v687_v30, %v13441_v13  ;;  %2574 = vst.msk [vmem:[#allocation2 + $0xa0] sm:$0xff] %vm2552_vm1, %v2072_v8  ;;  %2579 = vst.msk [vmem:[#allocation2 + $0xc8] sm:$0xff] %vm2552_vm1, %v2072_v8 }
  0x83   : > { %v2105_v38 = vrot.slane %v2091_v24, %v13443_v14  ;;  %v1543_v40 = vrot.slane %v727_v33, %v13441_v13  ;;  %v3324_v42 = vld [vmem:[#allocation2 + $0x1f1] sm:$0xff]  ;;  %v3325_v43 = vld [vmem:[#allocation2 + $0x1f9] sm:$0xff]  ;;  %2575 = vst.msk [vmem:[#allocation2 + $0xa8] sm:$0xff] %vm2552_vm1, %v2089_v34  ;;  %2580 = vst.msk [vmem:[#allocation2 + $0xd0] sm:$0xff] %vm2552_vm1, %v2089_v34  ;;  %v1215_v48 = vrot.slane %v341_v16, %v13433_v11 }
  0x84   : > { %v705_v45 = vcombine.high %v701_v35, %v701_v35  ;;  %v1527_v46 = vrot.slane %v701_v35, %v13441_v13  ;;  %v1531_v47 = vrot.slane %v703_v36, %v13441_v13  ;;  %12428 = vmatprep.mubr.msk.f32.mxu1 %vm2552_vm1, %v3324_v42  ;;  %v1222_v51 = vrot.slane %v1208_v41, %v13433_v11  ;;  %v3328_v62 = vld [vmem:[#allocation2 + $0x219] sm:$0xff]  ;;  %v3329_v18 = vld [vmem:[#allocation2 + $0x221] sm:$0xff] }
  0x85   : > { %v2106_v49 = vcombine.low %v2098_v32, %v2105_v38  ;;  %v2124_v50 = vcombine.low %v1539_v39, %v1543_v40  ;;  %v1264_v52 = vrot.slane %v13832_v25, %v13433_v11  ;;  %12429 = vmatmul.mubr.msk.f32.gmra.mrb[14].mxu1 %vm2552_vm1, %v3325_v43  ;;  %v1223_v55 = vcombine.high %v1215_v48, %v1215_v48  ;;  %v11164_v16 = vld.sshfl [vmem:[%s13438_s10 + $0xb8] sm:$0x11 pattern:$0x75316420]  ;;  %v329_v35 = vld [vmem:[%s13438_s10 + $0x48] sm:$0xff] }
  0x86   : > { %v1535_v53 = vrot.slane %v705_v45, %v13441_v13  ;;  %v2107_v54 = vcombine.low %v1523_v37, %v1527_v46  ;;  %v1231_v56 = vrot.slane %v1215_v48, %v13433_v11  ;;  %12431 = vmatprep.mubr.msk.f32.mxu1 %vm2552_vm1, %v3326_v44  ;;  %v1224_v59 = vcombine.high %v1222_v51, %v1222_v51 }
  0x87   : > { %2576 = vst.msk [vmem:[#allocation2 + $0xb0] sm:$0xff] %vm2552_vm1, %v2106_v49  ;;  %2581 = vst.msk [vmem:[#allocation2 + $0xd8] sm:$0xff] %vm2552_vm1, %v2106_v49  ;;  %v2131_v58 = vrot.slane %v2124_v50, %v13443_v14  ;;  %v1238_v60 = vrot.slane %v1222_v51, %v13433_v11  ;;  %v1272_v61 = vcombine.high %v1264_v52, %v1264_v52 }
  0x88   : > { %v2108_v63 = vcombine.low %v1531_v47, %v1535_v53  ;;  %v2115_v0 = vrot.slane %v2107_v54, %v13443_v14  ;;  %v1245_v1 = vrot.slane %v1223_v55, %v13433_v11  ;;  %v1253_v2 = vcombine.high %v1231_v56, %v1231_v56 }
  0x89   : > { %2578 = vst.msk [vmem:[#allocation2 + $0xc0] sm:$0xf] %vm2557_vm2, %v2131_v58  ;;  %2583 = vst.msk [vmem:[#allocation2 + $0xe8] sm:$0xf] %vm2557_vm2, %v2131_v58  ;;  %v1252_v3 = vrot.slane %v1224_v59, %v13433_v11  ;;  %v1254_v4 = vcombine.high %v1238_v60, %v1238_v60  ;;  %v1835_v5 = vrot.slane %v1231_v56, %v13441_v13  ;;  %12432 = vmatmul.mubr.msk.f32.gmra.mrb[16].mxu1 %vm2552_vm1, %v3327_v57 }
  0x8a   : > { %v1851_v7 = vrot.slane %v1238_v60, %v13441_v13  ;;  %v2122_v9 = vrot.slane %v2108_v63, %v13443_v14  ;;  %v1255_v10 = vcombine.high %v1245_v1, %v1245_v1  ;;  %v1839_v12 = vrot.slane %v1245_v1, %v13441_v13  ;;  %v3290_v17 = vld [vmem:[#allocation2 + $0xa1] sm:$0xff]  ;;  %12434 = vmatprep.mubr.msk.f32.mxu1 %vm2552_vm1, %v3328_v62  ;;  %v3294_v62 = vld [vmem:[#allocation2 + $0xc9] sm:$0xff] }
  0x8b   : > { %v1843_v15 = vrot.slane %v1253_v2, %v13441_v13  ;;  %v1256_v19 = vcombine.high %v1252_v3, %v1252_v3  ;;  %v1855_v20 = vrot.slane %v1252_v3, %v13441_v13  ;;  %v1859_v21 = vrot.slane %v1254_v4, %v13441_v13  ;;  %12377 = vmatprep.mubr.msk.f32.mxu0 %vm2552_vm1, %v3290_v17 }
  0x8c   : > { %v1280_v22 = vrot.slane %v1264_v52, %v13433_v11  ;;  %v2123_v23 = vcombine.low %v2115_v0, %v2122_v9  ;;  %v1847_v26 = vrot.slane %v1255_v10, %v13441_v13  ;;  %v2436_v27 = vcombine.low %v1835_v5, %v1839_v12 }
  0x8d   : > { %v1294_v28 = vrot.slane %v1272_v61, %v13433_v11  ;;  %v1863_v6 = vrot.slane %v1256_v19, %v13441_v13  ;;  %v2453_v29 = vcombine.low %v1851_v7, %v1855_v20  ;;  %12435 = vmatmul.mubr.msk.f32.gmra.mrb[18].mxu1 %vm2552_vm1, %v3329_v18  ;;  %v1257_v39 = vcombine.high %v13832_v25, %v13832_v25  ;;  %v13896_v25 = vld [vmem:[%s13438_s10 + $0x50] sm:$0xff] }
  0x8e   : > { %v1302_v30 = vcombine.high %v1280_v22, %v1280_v22  ;;  %v1867_v31 = vrot.slane %v1280_v22, %v13441_v13  ;;  %v3291_v8 = vld [vmem:[#allocation2 + $0xa9] sm:$0xff]  ;;  %2577 = vst.msk [vmem:[#allocation2 + $0xb8] sm:$0xff] %vm2552_vm1, %v2123_v23  ;;  %2582 = vst.msk [vmem:[#allocation2 + $0xe0] sm:$0xff] %vm2552_vm1, %v2123_v23  ;;  %v2437_v24 = vcombine.low %v1843_v15, %v1847_v26  ;;  %v3295_v17 = vld [vmem:[#allocation2 + $0xd1] sm:$0xff] }
  0x8f   : > { %v2444_v32 = vrot.slane %v2436_v27, %v13443_v14  ;;  %v1304_v33 = vcombine.high %v1294_v28, %v1294_v28  ;;  %v1871_v34 = vrot.slane %v1294_v28, %v13441_v13  ;;  %12378 = vmatmul.mubr.msk.f32.gmra.mrb[12].mxu0 %vm2552_vm1, %v3291_v8  ;;  %v2454_v36 = vcombine.low %v1859_v21, %v1863_v6 }
  0x90   : > { %v2461_v37 = vrot.slane %v2453_v29, %v13443_v14  ;;  %v1875_v38 = vrot.slane %v1302_v30, %v13441_v13  ;;  %v2451_v40 = vrot.slane %v2437_v24, %v13443_v14  ;;  %v1313_v43 = vcombine.high %v11164_v16, %v11164_v16 }
  0x91   : > { %v1879_v41 = vrot.slane %v1304_v33, %v13441_v13  ;;  %v2470_v42 = vcombine.low %v1867_v31, %v1871_v34  ;;  %v2468_v44 = vrot.slane %v2454_v36, %v13443_v14  ;;  %v1271_v45 = vrot.slane %v1257_v39, %v13433_v11 }
  0x92   : > { %v1320_v46 = vrot.slane %v11164_v16, %v13433_v11  ;;  %v728_v47 = vcombine.high %v329_v35, %v329_v35  ;;  %v2452_v48 = vcombine.low %v2444_v32, %v2451_v40  ;;  %v1327_v51 = vrot.slane %v1313_v43, %v13433_v11 }
  0x93   : > { %v2471_v49 = vcombine.low %v1875_v38, %v1879_v41  ;;  %v2478_v50 = vrot.slane %v2470_v42, %v13443_v14  ;;  %v2469_v52 = vcombine.low %v2461_v37, %v2468_v44  ;;  %v1273_v53 = vcombine.high %v1271_v45, %v1271_v45 }
  0x94   : > { %v1287_v54 = vrot.slane %v1271_v45, %v13433_v11  ;;  %v1899_v55 = vrot.slane %v1320_v46, %v13441_v13  ;;  %2624 = vst.msk [vmem:[#allocation2 + $0x230] sm:$0xff] %vm2552_vm1, %v2452_v48  ;;  %2629 = vst.msk [vmem:[#allocation2 + $0x258] sm:$0xff] %vm2552_vm1, %v2452_v48  ;;  %v1903_v57 = vrot.slane %v1327_v51, %v13441_v13 }
  0x95   : > { %v2485_v56 = vrot.slane %v2471_v49, %v13443_v14  ;;  %v735_v58 = vrot.slane %v329_v35, %v13433_v11  ;;  %v742_v59 = vrot.slane %v728_v47, %v13433_v11  ;;  %v3292_v60 = vld [vmem:[#allocation2 + $0xb1] sm:$0xff]  ;;  %v3293_v61 = vld [vmem:[#allocation2 + $0xb9] sm:$0xff]  ;;  %2625 = vst.msk [vmem:[#allocation2 + $0x238] sm:$0xff] %vm2552_vm1, %v2469_v52  ;;  %2630 = vst.msk [vmem:[#allocation2 + $0x260] sm:$0xff] %vm2552_vm1, %v2469_v52 }
  0x96   : > { %v1301_v63 = vrot.slane %v1273_v53, %v13433_v11  ;;  %v1303_v0 = vcombine.high %v1287_v54, %v1287_v54  ;;  %v1883_v1 = vrot.slane %v1287_v54, %v13441_v13  ;;  %v784_v2 = vrot.slane %v13896_v25, %v13433_v11  ;;  %12380 = vmatprep.mubr.msk.f32.mxu0 %vm2552_vm1, %v3292_v60  ;;  %v3296_v26 = vld [vmem:[#allocation2 + $0xd9] sm:$0xff]  ;;  %v3297_v34 = vld [vmem:[#allocation2 + $0xe1] sm:$0xff] }
  0x97   : > { %v2486_v3 = vcombine.low %v2478_v50, %v2485_v56  ;;  %v2504_v4 = vcombine.low %v1899_v55, %v1903_v57  ;;  %v743_v5 = vcombine.high %v735_v58, %v735_v58  ;;  %v744_v7 = vcombine.high %v742_v59, %v742_v59  ;;  %12381 = vmatmul.mubr.msk.f32.gmra.mrb[14].mxu0 %vm2552_vm1, %v3293_v61  ;;  %v11160_v52 = vld.sshfl [vmem:[%s13438_s10 + $0x58] sm:$0x11 pattern:$0x75316420]  ;;  %v2634_v60 = vld [vmem:[%s13947_s29] sm:$0xff] }
  0x98   : > { %v1305_v9 = vcombine.high %v1301_v63, %v1301_v63  ;;  %v1887_v10 = vrot.slane %v1301_v63, %v13441_v13  ;;  %v1891_v12 = vrot.slane %v1303_v0, %v13441_v13  ;;  %v751_v15 = vrot.slane %v735_v58, %v13433_v11  ;;  %12383 = vmatprep.mubr.msk.f32.mxu0 %vm2552_vm1, %v3294_v62 }
  0x99   : > { %2626 = vst.msk [vmem:[#allocation2 + $0x240] sm:$0xff] %vm2552_vm1, %v2486_v3  ;;  %2631 = vst.msk [vmem:[#allocation2 + $0x268] sm:$0xff] %vm2552_vm1, %v2486_v3  ;;  %v2511_v18 = vrot.slane %v2504_v4, %v13443_v14  ;;  %v758_v19 = vrot.slane %v742_v59, %v13433_v11  ;;  %v765_v20 = vrot.slane %v743_v5, %v13433_v11 }
  0x9a   : > { %v772_v21 = vrot.slane %v744_v7, %v13433_v11  ;;  %v1895_v22 = vrot.slane %v1305_v9, %v13441_v13  ;;  %v2487_v23 = vcombine.low %v1883_v1, %v1887_v10  ;;  %v773_v27 = vcombine.high %v751_v15, %v751_v15 }
  0x9b   : > { %v1547_v28 = vrot.slane %v751_v15, %v13441_v13  ;;  %2628 = vst.msk [vmem:[#allocation2 + $0x250] sm:$0xf] %vm2557_vm2, %v2511_v18  ;;  %2633 = vst.msk [vmem:[#allocation2 + $0x278] sm:$0xf] %vm2557_vm2, %v2511_v18  ;;  %v774_v6 = vcombine.high %v758_v19, %v758_v19  ;;  %v775_v29 = vcombine.high %v765_v20, %v765_v20  ;;  %12384 = vmatmul.mubr.msk.f32.gmra.mrb[16].mxu0 %vm2552_vm1, %v3295_v17 }
  0x9c   : > { %v776_v30 = vcombine.high %v772_v21, %v772_v21  ;;  %v1551_v31 = vrot.slane %v765_v20, %v13441_v13  ;;  %v2488_v16 = vcombine.low %v1891_v12, %v1895_v22  ;;  %v2495_v8 = vrot.slane %v2487_v23, %v13443_v14  ;;  %v3330_v33 = vld [vmem:[#allocation2 + $0x231] sm:$0xff]  ;;  %12386 = vmatprep.mubr.msk.f32.mxu0 %vm2552_vm1, %v3296_v26 }
  0x9d   : > { %v1555_v24 = vrot.slane %v773_v27, %v13441_v13  ;;  %v1563_v32 = vrot.slane %v758_v19, %v13441_v13  ;;  %v1559_v35 = vrot.slane %v775_v29, %v13441_v13  ;;  %v1567_v36 = vrot.slane %v772_v21, %v13441_v13  ;;  %12437 = vmatprep.mubr.msk.f32.mxu1 %vm2552_vm1, %v3330_v33 }
  0x9e   : > { %v1571_v37 = vrot.slane %v774_v6, %v13441_v13  ;;  %v1575_v38 = vrot.slane %v776_v30, %v13441_v13  ;;  %v2502_v39 = vrot.slane %v2488_v16, %v13443_v14  ;;  %v2132_v40 = vcombine.low %v1547_v28, %v1551_v31  ;;  %v3334_v30 = vld [vmem:[#allocation2 + $0x259] sm:$0xff] }
  0x9f   : > { %v792_v41 = vcombine.high %v784_v2, %v784_v2  ;;  %v800_v42 = vrot.slane %v784_v2, %v13433_v11  ;;  %v2133_v43 = vcombine.low %v1555_v24, %v1559_v35  ;;  %v2149_v44 = vcombine.low %v1563_v32, %v1567_v36  ;;  %12387 = vmatmul.mubr.msk.f32.gmra.mrb[18].mxu0 %vm2552_vm1, %v3297_v34 }
  0xa0   : > { %v2150_v45 = vcombine.low %v1571_v37, %v1575_v38  ;;  %v777_v46 = vcombine.high %v13896_v25, %v13896_v25  ;;  %v3331_v47 = vld [vmem:[#allocation2 + $0x239] sm:$0xff]  ;;  %v2503_v48 = vcombine.low %v2495_v8, %v2502_v39  ;;  %v2140_v49 = vrot.slane %v2132_v40, %v13443_v14 }
  0xa1   : > { %v814_v50 = vrot.slane %v792_v41, %v13433_v11  ;;  %v822_v51 = vcombine.high %v800_v42, %v800_v42  ;;  %12438 = vmatmul.mubr.msk.f32.gmra.mrb[20].mxu1 %vm2552_vm1, %v3331_v47  ;;  %v2147_v25 = vrot.slane %v2133_v43, %v13443_v14  ;;  %v2157_v53 = vrot.slane %v2149_v44, %v13443_v14  ;;  %v3335_v41 = vld [vmem:[#allocation2 + $0x261] sm:$0xff] }
  0xa2   : > { %v2164_v54 = vrot.slane %v2150_v45, %v13443_v14  ;;  %v1579_v55 = vrot.slane %v800_v42, %v13441_v13  ;;  %2627 = vst.msk [vmem:[#allocation2 + $0x248] sm:$0xff] %vm2552_vm1, %v2503_v48  ;;  %2632 = vst.msk [vmem:[#allocation2 + $0x270] sm:$0xff] %vm2552_vm1, %v2503_v48  ;;  %v791_v59 = vrot.slane %v777_v46, %v13433_v11  ;;  %v2635_v46 = vld [vmem:[%s13947_s29 + $0x8] sm:$0xff] }
  0xa3   : > { %v824_v56 = vcombine.high %v814_v50, %v814_v50  ;;  %v1583_v57 = vrot.slane %v814_v50, %v13441_v13  ;;  %v1587_v58 = vrot.slane %v822_v51, %v13441_v13  ;;  %v2148_v61 = vcombine.low %v2140_v49, %v2147_v25 }
  0xa4   : > { %v2165_v62 = vcombine.low %v2157_v53, %v2164_v54  ;;  %v833_v63 = vcombine.high %v11160_v52, %v11160_v52  ;;  %v840_v0 = vrot.slane %v11160_v52, %v13433_v11  ;;  %v793_v3 = vcombine.high %v791_v59, %v791_v59  ;;  %v11165_v52 = vld.sshfl [vmem:[%s13947_s29 + $0x10] sm:$0x11 pattern:$0x75316420] }
  0xa5   : > { %v1591_v1 = vrot.slane %v824_v56, %v13441_v13  ;;  %v2166_v2 = vcombine.low %v1579_v55, %v1583_v57  ;;  %v807_v4 = vrot.slane %v791_v59, %v13433_v11  ;;  %2584 = vst.msk [vmem:[#allocation2 + $0xf0] sm:$0xff] %vm2552_vm1, %v2148_v61  ;;  %2589 = vst.msk [vmem:[#allocation2 + $0x118] sm:$0xff] %vm2552_vm1, %v2148_v61 }
  0xa6   : > { %2585 = vst.msk [vmem:[#allocation2 + $0xf8] sm:$0xff] %vm2552_vm1, %v2165_v62  ;;  %2590 = vst.msk [vmem:[#allocation2 + $0x120] sm:$0xff] %vm2552_vm1, %v2165_v62  ;;  %v847_v5 = vrot.slane %v833_v63, %v13433_v11  ;;  %v1611_v7 = vrot.slane %v840_v0, %v13441_v13  ;;  %v2646_v9 = vcombine.high %v2634_v60, %v2634_v60 }
  0xa7   : > { %v2653_v10 = vrot.slane %v2634_v60, %v13433_v11  ;;  %v2167_v12 = vcombine.low %v1587_v58, %v1591_v1  ;;  %v2174_v15 = vrot.slane %v2166_v2, %v13443_v14  ;;  %v821_v17 = vrot.slane %v793_v3, %v13433_v11 }
  0xa8   : > { %v823_v18 = vcombine.high %v807_v4, %v807_v4  ;;  %v1595_v19 = vrot.slane %v807_v4, %v13441_v13  ;;  %v1615_v20 = vrot.slane %v847_v5, %v13441_v13  ;;  %v2660_v21 = vrot.slane %v2646_v9, %v13433_v11 }
  0xa9   : > { %v2661_v22 = vcombine.high %v2653_v10, %v2653_v10  ;;  %v2181_v23 = vrot.slane %v2167_v12, %v13443_v14  ;;  %v825_v26 = vcombine.high %v821_v17, %v821_v17  ;;  %v1599_v27 = vrot.slane %v821_v17, %v13441_v13  ;;  %v3332_v6 = vld [vmem:[#allocation2 + $0x241] sm:$0xff]  ;;  %v3333_v29 = vld [vmem:[#allocation2 + $0x249] sm:$0xff]  ;;  %v3337_v61 = vld [vmem:[#allocation2 + $0x271] sm:$0xff] }
  0xaa   : > { %v1603_v28 = vrot.slane %v823_v18, %v13441_v13  ;;  %v2200_v31 = vcombine.low %v1611_v7, %v1615_v20  ;;  %v2662_v16 = vcombine.high %v2660_v21, %v2660_v21  ;;  %v2669_v8 = vrot.slane %v2653_v10, %v13433_v11  ;;  %12440 = vmatprep.mubr.msk.f32.mxu1 %vm2552_vm1, %v3332_v6  ;;  %v3336_v47 = vld [vmem:[#allocation2 + $0x269] sm:$0xff] }
  0xab   : > { %v2676_v24 = vrot.slane %v2660_v21, %v13433_v11  ;;  %v2182_v32 = vcombine.low %v2174_v15, %v2181_v23  ;;  %v1607_v33 = vrot.slane %v825_v26, %v13441_v13  ;;  %v2183_v34 = vcombine.low %v1595_v19, %v1599_v27  ;;  %12441 = vmatmul.mubr.msk.f32.gmra.mrb[22].mxu1 %vm2552_vm1, %v3333_v29 }
  0xac   : > { %v2683_v35 = vrot.slane %v2661_v22, %v13433_v11  ;;  %v2207_v36 = vrot.slane %v2200_v31, %v13443_v14  ;;  %v2690_v37 = vrot.slane %v2662_v16, %v13433_v11  ;;  %v2691_v38 = vcombine.high %v2669_v8, %v2669_v8  ;;  %12443 = vmatprep.mubr.msk.f32.mxu1 %vm2552_vm1, %v3334_v30 }
  0xad   : > { %v2692_v39 = vcombine.high %v2676_v24, %v2676_v24  ;;  %v3298_v40 = vld [vmem:[#allocation2 + $0xf1] sm:$0xff]  ;;  %2586 = vst.msk [vmem:[#allocation2 + $0x100] sm:$0xff] %vm2552_vm1, %v2182_v32  ;;  %2591 = vst.msk [vmem:[#allocation2 + $0x128] sm:$0xff] %vm2552_vm1, %v2182_v32  ;;  %v2184_v42 = vcombine.low %v1603_v28, %v1607_v33  ;;  %v2191_v43 = vrot.slane %v2183_v34, %v13443_v14 }
  0xae   : > { %v2693_v44 = vcombine.high %v2683_v35, %v2683_v35  ;;  %v2889_v45 = vrot.slane %v2669_v8, %v13441_v13  ;;  %12389 = vmatprep.mubr.msk.f32.mxu0 %vm2552_vm1, %v3298_v40  ;;  %2588 = vst.msk [vmem:[#allocation2 + $0x110] sm:$0xf] %vm2557_vm2, %v2207_v36  ;;  %2593 = vst.msk [vmem:[#allocation2 + $0x138] sm:$0xf] %vm2557_vm2, %v2207_v36  ;;  %v2694_v48 = vcombine.high %v2690_v37, %v2690_v37 }
  0xaf   : > { %v2893_v49 = vrot.slane %v2683_v35, %v13441_v13  ;;  %v2897_v50 = vrot.slane %v2691_v38, %v13441_v13  ;;  %v2905_v51 = vrot.slane %v2676_v24, %v13441_v13  ;;  %v2198_v25 = vrot.slane %v2184_v42, %v13443_v14  ;;  %12444 = vmatmul.mubr.msk.f32.gmra.mrb[24].mxu1 %vm2552_vm1, %v3335_v41  ;;  %v3302_v38 = vld [vmem:[#allocation2 + $0x119] sm:$0xff] }
  0xb0   : > { %v2901_v53 = vrot.slane %v2693_v44, %v13441_v13  ;;  %v2909_v54 = vrot.slane %v2690_v37, %v13441_v13  ;;  %v2913_v55 = vrot.slane %v2692_v39, %v13441_v13  ;;  %v2917_v56 = vrot.slane %v2694_v48, %v13441_v13  ;;  %12446 = vmatprep.mubr.msk.f32.mxu1 %vm2552_vm1, %v3336_v47 }
  0xb1   : > { %v3030_v57 = vcombine.low %v2889_v45, %v2893_v49  ;;  %v2702_v58 = vrot.slane %v2635_v46, %v13433_v11  ;;  %v2695_v59 = vcombine.high %v2635_v46, %v2635_v46  ;;  %v2199_v60 = vcombine.low %v2191_v43, %v2198_v25 }
  0xb2   : > { %v3031_v62 = vcombine.low %v2897_v50, %v2901_v53  ;;  %v3047_v63 = vcombine.low %v2905_v51, %v2909_v54  ;;  %v2751_v0 = vcombine.high %v11165_v52, %v11165_v52  ;;  %v3048_v2 = vcombine.low %v2913_v55, %v2917_v56  ;;  %v3306_v54 = vld [vmem:[#allocation2 + $0x141] sm:$0xff]  ;;  %v3307_v55 = vld [vmem:[#allocation2 + $0x149] sm:$0xff]  ;;  %v3308_v56 = vld [vmem:[#allocation2 + $0x151] sm:$0xff] }
  0xb3   : > { %v3038_v1 = vrot.slane %v3030_v57, %v13443_v14  ;;  %v2710_v3 = vcombine.high %v2702_v58, %v2702_v58  ;;  %v2718_v4 = vrot.slane %v2702_v58, %v13433_v11  ;;  %2587 = vst.msk [vmem:[#allocation2 + $0x108] sm:$0xff] %vm2552_vm1, %v2199_v60  ;;  %2592 = vst.msk [vmem:[#allocation2 + $0x130] sm:$0xff] %vm2552_vm1, %v2199_v60  ;;  %12447 = vmatmul.mubr.msk.f32.gmra.mrb[26].mxu1 %vm2552_vm1, %v3337_v61  ;;  %v4116_v58 = vld [vmem:[#allocation2 + $0x2a] sm:$0xff] }
  0xb4   : > { %v3045_v5 = vrot.slane %v3031_v62, %v13443_v14  ;;  %v3055_v7 = vrot.slane %v3047_v63, %v13443_v14  ;;  %v2709_v9 = vrot.slane %v2695_v59, %v13433_v11  ;;  %v2758_v10 = vrot.slane %v11165_v52, %v13433_v11  ;;  %v3299_v12 = vld [vmem:[#allocation2 + $0xf9] sm:$0xff]  ;;  %v3303_v46 = vld [vmem:[#allocation2 + $0x121] sm:$0xff]  ;;  %v4954_v62 = vld [vmem:[#allocation2 + $0x2b] sm:$0xff] }
  0xb5   : > { %v3062_v15 = vrot.slane %v3048_v2, %v13443_v14  ;;  %v2732_v17 = vrot.slane %v2710_v3, %v13433_v11  ;;  %v2740_v18 = vcombine.high %v2718_v4, %v2718_v4  ;;  %v2921_v19 = vrot.slane %v2718_v4, %v13441_v13  ;;  %12390 = vmatmul.mubr.msk.f32.gmra.mrb[20].mxu0 %vm2552_vm1, %v3299_v12  ;;  %v3309_v59 = vld [vmem:[#allocation2 + $0x159] sm:$0xff]  ;;  %v14072_v3 = vld [vmem:[%s16179_s2 + $0x14] sm:$0xf]  ;;  %v13297_v4 = vld [vmem:[%s16179_s2 + $0xc] sm:$0xf] }
  0xb6   : > { %v3046_v20 = vcombine.low %v3038_v1, %v3045_v5  ;;  %v2711_v21 = vcombine.high %v2709_v9, %v2709_v9  ;;  %v2725_v22 = vrot.slane %v2709_v9, %v13433_v11  ;;  %v2765_v23 = vrot.slane %v2751_v0, %v13433_v11  ;;  %v4117_v63 = vld [vmem:[#allocation2 + $0x32] sm:$0xff]  ;;  %v4118_v1 = vld [vmem:[#allocation2 + $0x3a] sm:$0xff]  ;;  %v4119_v5 = vld [vmem:[#allocation2 + $0x42] sm:$0xff] }
  0xb7   : > { %v3063_v26 = vcombine.low %v3055_v7, %v3062_v15  ;;  %v2742_v27 = vcombine.high %v2732_v17, %v2732_v17  ;;  %v2925_v28 = vrot.slane %v2732_v17, %v13441_v13  ;;  %v2929_v6 = vrot.slane %v2740_v18, %v13441_v13  ;;  %v4955_v0 = vld [vmem:[#allocation2 + $0x33] sm:$0xff]  ;;  %v4956_v2 = vld [vmem:[#allocation2 + $0x3b] sm:$0xff]  ;;  %v4957_v7 = vld [vmem:[#allocation2 + $0x43] sm:$0xff] }
  0xb8   : > { %3193 = vst.msk [vmem:[#allocation2 + $0x280] sm:$0xff] %vm2552_vm1, %v3046_v20  ;;  %3198 = vst.msk [vmem:[#allocation2 + $0x2a8] sm:$0xff] %vm2552_vm1, %v3046_v20  ;;  %v2739_v29 = vrot.slane %v2711_v21, %v13433_v11  ;;  %v2741_v30 = vcombine.high %v2725_v22, %v2725_v22  ;;  %v2937_v31 = vrot.slane %v2725_v22, %v13441_v13  ;;  %v14079_v9 = vld [vmem:[#allocation2 + $0x52] sm:$0xff]  ;;  %v14092_v15 = vld [vmem:[#allocation2 + $0x5a] sm:$0xff] }
  0xb9   : > { %v2953_v16 = vrot.slane %v2758_v10, %v13441_v13  ;;  %3194 = vst.msk [vmem:[#allocation2 + $0x288] sm:$0xff] %vm2552_vm1, %v3063_v26  ;;  %3199 = vst.msk [vmem:[#allocation2 + $0x2b0] sm:$0xff] %vm2552_vm1, %v3063_v26  ;;  %v2933_v8 = vrot.slane %v2742_v27, %v13441_v13  ;;  %v3064_v24 = vcombine.low %v2921_v19, %v2925_v28  ;;  %v13298_v10 = vld [vmem:[%s16179_s2 + $0x10] sm:$0xf]  ;;  %v4959_v17 = vld [vmem:[#allocation2 + $0x5b] sm:$0xff]  ;;  %v13344_v27 = vmov 0.0  }
  0xba   : > { %v2957_v32 = vrot.slane %v2765_v23, %v13441_v13  ;;  %v2743_v33 = vcombine.high %v2739_v29, %v2739_v29  ;;  %v2941_v34 = vrot.slane %v2739_v29, %v13441_v13  ;;  %v2945_v35 = vrot.slane %v2741_v30, %v13441_v13  ;;  %v3300_v36 = vld [vmem:[#allocation2 + $0x101] sm:$0xff]  ;;  %v3301_v37 = vld [vmem:[#allocation2 + $0x109] sm:$0xff]  ;;  %v3305_v53 = vld [vmem:[#allocation2 + $0x131] sm:$0xff]  ;;  %3246 = vst.msk [vmem:[#allocation3 + $0x108] sm:$0xff] %vm2552_vm1, %v13344_v27 }
  0xbb   : > { %v3065_v39 = vcombine.low %v2929_v6, %v2933_v8  ;;  %v3072_v40 = vrot.slane %v3064_v24, %v13443_v14  ;;  %12392 = vmatprep.mubr.msk.f32.mxu0 %vm2552_vm1, %v3300_v36  ;;  %v3304_v50 = vld [vmem:[#allocation2 + $0x129] sm:$0xff]  ;;  %v4958_v12 = vld [vmem:[#allocation2 + $0x53] sm:$0xff]  ;;  %v14112_v26 = vld [vmem:[#allocation2 + $0x7b] sm:$0xff]  ;;  %3213 = vst.msk [vmem:[#allocation3] sm:$0xff] %vm2552_vm1, %v13344_v27 }
  0xbc   : > { %v3098_v41 = vcombine.low %v2953_v16, %v2957_v32  ;;  %v2949_v42 = vrot.slane %v2743_v33, %v13441_v13  ;;  %v3081_v43 = vcombine.low %v2937_v31, %v2941_v34  ;;  %12393 = vmatmul.mubr.msk.f32.gmra.mrb[22].mxu0 %vm2552_vm1, %v3301_v37  ;;  %v14095_v18 = vld [vmem:[#allocation2 + $0x62] sm:$0xff]  ;;  %v14103_v20 = vld [vmem:[%s16179_s2 + $0x18] sm:$0xf]  ;;  %v14107_v21 = vld [vmem:[#allocation2 + $0x6a] sm:$0xff]  ;;  %3214 = vst.msk [vmem:[#allocation3 + $0x8] sm:$0xff] %vm2552_vm1, %v13344_v27 }
  0xbd   : > { %v3079_v44 = vrot.slane %v3065_v39, %v13443_v14  ;;  %12395 = vmatprep.mubr.msk.f32.mxu0 %vm2552_vm1, %v3302_v38  ;;  %v4960_v19 = vld [vmem:[#allocation2 + $0x63] sm:$0xff]  ;;  %v4961_v22 = vld [vmem:[#allocation2 + $0x6b] sm:$0xff]  ;;  %v14110_v23 = vld [vmem:[#allocation2 + $0x7a] sm:$0xff]  ;;  %3215 = vst.msk [vmem:[#allocation3 + $0x10] sm:$0xff] %vm2552_vm1, %v13344_v27 }
  0xbe   : > { %v3105_v45 = vrot.slane %v3098_v41, %v13443_v14  ;;  %v3082_v47 = vcombine.low %v2945_v35, %v2949_v42  ;;  %v3089_v48 = vrot.slane %v3081_v43, %v13443_v14  ;;  %3216 = vst.msk [vmem:[#allocation3 + $0x18] sm:$0xff] %vm2552_vm1, %v13344_v27  ;;  %3217 = vst.msk [vmem:[#allocation3 + $0x20] sm:$0xff] %vm2552_vm1, %v13344_v27  ;;  %v14249_v28 = vld [vmem:[#allocation2 + $0x82] sm:$0xff]  ;;  %v14253_v29 = vld [vmem:[#allocation2 + $0x8a] sm:$0xff] }
  0xbf   : > { %v3080_v49 = vcombine.low %v3072_v40, %v3079_v44  ;;  %3218 = vst.msk [vmem:[#allocation3 + $0x28] sm:$0xff] %vm2552_vm1, %v13344_v27  ;;  %3219 = vst.msk [vmem:[#allocation3 + $0x30] sm:$0xff] %vm2552_vm1, %v13344_v27  ;;  %v4963_v6 = vld [vmem:[#allocation2 + $0x83] sm:$0xff]  ;;  %v4964_v30 = vld [vmem:[#allocation2 + $0x8b] sm:$0xff] }
  0xc0   : > { %3197 = vst.msk [vmem:[#allocation2 + $0x2a0] sm:$0xf] %vm2557_vm2, %v3105_v45  ;;  %3202 = vst.msk [vmem:[#allocation2 + $0x2c8] sm:$0xf] %vm2557_vm2, %v3105_v45  ;;  %v3338_v51 = vld [vmem:[#allocation2 + $0x281] sm:$0xff]  ;;  %v3096_v52 = vrot.slane %v3082_v47, %v13443_v14  ;;  %12396 = vmatmul.mubr.msk.f32.gmra.mrb[24].mxu0 %vm2552_vm1, %v3303_v46  ;;  %v14260_v31 = vld [vmem:[#allocation2 + $0x92] sm:$0xff] }
  0xc1   : > { %12449 = vmatprep.mubr.msk.f32.mxu1 %vm2552_vm1, %v3338_v51  ;;  %3195 = vst.msk [vmem:[#allocation2 + $0x290] sm:$0xff] %vm2552_vm1, %v3080_v49  ;;  %3200 = vst.msk [vmem:[#allocation2 + $0x2b8] sm:$0xff] %vm2552_vm1, %v3080_v49  ;;  %12398 = vmatprep.mubr.msk.f32.mxu0 %vm2552_vm1, %v3304_v50  ;;  %v4965_v16 = vld [vmem:[#allocation2 + $0x93] sm:$0xff]  ;;  %v14263_v8 = vld [vmem:[#allocation2 + $0xa2] sm:$0xff] }
  0xc2   : > { %v3097_v25 = vcombine.low %v3089_v48, %v3096_v52  ;;  %3220 = vst.msk [vmem:[#allocation3 + $0x38] sm:$0xff] %vm2552_vm1, %v13344_v27  ;;  %3221 = vst.msk [vmem:[#allocation3 + $0x40] sm:$0xff] %vm2552_vm1, %v13344_v27  ;;  %v4966_v24 = vld [vmem:[#allocation2 + $0xa3] sm:$0xff]  ;;  %v4967_v33 = vld [vmem:[#allocation2 + $0xab] sm:$0xff] }
  0xc3   : > { %3222 = vst.msk [vmem:[#allocation3 + $0x48] sm:$0xff] %vm2552_vm1, %v13344_v27  ;;  %3223 = vst.msk [vmem:[#allocation3 + $0x50] sm:$0xff] %vm2552_vm1, %v13344_v27  ;;  %v14270_v32 = vld [vmem:[#allocation2 + $0xaa] sm:$0xff]  ;;  %v14273_v34 = vld [vmem:[#allocation2 + $0xb2] sm:$0xff] }
  0xc4   : > { %3196 = vst.msk [vmem:[#allocation2 + $0x298] sm:$0xff] %vm2552_vm1, %v3097_v25  ;;  %3201 = vst.msk [vmem:[#allocation2 + $0x2c0] sm:$0xff] %vm2552_vm1, %v3097_v25  ;;  %12399 = vmatmul.mubr.msk.f32.gmra.mrb[26].mxu0 %vm2552_vm1, %v3305_v53  ;;  %v4968_v35 = vld [vmem:[#allocation2 + $0xb3] sm:$0xff]  ;;  %v4969_v37 = vld [vmem:[#allocation2 + $0xbb] sm:$0xff] }
  0xc5   : > { %12401 = vmatprep.mubr.msk.f32.mxu0 %vm2552_vm1, %v3306_v54  ;;  %3224 = vst.msk [vmem:[#allocation3 + $0x58] sm:$0xff] %vm2552_vm1, %v13344_v27  ;;  %3225 = vst.msk [vmem:[#allocation3 + $0x60] sm:$0xff] %vm2552_vm1, %v13344_v27  ;;  %v14280_v36 = vld [vmem:[#allocation2 + $0xba] sm:$0xff]  ;;  %v14283_v38 = vld [vmem:[#allocation2 + $0xca] sm:$0xff] }
  0xc6   : > { %3226 = vst.msk [vmem:[#allocation3 + $0x68] sm:$0xff] %vm2552_vm1, %v13344_v27  ;;  %3227 = vst.msk [vmem:[#allocation3 + $0x70] sm:$0xff] %vm2552_vm1, %v13344_v27  ;;  %v4970_v39 = vld [vmem:[#allocation2 + $0xcb] sm:$0xff]  ;;  %v4971_v41 = vld [vmem:[#allocation2 + $0xd3] sm:$0xff] }
  0xc7   : > { %3228 = vst.msk [vmem:[#allocation3 + $0x78] sm:$0xff] %vm2552_vm1, %v13344_v27  ;;  %3229 = vst.msk [vmem:[#allocation3 + $0x80] sm:$0xff] %vm2552_vm1, %v13344_v27  ;;  %v14290_v40 = vld [vmem:[#allocation2 + $0xd2] sm:$0xff]  ;;  %v14293_v42 = vld [vmem:[#allocation2 + $0xda] sm:$0xff] }
  0xc8   : > { %v3339_v57 = vld [vmem:[#allocation2 + $0x289] sm:$0xff]  ;;  %12402 = vmatmul.mubr.msk.f32.gmra.mrb[28].mxu0 %vm2552_vm1, %v3307_v55  ;;  %3230 = vst.msk [vmem:[#allocation3 + $0x88] sm:$0xff] %vm2552_vm1, %v13344_v27  ;;  %3231 = vst.msk [vmem:[#allocation3 + $0x90] sm:$0xff] %vm2552_vm1, %v13344_v27  ;;  %v4972_v43 = vld [vmem:[#allocation2 + $0xdb] sm:$0xff] }
  0xc9   : > { %12450 = vmatmul.mubr.msk.f32.gmra.mrb[28].mxu1 %vm2552_vm1, %v3339_v57  ;;  %12404 = vmatprep.mubr.msk.f32.mxu0 %vm2552_vm1, %v3308_v56  ;;  %3232 = vst.msk [vmem:[#allocation3 + $0x98] sm:$0xff] %vm2552_vm1, %v13344_v27  ;;  %3233 = vst.msk [vmem:[#allocation3 + $0xa0] sm:$0xff] %vm2552_vm1, %v13344_v27  ;;  %v14300_v44 = vld [vmem:[#allocation2 + $0xe2] sm:$0xff]  ;;  %v14303_v46 = vld [vmem:[#allocation2 + $0xf2] sm:$0xff] }
  0xca   : > { %3234 = vst.msk [vmem:[#allocation3 + $0xa8] sm:$0xff] %vm2552_vm1, %v13344_v27  ;;  %3235 = vst.msk [vmem:[#allocation3 + $0xb0] sm:$0xff] %vm2552_vm1, %v13344_v27  ;;  %v4973_v45 = vld [vmem:[#allocation2 + $0xe3] sm:$0xff]  ;;  %v4974_v47 = vld [vmem:[#allocation2 + $0xf3] sm:$0xff] }
  0xcb   : > { %v3340_v60 = vld [vmem:[#allocation2 + $0x291] sm:$0xff]  ;;  %v3341_v61 = vld [vmem:[#allocation2 + $0x299] sm:$0xff]  ;;  %3236 = vst.msk [vmem:[#allocation3 + $0xb8] sm:$0xff] %vm2552_vm1, %v13344_v27  ;;  %3237 = vst.msk [vmem:[#allocation3 + $0xc0] sm:$0xff] %vm2552_vm1, %v13344_v27 }
  0xcc   : > { %12452 = vmatprep.mubr.msk.f32.mxu1 %vm2552_vm1, %v3340_v60  ;;  %12405 = vmatmul.mubr.msk.f32.gmra.mrb[30].mxu0 %vm2552_vm1, %v3309_v59  ;;  %3238 = vst.msk [vmem:[#allocation3 + $0xc8] sm:$0xff] %vm2552_vm1, %v13344_v27  ;;  %3239 = vst.msk [vmem:[#allocation3 + $0xd0] sm:$0xff] %vm2552_vm1, %v13344_v27  ;;  %v14310_v48 = vld [vmem:[#allocation2 + $0xfa] sm:$0xff]  ;;  %v14313_v50 = vld [vmem:[#allocation2 + $0x102] sm:$0xff] }
  0xcd   : > { %12453 = vmatmul.mubr.msk.f32.gmra.mrb[30].mxu1 %vm2552_vm1, %v3341_v61  ;;  %12555 = vmatprep.mubr.msk.f32.mxu0 %vm2552_vm1, %v4954_v62  ;;  %3240 = vst.msk [vmem:[#allocation3 + $0xd8] sm:$0xff] %vm2552_vm1, %v13344_v27  ;;  %3241 = vst.msk [vmem:[#allocation3 + $0xe0] sm:$0xff] %vm2552_vm1, %v13344_v27  ;;  %v4975_v49 = vld [vmem:[#allocation2 + $0xfb] sm:$0xff]  ;;  %v4976_v51 = vld [vmem:[#allocation2 + $0x103] sm:$0xff] }
  0xce   : > { %12457 = vmatprep.mubr.msk.f32.mxu1 %vm2552_vm1, %v4116_v58  ;;  %3242 = vst.msk [vmem:[#allocation3 + $0xe8] sm:$0xff] %vm2552_vm1, %v13344_v27  ;;  %3243 = vst.msk [vmem:[#allocation3 + $0xf0] sm:$0xff] %vm2552_vm1, %v13344_v27  ;;  %v14320_v52 = vld [vmem:[#allocation2 + $0x10a] sm:$0xff]  ;;  %v14323_v53 = vld [vmem:[#allocation2 + $0x11a] sm:$0xff] }
  0xcf   : > { %3244 = vst.msk [vmem:[#allocation3 + $0xf8] sm:$0xff] %vm2552_vm1, %v13344_v27  ;;  %3245 = vst.msk [vmem:[#allocation3 + $0x100] sm:$0xff] %vm2552_vm1, %v13344_v27  ;;  %v4977_v25 = vld [vmem:[#allocation2 + $0x10b] sm:$0xff]  ;;  %v4978_v54 = vld [vmem:[#allocation2 + $0x11b] sm:$0xff] }
  0xd0   : > { %12556 = vmatmul.mubr.msk.f32.vlgmr.msra.gmra.mrb[32].mxu0 %vm2552_vm1, %v4955_v0  ;;  %3247 = vst.msk [vmem:[#allocation3 + $0x110] sm:$0xff] %vm2552_vm1, %v13344_v27  ;;  %3248 = vst.msk [vmem:[#allocation3 + $0x118] sm:$0xff] %vm2552_vm1, %v13344_v27  ;;  %v14330_v55 = vld [vmem:[#allocation2 + $0x122] sm:$0xff]  ;;  %v14333_v57 = vld [vmem:[#allocation2 + $0x12a] sm:$0xff] }
  0xd1   : > { %12458 = vmatmul.mubr.msk.f32.vlgmr.msra.gmra.mrb[32].mxu1 %vm2552_vm1, %v4117_v63  ;;  %12750 = vmatpush3.msk.msra.mxu0 %vm3599_vm0, %v13298_v10  ;;  %3249 = vst.msk [vmem:[#allocation3 + $0x120] sm:$0xff] %vm2552_vm1, %v13344_v27  ;;  %3250 = vst.msk [vmem:[#allocation3 + $0x128] sm:$0xff] %vm2552_vm1, %v13344_v27  ;;  %v4979_v56 = vld [vmem:[#allocation2 + $0x123] sm:$0xff]  ;;  %v4980_v58 = vld [vmem:[#allocation2 + $0x12b] sm:$0xff] }
  0xd2   : > { %12652 = vmatpush3.msk.msra.mxu1 %vm3599_vm0, %v13297_v4  ;;  %12460 = vmatprep.mubr.msk.f32.mxu1 %vm2552_vm1, %v4118_v1  ;;  %3251 = vst.msk [vmem:[#allocation3 + $0x130] sm:$0xff] %vm2552_vm1, %v13344_v27  ;;  %3252 = vst.msk [vmem:[#allocation3 + $0x138] sm:$0xff] %vm2552_vm1, %v13344_v27  ;;  %v14340_v59 = vld [vmem:[#allocation2 + $0x132] sm:$0xff]  ;;  %v14343_v61 = vld [vmem:[#allocation2 + $0x142] sm:$0xff] }
  0xd3   : > { %12558 = vmatprep.mubr.msk.f32.mxu0 %vm2552_vm1, %v4956_v2  ;;  %12847 = vmatprep.subr.msk.mxu1 %vm3599_vm0, %v14072_v3  ;;  %3253 = vst.msk [vmem:[#allocation3 + $0x140] sm:$0xff] %vm2552_vm1, %v13344_v27  ;;  %3254 = vst.msk [vmem:[#allocation3 + $0x148] sm:$0xff] %vm2552_vm1, %v13344_v27  ;;  %v4981_v60 = vld [vmem:[#allocation2 + $0x133] sm:$0xff]  ;;  %v4982_v62 = vld [vmem:[#allocation2 + $0x143] sm:$0xff] }
  0xd4   : > { %12559 = vmatmul.mubr.msk.f32.gmra.mrb[34].mxu0 %vm2552_vm1, %v4957_v7  ;;  %12945 = vmatprep.subr.msk.mxu0 %vm3599_vm0, %v14103_v20  ;;  %3255 = vst.msk [vmem:[#allocation3 + $0x150] sm:$0xff] %vm2552_vm1, %v13344_v27  ;;  %3256 = vst.msk [vmem:[#allocation3 + $0x158] sm:$0xff] %vm2552_vm1, %v13344_v27  ;;  %v14350_v63 = vld [vmem:[#allocation2 + $0x14a] sm:$0xff]  ;;  %v14353_v1 = vld [vmem:[#allocation2 + $0x152] sm:$0xff] }
  0xd5   : > { %12461 = vmatmul.mubr.msk.f32.gmra.mrb[34].mxu1 %vm2552_vm1, %v4119_v5  ;;  %12561 = vmatprep.mubr.msk.f32.mxu0 %vm2552_vm1, %v4958_v12  ;;  %3257 = vst.msk [vmem:[#allocation3 + $0x160] sm:$0xff] %vm2552_vm1, %v13344_v27  ;;  %3258 = vst.msk [vmem:[#allocation3 + $0x168] sm:$0xff] %vm2552_vm1, %v13344_v27  ;;  %v4983_v0 = vld [vmem:[#allocation2 + $0x14b] sm:$0xff]  ;;  %v4984_v2 = vld [vmem:[#allocation2 + $0x153] sm:$0xff] }
  0xd6   : > { %12463 = vmatprep.mubr.msk.f32.mxu1 %vm2552_vm1, %v14079_v9  ;;  %3259 = vst.msk [vmem:[#allocation3 + $0x170] sm:$0xff] %vm2552_vm1, %v13344_v27  ;;  %3260 = vst.msk [vmem:[#allocation3 + $0x178] sm:$0xff] %vm2552_vm1, %v13344_v27  ;;  %v14360_v4 = vld [vmem:[#allocation2 + $0x15a] sm:$0xff]  ;;  %v14363_v7 = vld [vmem:[#allocation2 + $0x16a] sm:$0xff] }
  0xd7   : > { %3261 = vst.msk [vmem:[#allocation3 + $0x180] sm:$0xff] %vm2552_vm1, %v13344_v27  ;;  %3262 = vst.msk [vmem:[#allocation3 + $0x188] sm:$0xff] %vm2552_vm1, %v13344_v27  ;;  %v4985_v5 = vld [vmem:[#allocation2 + $0x15b] sm:$0xff]  ;;  %v4986_v10 = vld [vmem:[#allocation2 + $0x16b] sm:$0xff] }
  0xd8   : > { %12562 = vmatmul.mubr.msk.f32.gmra.mrb[36].mxu0 %vm2552_vm1, %v4959_v17  ;;  %3263 = vst.msk [vmem:[#allocation3 + $0x190] sm:$0xff] %vm2552_vm1, %v13344_v27  ;;  %3264 = vst.msk [vmem:[#allocation3 + $0x198] sm:$0xff] %vm2552_vm1, %v13344_v27  ;;  %v14370_v12 = vld [vmem:[#allocation2 + $0x172] sm:$0xff] }
  0xd9   : > { %12464 = vmatmul.mubr.msk.f32.gmra.mrb[36].mxu1 %vm2552_vm1, %v14092_v15  ;;  %12564 = vmatprep.mubr.msk.f32.mxu0 %vm2552_vm1, %v4960_v19  ;;  %3265 = vst.msk [vmem:[#allocation3 + $0x1a0] sm:$0xff] %vm2552_vm1, %v13344_v27  ;;  %3266 = vst.msk [vmem:[#allocation3 + $0x1a8] sm:$0xff] %vm2552_vm1, %v13344_v27  ;;  %v4987_v17 = vld [vmem:[#allocation2 + $0x173] sm:$0xff]  ;;  %v3375_v19 = vld [vmem:[#allocation3 + $0x108] sm:$0xff] }
  0xda   : > { %12466 = vmatprep.mubr.msk.f32.mxu1 %vm2552_vm1, %v14095_v18  ;;  %3267 = vst.msk [vmem:[#allocation3 + $0x1b0] sm:$0xff] %vm2552_vm1, %v13344_v27  ;;  %3268 = vst.msk [vmem:[#allocation3 + $0x1b8] sm:$0xff] %vm2552_vm1, %v13344_v27 }
  0xdb   : > { %3269 = vst.msk [vmem:[#allocation3 + $0x1c0] sm:$0xff] %vm2552_vm1, %v13344_v27  ;;  %3270 = vst.msk [vmem:[#allocation3 + $0x1c8] sm:$0xff] %vm2552_vm1, %v13344_v27 }
  0xdc   : > { %12565 = vmatmul.mubr.msk.f32.gmra.mrb[38].mxu0 %vm2552_vm1, %v4961_v22  ;;  %3271 = vst.msk [vmem:[#allocation3 + $0x1d0] sm:$0xff] %vm2552_vm1, %v13344_v27  ;;  %3272 = vst.msk [vmem:[#allocation3 + $0x1d8] sm:$0xff] %vm2552_vm1, %v13344_v27  ;;  %v4150_v22 = vld [vmem:[#allocation2 + $0x17a] sm:$0xff] }
  0xdd   : > { %12467 = vmatmul.mubr.msk.f32.gmra.mrb[38].mxu1 %vm2552_vm1, %v14107_v21  ;;  %3273 = vst.msk [vmem:[#allocation3 + $0x1e0] sm:$0xff] %vm2552_vm1, %v13344_v27  ;;  %3274 = vst.msk [vmem:[#allocation3 + $0x1e8] sm:$0xff] %vm2552_vm1, %v13344_v27  ;;  %12567 = vmatprep.mubr.msk.f32.mxu0 %vm2552_vm1, %v14112_v26  ;;  %v4988_v26 = vld [vmem:[#allocation2 + $0x17b] sm:$0xff] }
  0xde   : > { %3275 = vst.msk [vmem:[#allocation3 + $0x1f0] sm:$0xff] %vm2552_vm1, %v13344_v27  ;;  %3276 = vst.msk [vmem:[#allocation3 + $0x1f8] sm:$0xff] %vm2552_vm1, %v13344_v27  ;;  %12469 = vmatprep.mubr.msk.f32.mxu1 %vm2552_vm1, %v14110_v23  ;;  %v3374_v27 = vld [vmem:[#allocation3 + $0x100] sm:$0xff] }
  0xe0   : > { %12568 = vmatmul.mubr.msk.f32.gmra.mrb[40].mxu0 %vm2552_vm1, %v4963_v6 }
  0xe1   : > { %12470 = vmatmul.mubr.msk.f32.gmra.mrb[40].mxu1 %vm2552_vm1, %v14249_v28  ;;  %12570 = vmatprep.mubr.msk.f32.mxu0 %vm2552_vm1, %v4964_v30 }
  0xe2   : > { %12472 = vmatprep.mubr.msk.f32.mxu1 %vm2552_vm1, %v14253_v29 }
  0xe4   : > { %12571 = vmatmul.mubr.msk.f32.gmra.mrb[42].mxu0 %vm2552_vm1, %v4965_v16 }
  0xe5   : > { %12473 = vmatmul.mubr.msk.f32.gmra.mrb[42].mxu1 %vm2552_vm1, %v14260_v31  ;;  %12573 = vmatprep.mubr.msk.f32.mxu0 %vm2552_vm1, %v4966_v24  ;;  %v4151_v24 = vld [vmem:[#allocation2 + $0x182] sm:$0xff] }
  0xe6   : > { %12475 = vmatprep.mubr.msk.f32.mxu1 %vm2552_vm1, %v14263_v8 }
  0xe8   : > { %12574 = vmatmul.mubr.msk.f32.gmra.mrb[44].mxu0 %vm2552_vm1, %v4967_v33  ;;  %v4989_v33 = vld [vmem:[#allocation2 + $0x183] sm:$0xff] }
  0xe9   : > { %12476 = vmatmul.mubr.msk.f32.gmra.mrb[44].mxu1 %vm2552_vm1, %v14270_v32  ;;  %12576 = vmatprep.mubr.msk.f32.mxu0 %vm2552_vm1, %v4968_v35 }
  0xea   : > { %12478 = vmatprep.mubr.msk.f32.mxu1 %vm2552_vm1, %v14273_v34 }
  0xec   : > { %12577 = vmatmul.mubr.msk.f32.gmra.mrb[46].mxu0 %vm2552_vm1, %v4969_v37  ;;  %v4152_v37 = vld [vmem:[#allocation2 + $0x192] sm:$0xff] }
  0xed   : > { %12479 = vmatmul.mubr.msk.f32.gmra.mrb[46].mxu1 %vm2552_vm1, %v14280_v36  ;;  %12579 = vmatprep.mubr.msk.f32.mxu0 %vm2552_vm1, %v4970_v39  ;;  %v4990_v39 = vld [vmem:[#allocation2 + $0x193] sm:$0xff] }
  0xee   : > { %12481 = vmatprep.mubr.msk.f32.mxu1 %vm2552_vm1, %v14283_v38 }
  0xf0   : > { %12580 = vmatmul.mubr.msk.f32.gmra.mrb[48].mxu0 %vm2552_vm1, %v4971_v41  ;;  %v3377_v41 = vld [vmem:[#allocation3 + $0x118] sm:$0xff] }
  0xf1   : > { %12482 = vmatmul.mubr.msk.f32.gmra.mrb[48].mxu1 %vm2552_vm1, %v14290_v40  ;;  %12582 = vmatprep.mubr.msk.f32.mxu0 %vm2552_vm1, %v4972_v43  ;;  %v3376_v43 = vld [vmem:[#allocation3 + $0x110] sm:$0xff] }
  0xf2   : > { %12484 = vmatprep.mubr.msk.f32.mxu1 %vm2552_vm1, %v14293_v42 }
  0xf4   : > { %12583 = vmatmul.mubr.msk.f32.gmra.mrb[50].mxu0 %vm2552_vm1, %v4973_v45  ;;  %v4153_v45 = vld [vmem:[#allocation2 + $0x19a] sm:$0xff] }
  0xf5   : > { %12485 = vmatmul.mubr.msk.f32.gmra.mrb[50].mxu1 %vm2552_vm1, %v14300_v44  ;;  %12585 = vmatprep.mubr.msk.f32.mxu0 %vm2552_vm1, %v4974_v47  ;;  %v4991_v47 = vld [vmem:[#allocation2 + $0x19b] sm:$0xff] }
  0xf6   : > { %12487 = vmatprep.mubr.msk.f32.mxu1 %vm2552_vm1, %v14303_v46 }
  0xf8   : > { %12586 = vmatmul.mubr.msk.f32.gmra.mrb[52].mxu0 %vm2552_vm1, %v4975_v49 }
  0xf9   : > { %12488 = vmatmul.mubr.msk.f32.gmra.mrb[52].mxu1 %vm2552_vm1, %v14310_v48  ;;  %12588 = vmatprep.mubr.msk.f32.mxu0 %vm2552_vm1, %v4976_v51  ;;  %v4154_v51 = vld [vmem:[#allocation2 + $0x1a2] sm:$0xff] }
  0xfa   : > { %12490 = vmatprep.mubr.msk.f32.mxu1 %vm2552_vm1, %v14313_v50 }
  0xfc   : > { %12589 = vmatmul.mubr.msk.f32.gmra.mrb[54].mxu0 %vm2552_vm1, %v4977_v25  ;;  %v4992_v25 = vld [vmem:[#allocation2 + $0x1a3] sm:$0xff] }
  0xfd   : > { %12491 = vmatmul.mubr.msk.f32.gmra.mrb[54].mxu1 %vm2552_vm1, %v14320_v52  ;;  %12591 = vmatprep.mubr.msk.f32.mxu0 %vm2552_vm1, %v4978_v54 }
  0xfe   : > { %12493 = vmatprep.mubr.msk.f32.mxu1 %vm2552_vm1, %v14323_v53 }
 0x100   : > { %12592 = vmatmul.mubr.msk.f32.gmra.mrb[56].mxu0 %vm2552_vm1, %v4979_v56 }
 0x101   : > { %12494 = vmatmul.mubr.msk.f32.gmra.mrb[56].mxu1 %vm2552_vm1, %v14330_v55  ;;  %12594 = vmatprep.mubr.msk.f32.mxu0 %vm2552_vm1, %v4980_v58 }
 0x102   : > { %12496 = vmatprep.mubr.msk.f32.mxu1 %vm2552_vm1, %v14333_v57 }
 0x104   : > { %12595 = vmatmul.mubr.msk.f32.gmra.mrb[58].mxu0 %vm2552_vm1, %v4981_v60  ;;  %v4155_v60 = vld [vmem:[#allocation2 + $0x1aa] sm:$0xff] }
 0x105   : > { %12497 = vmatmul.mubr.msk.f32.gmra.mrb[58].mxu1 %vm2552_vm1, %v14340_v59  ;;  %12597 = vmatprep.mubr.msk.f32.mxu0 %vm2552_vm1, %v4982_v62  ;;  %v4993_v62 = vld [vmem:[#allocation2 + $0x1ab] sm:$0xff] }
 0x106   : > { %12499 = vmatprep.mubr.msk.f32.mxu1 %vm2552_vm1, %v14343_v61 }
 0x107   : > { %v12409_v6 = vpop.f32.mrb[0].mxu1 }
 0x108   : > { %12598 = vmatmul.mubr.msk.f32.gmra.mrb[60].mxu0 %vm2552_vm1, %v4983_v0  ;;  %v4021_v30 = vadd.f32 %v12409_v6, %v3375_v19  ;;  %v3829_v16 = vpop.f32.mrb[1].mxu1  ;;  %v4156_v0 = vld [vmem:[#allocation2 + $0x1ba] sm:$0xff]  ;;  %v4996_v19 = vld [vmem:[#allocation2 + $0x1cb] sm:$0xff]  ;;  %v4998_v6 = vld [vmem:[#allocation2 + $0x1e3] sm:$0xff] }
 0x109   : > { %12500 = vmatmul.mubr.msk.f32.gmra.mrb[60].mxu1 %vm2552_vm1, %v14350_v63  ;;  %12600 = vmatprep.mubr.msk.f32.mxu0 %vm2552_vm1, %v4984_v2  ;;  %v4020_v35 = vadd.f32 %v3829_v16, %v3374_v27  ;;  %v4994_v2 = vld [vmem:[#allocation2 + $0x1bb] sm:$0xff]  ;;  %v4999_v16 = vld [vmem:[#allocation2 + $0x1eb] sm:$0xff] }
 0x10a   : > { %12502 = vmatprep.mubr.msk.f32.mxu1 %vm2552_vm1, %v14353_v1  ;;  %4085 = vst.msk [vmem:[#allocation3 + $0x108] sm:$0xff] %vm2552_vm1, %v4021_v30  ;;  %v4160_v27 = vld [vmem:[#allocation2 + $0x1e2] sm:$0xff]  ;;  %v4161_v30 = vld [vmem:[#allocation2 + $0x1ea] sm:$0xff] }
 0x10b   : > { %4084 = vst.msk [vmem:[#allocation3 + $0x100] sm:$0xff] %vm2552_vm1, %v4020_v35  ;;  %v3379_v35 = vld [vmem:[#allocation3 + $0x128] sm:$0xff] }
 0x10c   : > { %12601 = vmatmul.mubr.msk.f32.gmra.mrb[62].mxu0 %vm2552_vm1, %v4985_v5  ;;  %v4157_v5 = vld [vmem:[#allocation2 + $0x1c2] sm:$0xff] }
 0x10d   : > { %12503 = vmatmul.mubr.msk.f32.gmra.mrb[62].mxu1 %vm2552_vm1, %v14360_v4  ;;  %12603 = vmatprep.mubr.msk.f32.mxu0 %vm2552_vm1, %v4986_v10  ;;  %v4995_v10 = vld [vmem:[#allocation2 + $0x1c3] sm:$0xff] }
 0x10e   : > { %12505 = vmatprep.mubr.msk.f32.mxu1 %vm2552_vm1, %v14363_v7  ;;  %v12412_v49 = vpop.f32.mrb[2].mxu1 }
 0x10f   : > { %v4023_v54 = vadd.f32 %v12412_v49, %v3377_v41  ;;  %v3839_v56 = vpop.f32.mrb[3].mxu1  ;;  %v4163_v41 = vld [vmem:[#allocation2 + $0x1fa] sm:$0xff] }
 0x110   : > { %12604 = vmatmul.mubr.msk.f32.gmra.mrb[64].mxu0 %vm2552_vm1, %v4987_v17  ;;  %v4022_v58 = vadd.f32 %v3839_v56, %v3376_v43  ;;  %v4158_v17 = vld [vmem:[#allocation2 + $0x1ca] sm:$0xff]  ;;  %v5001_v43 = vld [vmem:[#allocation2 + $0x1fb] sm:$0xff] }
 0x111   : > { %12506 = vmatmul.mubr.msk.f32.gmra.mrb[64].mxu1 %vm2552_vm1, %v14370_v12  ;;  %12606 = vmatprep.mubr.msk.f32.mxu0 %vm2552_vm1, %v4988_v26  ;;  %4087 = vst.msk [vmem:[#allocation3 + $0x118] sm:$0xff] %vm2552_vm1, %v4023_v54  ;;  %v4997_v26 = vld [vmem:[#allocation2 + $0x1d3] sm:$0xff]  ;;  %v3342_v56 = vld [vmem:[#allocation3] sm:$0xff] }
 0x112   : > { %12508 = vmatprep.mubr.msk.f32.mxu1 %vm2552_vm1, %v4150_v22  ;;  %4086 = vst.msk [vmem:[#allocation3 + $0x110] sm:$0xff] %vm2552_vm1, %v4022_v58  ;;  %v4159_v22 = vld [vmem:[#allocation2 + $0x1d2] sm:$0xff] }
 0x114   : > { %12607 = vmatmul.mubr.msk.f32.gmra.mrb[66].mxu0 %vm2552_vm1, %v4989_v33  ;;  %v5000_v33 = vld [vmem:[#allocation2 + $0x1f3] sm:$0xff] }
 0x115   : > { %12509 = vmatmul.mubr.msk.f32.gmra.mrb[66].mxu1 %vm2552_vm1, %v4151_v24  ;;  %12609 = vmatprep.mubr.msk.f32.mxu0 %vm2552_vm1, %v4990_v39  ;;  %v4162_v24 = vld [vmem:[#allocation2 + $0x1f2] sm:$0xff] }
 0x116   : > { %12511 = vmatprep.mubr.msk.f32.mxu1 %vm2552_vm1, %v4152_v37  ;;  %v3378_v37 = vld [vmem:[#allocation3 + $0x120] sm:$0xff] }
 0x118   : > { %12610 = vmatmul.mubr.msk.f32.gmra.mrb[68].mxu0 %vm2552_vm1, %v4991_v47  ;;  %v3343_v47 = vld [vmem:[#allocation3 + $0x8] sm:$0xff] }
 0x119   : > { %12512 = vmatmul.mubr.msk.f32.gmra.mrb[68].mxu1 %vm2552_vm1, %v4153_v45  ;;  %12612 = vmatprep.mubr.msk.f32.mxu0 %vm2552_vm1, %v4992_v25  ;;  %v5002_v25 = vld [vmem:[#allocation2 + $0x20b] sm:$0xff] }
 0x11a   : > { %12514 = vmatprep.mubr.msk.f32.mxu1 %vm2552_vm1, %v4154_v51  ;;  %v4164_v51 = vld [vmem:[#allocation2 + $0x20a] sm:$0xff] }
 0x11c   : > { %12613 = vmatmul.mubr.msk.f32.gmra.mrb[70].mxu0 %vm2552_vm1, %v4993_v62 }
 0x11d   : > { %12515 = vmatmul.mubr.msk.f32.gmra.mrb[70].mxu1 %vm2552_vm1, %v4155_v60  ;;  %12615 = vmatprep.mubr.msk.f32.mxu0 %vm2552_vm1, %v4994_v2  ;;  %v5003_v2 = vld [vmem:[#allocation2 + $0x213] sm:$0xff] }
 0x11e   : > { %12517 = vmatprep.mubr.msk.f32.mxu1 %vm2552_vm1, %v4156_v0  ;;  %v4165_v0 = vld [vmem:[#allocation2 + $0x212] sm:$0xff] }
 0x120   : > { %12616 = vmatmul.mubr.msk.f32.gmra.mrb[72].mxu0 %vm2552_vm1, %v4995_v10  ;;  %v4166_v10 = vld [vmem:[#allocation2 + $0x21a] sm:$0xff] }
 0x121   : > { %12518 = vmatmul.mubr.msk.f32.gmra.mrb[72].mxu1 %vm2552_vm1, %v4157_v5  ;;  %12618 = vmatprep.mubr.msk.f32.mxu0 %vm2552_vm1, %v4996_v19  ;;  %v3381_v19 = vld [vmem:[#allocation3 + $0x138] sm:$0xff] }
 0x122   : > { %12520 = vmatprep.mubr.msk.f32.mxu1 %vm2552_vm1, %v4158_v17  ;;  %v12415_v39 = vpop.f32.mrb[4].mxu1  ;;  %v5004_v17 = vld [vmem:[#allocation2 + $0x21b] sm:$0xff] }
 0x123   : > { %v4025_v45 = vadd.f32 %v12415_v39, %v3379_v35  ;;  %v3849_v49 = vpop.f32.mrb[5].mxu1  ;;  %v3345_v35 = vld [vmem:[#allocation3 + $0x18] sm:$0xff]  ;;  %v3383_v39 = vld [vmem:[#allocation3 + $0x148] sm:$0xff] }
 0x124   : > { %12619 = vmatmul.mubr.msk.f32.gmra.mrb[74].mxu0 %vm2552_vm1, %v4997_v26  ;;  %v4024_v54 = vadd.f32 %v3849_v49, %v3378_v37  ;;  %v4167_v26 = vld [vmem:[#allocation2 + $0x222] sm:$0xff] }
 0x125   : > { %12521 = vmatmul.mubr.msk.f32.gmra.mrb[74].mxu1 %vm2552_vm1, %v4159_v22  ;;  %12621 = vmatprep.mubr.msk.f32.mxu0 %vm2552_vm1, %v4998_v6  ;;  %4089 = vst.msk [vmem:[#allocation3 + $0x128] sm:$0xff] %vm2552_vm1, %v4025_v45  ;;  %v12361_v58 = vpop.f32.mrb[0].mxu0  ;;  %v3380_v22 = vld [vmem:[#allocation3 + $0x130] sm:$0xff]  ;;  %v4169_v45 = vld [vmem:[#allocation2 + $0x23a] sm:$0xff] }
 0x126   : > { %12523 = vmatprep.mubr.msk.f32.mxu1 %vm2552_vm1, %v4160_v27  ;;  %v3989_v60 = vadd.f32 %v12361_v58, %v3343_v47  ;;  %4088 = vst.msk [vmem:[#allocation3 + $0x120] sm:$0xff] %vm2552_vm1, %v4024_v54  ;;  %v3669_v62 = vpop.f32.mrb[1].mxu0  ;;  %v5005_v27 = vld [vmem:[#allocation2 + $0x223] sm:$0xff]  ;;  %v5007_v47 = vld [vmem:[#allocation2 + $0x23b] sm:$0xff] }
 0x127   : > { %v3988_v5 = vadd.f32 %v3669_v62, %v3342_v56  ;;  %v5008_v54 = vld [vmem:[#allocation2 + $0x243] sm:$0xff] }
 0x128   : > { %12622 = vmatmul.mubr.msk.f32.gmra.mrb[76].mxu0 %vm2552_vm1, %v4999_v16  ;;  %4053 = vst.msk [vmem:[#allocation3 + $0x8] sm:$0xff] %vm2552_vm1, %v3989_v60  ;;  %v5006_v16 = vld [vmem:[#allocation2 + $0x233] sm:$0xff] }
 0x129   : > { %12524 = vmatmul.mubr.msk.f32.gmra.mrb[76].mxu1 %vm2552_vm1, %v4161_v30  ;;  %12624 = vmatprep.mubr.msk.f32.mxu0 %vm2552_vm1, %v5000_v33  ;;  %4052 = vst.msk [vmem:[#allocation3] sm:$0xff] %vm2552_vm1, %v3988_v5  ;;  %v4168_v30 = vld [vmem:[#allocation2 + $0x232] sm:$0xff] }
 0x12a   : > { %12526 = vmatprep.mubr.msk.f32.mxu1 %vm2552_vm1, %v4162_v24  ;;  %v3385_v5 = vld [vmem:[#allocation3 + $0x158] sm:$0xff] }
 0x12b   : > { %v12418_v6 = vpop.f32.mrb[6].mxu1 }
 0x12c   : > { %12625 = vmatmul.mubr.msk.f32.gmra.mrb[78].mxu0 %vm2552_vm1, %v5001_v43  ;;  %v4027_v24 = vadd.f32 %v12418_v6, %v3381_v19  ;;  %v3859_v33 = vpop.f32.mrb[7].mxu1  ;;  %v3382_v43 = vld [vmem:[#allocation3 + $0x140] sm:$0xff]  ;;  %v5009_v19 = vld [vmem:[#allocation2 + $0x24b] sm:$0xff] }
 0x12d   : > { %12527 = vmatmul.mubr.msk.f32.gmra.mrb[78].mxu1 %vm2552_vm1, %v4163_v41  ;;  %12627 = vmatprep.mubr.msk.f32.mxu0 %vm2552_vm1, %v5002_v25  ;;  %v4026_v37 = vadd.f32 %v3859_v33, %v3380_v22  ;;  %v3344_v41 = vld [vmem:[#allocation3 + $0x10] sm:$0xff]  ;;  %v4170_v25 = vld [vmem:[#allocation2 + $0x242] sm:$0xff] }
 0x12e   : > { %12529 = vmatprep.mubr.msk.f32.mxu1 %vm2552_vm1, %v4164_v51  ;;  %4091 = vst.msk [vmem:[#allocation3 + $0x138] sm:$0xff] %vm2552_vm1, %v4027_v24  ;;  %v4173_v24 = vld [vmem:[#allocation2 + $0x262] sm:$0xff] }
 0x12f   : > { %4090 = vst.msk [vmem:[#allocation3 + $0x130] sm:$0xff] %vm2552_vm1, %v4026_v37  ;;  %v12421_v51 = vpop.f32.mrb[8].mxu1  ;;  %v5011_v33 = vld [vmem:[#allocation2 + $0x263] sm:$0xff]  ;;  %v5012_v37 = vld [vmem:[#allocation2 + $0x26b] sm:$0xff] }
 0x130   : > { %12628 = vmatmul.mubr.msk.f32.gmra.mrb[80].mxu0 %vm2552_vm1, %v5003_v2  ;;  %v12364_v49 = vpop.f32.mrb[2].mxu0  ;;  %v4029_v60 = vadd.f32 %v12421_v51, %v3383_v39  ;;  %v3869_v62 = vpop.f32.mrb[9].mxu1  ;;  %v4175_v39 = vld [vmem:[#allocation2 + $0x272] sm:$0xff] }
 0x131   : > { %12530 = vmatmul.mubr.msk.f32.gmra.mrb[80].mxu1 %vm2552_vm1, %v4165_v0  ;;  %12630 = vmatprep.mubr.msk.f32.mxu0 %vm2552_vm1, %v5004_v17  ;;  %v3991_v56 = vadd.f32 %v12364_v49, %v3345_v35  ;;  %v3679_v58 = vpop.f32.mrb[3].mxu0  ;;  %v4028_v2 = vadd.f32 %v3869_v62, %v3382_v43  ;;  %v4171_v17 = vld [vmem:[#allocation2 + $0x24a] sm:$0xff]  ;;  %v3346_v49 = vld [vmem:[#allocation3 + $0x20] sm:$0xff]  ;;  %v3349_v62 = vld [vmem:[#allocation3 + $0x38] sm:$0xff] }
 0x132   : > { %12532 = vmatprep.mubr.msk.f32.mxu1 %vm2552_vm1, %v4166_v10  ;;  %v3990_v0 = vadd.f32 %v3679_v58, %v3344_v41  ;;  %4093 = vst.msk [vmem:[#allocation3 + $0x148] sm:$0xff] %vm2552_vm1, %v4029_v60  ;;  %v3384_v10 = vld [vmem:[#allocation3 + $0x150] sm:$0xff]  ;;  %v3347_v43 = vld [vmem:[#allocation3 + $0x28] sm:$0xff] }
 0x133   : > { %4055 = vst.msk [vmem:[#allocation3 + $0x18] sm:$0xff] %vm2552_vm1, %v3991_v56  ;;  %4092 = vst.msk [vmem:[#allocation3 + $0x140] sm:$0xff] %vm2552_vm1, %v4028_v2  ;;  %v12424_v22 = vpop.f32.mrb[10].mxu1  ;;  %v4174_v35 = vld [vmem:[#allocation2 + $0x26a] sm:$0xff]  ;;  %v5013_v41 = vld [vmem:[#allocation2 + $0x273] sm:$0xff] }
 0x134   : > { %12631 = vmatmul.mubr.msk.f32.gmra.mrb[82].mxu0 %vm2552_vm1, %v5005_v27  ;;  %4054 = vst.msk [vmem:[#allocation3 + $0x10] sm:$0xff] %vm2552_vm1, %v3990_v0  ;;  %v5010_v27 = vld [vmem:[#allocation2 + $0x25b] sm:$0xff]  ;;  %v4031_v6 = vadd.f32 %v12424_v22, %v3385_v5  ;;  %v4177_v56 = vld [vmem:[#allocation2 + $0x28a] sm:$0xff]  ;;  %v4178_v0 = vld [vmem:[#allocation2 + $0x292] sm:$0xff] }
 0x135   : > { %12533 = vmatmul.mubr.msk.f32.gmra.mrb[82].mxu1 %vm2552_vm1, %v4167_v26  ;;  %12633 = vmatprep.mubr.msk.f32.mxu0 %vm2552_vm1, %v5006_v16  ;;  %v4172_v26 = vld [vmem:[#allocation2 + $0x25a] sm:$0xff]  ;;  %v5015_v58 = vld [vmem:[#allocation2 + $0x28b] sm:$0xff] }
 0x136   : > { %12535 = vmatprep.mubr.msk.f32.mxu1 %vm2552_vm1, %v4168_v30  ;;  %v3879_v30 = vpop.f32.mrb[11].mxu1  ;;  %4095 = vst.msk [vmem:[#allocation3 + $0x158] sm:$0xff] %vm2552_vm1, %v4031_v6  ;;  %v5016_v2 = vld [vmem:[#allocation2 + $0x293] sm:$0xff]  ;;  %v3351_v6 = vld [vmem:[#allocation3 + $0x48] sm:$0xff] }
 0x137   : > { %v4030_v16 = vadd.f32 %v3879_v30, %v3384_v10  ;;  %v3348_v5 = vld [vmem:[#allocation3 + $0x30] sm:$0xff]  ;;  %v4179_v22 = vld [vmem:[#allocation2 + $0x29a] sm:$0xff] }
 0x138   : > { %12634 = vmatmul.mubr.msk.f32.gmra.mrb[84].mxu0 %vm2552_vm1, %v5007_v47  ;;  %v5014_v47 = vld [vmem:[#allocation2 + $0x283] sm:$0xff]  ;;  %v5793_v30 = vld [vmem:[#allocation2 + $0x51] sm:$0xff] }
 0x139   : > { %12536 = vmatmul.mubr.msk.f32.gmra.mrb[84].mxu1 %vm2552_vm1, %v4169_v45  ;;  %12636 = vmatprep.mubr.msk.f32.mxu0 %vm2552_vm1, %v5008_v54  ;;  %4094 = vst.msk [vmem:[#allocation3 + $0x150] sm:$0xff] %vm2552_vm1, %v4030_v16  ;;  %v4176_v45 = vld [vmem:[#allocation2 + $0x282] sm:$0xff] }
 0x13a   : > { %12538 = vmatprep.mubr.msk.f32.mxu1 %vm2552_vm1, %v4170_v25  ;;  %v3350_v16 = vld [vmem:[#allocation3 + $0x40] sm:$0xff] }
 0x13c   : > { %12637 = vmatmul.mubr.msk.f32.gmra.mrb[86].mxu0 %vm2552_vm1, %v5009_v19 }
 0x13d   : > { %12539 = vmatmul.mubr.msk.f32.gmra.mrb[86].mxu1 %vm2552_vm1, %v4171_v17  ;;  %12639 = vmatprep.mubr.msk.f32.mxu0 %vm2552_vm1, %v5010_v27 }
 0x13e   : > { %12541 = vmatprep.mubr.msk.f32.mxu1 %vm2552_vm1, %v4172_v26  ;;  %v12367_v51 = vpop.f32.mrb[4].mxu0  ;;  %v5017_v26 = vld [vmem:[#allocation2 + $0x29b] sm:$0xff] }
 0x13f   : > { %v3993_v25 = vadd.f32 %v12367_v51, %v3347_v43  ;;  %v3689_v54 = vpop.f32.mrb[5].mxu0  ;;  %v5795_v43 = vld [vmem:[#allocation2 + $0x61] sm:$0xff] }
 0x140   : > { %12640 = vmatmul.mubr.msk.f32.gmra.mrb[88].mxu0 %vm2552_vm1, %v5011_v33  ;;  %v3992_v60 = vadd.f32 %v3689_v54, %v3346_v49  ;;  %v3387_v49 = vld [vmem:[#allocation3 + $0x168] sm:$0xff]  ;;  %v3386_v54 = vld [vmem:[#allocation3 + $0x160] sm:$0xff] }
 0x141   : > { %12542 = vmatmul.mubr.msk.f32.gmra.mrb[88].mxu1 %vm2552_vm1, %v4173_v24  ;;  %12642 = vmatprep.mubr.msk.f32.mxu0 %vm2552_vm1, %v5012_v37  ;;  %4057 = vst.msk [vmem:[#allocation3 + $0x28] sm:$0xff] %vm2552_vm1, %v3993_v25  ;;  %v5794_v37 = vld [vmem:[#allocation2 + $0x59] sm:$0xff] }
 0x142   : > { %12544 = vmatprep.mubr.msk.f32.mxu1 %vm2552_vm1, %v4174_v35  ;;  %4056 = vst.msk [vmem:[#allocation3 + $0x20] sm:$0xff] %vm2552_vm1, %v3992_v60  ;;  %v12370_v10 = vpop.f32.mrb[6].mxu0 }
 0x143   : > { %v3995_v17 = vadd.f32 %v12370_v10, %v3349_v62  ;;  %v3699_v19 = vpop.f32.mrb[7].mxu0  ;;  %v3388_v10 = vld [vmem:[#allocation3 + $0x170] sm:$0xff] }
 0x144   : > { %12643 = vmatmul.mubr.msk.f32.gmra.mrb[90].mxu0 %vm2552_vm1, %v5013_v41  ;;  %v3994_v27 = vadd.f32 %v3699_v19, %v3348_v5  ;;  %v3353_v41 = vld [vmem:[#allocation3 + $0x58] sm:$0xff]  ;;  %v5801_v5 = vld [vmem:[#allocation2 + $0xa1] sm:$0xff] }
 0x145   : > { %12545 = vmatmul.mubr.msk.f32.gmra.mrb[90].mxu1 %vm2552_vm1, %v4175_v39  ;;  %12645 = vmatprep.mubr.msk.f32.mxu0 %vm2552_vm1, %v5014_v47  ;;  %4059 = vst.msk [vmem:[#allocation3 + $0x38] sm:$0xff] %vm2552_vm1, %v3995_v17 }
 0x146   : > { %12547 = vmatprep.mubr.msk.f32.mxu1 %vm2552_vm1, %v4176_v45  ;;  %4058 = vst.msk [vmem:[#allocation3 + $0x30] sm:$0xff] %vm2552_vm1, %v3994_v27  ;;  %v12373_v24 = vpop.f32.mrb[8].mxu0  ;;  %v3352_v45 = vld [vmem:[#allocation3 + $0x50] sm:$0xff] }
 0x147   : > { %v3997_v33 = vadd.f32 %v12373_v24, %v3351_v6  ;;  %v3709_v35 = vpop.f32.mrb[9].mxu0  ;;  %v5803_v27 = vld [vmem:[#allocation2 + $0xb1] sm:$0xff]  ;;  %v3390_v6 = vld [vmem:[#allocation3 + $0x180] sm:$0xff] }
 0x148   : > { %12646 = vmatmul.mubr.msk.f32.gmra.mrb[92].mxu0 %vm2552_vm1, %v5015_v58  ;;  %v3996_v39 = vadd.f32 %v3709_v35, %v3350_v16  ;;  %v5797_v58 = vld [vmem:[#allocation2 + $0x79] sm:$0xff]  ;;  %v5805_v35 = vld [vmem:[#allocation2 + $0xc9] sm:$0xff] }
 0x149   : > { %12548 = vmatmul.mubr.msk.f32.gmra.mrb[92].mxu1 %vm2552_vm1, %v4177_v56  ;;  %12648 = vmatprep.mubr.msk.f32.mxu0 %vm2552_vm1, %v5016_v2  ;;  %4061 = vst.msk [vmem:[#allocation3 + $0x48] sm:$0xff] %vm2552_vm1, %v3997_v33  ;;  %v3389_v2 = vld [vmem:[#allocation3 + $0x178] sm:$0xff] }
 0x14a   : > { %12550 = vmatprep.mubr.msk.f32.mxu1 %vm2552_vm1, %v4178_v0  ;;  %4060 = vst.msk [vmem:[#allocation3 + $0x40] sm:$0xff] %vm2552_vm1, %v3996_v39  ;;  %v12376_v47 = vpop.f32.mrb[10].mxu0  ;;  %v5799_v0 = vld [vmem:[#allocation2 + $0x89] sm:$0xff]  ;;  %v5804_v16 = vld [vmem:[#allocation2 + $0xb9] sm:$0xff] }
 0x14b   : > { %v3999_v51 = vadd.f32 %v12376_v47, %v3353_v41  ;;  %v3719_v25 = vpop.f32.mrb[11].mxu0  ;;  %v3393_v33 = vld [vmem:[#allocation3 + $0x198] sm:$0xff]  ;;  %v3392_v39 = vld [vmem:[#allocation3 + $0x190] sm:$0xff]  ;;  %v3354_v41 = vld [vmem:[#allocation3 + $0x60] sm:$0xff] }
 0x14c   : > { %12649 = vmatmul.mubr.msk.f32.gmra.mrb[94].mxu0 %vm2552_vm1, %v5017_v26  ;;  %v3998_v56 = vadd.f32 %v3719_v25, %v3352_v45  ;;  %v3391_v26 = vld [vmem:[#allocation3 + $0x188] sm:$0xff] }
 0x14d   : > { %12551 = vmatmul.mubr.msk.f32.gmra.mrb[94].mxu1 %vm2552_vm1, %v4179_v22  ;;  %12751 = vmatprep.mubr.msk.f32.mxu0 %vm2552_vm1, %v14079_v9  ;;  %v5796_v9 = vld [vmem:[#allocation2 + $0x69] sm:$0xff]  ;;  %4063 = vst.msk [vmem:[#allocation3 + $0x58] sm:$0xff] %vm2552_vm1, %v3999_v51 }
 0x14e   : > { %12653 = vmatprep.mubr.msk.f32.mxu1 %vm2552_vm1, %v5793_v30  ;;  %v12427_v60 = vpop.f32.mrb[12].mxu1  ;;  %4062 = vst.msk [vmem:[#allocation3 + $0x50] sm:$0xff] %vm2552_vm1, %v3998_v56  ;;  %v3357_v56 = vld [vmem:[#allocation3 + $0x78] sm:$0xff] }
 0x14f   : > { %v3889_v62 = vpop.f32.mrb[13].mxu1 }
 0x150   : > { %12752 = vmatmul.mubr.msk.f32.vlgmr.msra.gmra.mrb[96].mxu0 %vm2552_vm1, %v14092_v15  ;;  %v11628_v15 = vld [vmem:[%s16179_s2 + $0x1c] sm:$0xf] }
 0x151   : > { %12654 = vmatmul.mubr.msk.f32.vlgmr.msra.gmra.mrb[96].mxu1 %vm2552_vm1, %v5794_v37  ;;  %12946 = vmatpush3.msk.msra.mxu0 %vm3599_vm0, %v14103_v20  ;;  %v4032_v20 = vadd.f32 %v3889_v62, %v3386_v54  ;;  %v3355_v37 = vld [vmem:[#allocation3 + $0x68] sm:$0xff] }
 0x152   : > { %12848 = vmatpush3.msk.msra.mxu1 %vm3599_vm0, %v14072_v3  ;;  %12656 = vmatprep.mubr.msk.f32.mxu1 %vm2552_vm1, %v5795_v43  ;;  %v4033_v3 = vadd.f32 %v12427_v60, %v3387_v49  ;;  %v5811_v62 = vld [vmem:[#allocation2 + $0x101] sm:$0xff] }
 0x153   : > { %12754 = vmatprep.mubr.msk.f32.mxu0 %vm2552_vm1, %v14095_v18  ;;  %13043 = vmatprep.subr.msk.mxu1 %vm3599_vm0, %v11628_v15  ;;  %v5798_v18 = vld [vmem:[#allocation2 + $0x81] sm:$0xff]  ;;  %4096 = vst.msk [vmem:[#allocation3 + $0x160] sm:$0xff] %vm2552_vm1, %v4032_v20 }
 0x154   : > { %12755 = vmatmul.mubr.msk.f32.gmra.mrb[98].mxu0 %vm2552_vm1, %v14107_v21  ;;  %4097 = vst.msk [vmem:[#allocation3 + $0x168] sm:$0xff] %vm2552_vm1, %v4033_v3  ;;  %v5800_v21 = vld [vmem:[#allocation2 + $0x91] sm:$0xff] }
 0x155   : > { %12657 = vmatmul.mubr.msk.f32.gmra.mrb[98].mxu1 %vm2552_vm1, %v5796_v9  ;;  %12757 = vmatprep.mubr.msk.f32.mxu0 %vm2552_vm1, %v14110_v23  ;;  %v5807_v9 = vld [vmem:[#allocation2 + $0xd9] sm:$0xff] }
 0x156   : > { %12659 = vmatprep.mubr.msk.f32.mxu1 %vm2552_vm1, %v5797_v58  ;;  %v3356_v58 = vld [vmem:[#allocation3 + $0x70] sm:$0xff] }
 0x158   : > { %12758 = vmatmul.mubr.msk.f32.gmra.mrb[100].mxu0 %vm2552_vm1, %v14249_v28  ;;  %v12430_v23 = vpop.f32.mrb[14].mxu1  ;;  %v5802_v28 = vld [vmem:[#allocation2 + $0xa9] sm:$0xff] }
 0x159   : > { %12660 = vmatmul.mubr.msk.f32.gmra.mrb[100].mxu1 %vm2552_vm1, %v5798_v18  ;;  %12760 = vmatprep.mubr.msk.f32.mxu0 %vm2552_vm1, %v14253_v29  ;;  %v4035_v17 = vadd.f32 %v12430_v23, %v3389_v2  ;;  %v3899_v19 = vpop.f32.mrb[15].mxu1  ;;  %v11694_v29 = vld [vmem:[%s16179_s2 + $0x20] sm:$0xf]  ;;  %v3395_v23 = vld [vmem:[#allocation3 + $0x1a8] sm:$0xff] }
 0x15a   : > { %12662 = vmatprep.mubr.msk.f32.mxu1 %vm2552_vm1, %v5799_v0  ;;  %v4034_v22 = vadd.f32 %v3899_v19, %v3388_v10  ;;  %13141 = vmatprep.subr.msk.mxu0 %vm3599_vm0, %v11694_v29  ;;  %v3358_v18 = vld [vmem:[#allocation3 + $0x80] sm:$0xff]  ;;  %v5812_v0 = vld [vmem:[#allocation2 + $0x109] sm:$0xff]  ;;  %v3361_v10 = vld [vmem:[#allocation3 + $0x98] sm:$0xff] }
 0x15b   : > { %4099 = vst.msk [vmem:[#allocation3 + $0x178] sm:$0xff] %vm2552_vm1, %v4035_v17  ;;  %v5813_v2 = vld [vmem:[#allocation2 + $0x119] sm:$0xff]  ;;  %v3360_v17 = vld [vmem:[#allocation3 + $0x90] sm:$0xff] }
 0x15c   : > { %12761 = vmatmul.mubr.msk.f32.gmra.mrb[102].mxu0 %vm2552_vm1, %v14260_v31  ;;  %4098 = vst.msk [vmem:[#allocation3 + $0x170] sm:$0xff] %vm2552_vm1, %v4034_v22  ;;  %v12433_v31 = vpop.f32.mrb[16].mxu1  ;;  %v5815_v29 = vld [vmem:[#allocation2 + $0x129] sm:$0xff] }
 0x15d   : > { %12663 = vmatmul.mubr.msk.f32.gmra.mrb[102].mxu1 %vm2552_vm1, %v5800_v21  ;;  %12763 = vmatprep.mubr.msk.f32.mxu0 %vm2552_vm1, %v14263_v8  ;;  %v4037_v8 = vadd.f32 %v12433_v31, %v3391_v26  ;;  %v3909_v30 = vpop.f32.mrb[17].mxu1 }
 0x15e   : > { %12665 = vmatprep.mubr.msk.f32.mxu1 %vm2552_vm1, %v5801_v5  ;;  %v4036_v24 = vadd.f32 %v3909_v30, %v3390_v6  ;;  %v3397_v30 = vld [vmem:[#allocation3 + $0x1b8] sm:$0xff] }
 0x15f   : > { %4101 = vst.msk [vmem:[#allocation3 + $0x188] sm:$0xff] %vm2552_vm1, %v4037_v8 }
 0x160   : > { %12764 = vmatmul.mubr.msk.f32.gmra.mrb[104].mxu0 %vm2552_vm1, %v14270_v32  ;;  %4100 = vst.msk [vmem:[#allocation3 + $0x180] sm:$0xff] %vm2552_vm1, %v4036_v24  ;;  %v12436_v43 = vpop.f32.mrb[18].mxu1  ;;  %v3396_v24 = vld [vmem:[#allocation3 + $0x1b0] sm:$0xff] }
 0x161   : > { %12666 = vmatmul.mubr.msk.f32.gmra.mrb[104].mxu1 %vm2552_vm1, %v5802_v28  ;;  %12766 = vmatprep.mubr.msk.f32.mxu0 %vm2552_vm1, %v14273_v34  ;;  %v4039_v45 = vadd.f32 %v12436_v43, %v3393_v33  ;;  %v3919_v47 = vpop.f32.mrb[19].mxu1  ;;  %v5806_v34 = vld [vmem:[#allocation2 + $0xd1] sm:$0xff] }
 0x162   : > { %12668 = vmatprep.mubr.msk.f32.mxu1 %vm2552_vm1, %v5803_v27  ;;  %v12379_v32 = vpop.f32.mrb[12].mxu0  ;;  %v4038_v25 = vadd.f32 %v3919_v47, %v3392_v39  ;;  %v3399_v39 = vld [vmem:[#allocation3 + $0x1c8] sm:$0xff] }
 0x163   : > { %v4001_v49 = vadd.f32 %v12379_v32, %v3355_v37  ;;  %v3729_v51 = vpop.f32.mrb[13].mxu0  ;;  %4103 = vst.msk [vmem:[#allocation3 + $0x198] sm:$0xff] %vm2552_vm1, %v4039_v45  ;;  %v5822_v45 = vld [vmem:[#allocation2 + $0x171] sm:$0xff] }
 0x164   : > { %12767 = vmatmul.mubr.msk.f32.gmra.mrb[106].mxu0 %vm2552_vm1, %v14280_v36  ;;  %v4000_v54 = vadd.f32 %v3729_v51, %v3354_v41  ;;  %4102 = vst.msk [vmem:[#allocation3 + $0x190] sm:$0xff] %vm2552_vm1, %v4038_v25  ;;  %v5808_v36 = vld [vmem:[#allocation2 + $0xe1] sm:$0xff]  ;;  %v3400_v25 = vld [vmem:[#allocation3 + $0x1d0] sm:$0xff] }
 0x165   : > { %12669 = vmatmul.mubr.msk.f32.gmra.mrb[106].mxu1 %vm2552_vm1, %v5804_v16  ;;  %12769 = vmatprep.mubr.msk.f32.mxu0 %vm2552_vm1, %v14283_v38  ;;  %4065 = vst.msk [vmem:[#allocation3 + $0x68] sm:$0xff] %vm2552_vm1, %v4001_v49  ;;  %v5809_v38 = vld [vmem:[#allocation2 + $0xf1] sm:$0xff]  ;;  %v3398_v41 = vld [vmem:[#allocation3 + $0x1c0] sm:$0xff]  ;;  %v3363_v49 = vld [vmem:[#allocation3 + $0xa8] sm:$0xff] }
 0x166   : > { %12671 = vmatprep.mubr.msk.f32.mxu1 %vm2552_vm1, %v5805_v35  ;;  %4064 = vst.msk [vmem:[#allocation3 + $0x60] sm:$0xff] %vm2552_vm1, %v4000_v54  ;;  %v5819_v16 = vld [vmem:[#allocation2 + $0x151] sm:$0xff]  ;;  %v6661_v51 = vld [vmem:[#allocation2 + $0x17a] sm:$0xff] }
 0x168   : > { %12770 = vmatmul.mubr.msk.f32.gmra.mrb[108].mxu0 %vm2552_vm1, %v14290_v40  ;;  %v5810_v40 = vld [vmem:[#allocation2 + $0xf9] sm:$0xff] }
 0x169   : > { %12672 = vmatmul.mubr.msk.f32.gmra.mrb[108].mxu1 %vm2552_vm1, %v5806_v34  ;;  %12772 = vmatprep.mubr.msk.f32.mxu0 %vm2552_vm1, %v14293_v42  ;;  %v3359_v42 = vld [vmem:[#allocation3 + $0x88] sm:$0xff]  ;;  %v3401_v34 = vld [vmem:[#allocation3 + $0x1d8] sm:$0xff] }
 0x16a   : > { %12674 = vmatprep.mubr.msk.f32.mxu1 %vm2552_vm1, %v5807_v9  ;;  %v12382_v60 = vpop.f32.mrb[14].mxu0  ;;  %v3362_v9 = vld [vmem:[#allocation3 + $0xa0] sm:$0xff] }
 0x16b   : > { %v4003_v15 = vadd.f32 %v12382_v60, %v3357_v56  ;;  %v3739_v3 = vpop.f32.mrb[15].mxu0  ;;  %v6662_v60 = vld [vmem:[#allocation2 + $0x182] sm:$0xff] }
 0x16c   : > { %12773 = vmatmul.mubr.msk.f32.gmra.mrb[110].mxu0 %vm2552_vm1, %v14300_v44  ;;  %v4002_v20 = vadd.f32 %v3739_v3, %v3356_v58 }
 0x16d   : > { %12675 = vmatmul.mubr.msk.f32.gmra.mrb[110].mxu1 %vm2552_vm1, %v5808_v36  ;;  %12775 = vmatprep.mubr.msk.f32.mxu0 %vm2552_vm1, %v14303_v46  ;;  %4067 = vst.msk [vmem:[#allocation3 + $0x78] sm:$0xff] %vm2552_vm1, %v4003_v15  ;;  %v5825_v15 = vld [vmem:[#allocation2 + $0x191] sm:$0xff] }
 0x16e   : > { %12677 = vmatprep.mubr.msk.f32.mxu1 %vm2552_vm1, %v5809_v38  ;;  %4066 = vst.msk [vmem:[#allocation3 + $0x70] sm:$0xff] %vm2552_vm1, %v4002_v20  ;;  %v12385_v44 = vpop.f32.mrb[16].mxu0  ;;  %v3365_v20 = vld [vmem:[#allocation3 + $0xb8] sm:$0xff] }
 0x16f   : > { %v4005_v46 = vadd.f32 %v12385_v44, %v3359_v42  ;;  %v3749_v21 = vpop.f32.mrb[17].mxu0  ;;  %v6664_v42 = vld [vmem:[#allocation2 + $0x19a] sm:$0xff]  ;;  %v3364_v44 = vld [vmem:[#allocation3 + $0xb0] sm:$0xff] }
 0x170   : > { %12776 = vmatmul.mubr.msk.f32.gmra.mrb[112].mxu0 %vm2552_vm1, %v14310_v48  ;;  %v4004_v5 = vadd.f32 %v3749_v21, %v3358_v18  ;;  %v3394_v48 = vld [vmem:[#allocation3 + $0x1a0] sm:$0xff] }
 0x171   : > { %12678 = vmatmul.mubr.msk.f32.gmra.mrb[112].mxu1 %vm2552_vm1, %v5810_v40  ;;  %12778 = vmatprep.mubr.msk.f32.mxu0 %vm2552_vm1, %v14313_v50  ;;  %4069 = vst.msk [vmem:[#allocation3 + $0x88] sm:$0xff] %vm2552_vm1, %v4005_v46  ;;  %v5814_v50 = vld [vmem:[#allocation2 + $0x121] sm:$0xff] }
 0x172   : > { %12680 = vmatprep.mubr.msk.f32.mxu1 %vm2552_vm1, %v5811_v62  ;;  %4068 = vst.msk [vmem:[#allocation3 + $0x80] sm:$0xff] %vm2552_vm1, %v4004_v5  ;;  %v12388_v19 = vpop.f32.mrb[18].mxu0  ;;  %v6663_v62 = vld [vmem:[#allocation2 + $0x192] sm:$0xff]  ;;  %v5827_v18 = vld [vmem:[#allocation2 + $0x1a1] sm:$0xff]  ;;  %v5828_v5 = vld [vmem:[#allocation2 + $0x1a9] sm:$0xff] }
 0x173   : > { %v4007_v22 = vadd.f32 %v12388_v19, %v3361_v10  ;;  %v3759_v26 = vpop.f32.mrb[19].mxu0  ;;  %v3366_v19 = vld [vmem:[#allocation3 + $0xc0] sm:$0xff] }
 0x174   : > { %12779 = vmatmul.mubr.msk.f32.gmra.mrb[114].mxu0 %vm2552_vm1, %v14320_v52  ;;  %v12439_v28 = vpop.f32.mrb[20].mxu1  ;;  %v4006_v31 = vadd.f32 %v3759_v26, %v3360_v17  ;;  %v5816_v52 = vld [vmem:[#allocation2 + $0x131] sm:$0xff] }
 0x175   : > { %12681 = vmatmul.mubr.msk.f32.gmra.mrb[114].mxu1 %vm2552_vm1, %v5812_v0  ;;  %12781 = vmatprep.mubr.msk.f32.mxu0 %vm2552_vm1, %v14323_v53  ;;  %v4041_v27 = vadd.f32 %v12439_v28, %v3395_v23  ;;  %v3929_v6 = vpop.f32.mrb[21].mxu1  ;;  %4071 = vst.msk [vmem:[#allocation3 + $0x98] sm:$0xff] %vm2552_vm1, %v4007_v22  ;;  %v5817_v53 = vld [vmem:[#allocation2 + $0x141] sm:$0xff]  ;;  %v6666_v17 = vld [vmem:[#allocation2 + $0x1aa] sm:$0xff] }
 0x176   : > { %12683 = vmatprep.mubr.msk.f32.mxu1 %vm2552_vm1, %v5813_v2  ;;  %v4040_v8 = vadd.f32 %v3929_v6, %v3394_v48  ;;  %4070 = vst.msk [vmem:[#allocation3 + $0x90] sm:$0xff] %vm2552_vm1, %v4006_v31  ;;  %v6665_v0 = vld [vmem:[#allocation2 + $0x1a2] sm:$0xff]  ;;  %v5829_v48 = vld [vmem:[#allocation2 + $0x1b9] sm:$0xff] }
 0x177   : > { %4105 = vst.msk [vmem:[#allocation3 + $0x1a8] sm:$0xff] %vm2552_vm1, %v4041_v27  ;;  %v3367_v23 = vld [vmem:[#allocation3 + $0xc8] sm:$0xff]  ;;  %v3369_v6 = vld [vmem:[#allocation3 + $0xd8] sm:$0xff] }
 0x178   : > { %12782 = vmatmul.mubr.msk.f32.gmra.mrb[116].mxu0 %vm2552_vm1, %v14330_v55  ;;  %4104 = vst.msk [vmem:[#allocation3 + $0x1a0] sm:$0xff] %vm2552_vm1, %v4040_v8  ;;  %v5818_v55 = vld [vmem:[#allocation2 + $0x149] sm:$0xff] }
 0x179   : > { %12684 = vmatmul.mubr.msk.f32.gmra.mrb[116].mxu1 %vm2552_vm1, %v5814_v50  ;;  %12784 = vmatprep.mubr.msk.f32.mxu0 %vm2552_vm1, %v14333_v57  ;;  %v6667_v50 = vld [vmem:[#allocation2 + $0x1ba] sm:$0xff]  ;;  %v6668_v31 = vld [vmem:[#allocation2 + $0x1c2] sm:$0xff] }
 0x17a   : > { %12686 = vmatprep.mubr.msk.f32.mxu1 %vm2552_vm1, %v5815_v29  ;;  %v5830_v29 = vld [vmem:[#allocation2 + $0x1c1] sm:$0xff]  ;;  %v5831_v8 = vld [vmem:[#allocation2 + $0x1c9] sm:$0xff] }
 0x17c   : > { %12785 = vmatmul.mubr.msk.f32.gmra.mrb[118].mxu0 %vm2552_vm1, %v14340_v59  ;;  %v5820_v59 = vld [vmem:[#allocation2 + $0x159] sm:$0xff] }
 0x17d   : > { %12687 = vmatmul.mubr.msk.f32.gmra.mrb[118].mxu1 %vm2552_vm1, %v5816_v52  ;;  %12787 = vmatprep.mubr.msk.f32.mxu0 %vm2552_vm1, %v14343_v61  ;;  %v5821_v61 = vld [vmem:[#allocation2 + $0x169] sm:$0xff] }
 0x17e   : > { %12689 = vmatprep.mubr.msk.f32.mxu1 %vm2552_vm1, %v5817_v53  ;;  %v12442_v33 = vpop.f32.mrb[22].mxu1  ;;  %v3368_v52 = vld [vmem:[#allocation3 + $0xd0] sm:$0xff] }
 0x17f   : > { %v4043_v57 = vadd.f32 %v12442_v33, %v3397_v30  ;;  %v3939_v35 = vpop.f32.mrb[23].mxu1  ;;  %v6669_v53 = vld [vmem:[#allocation2 + $0x1ca] sm:$0xff] }
 0x180   : > { %12788 = vmatmul.mubr.msk.f32.gmra.mrb[120].mxu0 %vm2552_vm1, %v14350_v63  ;;  %v4042_v37 = vadd.f32 %v3939_v35, %v3396_v24  ;;  %v3403_v30 = vld [vmem:[#allocation3 + $0x1e8] sm:$0xff] }
 0x181   : > { %12690 = vmatmul.mubr.msk.f32.gmra.mrb[120].mxu1 %vm2552_vm1, %v5818_v55  ;;  %12790 = vmatprep.mubr.msk.f32.mxu0 %vm2552_vm1, %v14353_v1  ;;  %4107 = vst.msk [vmem:[#allocation3 + $0x1b8] sm:$0xff] %vm2552_vm1, %v4043_v57  ;;  %v5823_v1 = vld [vmem:[#allocation2 + $0x179] sm:$0xff] }
 0x182   : > { %12692 = vmatprep.mubr.msk.f32.mxu1 %vm2552_vm1, %v5819_v16  ;;  %4106 = vst.msk [vmem:[#allocation3 + $0x1b0] sm:$0xff] %vm2552_vm1, %v4042_v37  ;;  %v12445_v43 = vpop.f32.mrb[24].mxu1  ;;  %v5832_v16 = vld [vmem:[#allocation2 + $0x1d1] sm:$0xff]  ;;  %v3402_v57 = vld [vmem:[#allocation3 + $0x1e0] sm:$0xff] }
 0x183   : > { %v4045_v63 = vadd.f32 %v12445_v43, %v3399_v39  ;;  %v3949_v32 = vpop.f32.mrb[25].mxu1  ;;  %v6670_v37 = vld [vmem:[#allocation2 + $0x1d2] sm:$0xff]  ;;  %v5833_v39 = vld [vmem:[#allocation2 + $0x1e1] sm:$0xff] }
 0x184   : > { %12791 = vmatmul.mubr.msk.f32.gmra.mrb[122].mxu0 %vm2552_vm1, %v14360_v4  ;;  %v4044_v47 = vadd.f32 %v3949_v32, %v3398_v41  ;;  %v6671_v41 = vld [vmem:[#allocation2 + $0x1e2] sm:$0xff] }
 0x185   : > { %12693 = vmatmul.mubr.msk.f32.gmra.mrb[122].mxu1 %vm2552_vm1, %v5820_v59  ;;  %12793 = vmatprep.mubr.msk.f32.mxu0 %vm2552_vm1, %v14363_v7  ;;  %4109 = vst.msk [vmem:[#allocation3 + $0x1c8] sm:$0xff] %vm2552_vm1, %v4045_v63  ;;  %v5824_v7 = vld [vmem:[#allocation2 + $0x181] sm:$0xff] }
 0x186   : > { %12695 = vmatprep.mubr.msk.f32.mxu1 %vm2552_vm1, %v5821_v61  ;;  %4108 = vst.msk [vmem:[#allocation3 + $0x1c0] sm:$0xff] %vm2552_vm1, %v4044_v47  ;;  %v12448_v4 = vpop.f32.mrb[26].mxu1  ;;  %v3371_v59 = vld [vmem:[#allocation3 + $0xe8] sm:$0xff]  ;;  %v3370_v61 = vld [vmem:[#allocation3 + $0xe0] sm:$0xff] }
 0x187   : > { %v4047_v36 = vadd.f32 %v12448_v4, %v3401_v34  ;;  %v3959_v38 = vpop.f32.mrb[27].mxu1  ;;  %v5834_v47 = vld [vmem:[#allocation2 + $0x1e9] sm:$0xff]  ;;  %v3373_v4 = vld [vmem:[#allocation3 + $0xf8] sm:$0xff] }
 0x188   : > { %12794 = vmatmul.mubr.msk.f32.gmra.mrb[124].mxu0 %vm2552_vm1, %v14370_v12  ;;  %v12391_v54 = vpop.f32.mrb[20].mxu0  ;;  %v4046_v40 = vadd.f32 %v3959_v38, %v3400_v25  ;;  %v5826_v12 = vld [vmem:[#allocation2 + $0x199] sm:$0xff]  ;;  %v3404_v25 = vld [vmem:[#allocation3 + $0x1f0] sm:$0xff] }
 0x189   : > { %12696 = vmatmul.mubr.msk.f32.gmra.mrb[124].mxu1 %vm2552_vm1, %v5822_v45  ;;  %v4009_v56 = vadd.f32 %v12391_v54, %v3363_v49  ;;  %12796 = vmatprep.mubr.msk.f32.mxu0 %vm2552_vm1, %v6661_v51  ;;  %v3769_v58 = vpop.f32.mrb[21].mxu0  ;;  %4111 = vst.msk [vmem:[#allocation3 + $0x1d8] sm:$0xff] %vm2552_vm1, %v4047_v36  ;;  %v6672_v54 = vld [vmem:[#allocation2 + $0x1ea] sm:$0xff] }
 0x18a   : > { %12698 = vmatprep.mubr.msk.f32.mxu1 %vm2552_vm1, %v5823_v1  ;;  %v4008_v3 = vadd.f32 %v3769_v58, %v3362_v9  ;;  %4110 = vst.msk [vmem:[#allocation3 + $0x1d0] sm:$0xff] %vm2552_vm1, %v4046_v40  ;;  %v3405_v1 = vld [vmem:[#allocation3 + $0x1f8] sm:$0xff]  ;;  %v3372_v38 = vld [vmem:[#allocation3 + $0xf0] sm:$0xff] }
 0x18b   : > { %4073 = vst.msk [vmem:[#allocation3 + $0xa8] sm:$0xff] %vm2552_vm1, %v4009_v56  ;;  %v5835_v36 = vld [vmem:[#allocation2 + $0x1f1] sm:$0xff] }
 0x18c   : > { %4072 = vst.msk [vmem:[#allocation3 + $0xa0] sm:$0xff] %vm2552_vm1, %v4008_v3  ;;  %12797 = vmatmul.mubr.msk.f32.gmra.mrb[126].mxu0 %vm2552_vm1, %v6662_v60 }
 0x18d   : > { %12699 = vmatmul.mubr.msk.f32.gmra.mrb[126].mxu1 %vm2552_vm1, %v5824_v7  ;;  %12799 = vmatprep.mubr.msk.f32.mxu0 %vm2552_vm1, %v6663_v62  ;;  %v6673_v7 = vld [vmem:[#allocation2 + $0x1f2] sm:$0xff] }
 0x18e   : > { %12701 = vmatprep.mubr.msk.f32.mxu1 %vm2552_vm1, %v5825_v15 }
 0x18f   : > { %v12394_v46 = vpop.f32.mrb[22].mxu0 }
 0x190   : > { %v4011_v21 = vadd.f32 %v12394_v46, %v3365_v20  ;;  %v3779_v2 = vpop.f32.mrb[23].mxu0  ;;  %12800 = vmatmul.mubr.msk.f32.gmra.mrb[128].mxu0 %vm2552_vm1, %v6664_v42  ;;  %v6674_v42 = vld [vmem:[#allocation2 + $0x1fa] sm:$0xff] }
 0x191   : > { %12702 = vmatmul.mubr.msk.f32.gmra.mrb[128].mxu1 %vm2552_vm1, %v5826_v12  ;;  %v4010_v10 = vadd.f32 %v3779_v2, %v3364_v44  ;;  %12802 = vmatprep.mubr.msk.f32.mxu0 %vm2552_vm1, %v6665_v0  ;;  %v5836_v12 = vld [vmem:[#allocation2 + $0x1f9] sm:$0xff]  ;;  %v6675_v44 = vld [vmem:[#allocation2 + $0x20a] sm:$0xff] }
 0x192   : > { %12704 = vmatprep.mubr.msk.f32.mxu1 %vm2552_vm1, %v5827_v18  ;;  %4075 = vst.msk [vmem:[#allocation3 + $0xb8] sm:$0xff] %vm2552_vm1, %v4011_v21  ;;  %v5837_v18 = vld [vmem:[#allocation2 + $0x209] sm:$0xff] }
 0x193   : > { %4074 = vst.msk [vmem:[#allocation3 + $0xb0] sm:$0xff] %vm2552_vm1, %v4010_v10  ;;  %v12397_v28 = vpop.f32.mrb[24].mxu0  ;;  %v4181_v0 = vld [vmem:[#allocation3 + $0x8] sm:$0xff] }
 0x194   : > { %v4013_v22 = vadd.f32 %v12397_v28, %v3367_v23  ;;  %v3789_v26 = vpop.f32.mrb[25].mxu0  ;;  %12803 = vmatmul.mubr.msk.f32.gmra.mrb[130].mxu0 %vm2552_vm1, %v6666_v17  ;;  %v6677_v28 = vld [vmem:[#allocation2 + $0x21a] sm:$0xff] }
 0x195   : > { %12705 = vmatmul.mubr.msk.f32.gmra.mrb[130].mxu1 %vm2552_vm1, %v5828_v5  ;;  %v4012_v27 = vadd.f32 %v3789_v26, %v3366_v19  ;;  %12805 = vmatprep.mubr.msk.f32.mxu0 %vm2552_vm1, %v6667_v50  ;;  %v4180_v5 = vld [vmem:[#allocation3] sm:$0xff]  ;;  %v6676_v19 = vld [vmem:[#allocation2 + $0x212] sm:$0xff] }
 0x196   : > { %12707 = vmatprep.mubr.msk.f32.mxu1 %vm2552_vm1, %v5829_v48  ;;  %4077 = vst.msk [vmem:[#allocation3 + $0xc8] sm:$0xff] %vm2552_vm1, %v4013_v22  ;;  %v5838_v48 = vld [vmem:[#allocation2 + $0x211] sm:$0xff]  ;;  %v5839_v50 = vld [vmem:[#allocation2 + $0x219] sm:$0xff] }
 0x197   : > { %4076 = vst.msk [vmem:[#allocation3 + $0xc0] sm:$0xff] %vm2552_vm1, %v4012_v27  ;;  %v12400_v55 = vpop.f32.mrb[26].mxu0  ;;  %v4183_v22 = vld [vmem:[#allocation3 + $0x18] sm:$0xff] }
 0x198   : > { %v4015_v24 = vadd.f32 %v12400_v55, %v3369_v6  ;;  %v3799_v33 = vpop.f32.mrb[27].mxu0  ;;  %12806 = vmatmul.mubr.msk.f32.gmra.mrb[132].mxu0 %vm2552_vm1, %v6668_v31  ;;  %v4182_v6 = vld [vmem:[#allocation3 + $0x10] sm:$0xff]  ;;  %v6678_v55 = vld [vmem:[#allocation2 + $0x222] sm:$0xff] }
 0x199   : > { %12708 = vmatmul.mubr.msk.f32.gmra.mrb[132].mxu1 %vm2552_vm1, %v5830_v29  ;;  %v4014_v35 = vadd.f32 %v3799_v33, %v3368_v52  ;;  %12808 = vmatprep.mubr.msk.f32.mxu0 %vm2552_vm1, %v6669_v53  ;;  %v5840_v53 = vld [vmem:[#allocation2 + $0x221] sm:$0xff] }
 0x19a   : > { %12710 = vmatprep.mubr.msk.f32.mxu1 %vm2552_vm1, %v5831_v8  ;;  %4079 = vst.msk [vmem:[#allocation3 + $0xd8] sm:$0xff] %vm2552_vm1, %v4015_v24  ;;  %v4185_v24 = vld [vmem:[#allocation3 + $0x28] sm:$0xff] }
 0x19b   : > { %4078 = vst.msk [vmem:[#allocation3 + $0xd0] sm:$0xff] %vm2552_vm1, %v4014_v35  ;;  %v12403_v63 = vpop.f32.mrb[28].mxu0 }
 0x19c   : > { %v12451_v43 = vpop.f32.mrb[28].mxu1  ;;  %v4017_v34 = vadd.f32 %v12403_v63, %v3371_v59  ;;  %v3809_v49 = vpop.f32.mrb[29].mxu0  ;;  %12809 = vmatmul.mubr.msk.f32.gmra.mrb[134].mxu0 %vm2552_vm1, %v6670_v37  ;;  %v4184_v59 = vld [vmem:[#allocation3 + $0x20] sm:$0xff] }
 0x19d   : > { %v4049_v32 = vadd.f32 %v12451_v43, %v3403_v30  ;;  %v3969_v45 = vpop.f32.mrb[29].mxu1  ;;  %12711 = vmatmul.mubr.msk.f32.gmra.mrb[134].mxu1 %vm2552_vm1, %v5832_v16  ;;  %v4016_v9 = vadd.f32 %v3809_v49, %v3370_v61  ;;  %12811 = vmatprep.mubr.msk.f32.mxu0 %vm2552_vm1, %v6671_v41  ;;  %v5841_v30 = vld [vmem:[#allocation2 + $0x231] sm:$0xff]  ;;  %v5842_v43 = vld [vmem:[#allocation2 + $0x239] sm:$0xff] }
 0x19e   : > { %v4048_v51 = vadd.f32 %v3969_v45, %v3402_v57  ;;  %12713 = vmatprep.mubr.msk.f32.mxu1 %vm2552_vm1, %v5833_v39  ;;  %4081 = vst.msk [vmem:[#allocation3 + $0xe8] sm:$0xff] %vm2552_vm1, %v4017_v34  ;;  %v6679_v16 = vld [vmem:[#allocation2 + $0x232] sm:$0xff]  ;;  %v6680_v63 = vld [vmem:[#allocation2 + $0x23a] sm:$0xff] }
 0x19f   : > { %4113 = vst.msk [vmem:[#allocation3 + $0x1e8] sm:$0xff] %vm2552_vm1, %v4049_v32  ;;  %4080 = vst.msk [vmem:[#allocation3 + $0xe0] sm:$0xff] %vm2552_vm1, %v4016_v9  ;;  %v12406_v58 = vpop.f32.mrb[30].mxu0  ;;  %v4187_v49 = vld [vmem:[#allocation3 + $0x38] sm:$0xff] }
 0x1a0   : > { %4112 = vst.msk [vmem:[#allocation3 + $0x1e0] sm:$0xff] %vm2552_vm1, %v4048_v51  ;;  %v12454_v56 = vpop.f32.mrb[30].mxu1  ;;  %v4019_v15 = vadd.f32 %v12406_v58, %v3373_v4  ;;  %v3819_v3 = vpop.f32.mrb[31].mxu0  ;;  %12812 = vmatmul.mubr.msk.f32.gmra.mrb[136].mxu0 %vm2552_vm1, %v6672_v54  ;;  %v4186_v4 = vld [vmem:[#allocation3 + $0x30] sm:$0xff] }
 0x1a1   : > { %v4051_v60 = vadd.f32 %v12454_v56, %v3405_v1  ;;  %v3979_v40 = vpop.f32.mrb[31].mxu1  ;;  %12714 = vmatmul.mubr.msk.f32.gmra.mrb[136].mxu1 %vm2552_vm1, %v5834_v47  ;;  %v4018_v20 = vadd.f32 %v3819_v3, %v3372_v38  ;;  %12814 = vmatprep.mubr.msk.f32.mxu0 %vm2552_vm1, %v6673_v7  ;;  %v5843_v1 = vld [vmem:[#allocation2 + $0x241] sm:$0xff]  ;;  %v5844_v56 = vld [vmem:[#allocation2 + $0x249] sm:$0xff] }
 0x1a2   : > { %v4050_v62 = vadd.f32 %v3979_v40, %v3404_v25  ;;  %12716 = vmatprep.mubr.msk.f32.mxu1 %vm2552_vm1, %v5835_v36  ;;  %4083 = vst.msk [vmem:[#allocation3 + $0xf8] sm:$0xff] %vm2552_vm1, %v4019_v15  ;;  %v6681_v47 = vld [vmem:[#allocation2 + $0x242] sm:$0xff]  ;;  %v6682_v58 = vld [vmem:[#allocation2 + $0x24a] sm:$0xff]  ;;  %v5845_v15 = vld [vmem:[#allocation2 + $0x259] sm:$0xff] }
 0x1a3   : > { %4115 = vst.msk [vmem:[#allocation3 + $0x1f8] sm:$0xff] %vm2552_vm1, %v4051_v60  ;;  %4082 = vst.msk [vmem:[#allocation3 + $0xf0] sm:$0xff] %vm2552_vm1, %v4018_v20  ;;  %v12557_v21 = vpop.f32.mrb[32].mxu0  ;;  %v6683_v3 = vld [vmem:[#allocation2 + $0x25a] sm:$0xff] }
 0x1a4   : > { %4114 = vst.msk [vmem:[#allocation3 + $0x1f0] sm:$0xff] %vm2552_vm1, %v4050_v62  ;;  %v12459_v46 = vpop.f32.mrb[32].mxu1  ;;  %v5345_v23 = vpop.f32.mrb[33].mxu0  ;;  %12815 = vmatmul.mubr.msk.f32.gmra.mrb[138].mxu0 %vm2552_vm1, %v6674_v42 }
 0x1a5   : > { %v4827_v2 = vadd.f32 %v12459_v46, %v4181_v0  ;;  %v4507_v10 = vpop.f32.mrb[33].mxu1  ;;  %12717 = vmatmul.mubr.msk.f32.gmra.mrb[138].mxu1 %vm2552_vm1, %v5836_v12  ;;  %12817 = vmatprep.mubr.msk.f32.mxu0 %vm2552_vm1, %v6675_v44  ;;  %v4189_v12 = vld [vmem:[#allocation3 + $0x48] sm:$0xff]  ;;  %v4188_v44 = vld [vmem:[#allocation3 + $0x40] sm:$0xff] }
 0x1a6   : > { %v4826_v17 = vadd.f32 %v4507_v10, %v4180_v5  ;;  %12719 = vmatprep.mubr.msk.f32.mxu1 %vm2552_vm1, %v5837_v18  ;;  %v5846_v46 = vld [vmem:[#allocation2 + $0x261] sm:$0xff] }
 0x1a7   : > { %4891 = vst.msk [vmem:[#allocation3 + $0x8] sm:$0xff] %vm2552_vm1, %v4827_v2  ;;  %v12560_v29 = vpop.f32.mrb[34].mxu0  ;;  %v6684_v10 = vld [vmem:[#allocation2 + $0x262] sm:$0xff] }
 0x1a8   : > { %4890 = vst.msk [vmem:[#allocation3] sm:$0xff] %vm2552_vm1, %v4826_v17  ;;  %v12462_v26 = vpop.f32.mrb[34].mxu1  ;;  %v5355_v8 = vpop.f32.mrb[35].mxu0  ;;  %12818 = vmatmul.mubr.msk.f32.gmra.mrb[140].mxu0 %vm2552_vm1, %v6676_v19  ;;  %v5847_v19 = vld [vmem:[#allocation2 + $0x269] sm:$0xff] }
 0x1a9   : > { %v4829_v27 = vadd.f32 %v12462_v26, %v4183_v22  ;;  %v4517_v31 = vpop.f32.mrb[35].mxu1  ;;  %12720 = vmatmul.mubr.msk.f32.gmra.mrb[140].mxu1 %vm2552_vm1, %v5838_v48  ;;  %12820 = vmatprep.mubr.msk.f32.mxu0 %vm2552_vm1, %v6677_v28  ;;  %v4191_v26 = vld [vmem:[#allocation3 + $0x58] sm:$0xff] }
 0x1aa   : > { %v4828_v52 = vadd.f32 %v4517_v31, %v4182_v6  ;;  %12722 = vmatprep.mubr.msk.f32.mxu1 %vm2552_vm1, %v5839_v50  ;;  %v6685_v50 = vld [vmem:[#allocation2 + $0x26a] sm:$0xff] }
 0x1ab   : > { %4893 = vst.msk [vmem:[#allocation3 + $0x18] sm:$0xff] %vm2552_vm1, %v4829_v27  ;;  %v14640_v57 = vpop.f32.mrb[36].mxu0  ;;  %v4190_v31 = vld [vmem:[#allocation3 + $0x50] sm:$0xff] }
 0x1ac   : > { %4892 = vst.msk [vmem:[#allocation3 + $0x10] sm:$0xff] %vm2552_vm1, %v4828_v52  ;;  %v12465_v33 = vpop.f32.mrb[36].mxu1  ;;  %v14643_v39 = vpop.f32.mrb[37].mxu0  ;;  %12821 = vmatmul.mubr.msk.f32.gmra.mrb[142].mxu0 %vm2552_vm1, %v6678_v55 }
 0x1ad   : > { %v4831_v35 = vadd.f32 %v12465_v33, %v4185_v24  ;;  %v4527_v37 = vpop.f32.mrb[37].mxu1  ;;  %12723 = vmatmul.mubr.msk.f32.gmra.mrb[142].mxu1 %vm2552_vm1, %v5840_v53  ;;  %12823 = vmatprep.mubr.msk.f32.mxu0 %vm2552_vm1, %v6679_v16  ;;  %v5848_v33 = vld [vmem:[#allocation2 + $0x271] sm:$0xff] }
 0x1ae   : > { %v4830_v61 = vadd.f32 %v4527_v37, %v4184_v59  ;;  %v5019_v41 = vld [vmem:[#allocation3 + $0x8] sm:$0xff]  ;;  %12725 = vmatprep.mubr.msk.f32.mxu1 %vm2552_vm1, %v5841_v30  ;;  %v14687_v30 = vld [vmem:[%s13947_s29 + $0x20] sm:$0xff] }
 0x1af   : > { %4895 = vst.msk [vmem:[#allocation3 + $0x28] sm:$0xff] %vm2552_vm1, %v4831_v35  ;;  %v5665_v32 = vadd.f32 %v12557_v21, %v5019_v41  ;;  %v5018_v45 = vld [vmem:[#allocation3] sm:$0xff]  ;;  %v14650_v25 = vpop.f32.mrb[38].mxu0  ;;  %v2822_v35 = vrot.slane %v14687_v30, %v13433_v11 }
 0x1b0   : > { %4894 = vst.msk [vmem:[#allocation3 + $0x20] sm:$0xff] %vm2552_vm1, %v4830_v61  ;;  %v5664_v34 = vadd.f32 %v5345_v23, %v5018_v45  ;;  %v12468_v51 = vpop.f32.mrb[38].mxu1  ;;  %v14654_v36 = vpop.f32.mrb[39].mxu0  ;;  %12824 = vmatmul.mubr.msk.f32.gmra.mrb[144].mxu0 %vm2552_vm1, %v6680_v63  ;;  %v2637_v23 = vld [vmem:[%s13947_s29 + $0x18] sm:$0xff]  ;;  %v6687_v61 = vld [vmem:[#allocation2 + $0x282] sm:$0xff] }
 0x1b1   : > { %5729 = vst.msk [vmem:[#allocation3 + $0x8] sm:$0xff] %vm2552_vm1, %v5665_v32  ;;  %v4833_v9 = vadd.f32 %v12468_v51, %v4187_v49  ;;  %v4537_v54 = vpop.f32.mrb[39].mxu1  ;;  %12726 = vmatmul.mubr.msk.f32.gmra.mrb[144].mxu1 %vm2552_vm1, %v5842_v43  ;;  %12826 = vmatprep.mubr.msk.f32.mxu0 %vm2552_vm1, %v6681_v47  ;;  %v2766_v28 = vcombine.high %v2637_v23, %v2637_v23  ;;  %v4193_v32 = vld [vmem:[#allocation3 + $0x68] sm:$0xff]  ;;  %v4192_v51 = vld [vmem:[#allocation3 + $0x60] sm:$0xff] }
 0x1b2   : > { %5728 = vst.msk [vmem:[#allocation3] sm:$0xff] %vm2552_vm1, %v5664_v34  ;;  %v4832_v38 = vadd.f32 %v4537_v54, %v4186_v4  ;;  %v5021_v7 = vld [vmem:[#allocation3 + $0x18] sm:$0xff]  ;;  %12728 = vmatprep.mubr.msk.f32.mxu1 %vm2552_vm1, %v5843_v1  ;;  %v2773_v53 = vrot.slane %v2637_v23, %v13433_v11  ;;  %v2830_v47 = vcombine.high %v2822_v35, %v2822_v35 }
 0x1b3   : > { %4897 = vst.msk [vmem:[#allocation3 + $0x38] sm:$0xff] %vm2552_vm1, %v4833_v9  ;;  %v5667_v60 = vadd.f32 %v12560_v29, %v5021_v7  ;;  %v5020_v40 = vld [vmem:[#allocation3 + $0x10] sm:$0xff]  ;;  %v14662_v42 = vpop.f32.mrb[40].mxu0  ;;  %v2780_v55 = vrot.slane %v2766_v28, %v13433_v11  ;;  %v2815_v34 = vcombine.high %v14687_v30, %v14687_v30 }
 0x1b4   : > { %4896 = vst.msk [vmem:[#allocation3 + $0x30] sm:$0xff] %vm2552_vm1, %v4832_v38  ;;  %v5666_v62 = vadd.f32 %v5355_v8, %v5020_v40  ;;  %v12471_v20 = vpop.f32.mrb[40].mxu1  ;;  %v14666_v21 = vpop.f32.mrb[41].mxu0  ;;  %12827 = vmatmul.mubr.msk.f32.gmra.mrb[146].mxu0 %vm2552_vm1, %v6682_v58  ;;  %v2781_v41 = vcombine.high %v2773_v53, %v2773_v53  ;;  %v2789_v4 = vrot.slane %v2773_v53, %v13433_v11  ;;  %v5850_v7 = vld [vmem:[#allocation2 + $0x289] sm:$0xff] }
 0x1b5   : > { %5731 = vst.msk [vmem:[#allocation3 + $0x18] sm:$0xff] %vm2552_vm1, %v5667_v60  ;;  %v4835_v18 = vadd.f32 %v12471_v20, %v4189_v12  ;;  %v4547_v0 = vpop.f32.mrb[41].mxu1  ;;  %12729 = vmatmul.mubr.msk.f32.gmra.mrb[146].mxu1 %vm2552_vm1, %v5844_v56  ;;  %12829 = vmatprep.mubr.msk.f32.mxu0 %vm2552_vm1, %v6683_v3  ;;  %v2782_v43 = vcombine.high %v2780_v55, %v2780_v55  ;;  %v6688_v56 = vld [vmem:[#allocation2 + $0x28a] sm:$0xff] }
 0x1b6   : > { %5730 = vst.msk [vmem:[#allocation3 + $0x10] sm:$0xff] %vm2552_vm1, %v5666_v62  ;;  %v4834_v2 = vadd.f32 %v4547_v0, %v4188_v44  ;;  %v5023_v5 = vld [vmem:[#allocation3 + $0x28] sm:$0xff]  ;;  %12731 = vmatprep.mubr.msk.f32.mxu1 %vm2552_vm1, %v5845_v15  ;;  %v14709_v54 = vrot.slane %v2780_v55, %v13433_v11  ;;  %v2803_v58 = vrot.slane %v2781_v41, %v13433_v11  ;;  %v5851_v3 = vld [vmem:[#allocation2 + $0x291] sm:$0xff] }
 0x1b7   : > { %4899 = vst.msk [vmem:[#allocation3 + $0x48] sm:$0xff] %vm2552_vm1, %v4835_v18  ;;  %v5669_v17 = vadd.f32 %v14640_v57, %v5023_v5  ;;  %v5022_v48 = vld [vmem:[#allocation3 + $0x20] sm:$0xff]  ;;  %v14677_v27 = vpop.f32.mrb[42].mxu0  ;;  %v6686_v57 = vld [vmem:[#allocation2 + $0x272] sm:$0xff]  ;;  %v2810_v60 = vrot.slane %v2782_v43, %v13433_v11  ;;  %v2811_v12 = vcombine.high %v2789_v4, %v2789_v4  ;;  %v14721_v18 = vrot.slane %v2822_v35, %v13433_v11  ;;  %v5853_v55 = vld [vmem:[#allocation2 + $0x2a9] sm:$0xff] }
 0x1b8   : > { %4898 = vst.msk [vmem:[#allocation3 + $0x40] sm:$0xff] %vm2552_vm1, %v4834_v2  ;;  %v5668_v22 = vadd.f32 %v14643_v39, %v5022_v48  ;;  %v12474_v29 = vpop.f32.mrb[42].mxu1  ;;  %v14681_v52 = vpop.f32.mrb[43].mxu0  ;;  %12830 = vmatmul.mubr.msk.f32.gmra.mrb[148].mxu0 %vm2552_vm1, %v6684_v10  ;;  %v5849_v39 = vld [vmem:[#allocation2 + $0x281] sm:$0xff]  ;;  %v6689_v62 = vld [vmem:[#allocation2 + $0x292] sm:$0xff]  ;;  %v2812_v20 = vcombine.high %v14709_v54, %v14709_v54  ;;  %v2813_v5 = vcombine.high %v2803_v58, %v2803_v58 }
 0x1b9   : > { %5733 = vst.msk [vmem:[#allocation3 + $0x28] sm:$0xff] %vm2552_vm1, %v5669_v17  ;;  %v4837_v6 = vadd.f32 %v12474_v29, %v4191_v26  ;;  %v4557_v8 = vpop.f32.mrb[43].mxu1  ;;  %12732 = vmatmul.mubr.msk.f32.gmra.mrb[148].mxu1 %vm2552_vm1, %v5846_v46  ;;  %12832 = vmatprep.mubr.msk.f32.mxu0 %vm2552_vm1, %v6685_v50  ;;  %v4195_v0 = vld [vmem:[#allocation3 + $0x78] sm:$0xff]  ;;  %v14728_v10 = vrot.slane %v2830_v47, %v13433_v11  ;;  %v4194_v17 = vld [vmem:[#allocation3 + $0x70] sm:$0xff] }
 0x1ba   : > { %5732 = vst.msk [vmem:[#allocation3 + $0x20] sm:$0xff] %vm2552_vm1, %v5668_v22  ;;  %v4836_v16 = vadd.f32 %v4557_v8, %v4190_v31  ;;  %v5025_v24 = vld [vmem:[#allocation3 + $0x38] sm:$0xff]  ;;  %12734 = vmatprep.mubr.msk.f32.mxu1 %vm2552_vm1, %v5847_v19  ;;  %v2965_v50 = vrot.slane %v2803_v58, %v13441_v13  ;;  %v2973_v31 = vrot.slane %v2813_v5, %v13441_v13 }
 0x1bb   : > { %4901 = vst.msk [vmem:[#allocation3 + $0x58] sm:$0xff] %vm2552_vm1, %v4837_v6  ;;  %v5671_v59 = vadd.f32 %v14650_v25, %v5025_v24  ;;  %v5024_v37 = vld [vmem:[#allocation3 + $0x30] sm:$0xff]  ;;  %v14698_v1 = vpop.f32.mrb[44].mxu0  ;;  %v5852_v26 = vld [vmem:[#allocation2 + $0x299] sm:$0xff]  ;;  %v2969_v6 = vrot.slane %v2811_v12, %v13441_v13  ;;  %v2977_v24 = vrot.slane %v14709_v54, %v13441_v13 }
 0x1bc   : > { %4900 = vst.msk [vmem:[#allocation3 + $0x50] sm:$0xff] %vm2552_vm1, %v4836_v16  ;;  %v5670_v63 = vadd.f32 %v14654_v36, %v5024_v37  ;;  %v12477_v45 = vpop.f32.mrb[44].mxu1  ;;  %v14704_v9 = vpop.f32.mrb[45].mxu0  ;;  %12833 = vmatmul.mubr.msk.f32.gmra.mrb[150].mxu0 %vm2552_vm1, %v6686_v57  ;;  %v6690_v29 = vld [vmem:[#allocation2 + $0x29a] sm:$0xff]  ;;  %v6691_v16 = vld [vmem:[#allocation2 + $0x2aa] sm:$0xff]  ;;  %v2985_v57 = vrot.slane %v2812_v20, %v13441_v13  ;;  %v6692_v54 = vld [vmem:[#allocation2 + $0x2b2] sm:$0xff] }
 0x1bd   : > { %5735 = vst.msk [vmem:[#allocation3 + $0x38] sm:$0xff] %vm2552_vm1, %v5671_v59  ;;  %v4839_v49 = vadd.f32 %v12477_v45, %v4193_v32  ;;  %v4567_v25 = vpop.f32.mrb[45].mxu1  ;;  %12735 = vmatmul.mubr.msk.f32.gmra.mrb[150].mxu1 %vm2552_vm1, %v5848_v33  ;;  %12835 = vmatprep.mubr.msk.f32.mxu0 %vm2552_vm1, %v6687_v61  ;;  %v2981_v33 = vrot.slane %v2810_v60, %v13441_v13  ;;  %v4197_v59 = vld [vmem:[#allocation3 + $0x88] sm:$0xff]  ;;  %v5854_v45 = vld [vmem:[#allocation2 + $0x2b1] sm:$0xff] }
 0x1be   : > { %5734 = vst.msk [vmem:[#allocation3 + $0x30] sm:$0xff] %vm2552_vm1, %v5670_v63  ;;  %v4838_v36 = vadd.f32 %v4567_v25, %v4192_v51  ;;  %v5027_v38 = vld [vmem:[#allocation3 + $0x48] sm:$0xff]  ;;  %12737 = vmatprep.mubr.msk.f32.mxu1 %vm2552_vm1, %v5849_v39  ;;  %v3107_v41 = vcombine.low %v2969_v6, %v2973_v31  ;;  %v4196_v63 = vld [vmem:[#allocation3 + $0x80] sm:$0xff]  ;;  %v4199_v58 = vld [vmem:[#allocation3 + $0x98] sm:$0xff] }
 0x1bf   : > { %4903 = vst.msk [vmem:[#allocation3 + $0x68] sm:$0xff] %vm2552_vm1, %v4839_v49  ;;  %v5673_v40 = vadd.f32 %v14662_v42, %v5027_v38  ;;  %v5026_v15 = vld [vmem:[#allocation3 + $0x40] sm:$0xff]  ;;  %v14725_v2 = vpop.f32.mrb[46].mxu0  ;;  %v2814_v42 = vcombine.high %v2810_v60, %v2810_v60  ;;  %v2860_v49 = vcombine.high %v14721_v18, %v14721_v18  ;;  %v7469_v6 = vld [vmem:[#allocation2 + $0x53] sm:$0xff] }
 0x1c0   : > { %4902 = vst.msk [vmem:[#allocation3 + $0x60] sm:$0xff] %vm2552_vm1, %v4838_v36  ;;  %v5672_v44 = vadd.f32 %v14666_v21, %v5026_v15  ;;  %v12480_v46 = vpop.f32.mrb[46].mxu1  ;;  %v14732_v19 = vpop.f32.mrb[47].mxu0  ;;  %12836 = vmatmul.mubr.msk.f32.gmra.mrb[152].mxu0 %vm2552_vm1, %v6688_v56  ;;  %v2961_v21 = vrot.slane %v2789_v4, %v13441_v13  ;;  %v5855_v4 = vld [vmem:[#allocation2 + $0x2b9] sm:$0xff]  ;;  %v3121_v38 = vrot.slane %v3107_v41, %v13443_v14 }
 0x1c1   : > { %5737 = vst.msk [vmem:[#allocation3 + $0x48] sm:$0xff] %vm2552_vm1, %v5673_v40  ;;  %v4841_v23 = vadd.f32 %v12480_v46, %v4195_v0  ;;  %v4577_v48 = vpop.f32.mrb[47].mxu1  ;;  %12738 = vmatmul.mubr.msk.f32.gmra.mrb[152].mxu1 %vm2552_vm1, %v5850_v7  ;;  %12838 = vmatprep.mubr.msk.f32.mxu0 %vm2552_vm1, %v6689_v62  ;;  %v6693_v60 = vld [vmem:[#allocation2 + $0x2ba] sm:$0xff]  ;;  %v2997_v0 = vrot.slane %v14728_v10, %v13441_v13 }
 0x1c2   : > { %5736 = vst.msk [vmem:[#allocation3 + $0x40] sm:$0xff] %vm2552_vm1, %v5672_v44  ;;  %v4840_v28 = vadd.f32 %v4577_v48, %v4194_v17  ;;  %v5029_v22 = vld [vmem:[#allocation3 + $0x58] sm:$0xff]  ;;  %12740 = vmatprep.mubr.msk.f32.mxu1 %vm2552_vm1, %v5851_v3  ;;  %v3106_v61 = vcombine.low %v2961_v21, %v2965_v50  ;;  %v2862_v3 = vcombine.high %v14728_v10, %v14728_v10  ;;  %v14779_v46 = vld.sshfl [vmem:[%s13947_s29 + $0x28] sm:$0x11 pattern:$0x75316420] }
 0x1c3   : > { %4905 = vst.msk [vmem:[#allocation3 + $0x78] sm:$0xff] %vm2552_vm1, %v4841_v23  ;;  %v5675_v8 = vadd.f32 %v14677_v27, %v5029_v22  ;;  %v5028_v53 = vld [vmem:[#allocation3 + $0x50] sm:$0xff]  ;;  %v14750_v39 = vpop.f32.mrb[48].mxu0  ;;  %v2989_v27 = vrot.slane %v2814_v42, %v13441_v13  ;;  %v5856_v21 = vld [vmem:[#allocation2 + $0x2c1] sm:$0xff]  ;;  %v8308_v31 = vld [vmem:[#allocation2 + $0x79] sm:$0xff]  ;;  %s11155_s29 = sshll.u32 %s16195_s16, 7 }
 0x1c4   : > { %4904 = vst.msk [vmem:[#allocation3 + $0x70] sm:$0xff] %vm2552_vm1, %v4840_v28  ;;  %v5674_v35 = vadd.f32 %v14681_v52, %v5028_v53  ;;  %v12483_v37 = vpop.f32.mrb[48].mxu1  ;;  %v14755_v47 = vpop.f32.mrb[49].mxu0  ;;  %12839 = vmatmul.mubr.msk.f32.gmra.mrb[154].mxu0 %vm2552_vm1, %v6690_v29  ;;  %v3123_v52 = vcombine.low %v2977_v24, %v2981_v33  ;;  %v3114_v36 = vrot.slane %v3106_v61, %v13443_v14  ;;  %v4198_v42 = vld [vmem:[#allocation3 + $0x90] sm:$0xff]  ;;  %v6694_v50 = vld [vmem:[#allocation2 + $0x2c2] sm:$0xff]  ;;  %s316_s30 = sadd.s32 %s11155_s29, %s11154_s15 }
 0x1c5   : > { %5739 = vst.msk [vmem:[#allocation3 + $0x58] sm:$0xff] %vm2552_vm1, %v5675_v8  ;;  %v4843_v43 = vadd.f32 %v12483_v37, %v4197_v59  ;;  %v4587_v32 = vpop.f32.mrb[49].mxu1  ;;  %12741 = vmatmul.mubr.msk.f32.gmra.mrb[154].mxu1 %vm2552_vm1, %v5852_v26  ;;  %12841 = vmatprep.mubr.msk.f32.mxu0 %vm2552_vm1, %v6691_v16  ;;  %v3124_v40 = vcombine.low %v2985_v57, %v2989_v27  ;;  %v4201_v24 = vld [vmem:[#allocation3 + $0xa8] sm:$0xff]  ;;  %s11156_s16 = sshll.u32 %s316_s30, 3 }
 0x1c6   : > { %5738 = vst.msk [vmem:[#allocation3 + $0x50] sm:$0xff] %vm2552_vm1, %v5674_v35  ;;  %v4842_v51 = vadd.f32 %v4587_v32, %v4196_v63  ;;  %v5031_v25 = vld [vmem:[#allocation3 + $0x68] sm:$0xff]  ;;  %12743 = vmatprep.mubr.msk.f32.mxu1 %vm2552_vm1, %v5853_v55  ;;  %v3131_v15 = vrot.slane %v3123_v52, %v13443_v14  ;;  %v3122_v44 = vcombine.low %v3114_v36, %v3121_v38  ;;  %v7470_v63 = vld [vmem:[#allocation2 + $0x5b] sm:$0xff]  ;;  %s15848_s9 = scalar_lea.vmem %s16181_s4, %s11156_s16 }
 0x1c7   : > { %4907 = vst.msk [vmem:[#allocation3 + $0x88] sm:$0xff] %vm2552_vm1, %v4843_v43  ;;  %v5677_v7 = vadd.f32 %v14698_v1, %v5031_v25  ;;  %v5030_v56 = vld [vmem:[#allocation3 + $0x60] sm:$0xff]  ;;  %v14772_v20 = vpop.f32.mrb[50].mxu0  ;;  %v2993_v1 = vrot.slane %v14721_v18, %v13441_v13  ;;  %v3138_v17 = vrot.slane %v3124_v40, %v13443_v14  ;;  %v3001_v18 = vrot.slane %v2860_v49, %v13441_v13 }
 0x1c8   : > { %4906 = vst.msk [vmem:[#allocation3 + $0x80] sm:$0xff] %vm2552_vm1, %v4842_v51  ;;  %v5676_v62 = vadd.f32 %v14704_v9, %v5030_v56  ;;  %v12486_v12 = vpop.f32.mrb[50].mxu1  ;;  %v14783_v9 = vpop.f32.mrb[51].mxu0  ;;  %12842 = vmatmul.mubr.msk.f32.gmra.mrb[156].mxu0 %vm2552_vm1, %v6692_v54  ;;  %3203 = vst.msk [vmem:[#allocation2 + $0x2d0] sm:$0xff] %vm2552_vm1, %v3122_v44  ;;  %v3005_v28 = vrot.slane %v2862_v3, %v13441_v13  ;;  %v2829_v53 = vrot.slane %v2815_v34, %v13433_v11  ;;  %v4200_v34 = vld [vmem:[#allocation3 + $0xa0] sm:$0xff]  ;;  %v4202_v3 = vld [vmem:[#allocation3 + $0xb0] sm:$0xff] }
 0x1c9   : > { %5741 = vst.msk [vmem:[#allocation3 + $0x68] sm:$0xff] %vm2552_vm1, %v5677_v7  ;;  %v4845_v5 = vadd.f32 %v12486_v12, %v4199_v58  ;;  %v4597_v23 = vpop.f32.mrb[51].mxu1  ;;  %12744 = vmatmul.mubr.msk.f32.gmra.mrb[156].mxu1 %vm2552_vm1, %v5854_v45  ;;  %12844 = vmatprep.mubr.msk.f32.mxu0 %vm2552_vm1, %v6693_v60  ;;  %v3140_v22 = vcombine.low %v2993_v1, %v2997_v0  ;;  %v8309_v32 = vld [vmem:[#allocation2 + $0x81] sm:$0xff]  ;;  %v4203_v7 = vld [vmem:[#allocation3 + $0xb8] sm:$0xff]  ;;  %v8310_v60 = vld [vmem:[#allocation2 + $0x89] sm:$0xff] }
 0x1ca   : > { %5740 = vst.msk [vmem:[#allocation3 + $0x60] sm:$0xff] %vm2552_vm1, %v5676_v62  ;;  %v4844_v10 = vadd.f32 %v4597_v23, %v4198_v42  ;;  %v5033_v48 = vld [vmem:[#allocation3 + $0x78] sm:$0xff]  ;;  %12746 = vmatprep.mubr.msk.f32.mxu1 %vm2552_vm1, %v5855_v4  ;;  %v3139_v8 = vcombine.low %v3131_v15, %v3138_v17  ;;  %v2871_v55 = vcombine.high %v14779_v46, %v14779_v46  ;;  %v7471_v25 = vld [vmem:[#allocation2 + $0x63] sm:$0xff] }
 0x1cb   : > { %4909 = vst.msk [vmem:[#allocation3 + $0x98] sm:$0xff] %vm2552_vm1, %v4845_v5  ;;  %v5679_v26 = vadd.f32 %v14725_v2, %v5033_v48  ;;  %v5032_v29 = vld [vmem:[#allocation3 + $0x70] sm:$0xff]  ;;  %v14803_v57 = vpop.f32.mrb[52].mxu0  ;;  %v3141_v2 = vcombine.low %v3001_v18, %v3005_v28  ;;  %v3148_v35 = vrot.slane %v3140_v22, %v13443_v14  ;;  %v2878_v59 = vrot.slane %v14779_v46, %v13433_v11  ;;  %v13299_v46 = vld [vmem:[%s16179_s2 + $0x1c] sm:$0xf] }
 0x1cc   : > { %4908 = vst.msk [vmem:[#allocation3 + $0x90] sm:$0xff] %vm2552_vm1, %v4844_v10  ;;  %v5678_v16 = vadd.f32 %v14732_v19, %v5032_v29  ;;  %v12489_v33 = vpop.f32.mrb[52].mxu1  ;;  %v14810_v27 = vpop.f32.mrb[53].mxu0  ;;  %12845 = vmatmul.mubr.msk.f32.gmra.mrb[158].mxu0 %vm2552_vm1, %v6694_v50  ;;  %3204 = vst.msk [vmem:[#allocation2 + $0x2d8] sm:$0xff] %vm2552_vm1, %v3139_v8  ;;  %v2831_v19 = vcombine.high %v2829_v53, %v2829_v53  ;;  %v2845_v61 = vrot.slane %v2829_v53, %v13433_v11  ;;  %v7472_v5 = vld [vmem:[#allocation2 + $0x6b] sm:$0xff]  ;;  %v7473_v48 = vld [vmem:[#allocation2 + $0x7b] sm:$0xff] }
 0x1cd   : > { %5743 = vst.msk [vmem:[#allocation3 + $0x78] sm:$0xff] %vm2552_vm1, %v5679_v26  ;;  %v4847_v30 = vadd.f32 %v12489_v33, %v4201_v24  ;;  %v4607_v37 = vpop.f32.mrb[53].mxu1  ;;  %12747 = vmatmul.mubr.msk.f32.gmra.mrb[158].mxu1 %vm2552_vm1, %v5856_v21  ;;  %12947 = vmatprep.mubr.msk.f32.mxu0 %vm2552_vm1, %v8308_v31  ;;  %v3155_v45 = vrot.slane %v3141_v2, %v13443_v14  ;;  %v8311_v42 = vld [vmem:[#allocation2 + $0x91] sm:$0xff]  ;;  %v13300_v21 = vld [vmem:[%s16179_s2 + $0x20] sm:$0xf]  ;;  %v4205_v29 = vld [vmem:[#allocation3 + $0xc8] sm:$0xff] }
 0x1ce   : > { %5742 = vst.msk [vmem:[#allocation3 + $0x70] sm:$0xff] %vm2552_vm1, %v5678_v16  ;;  %v4846_v41 = vadd.f32 %v4607_v37, %v4200_v34  ;;  %v5035_v43 = vld [vmem:[#allocation3 + $0x88] sm:$0xff]  ;;  %12849 = vmatprep.mubr.msk.f32.mxu1 %vm2552_vm1, %v7469_v6  ;;  %v2885_v52 = vrot.slane %v2871_v55, %v13433_v11  ;;  %v2859_v4 = vrot.slane %v2831_v19, %v13433_v11  ;;  %v4204_v53 = vld [vmem:[#allocation3 + $0xc0] sm:$0xff]  ;;  %v8314_v37 = vld [vmem:[#allocation2 + $0xb1] sm:$0xff] }
 0x1cf   : > { %4911 = vst.msk [vmem:[#allocation3 + $0xa8] sm:$0xff] %vm2552_vm1, %v4847_v30  ;;  %v5681_v49 = vadd.f32 %v14750_v39, %v5035_v43  ;;  %v5034_v51 = vld [vmem:[#allocation3 + $0x80] sm:$0xff]  ;;  %v2861_v54 = vcombine.high %v2845_v61, %v2845_v61  ;;  %v3009_v36 = vrot.slane %v2845_v61, %v13441_v13  ;;  %v14826_v58 = vpop.f32.mrb[54].mxu0  ;;  %v3156_v40 = vcombine.low %v3148_v35, %v3155_v45  ;;  %v8313_v35 = vld [vmem:[#allocation2 + $0xa9] sm:$0xff] }
 0x1d0   : > { %4910 = vst.msk [vmem:[#allocation3 + $0xa0] sm:$0xff] %vm2552_vm1, %v4846_v41  ;;  %v5680_v38 = vadd.f32 %v14755_v47, %v5034_v51  ;;  %v12492_v56 = vpop.f32.mrb[54].mxu1  ;;  %v3025_v15 = vrot.slane %v2878_v59, %v13441_v13  ;;  %v3029_v39 = vrot.slane %v2885_v52, %v13441_v13  ;;  %v14832_v12 = vpop.f32.mrb[55].mxu0  ;;  %12948 = vmatmul.mubr.msk.f32.vlgmr.msra.gmra.mrb[160].mxu0 %vm2552_vm1, %v8309_v32  ;;  %v8312_v50 = vld [vmem:[#allocation2 + $0xa1] sm:$0xff]  ;;  %v7475_v34 = vld [vmem:[#allocation2 + $0x8b] sm:$0xff]  ;;  %v4207_v41 = vld [vmem:[#allocation3 + $0xd8] sm:$0xff] }
 0x1d1   : > { %5745 = vst.msk [vmem:[#allocation3 + $0x88] sm:$0xff] %vm2552_vm1, %v5681_v49  ;;  %v4849_v11 = vadd.f32 %v12492_v56, %v4203_v7  ;;  %v4617_v62 = vpop.f32.mrb[55].mxu1  ;;  %12850 = vmatmul.mubr.msk.f32.vlgmr.msra.gmra.mrb[160].mxu1 %vm2552_vm1, %v7470_v63  ;;  %v2863_v47 = vcombine.high %v2859_v4, %v2859_v4  ;;  %v3013_v44 = vrot.slane %v2859_v4, %v13441_v13  ;;  %3205 = vst.msk [vmem:[#allocation2 + $0x2e0] sm:$0xff] %vm2552_vm1, %v3156_v40  ;;  %v7474_v2 = vld [vmem:[#allocation2 + $0x83] sm:$0xff]  ;;  %v4206_v45 = vld [vmem:[#allocation3 + $0xd0] sm:$0xff] }
 0x1d2   : > { %5744 = vst.msk [vmem:[#allocation3 + $0x80] sm:$0xff] %vm2552_vm1, %v5680_v38  ;;  %v4848_v1 = vadd.f32 %v4617_v62, %v4202_v3  ;;  %v5037_v0 = vld [vmem:[#allocation3 + $0x98] sm:$0xff]  ;;  %13044 = vmatpush3.msk.msra.mxu1 %vm3599_vm0, %v13299_v46  ;;  %12852 = vmatprep.mubr.msk.f32.mxu1 %vm2552_vm1, %v7471_v25  ;;  %v3017_v23 = vrot.slane %v2861_v54, %v13441_v13  ;;  %v8316_v38 = vld [vmem:[#allocation2 + $0xc9] sm:$0xff] }
 0x1d3   : > { %v3174_v17 = vcombine.low %v3025_v15, %v3029_v39  ;;  %4913 = vst.msk [vmem:[#allocation3 + $0xb8] sm:$0xff] %vm2552_vm1, %v4849_v11  ;;  %v5683_v18 = vadd.f32 %v14772_v20, %v5037_v0  ;;  %v5036_v10 = vld [vmem:[#allocation3 + $0x90] sm:$0xff]  ;;  %13142 = vmatpush3.msk.msra.mxu0 %vm3599_vm0, %v13300_v21  ;;  %12950 = vmatprep.mubr.msk.f32.mxu0 %vm2552_vm1, %v8310_v60  ;;  %v14854_v6 = vpop.f32.mrb[56].mxu0  ;;  %v8315_v25 = vld [vmem:[#allocation2 + $0xb9] sm:$0xff]  ;;  %v4209_v56 = vld [vmem:[#allocation3 + $0xe8] sm:$0xff] }
 0x1d4   : > { %v3021_v28 = vrot.slane %v2863_v47, %v13441_v13  ;;  %v3157_v22 = vcombine.low %v3009_v36, %v3013_v44  ;;  %4912 = vst.msk [vmem:[#allocation3 + $0xb0] sm:$0xff] %vm2552_vm1, %v4848_v1  ;;  %v5682_v26 = vadd.f32 %v14783_v9, %v5036_v10  ;;  %v12495_v20 = vpop.f32.mrb[56].mxu1  ;;  %v14859_v16 = vpop.f32.mrb[57].mxu0  ;;  %12951 = vmatmul.mubr.msk.f32.gmra.mrb[162].mxu0 %vm2552_vm1, %v8311_v42  ;;  %v7476_v51 = vld [vmem:[#allocation2 + $0x93] sm:$0xff]  ;;  %v7477_v36 = vld [vmem:[#allocation2 + $0xa3] sm:$0xff] }
 0x1d5   : > { %v3181_v31 = vrot.slane %v3174_v17, %v13443_v14  ;;  %5747 = vst.msk [vmem:[#allocation3 + $0x98] sm:$0xff] %vm2552_vm1, %v5683_v18  ;;  %v4851_v8 = vadd.f32 %v12495_v20, %v4205_v29  ;;  %v4627_v55 = vpop.f32.mrb[57].mxu1  ;;  %12853 = vmatmul.mubr.msk.f32.gmra.mrb[162].mxu1 %vm2552_vm1, %v7472_v5  ;;  %12953 = vmatprep.mubr.msk.f32.mxu0 %vm2552_vm1, %v8312_v50  ;;  %v4208_v39 = vld [vmem:[#allocation3 + $0xe0] sm:$0xff]  ;;  %v8317_v47 = vld [vmem:[#allocation2 + $0xd1] sm:$0xff] }
 0x1d6   : > { %v3158_v13 = vcombine.low %v3017_v23, %v3021_v28  ;;  %v3165_v9 = vrot.slane %v3157_v22, %v13443_v14  ;;  %5746 = vst.msk [vmem:[#allocation3 + $0x90] sm:$0xff] %vm2552_vm1, %v5682_v26  ;;  %v4850_v24 = vadd.f32 %v4627_v55, %v4204_v53  ;;  %v5039_v33 = vld [vmem:[#allocation3 + $0xa8] sm:$0xff]  ;;  %12855 = vmatprep.mubr.msk.f32.mxu1 %vm2552_vm1, %v7473_v48  ;;  %v7479_v0 = vld [vmem:[#allocation2 + $0xb3] sm:$0xff]  ;;  %v7480_v22 = vld [vmem:[#allocation2 + $0xbb] sm:$0xff] }
 0x1d7   : > { %3207 = vst.msk [vmem:[#allocation2 + $0x2f0] sm:$0xf] %vm2557_vm2, %v3181_v31  ;;  %v5685_v59 = vadd.f32 %v14803_v57, %v5039_v33  ;;  %v5038_v30 = vld [vmem:[#allocation3 + $0xa0] sm:$0xff]  ;;  %v14872_v63 = vpop.f32.mrb[58].mxu0  ;;  %v4211_v42 = vld [vmem:[#allocation3 + $0xf8] sm:$0xff]  ;;  %v4210_v10 = vld [vmem:[#allocation3 + $0xf0] sm:$0xff] }
 0x1d8   : > { %4915 = vst.msk [vmem:[#allocation3 + $0xc8] sm:$0xff] %vm2552_vm1, %v4851_v8  ;;  %v3172_v19 = vrot.slane %v3158_v13, %v13443_v14  ;;  %4914 = vst.msk [vmem:[#allocation3 + $0xc0] sm:$0xff] %vm2552_vm1, %v4850_v24  ;;  %v5684_v61 = vadd.f32 %v14810_v27, %v5038_v30  ;;  %v12498_v43 = vpop.f32.mrb[58].mxu1  ;;  %v14876_v57 = vpop.f32.mrb[59].mxu0  ;;  %12954 = vmatmul.mubr.msk.f32.gmra.mrb[164].mxu0 %vm2552_vm1, %v8313_v35  ;;  %v8318_v46 = vld [vmem:[#allocation2 + $0xd9] sm:$0xff]  ;;  %v8319_v26 = vld [vmem:[#allocation2 + $0xe1] sm:$0xff] }
 0x1d9   : > { %5749 = vst.msk [vmem:[#allocation3 + $0xa8] sm:$0xff] %vm2552_vm1, %v5685_v59  ;;  %v4853_v32 = vadd.f32 %v12498_v43, %v4207_v41  ;;  %v4637_v52 = vpop.f32.mrb[59].mxu1  ;;  %12856 = vmatmul.mubr.msk.f32.gmra.mrb[164].mxu1 %vm2552_vm1, %v7474_v2  ;;  %12956 = vmatprep.mubr.msk.f32.mxu0 %vm2552_vm1, %v8314_v37  ;;  %v8320_v31 = vld [vmem:[#allocation2 + $0xf1] sm:$0xff]  ;;  %v4213_v53 = vld [vmem:[#allocation3 + $0x108] sm:$0xff]  ;;  %v8321_v30 = vld [vmem:[#allocation2 + $0xf9] sm:$0xff] }
 0x1da   : > { %v3173_v14 = vcombine.low %v3165_v9, %v3172_v19  ;;  %5748 = vst.msk [vmem:[#allocation3 + $0xa0] sm:$0xff] %vm2552_vm1, %v5684_v61  ;;  %v4852_v49 = vadd.f32 %v4637_v52, %v4206_v45  ;;  %v5041_v27 = vld [vmem:[#allocation3 + $0xb8] sm:$0xff]  ;;  %12858 = vmatprep.mubr.msk.f32.mxu1 %vm2552_vm1, %v7475_v34  ;;  %v4212_v9 = vld [vmem:[#allocation3 + $0x100] sm:$0xff]  ;;  %v4214_v52 = vld [vmem:[#allocation3 + $0x110] sm:$0xff] }
 0x1db   : > { %4917 = vst.msk [vmem:[#allocation3 + $0xd8] sm:$0xff] %vm2552_vm1, %v4853_v32  ;;  %v5687_v4 = vadd.f32 %v14826_v58, %v5041_v27  ;;  %v5040_v54 = vld [vmem:[#allocation3 + $0xb0] sm:$0xff]  ;;  %v14887_v40 = vpop.f32.mrb[60].mxu0  ;;  %v7483_v19 = vld [vmem:[#allocation2 + $0xdb] sm:$0xff] }
 0x1dc   : > { %3206 = vst.msk [vmem:[#allocation2 + $0x2e8] sm:$0xff] %vm2552_vm1, %v3173_v14  ;;  %4916 = vst.msk [vmem:[#allocation3 + $0xd0] sm:$0xff] %vm2552_vm1, %v4852_v49  ;;  %v5686_v7 = vadd.f32 %v14832_v12, %v5040_v54  ;;  %v12501_v60 = vpop.f32.mrb[60].mxu1  ;;  %v14891_v58 = vpop.f32.mrb[61].mxu0  ;;  %12957 = vmatmul.mubr.msk.f32.gmra.mrb[166].mxu0 %vm2552_vm1, %v8315_v25  ;;  %v7478_v12 = vld [vmem:[#allocation2 + $0xab] sm:$0xff]  ;;  %v7482_v59 = vld [vmem:[#allocation2 + $0xd3] sm:$0xff] }
 0x1dd   : > { %5751 = vst.msk [vmem:[#allocation3 + $0xb8] sm:$0xff] %vm2552_vm1, %v5687_v4  ;;  %v4855_v15 = vadd.f32 %v12501_v60, %v4209_v56  ;;  %v4647_v11 = vpop.f32.mrb[61].mxu1  ;;  %12859 = vmatmul.mubr.msk.f32.gmra.mrb[166].mxu1 %vm2552_vm1, %v7476_v51  ;;  %12959 = vmatprep.mubr.msk.f32.mxu0 %vm2552_vm1, %v8316_v38  ;;  %v8322_v61 = vld [vmem:[#allocation2 + $0x101] sm:$0xff]  ;;  %v4215_v43 = vld [vmem:[#allocation3 + $0x118] sm:$0xff]  ;;  %v8323_v25 = vld [vmem:[#allocation2 + $0x109] sm:$0xff] }
 0x1de   : > { %5750 = vst.msk [vmem:[#allocation3 + $0xb0] sm:$0xff] %vm2552_vm1, %v5686_v7  ;;  %v4854_v3 = vadd.f32 %v4647_v11, %v4208_v39  ;;  %12861 = vmatprep.mubr.msk.f32.mxu1 %vm2552_vm1, %v7477_v36  ;;  %v7484_v51 = vld [vmem:[#allocation2 + $0xe3] sm:$0xff]  ;;  %v7485_v36 = vld [vmem:[#allocation2 + $0xf3] sm:$0xff] }
 0x1df   : > { %v5043_v62 = vld [vmem:[#allocation3 + $0xc8] sm:$0xff]  ;;  %4919 = vst.msk [vmem:[#allocation3 + $0xe8] sm:$0xff] %vm2552_vm1, %v4855_v15  ;;  %v5042_v1 = vld [vmem:[#allocation3 + $0xc0] sm:$0xff]  ;;  %v14901_v17 = vpop.f32.mrb[62].mxu0 }
 0x1e0   : > { %v5689_v44 = vadd.f32 %v14854_v6, %v5043_v62  ;;  %4918 = vst.msk [vmem:[#allocation3 + $0xe0] sm:$0xff] %vm2552_vm1, %v4854_v3  ;;  %v5688_v5 = vadd.f32 %v14859_v16, %v5042_v1  ;;  %v12504_v23 = vpop.f32.mrb[62].mxu1  ;;  %v14905_v21 = vpop.f32.mrb[63].mxu0  ;;  %12960 = vmatmul.mubr.msk.f32.gmra.mrb[168].mxu0 %vm2552_vm1, %v8317_v47  ;;  %v7481_v6 = vld [vmem:[#allocation2 + $0xcb] sm:$0xff]  ;;  %v8324_v38 = vld [vmem:[#allocation2 + $0x119] sm:$0xff]  ;;  %v8325_v47 = vld [vmem:[#allocation2 + $0x121] sm:$0xff] }
 0x1e1   : > { %v4857_v18 = vadd.f32 %v12504_v23, %v4211_v42  ;;  %v4657_v48 = vpop.f32.mrb[63].mxu1  ;;  %12862 = vmatmul.mubr.msk.f32.gmra.mrb[168].mxu1 %vm2552_vm1, %v7478_v12  ;;  %12962 = vmatprep.mubr.msk.f32.mxu0 %vm2552_vm1, %v8318_v46  ;;  %v4217_v56 = vld [vmem:[#allocation3 + $0x128] sm:$0xff]  ;;  %v4216_v39 = vld [vmem:[#allocation3 + $0x120] sm:$0xff]  ;;  %v4219_v42 = vld [vmem:[#allocation3 + $0x138] sm:$0xff] }
 0x1e2   : > { %5753 = vst.msk [vmem:[#allocation3 + $0xc8] sm:$0xff] %vm2552_vm1, %v5689_v44  ;;  %5752 = vst.msk [vmem:[#allocation3 + $0xc0] sm:$0xff] %vm2552_vm1, %v5688_v5  ;;  %v4856_v50 = vadd.f32 %v4657_v48, %v4210_v10  ;;  %v5045_v28 = vld [vmem:[#allocation3 + $0xd8] sm:$0xff]  ;;  %12864 = vmatprep.mubr.msk.f32.mxu1 %vm2552_vm1, %v7479_v0  ;;  %v7487_v0 = vld [vmem:[#allocation2 + $0x103] sm:$0xff] }
 0x1e3   : > { %4921 = vst.msk [vmem:[#allocation3 + $0xf8] sm:$0xff] %vm2552_vm1, %v4857_v18  ;;  %v5691_v29 = vadd.f32 %v14872_v63, %v5045_v28  ;;  %v5044_v20 = vld [vmem:[#allocation3 + $0xd0] sm:$0xff]  ;;  %v14915_v16 = vpop.f32.mrb[64].mxu0  ;;  %v7486_v12 = vld [vmem:[#allocation2 + $0xfb] sm:$0xff] }
 0x1e4   : > { %4920 = vst.msk [vmem:[#allocation3 + $0xf0] sm:$0xff] %vm2552_vm1, %v4856_v50  ;;  %v5690_v8 = vadd.f32 %v14876_v57, %v5044_v20  ;;  %v12507_v55 = vpop.f32.mrb[64].mxu1  ;;  %v14919_v33 = vpop.f32.mrb[65].mxu0  ;;  %12963 = vmatmul.mubr.msk.f32.gmra.mrb[170].mxu0 %vm2552_vm1, %v8319_v26  ;;  %v8326_v46 = vld [vmem:[#allocation2 + $0x129] sm:$0xff]  ;;  %v8327_v26 = vld [vmem:[#allocation2 + $0x131] sm:$0xff] }
 0x1e5   : > { %5755 = vst.msk [vmem:[#allocation3 + $0xd8] sm:$0xff] %vm2552_vm1, %v5691_v29  ;;  %v4859_v13 = vadd.f32 %v12507_v55, %v4213_v53  ;;  %v4667_v24 = vpop.f32.mrb[65].mxu1  ;;  %12865 = vmatmul.mubr.msk.f32.gmra.mrb[170].mxu1 %vm2552_vm1, %v7480_v22  ;;  %12965 = vmatprep.mubr.msk.f32.mxu0 %vm2552_vm1, %v8320_v31  ;;  %v4218_v10 = vld [vmem:[#allocation3 + $0x130] sm:$0xff]  ;;  %v8328_v31 = vld [vmem:[#allocation2 + $0x141] sm:$0xff] }
 0x1e6   : > { %5754 = vst.msk [vmem:[#allocation3 + $0xd0] sm:$0xff] %vm2552_vm1, %v5690_v8  ;;  %v4858_v2 = vadd.f32 %v4667_v24, %v4212_v9  ;;  %v5047_v35 = vld [vmem:[#allocation3 + $0xe8] sm:$0xff]  ;;  %12867 = vmatprep.mubr.msk.f32.mxu1 %vm2552_vm1, %v7481_v6  ;;  %v7489_v6 = vld [vmem:[#allocation2 + $0x11b] sm:$0xff] }
 0x1e7   : > { %4923 = vst.msk [vmem:[#allocation3 + $0x108] sm:$0xff] %vm2552_vm1, %v4859_v13  ;;  %v5693_v34 = vadd.f32 %v14887_v40, %v5047_v35  ;;  %v5046_v37 = vld [vmem:[#allocation3 + $0xe0] sm:$0xff]  ;;  %v14929_v32 = vpop.f32.mrb[66].mxu0  ;;  %v7488_v22 = vld [vmem:[#allocation2 + $0x10b] sm:$0xff] }
 0x1e8   : > { %4922 = vst.msk [vmem:[#allocation3 + $0x100] sm:$0xff] %vm2552_vm1, %v4858_v2  ;;  %v5692_v41 = vadd.f32 %v14891_v58, %v5046_v37  ;;  %v12510_v63 = vpop.f32.mrb[66].mxu1  ;;  %v14933_v14 = vpop.f32.mrb[67].mxu0  ;;  %12966 = vmatmul.mubr.msk.f32.gmra.mrb[172].mxu0 %vm2552_vm1, %v8321_v30  ;;  %v4221_v53 = vld [vmem:[#allocation3 + $0x148] sm:$0xff]  ;;  %v4220_v9 = vld [vmem:[#allocation3 + $0x140] sm:$0xff] }
 0x1e9   : > { %5757 = vst.msk [vmem:[#allocation3 + $0xe8] sm:$0xff] %vm2552_vm1, %v5693_v34  ;;  %v4861_v45 = vadd.f32 %v12510_v63, %v4215_v43  ;;  %v4677_v57 = vpop.f32.mrb[67].mxu1  ;;  %12868 = vmatmul.mubr.msk.f32.gmra.mrb[172].mxu1 %vm2552_vm1, %v7482_v59  ;;  %12968 = vmatprep.mubr.msk.f32.mxu0 %vm2552_vm1, %v8322_v61  ;;  %v7490_v59 = vld [vmem:[#allocation2 + $0x123] sm:$0xff]  ;;  %v8330_v61 = vld [vmem:[#allocation2 + $0x151] sm:$0xff] }
 0x1ea   : > { %5756 = vst.msk [vmem:[#allocation3 + $0xe0] sm:$0xff] %vm2552_vm1, %v5692_v41  ;;  %v4860_v49 = vadd.f32 %v4677_v57, %v4214_v52  ;;  %v5049_v27 = vld [vmem:[#allocation3 + $0xf8] sm:$0xff]  ;;  %12870 = vmatprep.mubr.msk.f32.mxu1 %vm2552_vm1, %v7483_v19  ;;  %v8329_v30 = vld [vmem:[#allocation2 + $0x149] sm:$0xff] }
 0x1eb   : > { %4925 = vst.msk [vmem:[#allocation3 + $0x118] sm:$0xff] %vm2552_vm1, %v4861_v45  ;;  %v5695_v4 = vadd.f32 %v14901_v17, %v5049_v27  ;;  %v5048_v54 = vld [vmem:[#allocation3 + $0xf0] sm:$0xff]  ;;  %v14943_v40 = vpop.f32.mrb[68].mxu0  ;;  %v4223_v43 = vld [vmem:[#allocation3 + $0x158] sm:$0xff] }
 0x1ec   : > { %4924 = vst.msk [vmem:[#allocation3 + $0x110] sm:$0xff] %vm2552_vm1, %v4860_v49  ;;  %v5694_v7 = vadd.f32 %v14905_v21, %v5048_v54  ;;  %v12513_v60 = vpop.f32.mrb[68].mxu1  ;;  %v14947_v58 = vpop.f32.mrb[69].mxu0  ;;  %12969 = vmatmul.mubr.msk.f32.gmra.mrb[174].mxu0 %vm2552_vm1, %v8323_v25  ;;  %v7491_v19 = vld [vmem:[#allocation2 + $0x12b] sm:$0xff]  ;;  %v8331_v25 = vld [vmem:[#allocation2 + $0x159] sm:$0xff] }
 0x1ed   : > { %5759 = vst.msk [vmem:[#allocation3 + $0xf8] sm:$0xff] %vm2552_vm1, %v5695_v4  ;;  %v4863_v15 = vadd.f32 %v12513_v60, %v4217_v56  ;;  %v4687_v11 = vpop.f32.mrb[69].mxu1  ;;  %12871 = vmatmul.mubr.msk.f32.gmra.mrb[174].mxu1 %vm2552_vm1, %v7484_v51  ;;  %12971 = vmatprep.mubr.msk.f32.mxu0 %vm2552_vm1, %v8324_v38  ;;  %v4222_v52 = vld [vmem:[#allocation3 + $0x150] sm:$0xff]  ;;  %v4225_v56 = vld [vmem:[#allocation3 + $0x168] sm:$0xff] }
 0x1ee   : > { %5758 = vst.msk [vmem:[#allocation3 + $0xf0] sm:$0xff] %vm2552_vm1, %v5694_v7  ;;  %v4862_v3 = vadd.f32 %v4687_v11, %v4216_v39  ;;  %v5051_v62 = vld [vmem:[#allocation3 + $0x108] sm:$0xff]  ;;  %12873 = vmatprep.mubr.msk.f32.mxu1 %vm2552_vm1, %v7485_v36  ;;  %v7492_v51 = vld [vmem:[#allocation2 + $0x133] sm:$0xff]  ;;  %v4224_v39 = vld [vmem:[#allocation3 + $0x160] sm:$0xff] }
 0x1ef   : > { %4927 = vst.msk [vmem:[#allocation3 + $0x128] sm:$0xff] %vm2552_vm1, %v4863_v15  ;;  %v5697_v44 = vadd.f32 %v14915_v16, %v5051_v62  ;;  %v5050_v1 = vld [vmem:[#allocation3 + $0x100] sm:$0xff]  ;;  %v14957_v17 = vpop.f32.mrb[70].mxu0  ;;  %v8332_v38 = vld [vmem:[#allocation2 + $0x169] sm:$0xff] }
 0x1f0   : > { %4926 = vst.msk [vmem:[#allocation3 + $0x120] sm:$0xff] %vm2552_vm1, %v4862_v3  ;;  %v5696_v5 = vadd.f32 %v14919_v33, %v5050_v1  ;;  %v12516_v23 = vpop.f32.mrb[70].mxu1  ;;  %v14961_v21 = vpop.f32.mrb[71].mxu0  ;;  %12972 = vmatmul.mubr.msk.f32.gmra.mrb[176].mxu0 %vm2552_vm1, %v8325_v47  ;;  %v7493_v36 = vld [vmem:[#allocation2 + $0x143] sm:$0xff]  ;;  %v8333_v47 = vld [vmem:[#allocation2 + $0x171] sm:$0xff] }
 0x1f1   : > { %5761 = vst.msk [vmem:[#allocation3 + $0x108] sm:$0xff] %vm2552_vm1, %v5697_v44  ;;  %v4865_v18 = vadd.f32 %v12516_v23, %v4219_v42  ;;  %v4697_v48 = vpop.f32.mrb[71].mxu1  ;;  %12874 = vmatmul.mubr.msk.f32.gmra.mrb[176].mxu1 %vm2552_vm1, %v7486_v12  ;;  %12974 = vmatprep.mubr.msk.f32.mxu0 %vm2552_vm1, %v8326_v46  ;;  %v7494_v12 = vld [vmem:[#allocation2 + $0x14b] sm:$0xff]  ;;  %v8334_v46 = vld [vmem:[#allocation2 + $0x179] sm:$0xff] }
 0x1f2   : > { %5760 = vst.msk [vmem:[#allocation3 + $0x100] sm:$0xff] %vm2552_vm1, %v5696_v5  ;;  %v4864_v50 = vadd.f32 %v4697_v48, %v4218_v10  ;;  %v5053_v28 = vld [vmem:[#allocation3 + $0x118] sm:$0xff]  ;;  %12876 = vmatprep.mubr.msk.f32.mxu1 %vm2552_vm1, %v7487_v0  ;;  %v4226_v10 = vld [vmem:[#allocation3 + $0x170] sm:$0xff] }
 0x1f3   : > { %4929 = vst.msk [vmem:[#allocation3 + $0x138] sm:$0xff] %vm2552_vm1, %v4865_v18  ;;  %v5699_v29 = vadd.f32 %v14929_v32, %v5053_v28  ;;  %v5052_v20 = vld [vmem:[#allocation3 + $0x110] sm:$0xff]  ;;  %v14971_v16 = vpop.f32.mrb[72].mxu0  ;;  %v4227_v42 = vld [vmem:[#allocation3 + $0x178] sm:$0xff] }
 0x1f4   : > { %4928 = vst.msk [vmem:[#allocation3 + $0x130] sm:$0xff] %vm2552_vm1, %v4864_v50  ;;  %v5698_v8 = vadd.f32 %v14933_v14, %v5052_v20  ;;  %v12519_v55 = vpop.f32.mrb[72].mxu1  ;;  %v14975_v33 = vpop.f32.mrb[73].mxu0  ;;  %12975 = vmatmul.mubr.msk.f32.gmra.mrb[178].mxu0 %vm2552_vm1, %v8327_v26  ;;  %v7495_v0 = vld [vmem:[#allocation2 + $0x153] sm:$0xff]  ;;  %v8335_v26 = vld [vmem:[#allocation2 + $0x181] sm:$0xff] }
 0x1f5   : > { %5763 = vst.msk [vmem:[#allocation3 + $0x118] sm:$0xff] %vm2552_vm1, %v5699_v29  ;;  %v4867_v13 = vadd.f32 %v12519_v55, %v4221_v53  ;;  %v4707_v24 = vpop.f32.mrb[73].mxu1  ;;  %12877 = vmatmul.mubr.msk.f32.gmra.mrb[178].mxu1 %vm2552_vm1, %v7488_v22  ;;  %12977 = vmatprep.mubr.msk.f32.mxu0 %vm2552_vm1, %v8328_v31  ;;  %v7496_v22 = vld [vmem:[#allocation2 + $0x15b] sm:$0xff]  ;;  %v8336_v31 = vld [vmem:[#allocation2 + $0x191] sm:$0xff]  ;;  %v4229_v53 = vld [vmem:[#allocation3 + $0x188] sm:$0xff] }
 0x1f6   : > { %5762 = vst.msk [vmem:[#allocation3 + $0x110] sm:$0xff] %vm2552_vm1, %v5698_v8  ;;  %v4866_v2 = vadd.f32 %v4707_v24, %v4220_v9  ;;  %v5055_v35 = vld [vmem:[#allocation3 + $0x128] sm:$0xff]  ;;  %12879 = vmatprep.mubr.msk.f32.mxu1 %vm2552_vm1, %v7489_v6  ;;  %v4228_v9 = vld [vmem:[#allocation3 + $0x180] sm:$0xff] }
 0x1f7   : > { %4931 = vst.msk [vmem:[#allocation3 + $0x148] sm:$0xff] %vm2552_vm1, %v4867_v13  ;;  %v5701_v34 = vadd.f32 %v14943_v40, %v5055_v35  ;;  %v5054_v37 = vld [vmem:[#allocation3 + $0x120] sm:$0xff]  ;;  %v14985_v32 = vpop.f32.mrb[74].mxu0  ;;  %v7497_v6 = vld [vmem:[#allocation2 + $0x16b] sm:$0xff] }
 0x1f8   : > { %4930 = vst.msk [vmem:[#allocation3 + $0x140] sm:$0xff] %vm2552_vm1, %v4866_v2  ;;  %v5700_v41 = vadd.f32 %v14947_v58, %v5054_v37  ;;  %v12522_v63 = vpop.f32.mrb[74].mxu1  ;;  %v14989_v14 = vpop.f32.mrb[75].mxu0  ;;  %12978 = vmatmul.mubr.msk.f32.gmra.mrb[180].mxu0 %vm2552_vm1, %v8329_v30  ;;  %v8337_v30 = vld [vmem:[#allocation2 + $0x199] sm:$0xff] }
 0x1f9   : > { %5765 = vst.msk [vmem:[#allocation3 + $0x128] sm:$0xff] %vm2552_vm1, %v5701_v34  ;;  %v4869_v45 = vadd.f32 %v12522_v63, %v4223_v43  ;;  %v4717_v57 = vpop.f32.mrb[75].mxu1  ;;  %12880 = vmatmul.mubr.msk.f32.gmra.mrb[180].mxu1 %vm2552_vm1, %v7490_v59  ;;  %12980 = vmatprep.mubr.msk.f32.mxu0 %vm2552_vm1, %v8330_v61  ;;  %v7498_v59 = vld [vmem:[#allocation2 + $0x173] sm:$0xff]  ;;  %v8338_v61 = vld [vmem:[#allocation2 + $0x1a1] sm:$0xff] }
 0x1fa   : > { %5764 = vst.msk [vmem:[#allocation3 + $0x120] sm:$0xff] %vm2552_vm1, %v5700_v41  ;;  %v4868_v49 = vadd.f32 %v4717_v57, %v4222_v52  ;;  %v5057_v27 = vld [vmem:[#allocation3 + $0x138] sm:$0xff]  ;;  %12882 = vmatprep.mubr.msk.f32.mxu1 %vm2552_vm1, %v7491_v19  ;;  %v4230_v52 = vld [vmem:[#allocation3 + $0x190] sm:$0xff] }
 0x1fb   : > { %4933 = vst.msk [vmem:[#allocation3 + $0x158] sm:$0xff] %vm2552_vm1, %v4869_v45  ;;  %v5703_v4 = vadd.f32 %v14957_v17, %v5057_v27  ;;  %v5056_v54 = vld [vmem:[#allocation3 + $0x130] sm:$0xff]  ;;  %v14999_v40 = vpop.f32.mrb[76].mxu0  ;;  %v7499_v19 = vld [vmem:[#allocation2 + $0x17b] sm:$0xff] }
 0x1fc   : > { %4932 = vst.msk [vmem:[#allocation3 + $0x150] sm:$0xff] %vm2552_vm1, %v4868_v49  ;;  %v5702_v7 = vadd.f32 %v14961_v21, %v5056_v54  ;;  %v12525_v60 = vpop.f32.mrb[76].mxu1  ;;  %v15003_v58 = vpop.f32.mrb[77].mxu0  ;;  %12981 = vmatmul.mubr.msk.f32.gmra.mrb[182].mxu0 %vm2552_vm1, %v8331_v25  ;;  %v4231_v43 = vld [vmem:[#allocation3 + $0x198] sm:$0xff]  ;;  %v8339_v25 = vld [vmem:[#allocation2 + $0x1a9] sm:$0xff] }
 0x1fd   : > { %5767 = vst.msk [vmem:[#allocation3 + $0x138] sm:$0xff] %vm2552_vm1, %v5703_v4  ;;  %v4871_v15 = vadd.f32 %v12525_v60, %v4225_v56  ;;  %v4727_v11 = vpop.f32.mrb[77].mxu1  ;;  %12883 = vmatmul.mubr.msk.f32.gmra.mrb[182].mxu1 %vm2552_vm1, %v7492_v51  ;;  %12983 = vmatprep.mubr.msk.f32.mxu0 %vm2552_vm1, %v8332_v38  ;;  %v7500_v51 = vld [vmem:[#allocation2 + $0x183] sm:$0xff]  ;;  %v8340_v38 = vld [vmem:[#allocation2 + $0x1b9] sm:$0xff] }
 0x1fe   : > { %5766 = vst.msk [vmem:[#allocation3 + $0x130] sm:$0xff] %vm2552_vm1, %v5702_v7  ;;  %v4870_v3 = vadd.f32 %v4727_v11, %v4224_v39  ;;  %v5059_v62 = vld [vmem:[#allocation3 + $0x148] sm:$0xff]  ;;  %12885 = vmatprep.mubr.msk.f32.mxu1 %vm2552_vm1, %v7493_v36  ;;  %v7501_v36 = vld [vmem:[#allocation2 + $0x193] sm:$0xff]  ;;  %v4232_v39 = vld [vmem:[#allocation3 + $0x1a0] sm:$0xff] }
 0x1ff   : > { %4935 = vst.msk [vmem:[#allocation3 + $0x168] sm:$0xff] %vm2552_vm1, %v4871_v15  ;;  %v5705_v44 = vadd.f32 %v14971_v16, %v5059_v62  ;;  %v5058_v1 = vld [vmem:[#allocation3 + $0x140] sm:$0xff]  ;;  %v15013_v17 = vpop.f32.mrb[78].mxu0  ;;  %v4233_v56 = vld [vmem:[#allocation3 + $0x1a8] sm:$0xff] }
 0x200   : > { %4934 = vst.msk [vmem:[#allocation3 + $0x160] sm:$0xff] %vm2552_vm1, %v4870_v3  ;;  %v5704_v5 = vadd.f32 %v14975_v33, %v5058_v1  ;;  %v12528_v23 = vpop.f32.mrb[78].mxu1  ;;  %v15017_v21 = vpop.f32.mrb[79].mxu0  ;;  %12984 = vmatmul.mubr.msk.f32.gmra.mrb[184].mxu0 %vm2552_vm1, %v8333_v47  ;;  %v8341_v47 = vld [vmem:[#allocation2 + $0x1c1] sm:$0xff] }
 0x201   : > { %5769 = vst.msk [vmem:[#allocation3 + $0x148] sm:$0xff] %vm2552_vm1, %v5705_v44  ;;  %v4873_v18 = vadd.f32 %v12528_v23, %v4227_v42  ;;  %v4737_v48 = vpop.f32.mrb[79].mxu1  ;;  %12886 = vmatmul.mubr.msk.f32.gmra.mrb[184].mxu1 %vm2552_vm1, %v7494_v12  ;;  %12986 = vmatprep.mubr.msk.f32.mxu0 %vm2552_vm1, %v8334_v46  ;;  %v7502_v12 = vld [vmem:[#allocation2 + $0x19b] sm:$0xff]  ;;  %v8342_v46 = vld [vmem:[#allocation2 + $0x1c9] sm:$0xff] }
 0x202   : > { %5768 = vst.msk [vmem:[#allocation3 + $0x140] sm:$0xff] %vm2552_vm1, %v5704_v5  ;;  %v4872_v50 = vadd.f32 %v4737_v48, %v4226_v10  ;;  %v5061_v28 = vld [vmem:[#allocation3 + $0x158] sm:$0xff]  ;;  %12888 = vmatprep.mubr.msk.f32.mxu1 %vm2552_vm1, %v7495_v0  ;;  %v7503_v0 = vld [vmem:[#allocation2 + $0x1a3] sm:$0xff]  ;;  %v4234_v10 = vld [vmem:[#allocation3 + $0x1b0] sm:$0xff] }
 0x203   : > { %4937 = vst.msk [vmem:[#allocation3 + $0x178] sm:$0xff] %vm2552_vm1, %v4873_v18  ;;  %v5707_v29 = vadd.f32 %v14985_v32, %v5061_v28  ;;  %v5060_v20 = vld [vmem:[#allocation3 + $0x150] sm:$0xff]  ;;  %v15027_v16 = vpop.f32.mrb[80].mxu0  ;;  %v4235_v42 = vld [vmem:[#allocation3 + $0x1b8] sm:$0xff] }
 0x204   : > { %4936 = vst.msk [vmem:[#allocation3 + $0x170] sm:$0xff] %vm2552_vm1, %v4872_v50  ;;  %v5706_v8 = vadd.f32 %v14989_v14, %v5060_v20  ;;  %v12531_v55 = vpop.f32.mrb[80].mxu1  ;;  %v15031_v33 = vpop.f32.mrb[81].mxu0  ;;  %12987 = vmatmul.mubr.msk.f32.gmra.mrb[186].mxu0 %vm2552_vm1, %v8335_v26  ;;  %v8343_v26 = vld [vmem:[#allocation2 + $0x1d1] sm:$0xff] }
 0x205   : > { %5771 = vst.msk [vmem:[#allocation3 + $0x158] sm:$0xff] %vm2552_vm1, %v5707_v29  ;;  %v4875_v13 = vadd.f32 %v12531_v55, %v4229_v53  ;;  %v4747_v24 = vpop.f32.mrb[81].mxu1  ;;  %12889 = vmatmul.mubr.msk.f32.gmra.mrb[186].mxu1 %vm2552_vm1, %v7496_v22  ;;  %12989 = vmatprep.mubr.msk.f32.mxu0 %vm2552_vm1, %v8336_v31  ;;  %v7504_v22 = vld [vmem:[#allocation2 + $0x1ab] sm:$0xff]  ;;  %v8344_v31 = vld [vmem:[#allocation2 + $0x1e1] sm:$0xff] }
 0x206   : > { %5770 = vst.msk [vmem:[#allocation3 + $0x150] sm:$0xff] %vm2552_vm1, %v5706_v8  ;;  %v4874_v2 = vadd.f32 %v4747_v24, %v4228_v9  ;;  %v5063_v35 = vld [vmem:[#allocation3 + $0x168] sm:$0xff]  ;;  %12891 = vmatprep.mubr.msk.f32.mxu1 %vm2552_vm1, %v7497_v6  ;;  %v7505_v6 = vld [vmem:[#allocation2 + $0x1bb] sm:$0xff] }
 0x207   : > { %4939 = vst.msk [vmem:[#allocation3 + $0x188] sm:$0xff] %vm2552_vm1, %v4875_v13  ;;  %v5709_v34 = vadd.f32 %v14999_v40, %v5063_v35  ;;  %v5062_v37 = vld [vmem:[#allocation3 + $0x160] sm:$0xff]  ;;  %v15041_v32 = vpop.f32.mrb[82].mxu0  ;;  %v4237_v53 = vld [vmem:[#allocation3 + $0x1c8] sm:$0xff] }
 0x208   : > { %4938 = vst.msk [vmem:[#allocation3 + $0x180] sm:$0xff] %vm2552_vm1, %v4874_v2  ;;  %v5708_v41 = vadd.f32 %v15003_v58, %v5062_v37  ;;  %v12534_v63 = vpop.f32.mrb[82].mxu1  ;;  %v15045_v14 = vpop.f32.mrb[83].mxu0  ;;  %12990 = vmatmul.mubr.msk.f32.gmra.mrb[188].mxu0 %vm2552_vm1, %v8337_v30  ;;  %v4236_v9 = vld [vmem:[#allocation3 + $0x1c0] sm:$0xff]  ;;  %v8345_v30 = vld [vmem:[#allocation2 + $0x1e9] sm:$0xff] }
 0x209   : > { %5773 = vst.msk [vmem:[#allocation3 + $0x168] sm:$0xff] %vm2552_vm1, %v5709_v34  ;;  %v4877_v45 = vadd.f32 %v12534_v63, %v4231_v43  ;;  %v4757_v57 = vpop.f32.mrb[83].mxu1  ;;  %12892 = vmatmul.mubr.msk.f32.gmra.mrb[188].mxu1 %vm2552_vm1, %v7498_v59  ;;  %12992 = vmatprep.mubr.msk.f32.mxu0 %vm2552_vm1, %v8338_v61  ;;  %v7506_v59 = vld [vmem:[#allocation2 + $0x1c3] sm:$0xff]  ;;  %v8346_v61 = vld [vmem:[#allocation2 + $0x1f1] sm:$0xff] }
 0x20a   : > { %5772 = vst.msk [vmem:[#allocation3 + $0x160] sm:$0xff] %vm2552_vm1, %v5708_v41  ;;  %v4876_v49 = vadd.f32 %v4757_v57, %v4230_v52  ;;  %v5065_v27 = vld [vmem:[#allocation3 + $0x178] sm:$0xff]  ;;  %12894 = vmatprep.mubr.msk.f32.mxu1 %vm2552_vm1, %v7499_v19  ;;  %v7507_v19 = vld [vmem:[#allocation2 + $0x1cb] sm:$0xff] }
 0x20b   : > { %4941 = vst.msk [vmem:[#allocation3 + $0x198] sm:$0xff] %vm2552_vm1, %v4877_v45  ;;  %v5711_v4 = vadd.f32 %v15013_v17, %v5065_v27  ;;  %v5064_v54 = vld [vmem:[#allocation3 + $0x170] sm:$0xff]  ;;  %v15055_v40 = vpop.f32.mrb[84].mxu0  ;;  %v4239_v43 = vld [vmem:[#allocation3 + $0x1d8] sm:$0xff] }
 0x20c   : > { %4940 = vst.msk [vmem:[#allocation3 + $0x190] sm:$0xff] %vm2552_vm1, %v4876_v49  ;;  %v5710_v7 = vadd.f32 %v15017_v21, %v5064_v54  ;;  %v12537_v60 = vpop.f32.mrb[84].mxu1  ;;  %v15059_v58 = vpop.f32.mrb[85].mxu0  ;;  %12993 = vmatmul.mubr.msk.f32.gmra.mrb[190].mxu0 %vm2552_vm1, %v8339_v25  ;;  %v4238_v52 = vld [vmem:[#allocation3 + $0x1d0] sm:$0xff]  ;;  %v8347_v25 = vld [vmem:[#allocation2 + $0x1f9] sm:$0xff] }
 0x20d   : > { %5775 = vst.msk [vmem:[#allocation3 + $0x178] sm:$0xff] %vm2552_vm1, %v5711_v4  ;;  %v4879_v15 = vadd.f32 %v12537_v60, %v4233_v56  ;;  %v4767_v11 = vpop.f32.mrb[85].mxu1  ;;  %12895 = vmatmul.mubr.msk.f32.gmra.mrb[190].mxu1 %vm2552_vm1, %v7500_v51  ;;  %12995 = vmatprep.mubr.msk.f32.mxu0 %vm2552_vm1, %v8340_v38  ;;  %v7508_v51 = vld [vmem:[#allocation2 + $0x1d3] sm:$0xff]  ;;  %v8348_v38 = vld [vmem:[#allocation2 + $0x209] sm:$0xff] }
 0x20e   : > { %5774 = vst.msk [vmem:[#allocation3 + $0x170] sm:$0xff] %vm2552_vm1, %v5710_v7  ;;  %v4878_v3 = vadd.f32 %v4767_v11, %v4232_v39  ;;  %v5067_v62 = vld [vmem:[#allocation3 + $0x188] sm:$0xff]  ;;  %12897 = vmatprep.mubr.msk.f32.mxu1 %vm2552_vm1, %v7501_v36  ;;  %v4240_v39 = vld [vmem:[#allocation3 + $0x1e0] sm:$0xff] }
 0x20f   : > { %4943 = vst.msk [vmem:[#allocation3 + $0x1a8] sm:$0xff] %vm2552_vm1, %v4879_v15  ;;  %v5713_v44 = vadd.f32 %v15027_v16, %v5067_v62  ;;  %v5066_v1 = vld [vmem:[#allocation3 + $0x180] sm:$0xff]  ;;  %v15069_v17 = vpop.f32.mrb[86].mxu0  ;;  %v4241_v56 = vld [vmem:[#allocation3 + $0x1e8] sm:$0xff] }
 0x210   : > { %4942 = vst.msk [vmem:[#allocation3 + $0x1a0] sm:$0xff] %vm2552_vm1, %v4878_v3  ;;  %v5712_v5 = vadd.f32 %v15031_v33, %v5066_v1  ;;  %v12540_v23 = vpop.f32.mrb[86].mxu1  ;;  %v15073_v21 = vpop.f32.mrb[87].mxu0  ;;  %12996 = vmatmul.mubr.msk.f32.gmra.mrb[192].mxu0 %vm2552_vm1, %v8341_v47  ;;  %v7509_v36 = vld [vmem:[#allocation2 + $0x1e3] sm:$0xff]  ;;  %v8349_v47 = vld [vmem:[#allocation2 + $0x211] sm:$0xff] }
 0x211   : > { %5777 = vst.msk [vmem:[#allocation3 + $0x188] sm:$0xff] %vm2552_vm1, %v5713_v44  ;;  %v4881_v18 = vadd.f32 %v12540_v23, %v4235_v42  ;;  %v4777_v48 = vpop.f32.mrb[87].mxu1  ;;  %12898 = vmatmul.mubr.msk.f32.gmra.mrb[192].mxu1 %vm2552_vm1, %v7502_v12  ;;  %12998 = vmatprep.mubr.msk.f32.mxu0 %vm2552_vm1, %v8342_v46  ;;  %v7510_v12 = vld [vmem:[#allocation2 + $0x1eb] sm:$0xff]  ;;  %v8350_v46 = vld [vmem:[#allocation2 + $0x219] sm:$0xff] }
 0x212   : > { %5776 = vst.msk [vmem:[#allocation3 + $0x180] sm:$0xff] %vm2552_vm1, %v5712_v5  ;;  %v4880_v50 = vadd.f32 %v4777_v48, %v4234_v10  ;;  %v5069_v28 = vld [vmem:[#allocation3 + $0x198] sm:$0xff]  ;;  %12900 = vmatprep.mubr.msk.f32.mxu1 %vm2552_vm1, %v7503_v0  ;;  %v4242_v10 = vld [vmem:[#allocation3 + $0x1f0] sm:$0xff] }
 0x213   : > { %4945 = vst.msk [vmem:[#allocation3 + $0x1b8] sm:$0xff] %vm2552_vm1, %v4881_v18  ;;  %v5715_v29 = vadd.f32 %v15041_v32, %v5069_v28  ;;  %v5068_v20 = vld [vmem:[#allocation3 + $0x190] sm:$0xff]  ;;  %v15083_v16 = vpop.f32.mrb[88].mxu0  ;;  %v4243_v42 = vld [vmem:[#allocation3 + $0x1f8] sm:$0xff] }
 0x214   : > { %4944 = vst.msk [vmem:[#allocation3 + $0x1b0] sm:$0xff] %vm2552_vm1, %v4880_v50  ;;  %v5714_v8 = vadd.f32 %v15045_v14, %v5068_v20  ;;  %v12543_v55 = vpop.f32.mrb[88].mxu1  ;;  %v15087_v33 = vpop.f32.mrb[89].mxu0  ;;  %12999 = vmatmul.mubr.msk.f32.gmra.mrb[194].mxu0 %vm2552_vm1, %v8343_v26  ;;  %v7511_v0 = vld [vmem:[#allocation2 + $0x1f3] sm:$0xff]  ;;  %v8351_v26 = vld [vmem:[#allocation2 + $0x221] sm:$0xff] }
 0x215   : > { %5779 = vst.msk [vmem:[#allocation3 + $0x198] sm:$0xff] %vm2552_vm1, %v5715_v29  ;;  %v4883_v13 = vadd.f32 %v12543_v55, %v4237_v53  ;;  %v4787_v24 = vpop.f32.mrb[89].mxu1  ;;  %12901 = vmatmul.mubr.msk.f32.gmra.mrb[194].mxu1 %vm2552_vm1, %v7504_v22  ;;  %13001 = vmatprep.mubr.msk.f32.mxu0 %vm2552_vm1, %v8344_v31  ;;  %v7512_v22 = vld [vmem:[#allocation2 + $0x1fb] sm:$0xff]  ;;  %v8352_v31 = vld [vmem:[#allocation2 + $0x231] sm:$0xff]  ;;  %v5858_v53 = vld [vmem:[#allocation3 + $0x8] sm:$0xff] }
 0x216   : > { %5778 = vst.msk [vmem:[#allocation3 + $0x190] sm:$0xff] %vm2552_vm1, %v5714_v8  ;;  %v4882_v2 = vadd.f32 %v4787_v24, %v4236_v9  ;;  %v5071_v35 = vld [vmem:[#allocation3 + $0x1a8] sm:$0xff]  ;;  %12903 = vmatprep.mubr.msk.f32.mxu1 %vm2552_vm1, %v7505_v6  ;;  %v5857_v9 = vld [vmem:[#allocation3] sm:$0xff] }
 0x217   : > { %4947 = vst.msk [vmem:[#allocation3 + $0x1c8] sm:$0xff] %vm2552_vm1, %v4883_v13  ;;  %v5717_v34 = vadd.f32 %v15055_v40, %v5071_v35  ;;  %v5070_v37 = vld [vmem:[#allocation3 + $0x1a0] sm:$0xff]  ;;  %v15097_v32 = vpop.f32.mrb[90].mxu0  ;;  %v7513_v6 = vld [vmem:[#allocation2 + $0x20b] sm:$0xff] }
 0x218   : > { %4946 = vst.msk [vmem:[#allocation3 + $0x1c0] sm:$0xff] %vm2552_vm1, %v4882_v2  ;;  %v5716_v41 = vadd.f32 %v15059_v58, %v5070_v37  ;;  %v12546_v63 = vpop.f32.mrb[90].mxu1  ;;  %v15101_v14 = vpop.f32.mrb[91].mxu0  ;;  %13002 = vmatmul.mubr.msk.f32.gmra.mrb[196].mxu0 %vm2552_vm1, %v8345_v30  ;;  %v8353_v30 = vld [vmem:[#allocation2 + $0x239] sm:$0xff] }
 0x219   : > { %5781 = vst.msk [vmem:[#allocation3 + $0x1a8] sm:$0xff] %vm2552_vm1, %v5717_v34  ;;  %v4885_v45 = vadd.f32 %v12546_v63, %v4239_v43  ;;  %v4797_v57 = vpop.f32.mrb[91].mxu1  ;;  %12904 = vmatmul.mubr.msk.f32.gmra.mrb[196].mxu1 %vm2552_vm1, %v7506_v59  ;;  %13004 = vmatprep.mubr.msk.f32.mxu0 %vm2552_vm1, %v8346_v61  ;;  %v7514_v59 = vld [vmem:[#allocation2 + $0x213] sm:$0xff]  ;;  %v8354_v61 = vld [vmem:[#allocation2 + $0x241] sm:$0xff] }
 0x21a   : > { %5780 = vst.msk [vmem:[#allocation3 + $0x1a0] sm:$0xff] %vm2552_vm1, %v5716_v41  ;;  %v4884_v49 = vadd.f32 %v4797_v57, %v4238_v52  ;;  %v5073_v27 = vld [vmem:[#allocation3 + $0x1b8] sm:$0xff]  ;;  %12906 = vmatprep.mubr.msk.f32.mxu1 %vm2552_vm1, %v7507_v19  ;;  %v5859_v52 = vld [vmem:[#allocation3 + $0x10] sm:$0xff] }
 0x21b   : > { %4949 = vst.msk [vmem:[#allocation3 + $0x1d8] sm:$0xff] %vm2552_vm1, %v4885_v45  ;;  %v5719_v4 = vadd.f32 %v15069_v17, %v5073_v27  ;;  %v5072_v54 = vld [vmem:[#allocation3 + $0x1b0] sm:$0xff]  ;;  %v15111_v40 = vpop.f32.mrb[92].mxu0  ;;  %v7515_v19 = vld [vmem:[#allocation2 + $0x21b] sm:$0xff] }
 0x21c   : > { %4948 = vst.msk [vmem:[#allocation3 + $0x1d0] sm:$0xff] %vm2552_vm1, %v4884_v49  ;;  %v5718_v7 = vadd.f32 %v15073_v21, %v5072_v54  ;;  %v12549_v60 = vpop.f32.mrb[92].mxu1  ;;  %v15115_v58 = vpop.f32.mrb[93].mxu0  ;;  %13005 = vmatmul.mubr.msk.f32.gmra.mrb[198].mxu0 %vm2552_vm1, %v8347_v25  ;;  %v5860_v43 = vld [vmem:[#allocation3 + $0x18] sm:$0xff]  ;;  %v8355_v25 = vld [vmem:[#allocation2 + $0x249] sm:$0xff] }
 0x21d   : > { %5783 = vst.msk [vmem:[#allocation3 + $0x1b8] sm:$0xff] %vm2552_vm1, %v5719_v4  ;;  %v4887_v15 = vadd.f32 %v12549_v60, %v4241_v56  ;;  %v4807_v11 = vpop.f32.mrb[93].mxu1  ;;  %12907 = vmatmul.mubr.msk.f32.gmra.mrb[198].mxu1 %vm2552_vm1, %v7508_v51  ;;  %13007 = vmatprep.mubr.msk.f32.mxu0 %vm2552_vm1, %v8348_v38  ;;  %v7516_v51 = vld [vmem:[#allocation2 + $0x223] sm:$0xff]  ;;  %v8356_v38 = vld [vmem:[#allocation2 + $0x259] sm:$0xff] }
 0x21e   : > { %5782 = vst.msk [vmem:[#allocation3 + $0x1b0] sm:$0xff] %vm2552_vm1, %v5718_v7  ;;  %v4886_v3 = vadd.f32 %v4807_v11, %v4240_v39  ;;  %v5075_v62 = vld [vmem:[#allocation3 + $0x1c8] sm:$0xff]  ;;  %12909 = vmatprep.mubr.msk.f32.mxu1 %vm2552_vm1, %v7509_v36  ;;  %v7517_v36 = vld [vmem:[#allocation2 + $0x233] sm:$0xff]  ;;  %v5861_v39 = vld [vmem:[#allocation3 + $0x20] sm:$0xff] }
 0x21f   : > { %4951 = vst.msk [vmem:[#allocation3 + $0x1e8] sm:$0xff] %vm2552_vm1, %v4887_v15  ;;  %v5721_v44 = vadd.f32 %v15083_v16, %v5075_v62  ;;  %v5074_v1 = vld [vmem:[#allocation3 + $0x1c0] sm:$0xff]  ;;  %v15125_v17 = vpop.f32.mrb[94].mxu0  ;;  %v5862_v56 = vld [vmem:[#allocation3 + $0x28] sm:$0xff] }
 0x220   : > { %4950 = vst.msk [vmem:[#allocation3 + $0x1e0] sm:$0xff] %vm2552_vm1, %v4886_v3  ;;  %v5720_v5 = vadd.f32 %v15087_v33, %v5074_v1  ;;  %v12552_v23 = vpop.f32.mrb[94].mxu1  ;;  %v15129_v21 = vpop.f32.mrb[95].mxu0  ;;  %13008 = vmatmul.mubr.msk.f32.gmra.mrb[200].mxu0 %vm2552_vm1, %v8349_v47  ;;  %v8357_v47 = vld [vmem:[#allocation2 + $0x261] sm:$0xff] }
 0x221   : > { %5785 = vst.msk [vmem:[#allocation3 + $0x1c8] sm:$0xff] %vm2552_vm1, %v5721_v44  ;;  %v4889_v18 = vadd.f32 %v12552_v23, %v4243_v42  ;;  %v4817_v48 = vpop.f32.mrb[95].mxu1  ;;  %12910 = vmatmul.mubr.msk.f32.gmra.mrb[200].mxu1 %vm2552_vm1, %v7510_v12  ;;  %13010 = vmatprep.mubr.msk.f32.mxu0 %vm2552_vm1, %v8350_v46  ;;  %v7518_v12 = vld [vmem:[#allocation2 + $0x23b] sm:$0xff]  ;;  %v8358_v46 = vld [vmem:[#allocation2 + $0x269] sm:$0xff] }
 0x222   : > { %5784 = vst.msk [vmem:[#allocation3 + $0x1c0] sm:$0xff] %vm2552_vm1, %v5720_v5  ;;  %v4888_v50 = vadd.f32 %v4817_v48, %v4242_v10  ;;  %v5077_v28 = vld [vmem:[#allocation3 + $0x1d8] sm:$0xff]  ;;  %12912 = vmatprep.mubr.msk.f32.mxu1 %vm2552_vm1, %v7511_v0  ;;  %v7519_v0 = vld [vmem:[#allocation2 + $0x243] sm:$0xff]  ;;  %v5863_v10 = vld [vmem:[#allocation3 + $0x30] sm:$0xff] }
 0x223   : > { %4953 = vst.msk [vmem:[#allocation3 + $0x1f8] sm:$0xff] %vm2552_vm1, %v4889_v18  ;;  %v5723_v29 = vadd.f32 %v15097_v32, %v5077_v28  ;;  %v5076_v20 = vld [vmem:[#allocation3 + $0x1d0] sm:$0xff]  ;;  %v15139_v16 = vpop.f32.mrb[96].mxu0  ;;  %v5864_v42 = vld [vmem:[#allocation3 + $0x38] sm:$0xff] }
 0x224   : > { %4952 = vst.msk [vmem:[#allocation3 + $0x1f0] sm:$0xff] %vm2552_vm1, %v4888_v50  ;;  %v5722_v8 = vadd.f32 %v15101_v14, %v5076_v20  ;;  %v12655_v55 = vpop.f32.mrb[96].mxu1  ;;  %v15143_v33 = vpop.f32.mrb[97].mxu0  ;;  %13011 = vmatmul.mubr.msk.f32.gmra.mrb[202].mxu0 %vm2552_vm1, %v8351_v26  ;;  %v8359_v26 = vld [vmem:[#allocation2 + $0x271] sm:$0xff] }
 0x225   : > { %5787 = vst.msk [vmem:[#allocation3 + $0x1d8] sm:$0xff] %vm2552_vm1, %v5723_v29  ;;  %v6504_v13 = vadd.f32 %v12655_v55, %v5858_v53  ;;  %v6184_v24 = vpop.f32.mrb[97].mxu1  ;;  %12913 = vmatmul.mubr.msk.f32.gmra.mrb[202].mxu1 %vm2552_vm1, %v7512_v22  ;;  %13013 = vmatprep.mubr.msk.f32.mxu0 %vm2552_vm1, %v8352_v31  ;;  %v7520_v22 = vld [vmem:[#allocation2 + $0x24b] sm:$0xff]  ;;  %v8360_v31 = vld [vmem:[#allocation2 + $0x281] sm:$0xff] }
 0x226   : > { %5786 = vst.msk [vmem:[#allocation3 + $0x1d0] sm:$0xff] %vm2552_vm1, %v5722_v8  ;;  %v5079_v2 = vld [vmem:[#allocation3 + $0x1e8] sm:$0xff]  ;;  %v6503_v35 = vadd.f32 %v6184_v24, %v5857_v9  ;;  %12915 = vmatprep.mubr.msk.f32.mxu1 %vm2552_vm1, %v7513_v6  ;;  %v7521_v6 = vld [vmem:[#allocation2 + $0x25b] sm:$0xff] }
 0x227   : > { %6568 = vst.msk [vmem:[#allocation3 + $0x8] sm:$0xff] %vm2552_vm1, %v6504_v13  ;;  %v5725_v34 = vadd.f32 %v15111_v40, %v5079_v2  ;;  %v5078_v37 = vld [vmem:[#allocation3 + $0x1e0] sm:$0xff]  ;;  %v15153_v32 = vpop.f32.mrb[98].mxu0  ;;  %v5866_v53 = vld [vmem:[#allocation3 + $0x48] sm:$0xff] }
 0x228   : > { %6567 = vst.msk [vmem:[#allocation3] sm:$0xff] %vm2552_vm1, %v6503_v35  ;;  %v5724_v41 = vadd.f32 %v15115_v58, %v5078_v37  ;;  %v12658_v63 = vpop.f32.mrb[98].mxu1  ;;  %v15157_v14 = vpop.f32.mrb[99].mxu0  ;;  %13014 = vmatmul.mubr.msk.f32.gmra.mrb[204].mxu0 %vm2552_vm1, %v8353_v30  ;;  %v5865_v9 = vld [vmem:[#allocation3 + $0x40] sm:$0xff]  ;;  %v8361_v30 = vld [vmem:[#allocation2 + $0x289] sm:$0xff] }
 0x229   : > { %5789 = vst.msk [vmem:[#allocation3 + $0x1e8] sm:$0xff] %vm2552_vm1, %v5725_v34  ;;  %v6506_v45 = vadd.f32 %v12658_v63, %v5860_v43  ;;  %v6194_v57 = vpop.f32.mrb[99].mxu1  ;;  %12916 = vmatmul.mubr.msk.f32.gmra.mrb[204].mxu1 %vm2552_vm1, %v7514_v59  ;;  %13016 = vmatprep.mubr.msk.f32.mxu0 %vm2552_vm1, %v8354_v61  ;;  %v7522_v59 = vld [vmem:[#allocation2 + $0x263] sm:$0xff]  ;;  %v8362_v61 = vld [vmem:[#allocation2 + $0x291] sm:$0xff] }
 0x22a   : > { %5788 = vst.msk [vmem:[#allocation3 + $0x1e0] sm:$0xff] %vm2552_vm1, %v5724_v41  ;;  %v5081_v49 = vld [vmem:[#allocation3 + $0x1f8] sm:$0xff]  ;;  %v6505_v27 = vadd.f32 %v6194_v57, %v5859_v52  ;;  %12918 = vmatprep.mubr.msk.f32.mxu1 %vm2552_vm1, %v7515_v19  ;;  %v7523_v19 = vld [vmem:[#allocation2 + $0x26b] sm:$0xff] }
 0x22b   : > { %6570 = vst.msk [vmem:[#allocation3 + $0x18] sm:$0xff] %vm2552_vm1, %v6506_v45  ;;  %v5727_v4 = vadd.f32 %v15125_v17, %v5081_v49  ;;  %v5080_v54 = vld [vmem:[#allocation3 + $0x1f0] sm:$0xff]  ;;  %v15167_v40 = vpop.f32.mrb[100].mxu0  ;;  %v5868_v43 = vld [vmem:[#allocation3 + $0x58] sm:$0xff] }
 0x22c   : > { %6569 = vst.msk [vmem:[#allocation3 + $0x10] sm:$0xff] %vm2552_vm1, %v6505_v27  ;;  %v5726_v7 = vadd.f32 %v15129_v21, %v5080_v54  ;;  %v12661_v60 = vpop.f32.mrb[100].mxu1  ;;  %v15171_v58 = vpop.f32.mrb[101].mxu0  ;;  %13017 = vmatmul.mubr.msk.f32.gmra.mrb[206].mxu0 %vm2552_vm1, %v8355_v25  ;;  %v5867_v52 = vld [vmem:[#allocation3 + $0x50] sm:$0xff]  ;;  %v8363_v25 = vld [vmem:[#allocation2 + $0x299] sm:$0xff] }
 0x22d   : > { %5791 = vst.msk [vmem:[#allocation3 + $0x1f8] sm:$0xff] %vm2552_vm1, %v5727_v4  ;;  %v6508_v15 = vadd.f32 %v12661_v60, %v5862_v56  ;;  %v6204_v11 = vpop.f32.mrb[101].mxu1  ;;  %12919 = vmatmul.mubr.msk.f32.gmra.mrb[206].mxu1 %vm2552_vm1, %v7516_v51  ;;  %13019 = vmatprep.mubr.msk.f32.mxu0 %vm2552_vm1, %v8356_v38  ;;  %v7524_v51 = vld [vmem:[#allocation2 + $0x273] sm:$0xff]  ;;  %v8364_v38 = vld [vmem:[#allocation2 + $0x2a9] sm:$0xff] }
 0x22e   : > { %5790 = vst.msk [vmem:[#allocation3 + $0x1f0] sm:$0xff] %vm2552_vm1, %v5726_v7  ;;  %v6507_v3 = vadd.f32 %v6204_v11, %v5861_v39  ;;  %v6696_v62 = vld [vmem:[#allocation3 + $0x8] sm:$0xff]  ;;  %12921 = vmatprep.mubr.msk.f32.mxu1 %vm2552_vm1, %v7517_v36  ;;  %v5869_v39 = vld [vmem:[#allocation3 + $0x60] sm:$0xff] }
 0x22f   : > { %6572 = vst.msk [vmem:[#allocation3 + $0x28] sm:$0xff] %vm2552_vm1, %v6508_v15  ;;  %v7342_v44 = vadd.f32 %v15139_v16, %v6696_v62  ;;  %v6695_v1 = vld [vmem:[#allocation3] sm:$0xff]  ;;  %v15181_v17 = vpop.f32.mrb[102].mxu0  ;;  %v5870_v56 = vld [vmem:[#allocation3 + $0x68] sm:$0xff] }
 0x230   : > { %6571 = vst.msk [vmem:[#allocation3 + $0x20] sm:$0xff] %vm2552_vm1, %v6507_v3  ;;  %v7341_v5 = vadd.f32 %v15143_v33, %v6695_v1  ;;  %v12664_v23 = vpop.f32.mrb[102].mxu1  ;;  %v15185_v21 = vpop.f32.mrb[103].mxu0  ;;  %13020 = vmatmul.mubr.msk.f32.gmra.mrb[208].mxu0 %vm2552_vm1, %v8357_v47  ;;  %v7525_v36 = vld [vmem:[#allocation2 + $0x283] sm:$0xff]  ;;  %v8365_v47 = vld [vmem:[#allocation2 + $0x2b1] sm:$0xff] }
 0x231   : > { %7406 = vst.msk [vmem:[#allocation3 + $0x8] sm:$0xff] %vm2552_vm1, %v7342_v44  ;;  %v6510_v18 = vadd.f32 %v12664_v23, %v5864_v42  ;;  %v6214_v48 = vpop.f32.mrb[103].mxu1  ;;  %12922 = vmatmul.mubr.msk.f32.gmra.mrb[208].mxu1 %vm2552_vm1, %v7518_v12  ;;  %13022 = vmatprep.mubr.msk.f32.mxu0 %vm2552_vm1, %v8358_v46  ;;  %v7526_v12 = vld [vmem:[#allocation2 + $0x28b] sm:$0xff]  ;;  %v8366_v46 = vld [vmem:[#allocation2 + $0x2b9] sm:$0xff] }
 0x232   : > { %7405 = vst.msk [vmem:[#allocation3] sm:$0xff] %vm2552_vm1, %v7341_v5  ;;  %v6509_v50 = vadd.f32 %v6214_v48, %v5863_v10  ;;  %v6698_v28 = vld [vmem:[#allocation3 + $0x18] sm:$0xff]  ;;  %12924 = vmatprep.mubr.msk.f32.mxu1 %vm2552_vm1, %v7519_v0  ;;  %v5871_v10 = vld [vmem:[#allocation3 + $0x70] sm:$0xff] }
 0x233   : > { %6574 = vst.msk [vmem:[#allocation3 + $0x38] sm:$0xff] %vm2552_vm1, %v6510_v18  ;;  %v7344_v29 = vadd.f32 %v15153_v32, %v6698_v28  ;;  %v6697_v20 = vld [vmem:[#allocation3 + $0x10] sm:$0xff]  ;;  %v15195_v16 = vpop.f32.mrb[104].mxu0  ;;  %v5872_v42 = vld [vmem:[#allocation3 + $0x78] sm:$0xff] }
 0x234   : > { %6573 = vst.msk [vmem:[#allocation3 + $0x30] sm:$0xff] %vm2552_vm1, %v6509_v50  ;;  %v7343_v8 = vadd.f32 %v15157_v14, %v6697_v20  ;;  %v12667_v55 = vpop.f32.mrb[104].mxu1  ;;  %v15199_v33 = vpop.f32.mrb[105].mxu0  ;;  %13023 = vmatmul.mubr.msk.f32.gmra.mrb[210].mxu0 %vm2552_vm1, %v8359_v26  ;;  %v7527_v0 = vld [vmem:[#allocation2 + $0x293] sm:$0xff]  ;;  %v8367_v26 = vld [vmem:[#allocation2 + $0x2c1] sm:$0xff] }
 0x235   : > { %7408 = vst.msk [vmem:[#allocation3 + $0x18] sm:$0xff] %vm2552_vm1, %v7344_v29  ;;  %v6512_v13 = vadd.f32 %v12667_v55, %v5866_v53  ;;  %v6224_v24 = vpop.f32.mrb[105].mxu1  ;;  %12925 = vmatmul.mubr.msk.f32.gmra.mrb[210].mxu1 %vm2552_vm1, %v7520_v22  ;;  %13025 = vmatprep.mubr.msk.f32.mxu0 %vm2552_vm1, %v8360_v31  ;;  %v7528_v22 = vld [vmem:[#allocation2 + $0x29b] sm:$0xff]  ;;  %v8368_v31 = vld [vmem:[#allocation2 + $0x2d1] sm:$0xff]  ;;  %v5874_v53 = vld [vmem:[#allocation3 + $0x88] sm:$0xff] }
 0x236   : > { %7407 = vst.msk [vmem:[#allocation3 + $0x10] sm:$0xff] %vm2552_vm1, %v7343_v8  ;;  %v6511_v2 = vadd.f32 %v6224_v24, %v5865_v9  ;;  %v6700_v35 = vld [vmem:[#allocation3 + $0x28] sm:$0xff]  ;;  %12927 = vmatprep.mubr.msk.f32.mxu1 %vm2552_vm1, %v7521_v6  ;;  %v5873_v9 = vld [vmem:[#allocation3 + $0x80] sm:$0xff] }
 0x237   : > { %6576 = vst.msk [vmem:[#allocation3 + $0x48] sm:$0xff] %vm2552_vm1, %v6512_v13  ;;  %v7346_v34 = vadd.f32 %v15167_v40, %v6700_v35  ;;  %v6699_v37 = vld [vmem:[#allocation3 + $0x20] sm:$0xff]  ;;  %v15209_v32 = vpop.f32.mrb[106].mxu0  ;;  %v7529_v6 = vld [vmem:[#allocation2 + $0x2ab] sm:$0xff] }
 0x238   : > { %6575 = vst.msk [vmem:[#allocation3 + $0x40] sm:$0xff] %vm2552_vm1, %v6511_v2  ;;  %v7345_v41 = vadd.f32 %v15171_v58, %v6699_v37  ;;  %v12670_v63 = vpop.f32.mrb[106].mxu1  ;;  %v15213_v14 = vpop.f32.mrb[107].mxu0  ;;  %13026 = vmatmul.mubr.msk.f32.gmra.mrb[212].mxu0 %vm2552_vm1, %v8361_v30  ;;  %v8369_v30 = vld [vmem:[#allocation2 + $0x2d9] sm:$0xff] }
 0x239   : > { %7410 = vst.msk [vmem:[#allocation3 + $0x28] sm:$0xff] %vm2552_vm1, %v7346_v34  ;;  %v6514_v45 = vadd.f32 %v12670_v63, %v5868_v43  ;;  %v6234_v57 = vpop.f32.mrb[107].mxu1  ;;  %12928 = vmatmul.mubr.msk.f32.gmra.mrb[212].mxu1 %vm2552_vm1, %v7522_v59  ;;  %13028 = vmatprep.mubr.msk.f32.mxu0 %vm2552_vm1, %v8362_v61  ;;  %v7530_v59 = vld [vmem:[#allocation2 + $0x2b3] sm:$0xff]  ;;  %v8370_v61 = vld [vmem:[#allocation2 + $0x2e1] sm:$0xff] }
 0x23a   : > { %7409 = vst.msk [vmem:[#allocation3 + $0x20] sm:$0xff] %vm2552_vm1, %v7345_v41  ;;  %v6513_v49 = vadd.f32 %v6234_v57, %v5867_v52  ;;  %v6702_v27 = vld [vmem:[#allocation3 + $0x38] sm:$0xff]  ;;  %12930 = vmatprep.mubr.msk.f32.mxu1 %vm2552_vm1, %v7523_v19  ;;  %v5875_v52 = vld [vmem:[#allocation3 + $0x90] sm:$0xff] }
 0x23b   : > { %6578 = vst.msk [vmem:[#allocation3 + $0x58] sm:$0xff] %vm2552_vm1, %v6514_v45  ;;  %v7348_v4 = vadd.f32 %v15181_v17, %v6702_v27  ;;  %v6701_v54 = vld [vmem:[#allocation3 + $0x30] sm:$0xff]  ;;  %v15223_v40 = vpop.f32.mrb[108].mxu0  ;;  %v7531_v19 = vld [vmem:[#allocation2 + $0x2bb] sm:$0xff] }
 0x23c   : > { %6577 = vst.msk [vmem:[#allocation3 + $0x50] sm:$0xff] %vm2552_vm1, %v6513_v49  ;;  %v7347_v7 = vadd.f32 %v15185_v21, %v6701_v54  ;;  %v12673_v60 = vpop.f32.mrb[108].mxu1  ;;  %v15227_v58 = vpop.f32.mrb[109].mxu0  ;;  %13029 = vmatmul.mubr.msk.f32.gmra.mrb[214].mxu0 %vm2552_vm1, %v8363_v25  ;;  %v5876_v43 = vld [vmem:[#allocation3 + $0x98] sm:$0xff]  ;;  %v8371_v25 = vld [vmem:[#allocation2 + $0x2e9] sm:$0xff] }
 0x23d   : > { %7412 = vst.msk [vmem:[#allocation3 + $0x38] sm:$0xff] %vm2552_vm1, %v7348_v4  ;;  %v6516_v15 = vadd.f32 %v12673_v60, %v5870_v56  ;;  %v6244_v11 = vpop.f32.mrb[109].mxu1  ;;  %12931 = vmatmul.mubr.msk.f32.gmra.mrb[214].mxu1 %vm2552_vm1, %v7524_v51  ;;  %13031 = vmatprep.mubr.msk.f32.mxu0 %vm2552_vm1, %v8364_v38  ;;  %v7532_v51 = vld [vmem:[#allocation2 + $0x2c3] sm:$0xff]  ;;  %v9984_v38 = vld [vmem:[#allocation2 + $0x7b] sm:$0xff] }
 0x23e   : > { %7411 = vst.msk [vmem:[#allocation3 + $0x30] sm:$0xff] %vm2552_vm1, %v7347_v7  ;;  %v6515_v3 = vadd.f32 %v6244_v11, %v5869_v39  ;;  %v6704_v62 = vld [vmem:[#allocation3 + $0x48] sm:$0xff]  ;;  %12933 = vmatprep.mubr.msk.f32.mxu1 %vm2552_vm1, %v7525_v36  ;;  %v9146_v36 = vld [vmem:[#allocation2 + $0x7a] sm:$0xff] }
 0x23f   : > { %6580 = vst.msk [vmem:[#allocation3 + $0x68] sm:$0xff] %vm2552_vm1, %v6516_v15  ;;  %v7350_v44 = vadd.f32 %v15195_v16, %v6704_v62  ;;  %v6703_v1 = vld [vmem:[#allocation3 + $0x40] sm:$0xff]  ;;  %v15237_v17 = vpop.f32.mrb[110].mxu0  ;;  %v5878_v56 = vld [vmem:[#allocation3 + $0xa8] sm:$0xff] }
 0x240   : > { %6579 = vst.msk [vmem:[#allocation3 + $0x60] sm:$0xff] %vm2552_vm1, %v6515_v3  ;;  %v7349_v5 = vadd.f32 %v15199_v33, %v6703_v1  ;;  %v12676_v23 = vpop.f32.mrb[110].mxu1  ;;  %v15241_v21 = vpop.f32.mrb[111].mxu0  ;;  %13032 = vmatmul.mubr.msk.f32.gmra.mrb[216].mxu0 %vm2552_vm1, %v8365_v47  ;;  %v5877_v39 = vld [vmem:[#allocation3 + $0xa0] sm:$0xff] }
 0x241   : > { %7414 = vst.msk [vmem:[#allocation3 + $0x48] sm:$0xff] %vm2552_vm1, %v7350_v44  ;;  %v6518_v18 = vadd.f32 %v12676_v23, %v5872_v42  ;;  %v6254_v48 = vpop.f32.mrb[111].mxu1  ;;  %12934 = vmatmul.mubr.msk.f32.gmra.mrb[216].mxu1 %vm2552_vm1, %v7526_v12  ;;  %13034 = vmatprep.mubr.msk.f32.mxu0 %vm2552_vm1, %v8366_v46  ;;  %v9147_v12 = vld [vmem:[#allocation2 + $0x82] sm:$0xff]  ;;  %v9986_v46 = vld [vmem:[#allocation2 + $0x8b] sm:$0xff]  ;;  %v5880_v42 = vld [vmem:[#allocation3 + $0xb8] sm:$0xff] }
 0x242   : > { %7413 = vst.msk [vmem:[#allocation3 + $0x40] sm:$0xff] %vm2552_vm1, %v7349_v5  ;;  %v6517_v50 = vadd.f32 %v6254_v48, %v5871_v10  ;;  %v6706_v28 = vld [vmem:[#allocation3 + $0x58] sm:$0xff]  ;;  %12936 = vmatprep.mubr.msk.f32.mxu1 %vm2552_vm1, %v7527_v0  ;;  %v9985_v47 = vld [vmem:[#allocation2 + $0x83] sm:$0xff]  ;;  %v5879_v10 = vld [vmem:[#allocation3 + $0xb0] sm:$0xff] }
 0x243   : > { %6582 = vst.msk [vmem:[#allocation3 + $0x78] sm:$0xff] %vm2552_vm1, %v6518_v18  ;;  %v7352_v29 = vadd.f32 %v15209_v32, %v6706_v28  ;;  %v6705_v20 = vld [vmem:[#allocation3 + $0x50] sm:$0xff]  ;;  %v15251_v16 = vpop.f32.mrb[112].mxu0 }
 0x244   : > { %6581 = vst.msk [vmem:[#allocation3 + $0x70] sm:$0xff] %vm2552_vm1, %v6517_v50  ;;  %v7351_v8 = vadd.f32 %v15213_v14, %v6705_v20  ;;  %v12679_v55 = vpop.f32.mrb[112].mxu1  ;;  %v15255_v33 = vpop.f32.mrb[113].mxu0  ;;  %13035 = vmatmul.mubr.msk.f32.gmra.mrb[218].mxu0 %vm2552_vm1, %v8367_v26  ;;  %v9148_v0 = vld [vmem:[#allocation2 + $0x8a] sm:$0xff]  ;;  %v9987_v26 = vld [vmem:[#allocation2 + $0x93] sm:$0xff] }
 0x245   : > { %7416 = vst.msk [vmem:[#allocation3 + $0x58] sm:$0xff] %vm2552_vm1, %v7352_v29  ;;  %v6520_v13 = vadd.f32 %v12679_v55, %v5874_v53  ;;  %v6264_v24 = vpop.f32.mrb[113].mxu1  ;;  %12937 = vmatmul.mubr.msk.f32.gmra.mrb[218].mxu1 %vm2552_vm1, %v7528_v22  ;;  %13037 = vmatprep.mubr.msk.f32.mxu0 %vm2552_vm1, %v8368_v31  ;;  %v9149_v22 = vld [vmem:[#allocation2 + $0x92] sm:$0xff]  ;;  %v9988_v31 = vld [vmem:[#allocation2 + $0xa3] sm:$0xff] }
 0x246   : > { %7415 = vst.msk [vmem:[#allocation3 + $0x50] sm:$0xff] %vm2552_vm1, %v7351_v8  ;;  %v6519_v2 = vadd.f32 %v6264_v24, %v5873_v9  ;;  %v6708_v35 = vld [vmem:[#allocation3 + $0x68] sm:$0xff]  ;;  %12939 = vmatprep.mubr.msk.f32.mxu1 %vm2552_vm1, %v7529_v6  ;;  %v5881_v9 = vld [vmem:[#allocation3 + $0xc0] sm:$0xff] }
 0x247   : > { %6584 = vst.msk [vmem:[#allocation3 + $0x88] sm:$0xff] %vm2552_vm1, %v6520_v13  ;;  %v7354_v34 = vadd.f32 %v15223_v40, %v6708_v35  ;;  %v6707_v37 = vld [vmem:[#allocation3 + $0x60] sm:$0xff]  ;;  %v15265_v32 = vpop.f32.mrb[114].mxu0  ;;  %v5882_v53 = vld [vmem:[#allocation3 + $0xc8] sm:$0xff] }
 0x248   : > { %6583 = vst.msk [vmem:[#allocation3 + $0x80] sm:$0xff] %vm2552_vm1, %v6519_v2  ;;  %v7353_v41 = vadd.f32 %v15227_v58, %v6707_v37  ;;  %v12682_v63 = vpop.f32.mrb[114].mxu1  ;;  %v15269_v14 = vpop.f32.mrb[115].mxu0  ;;  %13038 = vmatmul.mubr.msk.f32.gmra.mrb[220].mxu0 %vm2552_vm1, %v8369_v30  ;;  %v9150_v6 = vld [vmem:[#allocation2 + $0xa2] sm:$0xff]  ;;  %v9989_v30 = vld [vmem:[#allocation2 + $0xab] sm:$0xff] }
 0x249   : > { %7418 = vst.msk [vmem:[#allocation3 + $0x68] sm:$0xff] %vm2552_vm1, %v7354_v34  ;;  %v6522_v45 = vadd.f32 %v12682_v63, %v5876_v43  ;;  %v6274_v57 = vpop.f32.mrb[115].mxu1  ;;  %12940 = vmatmul.mubr.msk.f32.gmra.mrb[220].mxu1 %vm2552_vm1, %v7530_v59  ;;  %13040 = vmatprep.mubr.msk.f32.mxu0 %vm2552_vm1, %v8370_v61  ;;  %v9151_v59 = vld [vmem:[#allocation2 + $0xaa] sm:$0xff]  ;;  %v9990_v61 = vld [vmem:[#allocation2 + $0xb3] sm:$0xff] }
 0x24a   : > { %7417 = vst.msk [vmem:[#allocation3 + $0x60] sm:$0xff] %vm2552_vm1, %v7353_v41  ;;  %v6521_v49 = vadd.f32 %v6274_v57, %v5875_v52  ;;  %v6710_v27 = vld [vmem:[#allocation3 + $0x78] sm:$0xff]  ;;  %12942 = vmatprep.mubr.msk.f32.mxu1 %vm2552_vm1, %v7531_v19  ;;  %v5883_v52 = vld [vmem:[#allocation3 + $0xd0] sm:$0xff] }
 0x24b   : > { %6586 = vst.msk [vmem:[#allocation3 + $0x98] sm:$0xff] %vm2552_vm1, %v6522_v45  ;;  %v7356_v4 = vadd.f32 %v15237_v17, %v6710_v27  ;;  %v6709_v54 = vld [vmem:[#allocation3 + $0x70] sm:$0xff]  ;;  %v15279_v40 = vpop.f32.mrb[116].mxu0  ;;  %v5884_v43 = vld [vmem:[#allocation3 + $0xd8] sm:$0xff] }
 0x24c   : > { %6585 = vst.msk [vmem:[#allocation3 + $0x90] sm:$0xff] %vm2552_vm1, %v6521_v49  ;;  %v7355_v7 = vadd.f32 %v15241_v21, %v6709_v54  ;;  %v12685_v60 = vpop.f32.mrb[116].mxu1  ;;  %v15283_v58 = vpop.f32.mrb[117].mxu0  ;;  %13041 = vmatmul.mubr.msk.f32.gmra.mrb[222].mxu0 %vm2552_vm1, %v8371_v25  ;;  %v9152_v19 = vld [vmem:[#allocation2 + $0xb2] sm:$0xff]  ;;  %v9991_v25 = vld [vmem:[#allocation2 + $0xbb] sm:$0xff] }
 0x24d   : > { %7420 = vst.msk [vmem:[#allocation3 + $0x78] sm:$0xff] %vm2552_vm1, %v7356_v4  ;;  %v6524_v15 = vadd.f32 %v12685_v60, %v5878_v56  ;;  %v6284_v11 = vpop.f32.mrb[117].mxu1  ;;  %12943 = vmatmul.mubr.msk.f32.gmra.mrb[222].mxu1 %vm2552_vm1, %v7532_v51  ;;  %13143 = vmatprep.mubr.msk.f32.mxu0 %vm2552_vm1, %v9984_v38  ;;  %v9153_v51 = vld [vmem:[#allocation2 + $0xba] sm:$0xff]  ;;  %v9992_v38 = vld [vmem:[#allocation2 + $0xcb] sm:$0xff] }
 0x24e   : > { %7419 = vst.msk [vmem:[#allocation3 + $0x70] sm:$0xff] %vm2552_vm1, %v7355_v7  ;;  %v6523_v3 = vadd.f32 %v6284_v11, %v5877_v39  ;;  %v6712_v62 = vld [vmem:[#allocation3 + $0x88] sm:$0xff]  ;;  %13045 = vmatprep.mubr.msk.f32.mxu1 %vm2552_vm1, %v9146_v36  ;;  %v5885_v39 = vld [vmem:[#allocation3 + $0xe0] sm:$0xff] }
 0x24f   : > { %6588 = vst.msk [vmem:[#allocation3 + $0xa8] sm:$0xff] %vm2552_vm1, %v6524_v15  ;;  %v7358_v44 = vadd.f32 %v15251_v16, %v6712_v62  ;;  %v6711_v1 = vld [vmem:[#allocation3 + $0x80] sm:$0xff]  ;;  %v15293_v17 = vpop.f32.mrb[118].mxu0  ;;  %v9154_v36 = vld [vmem:[#allocation2 + $0xca] sm:$0xff] }
 0x250   : > { %6587 = vst.msk [vmem:[#allocation3 + $0xa0] sm:$0xff] %vm2552_vm1, %v6523_v3  ;;  %v7357_v5 = vadd.f32 %v15255_v33, %v6711_v1  ;;  %v12688_v23 = vpop.f32.mrb[118].mxu1  ;;  %v15297_v21 = vpop.f32.mrb[119].mxu0  ;;  %13144 = vmatmul.mubr.msk.f32.vlgmr.msra.gmra.mrb[224].mxu0 %vm2552_vm1, %v9985_v47  ;;  %v5886_v56 = vld [vmem:[#allocation3 + $0xe8] sm:$0xff]  ;;  %v9993_v47 = vld [vmem:[#allocation2 + $0xd3] sm:$0xff] }
 0x251   : > { %7422 = vst.msk [vmem:[#allocation3 + $0x88] sm:$0xff] %vm2552_vm1, %v7358_v44  ;;  %v6526_v18 = vadd.f32 %v12688_v23, %v5880_v42  ;;  %v6294_v48 = vpop.f32.mrb[119].mxu1  ;;  %13046 = vmatmul.mubr.msk.f32.vlgmr.msra.gmra.mrb[224].mxu1 %vm2552_vm1, %v9147_v12  ;;  %13146 = vmatprep.mubr.msk.f32.mxu0 %vm2552_vm1, %v9986_v46  ;;  %v9155_v12 = vld [vmem:[#allocation2 + $0xd2] sm:$0xff]  ;;  %v9994_v46 = vld [vmem:[#allocation2 + $0xdb] sm:$0xff] }
 0x252   : > { %7421 = vst.msk [vmem:[#allocation3 + $0x80] sm:$0xff] %vm2552_vm1, %v7357_v5  ;;  %v6525_v50 = vadd.f32 %v6294_v48, %v5879_v10  ;;  %v6714_v28 = vld [vmem:[#allocation3 + $0x98] sm:$0xff]  ;;  %13048 = vmatprep.mubr.msk.f32.mxu1 %vm2552_vm1, %v9148_v0  ;;  %v5887_v10 = vld [vmem:[#allocation3 + $0xf0] sm:$0xff] }
 0x253   : > { %6590 = vst.msk [vmem:[#allocation3 + $0xb8] sm:$0xff] %vm2552_vm1, %v6526_v18  ;;  %v7360_v29 = vadd.f32 %v15265_v32, %v6714_v28  ;;  %v6713_v20 = vld [vmem:[#allocation3 + $0x90] sm:$0xff]  ;;  %v15307_v16 = vpop.f32.mrb[120].mxu0  ;;  %v9156_v0 = vld [vmem:[#allocation2 + $0xda] sm:$0xff] }
 0x254   : > { %6589 = vst.msk [vmem:[#allocation3 + $0xb0] sm:$0xff] %vm2552_vm1, %v6525_v50  ;;  %v7359_v8 = vadd.f32 %v15269_v14, %v6713_v20  ;;  %v12691_v55 = vpop.f32.mrb[120].mxu1  ;;  %v15311_v33 = vpop.f32.mrb[121].mxu0  ;;  %13147 = vmatmul.mubr.msk.f32.gmra.mrb[226].mxu0 %vm2552_vm1, %v9987_v26  ;;  %v5888_v42 = vld [vmem:[#allocation3 + $0xf8] sm:$0xff]  ;;  %v9995_v26 = vld [vmem:[#allocation2 + $0xe3] sm:$0xff] }
 0x255   : > { %7424 = vst.msk [vmem:[#allocation3 + $0x98] sm:$0xff] %vm2552_vm1, %v7360_v29  ;;  %v6528_v13 = vadd.f32 %v12691_v55, %v5882_v53  ;;  %v6304_v24 = vpop.f32.mrb[121].mxu1  ;;  %13049 = vmatmul.mubr.msk.f32.gmra.mrb[226].mxu1 %vm2552_vm1, %v9149_v22  ;;  %13149 = vmatprep.mubr.msk.f32.mxu0 %vm2552_vm1, %v9988_v31  ;;  %v9157_v22 = vld [vmem:[#allocation2 + $0xe2] sm:$0xff]  ;;  %v9996_v31 = vld [vmem:[#allocation2 + $0xf3] sm:$0xff] }
 0x256   : > { %7423 = vst.msk [vmem:[#allocation3 + $0x90] sm:$0xff] %vm2552_vm1, %v7359_v8  ;;  %v6527_v2 = vadd.f32 %v6304_v24, %v5881_v9  ;;  %v6716_v35 = vld [vmem:[#allocation3 + $0xa8] sm:$0xff]  ;;  %13051 = vmatprep.mubr.msk.f32.mxu1 %vm2552_vm1, %v9150_v6  ;;  %v9158_v6 = vld [vmem:[#allocation2 + $0xf2] sm:$0xff]  ;;  %v5889_v9 = vld [vmem:[#allocation3 + $0x100] sm:$0xff] }
 0x257   : > { %6592 = vst.msk [vmem:[#allocation3 + $0xc8] sm:$0xff] %vm2552_vm1, %v6528_v13  ;;  %v7362_v34 = vadd.f32 %v15279_v40, %v6716_v35  ;;  %v6715_v37 = vld [vmem:[#allocation3 + $0xa0] sm:$0xff]  ;;  %v15321_v32 = vpop.f32.mrb[122].mxu0  ;;  %v5890_v53 = vld [vmem:[#allocation3 + $0x108] sm:$0xff] }
 0x258   : > { %6591 = vst.msk [vmem:[#allocation3 + $0xc0] sm:$0xff] %vm2552_vm1, %v6527_v2  ;;  %v7361_v41 = vadd.f32 %v15283_v58, %v6715_v37  ;;  %v12694_v63 = vpop.f32.mrb[122].mxu1  ;;  %v15325_v14 = vpop.f32.mrb[123].mxu0  ;;  %13150 = vmatmul.mubr.msk.f32.gmra.mrb[228].mxu0 %vm2552_vm1, %v9989_v30  ;;  %v9997_v30 = vld [vmem:[#allocation2 + $0xfb] sm:$0xff] }
 0x259   : > { %7426 = vst.msk [vmem:[#allocation3 + $0xa8] sm:$0xff] %vm2552_vm1, %v7362_v34  ;;  %v6530_v45 = vadd.f32 %v12694_v63, %v5884_v43  ;;  %v6314_v57 = vpop.f32.mrb[123].mxu1  ;;  %13052 = vmatmul.mubr.msk.f32.gmra.mrb[228].mxu1 %vm2552_vm1, %v9151_v59  ;;  %13152 = vmatprep.mubr.msk.f32.mxu0 %vm2552_vm1, %v9990_v61  ;;  %v9159_v59 = vld [vmem:[#allocation2 + $0xfa] sm:$0xff]  ;;  %v9998_v61 = vld [vmem:[#allocation2 + $0x103] sm:$0xff] }
 0x25a   : > { %7425 = vst.msk [vmem:[#allocation3 + $0xa0] sm:$0xff] %vm2552_vm1, %v7361_v41  ;;  %v6529_v49 = vadd.f32 %v6314_v57, %v5883_v52  ;;  %v6718_v27 = vld [vmem:[#allocation3 + $0xb8] sm:$0xff]  ;;  %13054 = vmatprep.mubr.msk.f32.mxu1 %vm2552_vm1, %v9152_v19  ;;  %v9160_v19 = vld [vmem:[#allocation2 + $0x102] sm:$0xff]  ;;  %v5891_v52 = vld [vmem:[#allocation3 + $0x110] sm:$0xff] }
 0x25b   : > { %6594 = vst.msk [vmem:[#allocation3 + $0xd8] sm:$0xff] %vm2552_vm1, %v6530_v45  ;;  %v7364_v4 = vadd.f32 %v15293_v17, %v6718_v27  ;;  %v6717_v54 = vld [vmem:[#allocation3 + $0xb0] sm:$0xff]  ;;  %v15335_v40 = vpop.f32.mrb[124].mxu0  ;;  %v5892_v43 = vld [vmem:[#allocation3 + $0x118] sm:$0xff] }
 0x25c   : > { %6593 = vst.msk [vmem:[#allocation3 + $0xd0] sm:$0xff] %vm2552_vm1, %v6529_v49  ;;  %v7363_v7 = vadd.f32 %v15297_v21, %v6717_v54  ;;  %v12697_v60 = vpop.f32.mrb[124].mxu1  ;;  %v15339_v58 = vpop.f32.mrb[125].mxu0  ;;  %13153 = vmatmul.mubr.msk.f32.gmra.mrb[230].mxu0 %vm2552_vm1, %v9991_v25  ;;  %v9999_v25 = vld [vmem:[#allocation2 + $0x10b] sm:$0xff] }
 0x25d   : > { %7428 = vst.msk [vmem:[#allocation3 + $0xb8] sm:$0xff] %vm2552_vm1, %v7364_v4  ;;  %v6532_v15 = vadd.f32 %v12697_v60, %v5886_v56  ;;  %v6324_v11 = vpop.f32.mrb[125].mxu1  ;;  %13055 = vmatmul.mubr.msk.f32.gmra.mrb[230].mxu1 %vm2552_vm1, %v9153_v51  ;;  %13155 = vmatprep.mubr.msk.f32.mxu0 %vm2552_vm1, %v9992_v38  ;;  %v9161_v51 = vld [vmem:[#allocation2 + $0x10a] sm:$0xff]  ;;  %v10000_v38 = vld [vmem:[#allocation2 + $0x11b] sm:$0xff] }
 0x25e   : > { %7427 = vst.msk [vmem:[#allocation3 + $0xb0] sm:$0xff] %vm2552_vm1, %v7363_v7  ;;  %v6531_v3 = vadd.f32 %v6324_v11, %v5885_v39  ;;  %v6720_v62 = vld [vmem:[#allocation3 + $0xc8] sm:$0xff]  ;;  %13057 = vmatprep.mubr.msk.f32.mxu1 %vm2552_vm1, %v9154_v36  ;;  %v9162_v36 = vld [vmem:[#allocation2 + $0x11a] sm:$0xff] }
 0x25f   : > { %6596 = vst.msk [vmem:[#allocation3 + $0xe8] sm:$0xff] %vm2552_vm1, %v6532_v15  ;;  %v7366_v44 = vadd.f32 %v15307_v16, %v6720_v62  ;;  %v6719_v1 = vld [vmem:[#allocation3 + $0xc0] sm:$0xff]  ;;  %v15349_v17 = vpop.f32.mrb[126].mxu0  ;;  %v5894_v56 = vld [vmem:[#allocation3 + $0x128] sm:$0xff] }
 0x260   : > { %6595 = vst.msk [vmem:[#allocation3 + $0xe0] sm:$0xff] %vm2552_vm1, %v6531_v3  ;;  %v7365_v5 = vadd.f32 %v15311_v33, %v6719_v1  ;;  %v12700_v23 = vpop.f32.mrb[126].mxu1  ;;  %v15353_v21 = vpop.f32.mrb[127].mxu0  ;;  %13156 = vmatmul.mubr.msk.f32.gmra.mrb[232].mxu0 %vm2552_vm1, %v9993_v47  ;;  %v5893_v39 = vld [vmem:[#allocation3 + $0x120] sm:$0xff] }
 0x261   : > { %7430 = vst.msk [vmem:[#allocation3 + $0xc8] sm:$0xff] %vm2552_vm1, %v7366_v44  ;;  %v6534_v18 = vadd.f32 %v12700_v23, %v5888_v42  ;;  %v6334_v48 = vpop.f32.mrb[127].mxu1  ;;  %13058 = vmatmul.mubr.msk.f32.gmra.mrb[232].mxu1 %vm2552_vm1, %v9155_v12  ;;  %13158 = vmatprep.mubr.msk.f32.mxu0 %vm2552_vm1, %v9994_v46  ;;  %v9163_v12 = vld [vmem:[#allocation2 + $0x122] sm:$0xff]  ;;  %v10002_v46 = vld [vmem:[#allocation2 + $0x12b] sm:$0xff]  ;;  %v5896_v42 = vld [vmem:[#allocation3 + $0x138] sm:$0xff] }
 0x262   : > { %7429 = vst.msk [vmem:[#allocation3 + $0xc0] sm:$0xff] %vm2552_vm1, %v7365_v5  ;;  %v6533_v50 = vadd.f32 %v6334_v48, %v5887_v10  ;;  %v6722_v28 = vld [vmem:[#allocation3 + $0xd8] sm:$0xff]  ;;  %13060 = vmatprep.mubr.msk.f32.mxu1 %vm2552_vm1, %v9156_v0  ;;  %v10001_v47 = vld [vmem:[#allocation2 + $0x123] sm:$0xff]  ;;  %v5895_v10 = vld [vmem:[#allocation3 + $0x130] sm:$0xff] }
 0x263   : > { %6598 = vst.msk [vmem:[#allocation3 + $0xf8] sm:$0xff] %vm2552_vm1, %v6534_v18  ;;  %v7368_v29 = vadd.f32 %v15321_v32, %v6722_v28  ;;  %v6721_v20 = vld [vmem:[#allocation3 + $0xd0] sm:$0xff]  ;;  %v15363_v16 = vpop.f32.mrb[128].mxu0 }
 0x264   : > { %6597 = vst.msk [vmem:[#allocation3 + $0xf0] sm:$0xff] %vm2552_vm1, %v6533_v50  ;;  %v7367_v8 = vadd.f32 %v15325_v14, %v6721_v20  ;;  %v12703_v55 = vpop.f32.mrb[128].mxu1  ;;  %v15367_v33 = vpop.f32.mrb[129].mxu0  ;;  %13159 = vmatmul.mubr.msk.f32.gmra.mrb[234].mxu0 %vm2552_vm1, %v9995_v26  ;;  %v9164_v0 = vld [vmem:[#allocation2 + $0x12a] sm:$0xff]  ;;  %v10003_v26 = vld [vmem:[#allocation2 + $0x133] sm:$0xff] }
 0x265   : > { %7432 = vst.msk [vmem:[#allocation3 + $0xd8] sm:$0xff] %vm2552_vm1, %v7368_v29  ;;  %v6536_v13 = vadd.f32 %v12703_v55, %v5890_v53  ;;  %v6344_v24 = vpop.f32.mrb[129].mxu1  ;;  %13061 = vmatmul.mubr.msk.f32.gmra.mrb[234].mxu1 %vm2552_vm1, %v9157_v22  ;;  %13161 = vmatprep.mubr.msk.f32.mxu0 %vm2552_vm1, %v9996_v31  ;;  %v9165_v22 = vld [vmem:[#allocation2 + $0x132] sm:$0xff]  ;;  %v10004_v31 = vld [vmem:[#allocation2 + $0x143] sm:$0xff] }
 0x266   : > { %7431 = vst.msk [vmem:[#allocation3 + $0xd0] sm:$0xff] %vm2552_vm1, %v7367_v8  ;;  %v6535_v2 = vadd.f32 %v6344_v24, %v5889_v9  ;;  %v6724_v35 = vld [vmem:[#allocation3 + $0xe8] sm:$0xff]  ;;  %13063 = vmatprep.mubr.msk.f32.mxu1 %vm2552_vm1, %v9158_v6  ;;  %v5897_v9 = vld [vmem:[#allocation3 + $0x140] sm:$0xff] }
 0x267   : > { %6600 = vst.msk [vmem:[#allocation3 + $0x108] sm:$0xff] %vm2552_vm1, %v6536_v13  ;;  %v7370_v34 = vadd.f32 %v15335_v40, %v6724_v35  ;;  %v6723_v37 = vld [vmem:[#allocation3 + $0xe0] sm:$0xff]  ;;  %v15377_v32 = vpop.f32.mrb[130].mxu0  ;;  %v5898_v53 = vld [vmem:[#allocation3 + $0x148] sm:$0xff] }
 0x268   : > { %6599 = vst.msk [vmem:[#allocation3 + $0x100] sm:$0xff] %vm2552_vm1, %v6535_v2  ;;  %v7369_v41 = vadd.f32 %v15339_v58, %v6723_v37  ;;  %v12706_v63 = vpop.f32.mrb[130].mxu1  ;;  %v15381_v14 = vpop.f32.mrb[131].mxu0  ;;  %13162 = vmatmul.mubr.msk.f32.gmra.mrb[236].mxu0 %vm2552_vm1, %v9997_v30  ;;  %v9166_v6 = vld [vmem:[#allocation2 + $0x142] sm:$0xff]  ;;  %v10005_v30 = vld [vmem:[#allocation2 + $0x14b] sm:$0xff] }
 0x269   : > { %7434 = vst.msk [vmem:[#allocation3 + $0xe8] sm:$0xff] %vm2552_vm1, %v7370_v34  ;;  %v6538_v45 = vadd.f32 %v12706_v63, %v5892_v43  ;;  %v6354_v57 = vpop.f32.mrb[131].mxu1  ;;  %13064 = vmatmul.mubr.msk.f32.gmra.mrb[236].mxu1 %vm2552_vm1, %v9159_v59  ;;  %13164 = vmatprep.mubr.msk.f32.mxu0 %vm2552_vm1, %v9998_v61  ;;  %v9167_v59 = vld [vmem:[#allocation2 + $0x14a] sm:$0xff]  ;;  %v10006_v61 = vld [vmem:[#allocation2 + $0x153] sm:$0xff] }
 0x26a   : > { %7433 = vst.msk [vmem:[#allocation3 + $0xe0] sm:$0xff] %vm2552_vm1, %v7369_v41  ;;  %v6537_v49 = vadd.f32 %v6354_v57, %v5891_v52  ;;  %v6726_v27 = vld [vmem:[#allocation3 + $0xf8] sm:$0xff]  ;;  %13066 = vmatprep.mubr.msk.f32.mxu1 %vm2552_vm1, %v9160_v19  ;;  %v5899_v52 = vld [vmem:[#allocation3 + $0x150] sm:$0xff] }
 0x26b   : > { %6602 = vst.msk [vmem:[#allocation3 + $0x118] sm:$0xff] %vm2552_vm1, %v6538_v45  ;;  %v7372_v4 = vadd.f32 %v15349_v17, %v6726_v27  ;;  %v6725_v54 = vld [vmem:[#allocation3 + $0xf0] sm:$0xff]  ;;  %v15391_v40 = vpop.f32.mrb[132].mxu0  ;;  %v5900_v43 = vld [vmem:[#allocation3 + $0x158] sm:$0xff] }
 0x26c   : > { %6601 = vst.msk [vmem:[#allocation3 + $0x110] sm:$0xff] %vm2552_vm1, %v6537_v49  ;;  %v7371_v7 = vadd.f32 %v15353_v21, %v6725_v54  ;;  %v12709_v60 = vpop.f32.mrb[132].mxu1  ;;  %v15395_v58 = vpop.f32.mrb[133].mxu0  ;;  %13165 = vmatmul.mubr.msk.f32.gmra.mrb[238].mxu0 %vm2552_vm1, %v9999_v25  ;;  %v9168_v19 = vld [vmem:[#allocation2 + $0x152] sm:$0xff]  ;;  %v10007_v25 = vld [vmem:[#allocation2 + $0x15b] sm:$0xff] }
 0x26d   : > { %7436 = vst.msk [vmem:[#allocation3 + $0xf8] sm:$0xff] %vm2552_vm1, %v7372_v4  ;;  %v6540_v15 = vadd.f32 %v12709_v60, %v5894_v56  ;;  %v6364_v11 = vpop.f32.mrb[133].mxu1  ;;  %13067 = vmatmul.mubr.msk.f32.gmra.mrb[238].mxu1 %vm2552_vm1, %v9161_v51  ;;  %13167 = vmatprep.mubr.msk.f32.mxu0 %vm2552_vm1, %v10000_v38  ;;  %v9169_v51 = vld [vmem:[#allocation2 + $0x15a] sm:$0xff]  ;;  %v10008_v38 = vld [vmem:[#allocation2 + $0x16b] sm:$0xff] }
 0x26e   : > { %7435 = vst.msk [vmem:[#allocation3 + $0xf0] sm:$0xff] %vm2552_vm1, %v7371_v7  ;;  %v6539_v3 = vadd.f32 %v6364_v11, %v5893_v39  ;;  %v6728_v62 = vld [vmem:[#allocation3 + $0x108] sm:$0xff]  ;;  %13069 = vmatprep.mubr.msk.f32.mxu1 %vm2552_vm1, %v9162_v36  ;;  %v5901_v39 = vld [vmem:[#allocation3 + $0x160] sm:$0xff] }
 0x26f   : > { %6604 = vst.msk [vmem:[#allocation3 + $0x128] sm:$0xff] %vm2552_vm1, %v6540_v15  ;;  %v7374_v44 = vadd.f32 %v15363_v16, %v6728_v62  ;;  %v6727_v1 = vld [vmem:[#allocation3 + $0x100] sm:$0xff]  ;;  %v15405_v17 = vpop.f32.mrb[134].mxu0  ;;  %v9170_v36 = vld [vmem:[#allocation2 + $0x16a] sm:$0xff] }
 0x270   : > { %6603 = vst.msk [vmem:[#allocation3 + $0x120] sm:$0xff] %vm2552_vm1, %v6539_v3  ;;  %v7373_v5 = vadd.f32 %v15367_v33, %v6727_v1  ;;  %v12712_v23 = vpop.f32.mrb[134].mxu1  ;;  %v15409_v21 = vpop.f32.mrb[135].mxu0  ;;  %13168 = vmatmul.mubr.msk.f32.gmra.mrb[240].mxu0 %vm2552_vm1, %v10001_v47  ;;  %v5902_v56 = vld [vmem:[#allocation3 + $0x168] sm:$0xff]  ;;  %v10009_v47 = vld [vmem:[#allocation2 + $0x173] sm:$0xff] }
 0x271   : > { %7438 = vst.msk [vmem:[#allocation3 + $0x108] sm:$0xff] %vm2552_vm1, %v7374_v44  ;;  %v6542_v18 = vadd.f32 %v12712_v23, %v5896_v42  ;;  %v6374_v48 = vpop.f32.mrb[135].mxu1  ;;  %13070 = vmatmul.mubr.msk.f32.gmra.mrb[240].mxu1 %vm2552_vm1, %v9163_v12  ;;  %13170 = vmatprep.mubr.msk.f32.mxu0 %vm2552_vm1, %v10002_v46  ;;  %v9171_v12 = vld [vmem:[#allocation2 + $0x172] sm:$0xff]  ;;  %v10010_v46 = vld [vmem:[#allocation2 + $0x17b] sm:$0xff] }
 0x272   : > { %7437 = vst.msk [vmem:[#allocation3 + $0x100] sm:$0xff] %vm2552_vm1, %v7373_v5  ;;  %v6541_v50 = vadd.f32 %v6374_v48, %v5895_v10  ;;  %v6730_v28 = vld [vmem:[#allocation3 + $0x118] sm:$0xff]  ;;  %13072 = vmatprep.mubr.msk.f32.mxu1 %vm2552_vm1, %v9164_v0  ;;  %v5903_v10 = vld [vmem:[#allocation3 + $0x170] sm:$0xff] }
 0x273   : > { %6606 = vst.msk [vmem:[#allocation3 + $0x138] sm:$0xff] %vm2552_vm1, %v6542_v18  ;;  %v7376_v29 = vadd.f32 %v15377_v32, %v6730_v28  ;;  %v6729_v20 = vld [vmem:[#allocation3 + $0x110] sm:$0xff]  ;;  %v15419_v16 = vpop.f32.mrb[136].mxu0  ;;  %v9172_v0 = vld [vmem:[#allocation2 + $0x17a] sm:$0xff] }
 0x274   : > { %6605 = vst.msk [vmem:[#allocation3 + $0x130] sm:$0xff] %vm2552_vm1, %v6541_v50  ;;  %v7375_v8 = vadd.f32 %v15381_v14, %v6729_v20  ;;  %v12715_v55 = vpop.f32.mrb[136].mxu1  ;;  %v15423_v33 = vpop.f32.mrb[137].mxu0  ;;  %13171 = vmatmul.mubr.msk.f32.gmra.mrb[242].mxu0 %vm2552_vm1, %v10003_v26  ;;  %v5904_v42 = vld [vmem:[#allocation3 + $0x178] sm:$0xff]  ;;  %v10011_v26 = vld [vmem:[#allocation2 + $0x183] sm:$0xff] }
 0x275   : > { %7440 = vst.msk [vmem:[#allocation3 + $0x118] sm:$0xff] %vm2552_vm1, %v7376_v29  ;;  %v6544_v13 = vadd.f32 %v12715_v55, %v5898_v53  ;;  %v6384_v24 = vpop.f32.mrb[137].mxu1  ;;  %13073 = vmatmul.mubr.msk.f32.gmra.mrb[242].mxu1 %vm2552_vm1, %v9165_v22  ;;  %13173 = vmatprep.mubr.msk.f32.mxu0 %vm2552_vm1, %v10004_v31  ;;  %v9173_v22 = vld [vmem:[#allocation2 + $0x182] sm:$0xff]  ;;  %v10012_v31 = vld [vmem:[#allocation2 + $0x193] sm:$0xff] }
 0x276   : > { %7439 = vst.msk [vmem:[#allocation3 + $0x110] sm:$0xff] %vm2552_vm1, %v7375_v8  ;;  %v6543_v2 = vadd.f32 %v6384_v24, %v5897_v9  ;;  %v6732_v35 = vld [vmem:[#allocation3 + $0x128] sm:$0xff]  ;;  %13075 = vmatprep.mubr.msk.f32.mxu1 %vm2552_vm1, %v9166_v6  ;;  %v9174_v6 = vld [vmem:[#allocation2 + $0x192] sm:$0xff]  ;;  %v5905_v9 = vld [vmem:[#allocation3 + $0x180] sm:$0xff] }
 0x277   : > { %6608 = vst.msk [vmem:[#allocation3 + $0x148] sm:$0xff] %vm2552_vm1, %v6544_v13  ;;  %v7378_v34 = vadd.f32 %v15391_v40, %v6732_v35  ;;  %v6731_v37 = vld [vmem:[#allocation3 + $0x120] sm:$0xff]  ;;  %v15433_v32 = vpop.f32.mrb[138].mxu0  ;;  %v5906_v53 = vld [vmem:[#allocation3 + $0x188] sm:$0xff] }
 0x278   : > { %6607 = vst.msk [vmem:[#allocation3 + $0x140] sm:$0xff] %vm2552_vm1, %v6543_v2  ;;  %v7377_v41 = vadd.f32 %v15395_v58, %v6731_v37  ;;  %v12718_v63 = vpop.f32.mrb[138].mxu1  ;;  %v15437_v14 = vpop.f32.mrb[139].mxu0  ;;  %13174 = vmatmul.mubr.msk.f32.gmra.mrb[244].mxu0 %vm2552_vm1, %v10005_v30  ;;  %v10013_v30 = vld [vmem:[#allocation2 + $0x19b] sm:$0xff] }
 0x279   : > { %7442 = vst.msk [vmem:[#allocation3 + $0x128] sm:$0xff] %vm2552_vm1, %v7378_v34  ;;  %v6546_v45 = vadd.f32 %v12718_v63, %v5900_v43  ;;  %v6394_v57 = vpop.f32.mrb[139].mxu1  ;;  %13076 = vmatmul.mubr.msk.f32.gmra.mrb[244].mxu1 %vm2552_vm1, %v9167_v59  ;;  %13176 = vmatprep.mubr.msk.f32.mxu0 %vm2552_vm1, %v10006_v61  ;;  %v9175_v59 = vld [vmem:[#allocation2 + $0x19a] sm:$0xff]  ;;  %v10014_v61 = vld [vmem:[#allocation2 + $0x1a3] sm:$0xff] }
 0x27a   : > { %7441 = vst.msk [vmem:[#allocation3 + $0x120] sm:$0xff] %vm2552_vm1, %v7377_v41  ;;  %v6545_v49 = vadd.f32 %v6394_v57, %v5899_v52  ;;  %v6734_v27 = vld [vmem:[#allocation3 + $0x138] sm:$0xff]  ;;  %13078 = vmatprep.mubr.msk.f32.mxu1 %vm2552_vm1, %v9168_v19  ;;  %v9176_v19 = vld [vmem:[#allocation2 + $0x1a2] sm:$0xff]  ;;  %v5907_v52 = vld [vmem:[#allocation3 + $0x190] sm:$0xff] }
 0x27b   : > { %6610 = vst.msk [vmem:[#allocation3 + $0x158] sm:$0xff] %vm2552_vm1, %v6546_v45  ;;  %v7380_v4 = vadd.f32 %v15405_v17, %v6734_v27  ;;  %v6733_v54 = vld [vmem:[#allocation3 + $0x130] sm:$0xff]  ;;  %v15447_v40 = vpop.f32.mrb[140].mxu0  ;;  %v5908_v43 = vld [vmem:[#allocation3 + $0x198] sm:$0xff] }
 0x27c   : > { %6609 = vst.msk [vmem:[#allocation3 + $0x150] sm:$0xff] %vm2552_vm1, %v6545_v49  ;;  %v7379_v7 = vadd.f32 %v15409_v21, %v6733_v54  ;;  %v12721_v60 = vpop.f32.mrb[140].mxu1  ;;  %v15451_v58 = vpop.f32.mrb[141].mxu0  ;;  %13177 = vmatmul.mubr.msk.f32.gmra.mrb[246].mxu0 %vm2552_vm1, %v10007_v25  ;;  %v10015_v25 = vld [vmem:[#allocation2 + $0x1ab] sm:$0xff] }
 0x27d   : > { %7444 = vst.msk [vmem:[#allocation3 + $0x138] sm:$0xff] %vm2552_vm1, %v7380_v4  ;;  %v6548_v15 = vadd.f32 %v12721_v60, %v5902_v56  ;;  %v6404_v11 = vpop.f32.mrb[141].mxu1  ;;  %13079 = vmatmul.mubr.msk.f32.gmra.mrb[246].mxu1 %vm2552_vm1, %v9169_v51  ;;  %13179 = vmatprep.mubr.msk.f32.mxu0 %vm2552_vm1, %v10008_v38  ;;  %v9177_v51 = vld [vmem:[#allocation2 + $0x1aa] sm:$0xff]  ;;  %v10016_v38 = vld [vmem:[#allocation2 + $0x1bb] sm:$0xff] }
 0x27e   : > { %7443 = vst.msk [vmem:[#allocation3 + $0x130] sm:$0xff] %vm2552_vm1, %v7379_v7  ;;  %v6547_v3 = vadd.f32 %v6404_v11, %v5901_v39  ;;  %v6736_v62 = vld [vmem:[#allocation3 + $0x148] sm:$0xff]  ;;  %13081 = vmatprep.mubr.msk.f32.mxu1 %vm2552_vm1, %v9170_v36  ;;  %v9178_v36 = vld [vmem:[#allocation2 + $0x1ba] sm:$0xff] }
 0x27f   : > { %6612 = vst.msk [vmem:[#allocation3 + $0x168] sm:$0xff] %vm2552_vm1, %v6548_v15  ;;  %v7382_v44 = vadd.f32 %v15419_v16, %v6736_v62  ;;  %v6735_v1 = vld [vmem:[#allocation3 + $0x140] sm:$0xff]  ;;  %v15461_v17 = vpop.f32.mrb[142].mxu0  ;;  %v5910_v56 = vld [vmem:[#allocation3 + $0x1a8] sm:$0xff] }
 0x280   : > { %6611 = vst.msk [vmem:[#allocation3 + $0x160] sm:$0xff] %vm2552_vm1, %v6547_v3  ;;  %v7381_v5 = vadd.f32 %v15423_v33, %v6735_v1  ;;  %v12724_v23 = vpop.f32.mrb[142].mxu1  ;;  %v15465_v21 = vpop.f32.mrb[143].mxu0  ;;  %13180 = vmatmul.mubr.msk.f32.gmra.mrb[248].mxu0 %vm2552_vm1, %v10009_v47  ;;  %v5909_v39 = vld [vmem:[#allocation3 + $0x1a0] sm:$0xff] }
 0x281   : > { %7446 = vst.msk [vmem:[#allocation3 + $0x148] sm:$0xff] %vm2552_vm1, %v7382_v44  ;;  %v6550_v18 = vadd.f32 %v12724_v23, %v5904_v42  ;;  %v6414_v48 = vpop.f32.mrb[143].mxu1  ;;  %13082 = vmatmul.mubr.msk.f32.gmra.mrb[248].mxu1 %vm2552_vm1, %v9171_v12  ;;  %13182 = vmatprep.mubr.msk.f32.mxu0 %vm2552_vm1, %v10010_v46  ;;  %v9179_v12 = vld [vmem:[#allocation2 + $0x1c2] sm:$0xff]  ;;  %v10018_v46 = vld [vmem:[#allocation2 + $0x1cb] sm:$0xff]  ;;  %v5912_v42 = vld [vmem:[#allocation3 + $0x1b8] sm:$0xff] }
 0x282   : > { %7445 = vst.msk [vmem:[#allocation3 + $0x140] sm:$0xff] %vm2552_vm1, %v7381_v5  ;;  %v6549_v50 = vadd.f32 %v6414_v48, %v5903_v10  ;;  %v6738_v28 = vld [vmem:[#allocation3 + $0x158] sm:$0xff]  ;;  %13084 = vmatprep.mubr.msk.f32.mxu1 %vm2552_vm1, %v9172_v0  ;;  %v10017_v47 = vld [vmem:[#allocation2 + $0x1c3] sm:$0xff]  ;;  %v5911_v10 = vld [vmem:[#allocation3 + $0x1b0] sm:$0xff] }
 0x283   : > { %6614 = vst.msk [vmem:[#allocation3 + $0x178] sm:$0xff] %vm2552_vm1, %v6550_v18  ;;  %v7384_v29 = vadd.f32 %v15433_v32, %v6738_v28  ;;  %v6737_v20 = vld [vmem:[#allocation3 + $0x150] sm:$0xff]  ;;  %v15475_v16 = vpop.f32.mrb[144].mxu0 }
 0x284   : > { %6613 = vst.msk [vmem:[#allocation3 + $0x170] sm:$0xff] %vm2552_vm1, %v6549_v50  ;;  %v7383_v8 = vadd.f32 %v15437_v14, %v6737_v20  ;;  %v12727_v55 = vpop.f32.mrb[144].mxu1  ;;  %v15479_v33 = vpop.f32.mrb[145].mxu0  ;;  %13183 = vmatmul.mubr.msk.f32.gmra.mrb[250].mxu0 %vm2552_vm1, %v10011_v26  ;;  %v9180_v0 = vld [vmem:[#allocation2 + $0x1ca] sm:$0xff]  ;;  %v10019_v26 = vld [vmem:[#allocation2 + $0x1d3] sm:$0xff] }
 0x285   : > { %7448 = vst.msk [vmem:[#allocation3 + $0x158] sm:$0xff] %vm2552_vm1, %v7384_v29  ;;  %v6552_v13 = vadd.f32 %v12727_v55, %v5906_v53  ;;  %v6424_v24 = vpop.f32.mrb[145].mxu1  ;;  %13085 = vmatmul.mubr.msk.f32.gmra.mrb[250].mxu1 %vm2552_vm1, %v9173_v22  ;;  %13185 = vmatprep.mubr.msk.f32.mxu0 %vm2552_vm1, %v10012_v31  ;;  %v9181_v22 = vld [vmem:[#allocation2 + $0x1d2] sm:$0xff]  ;;  %v10020_v31 = vld [vmem:[#allocation2 + $0x1e3] sm:$0xff] }
 0x286   : > { %7447 = vst.msk [vmem:[#allocation3 + $0x150] sm:$0xff] %vm2552_vm1, %v7383_v8  ;;  %v6551_v2 = vadd.f32 %v6424_v24, %v5905_v9  ;;  %v6740_v35 = vld [vmem:[#allocation3 + $0x168] sm:$0xff]  ;;  %13087 = vmatprep.mubr.msk.f32.mxu1 %vm2552_vm1, %v9174_v6  ;;  %v5913_v9 = vld [vmem:[#allocation3 + $0x1c0] sm:$0xff] }
 0x287   : > { %6616 = vst.msk [vmem:[#allocation3 + $0x188] sm:$0xff] %vm2552_vm1, %v6552_v13  ;;  %v7386_v34 = vadd.f32 %v15447_v40, %v6740_v35  ;;  %v6739_v37 = vld [vmem:[#allocation3 + $0x160] sm:$0xff]  ;;  %v15489_v32 = vpop.f32.mrb[146].mxu0  ;;  %v5914_v53 = vld [vmem:[#allocation3 + $0x1c8] sm:$0xff] }
 0x288   : > { %6615 = vst.msk [vmem:[#allocation3 + $0x180] sm:$0xff] %vm2552_vm1, %v6551_v2  ;;  %v7385_v41 = vadd.f32 %v15451_v58, %v6739_v37  ;;  %v12730_v63 = vpop.f32.mrb[146].mxu1  ;;  %v15493_v14 = vpop.f32.mrb[147].mxu0  ;;  %13186 = vmatmul.mubr.msk.f32.gmra.mrb[252].mxu0 %vm2552_vm1, %v10013_v30  ;;  %v9182_v6 = vld [vmem:[#allocation2 + $0x1e2] sm:$0xff]  ;;  %v10021_v30 = vld [vmem:[#allocation2 + $0x1eb] sm:$0xff] }
 0x289   : > { %7450 = vst.msk [vmem:[#allocation3 + $0x168] sm:$0xff] %vm2552_vm1, %v7386_v34  ;;  %v6554_v45 = vadd.f32 %v12730_v63, %v5908_v43  ;;  %v6434_v57 = vpop.f32.mrb[147].mxu1  ;;  %13088 = vmatmul.mubr.msk.f32.gmra.mrb[252].mxu1 %vm2552_vm1, %v9175_v59  ;;  %13188 = vmatprep.mubr.msk.f32.mxu0 %vm2552_vm1, %v10014_v61  ;;  %v9183_v59 = vld [vmem:[#allocation2 + $0x1ea] sm:$0xff]  ;;  %v10022_v61 = vld [vmem:[#allocation2 + $0x1f3] sm:$0xff] }
 0x28a   : > { %7449 = vst.msk [vmem:[#allocation3 + $0x160] sm:$0xff] %vm2552_vm1, %v7385_v41  ;;  %v6553_v49 = vadd.f32 %v6434_v57, %v5907_v52  ;;  %v6742_v27 = vld [vmem:[#allocation3 + $0x178] sm:$0xff]  ;;  %13090 = vmatprep.mubr.msk.f32.mxu1 %vm2552_vm1, %v9176_v19  ;;  %v5915_v52 = vld [vmem:[#allocation3 + $0x1d0] sm:$0xff] }
 0x28b   : > { %6618 = vst.msk [vmem:[#allocation3 + $0x198] sm:$0xff] %vm2552_vm1, %v6554_v45  ;;  %v7388_v4 = vadd.f32 %v15461_v17, %v6742_v27  ;;  %v6741_v54 = vld [vmem:[#allocation3 + $0x170] sm:$0xff]  ;;  %v15503_v40 = vpop.f32.mrb[148].mxu0  ;;  %v5916_v43 = vld [vmem:[#allocation3 + $0x1d8] sm:$0xff] }
 0x28c   : > { %6617 = vst.msk [vmem:[#allocation3 + $0x190] sm:$0xff] %vm2552_vm1, %v6553_v49  ;;  %v7387_v7 = vadd.f32 %v15465_v21, %v6741_v54  ;;  %v12733_v60 = vpop.f32.mrb[148].mxu1  ;;  %v15507_v58 = vpop.f32.mrb[149].mxu0  ;;  %13189 = vmatmul.mubr.msk.f32.gmra.mrb[254].mxu0 %vm2552_vm1, %v10015_v25  ;;  %v9184_v19 = vld [vmem:[#allocation2 + $0x1f2] sm:$0xff]  ;;  %v10023_v25 = vld [vmem:[#allocation2 + $0x1fb] sm:$0xff] }
 0x28d   : > { %7452 = vst.msk [vmem:[#allocation3 + $0x178] sm:$0xff] %vm2552_vm1, %v7388_v4  ;;  %v6556_v15 = vadd.f32 %v12733_v60, %v5910_v56  ;;  %v6444_v11 = vpop.f32.mrb[149].mxu1  ;;  %13091 = vmatmul.mubr.msk.f32.gmra.mrb[254].mxu1 %vm2552_vm1, %v9177_v51  ;;  %13191 = vmatprep.mubr.msk.f32.mxu0 %vm2552_vm1, %v10016_v38  ;;  %v9185_v51 = vld [vmem:[#allocation2 + $0x1fa] sm:$0xff]  ;;  %v10024_v38 = vld [vmem:[#allocation2 + $0x20b] sm:$0xff] }
 0x28e   : > { %7451 = vst.msk [vmem:[#allocation3 + $0x170] sm:$0xff] %vm2552_vm1, %v7387_v7  ;;  %v6555_v3 = vadd.f32 %v6444_v11, %v5909_v39  ;;  %v6744_v62 = vld [vmem:[#allocation3 + $0x188] sm:$0xff]  ;;  %13093 = vmatprep.mubr.msk.f32.mxu1 %vm2552_vm1, %v9178_v36  ;;  %v5917_v39 = vld [vmem:[#allocation3 + $0x1e0] sm:$0xff] }
 0x28f   : > { %6620 = vst.msk [vmem:[#allocation3 + $0x1a8] sm:$0xff] %vm2552_vm1, %v6556_v15  ;;  %v7390_v44 = vadd.f32 %v15475_v16, %v6744_v62  ;;  %v6743_v1 = vld [vmem:[#allocation3 + $0x180] sm:$0xff]  ;;  %v15517_v17 = vpop.f32.mrb[150].mxu0  ;;  %v9186_v36 = vld [vmem:[#allocation2 + $0x20a] sm:$0xff] }
 0x290   : > { %6619 = vst.msk [vmem:[#allocation3 + $0x1a0] sm:$0xff] %vm2552_vm1, %v6555_v3  ;;  %v7389_v5 = vadd.f32 %v15479_v33, %v6743_v1  ;;  %v12736_v23 = vpop.f32.mrb[150].mxu1  ;;  %v15521_v21 = vpop.f32.mrb[151].mxu0  ;;  %13192 = vmatmul.mubr.msk.f32.gmra.mrb[0].mxu0 %vm2552_vm1, %v10017_v47  ;;  %v5918_v56 = vld [vmem:[#allocation3 + $0x1e8] sm:$0xff]  ;;  %v10025_v47 = vld [vmem:[#allocation2 + $0x213] sm:$0xff] }
 0x291   : > { %7454 = vst.msk [vmem:[#allocation3 + $0x188] sm:$0xff] %vm2552_vm1, %v7390_v44  ;;  %v6558_v18 = vadd.f32 %v12736_v23, %v5912_v42  ;;  %v6454_v48 = vpop.f32.mrb[151].mxu1  ;;  %13094 = vmatmul.mubr.msk.f32.gmra.mrb[0].mxu1 %vm2552_vm1, %v9179_v12  ;;  %13194 = vmatprep.mubr.msk.f32.mxu0 %vm2552_vm1, %v10018_v46  ;;  %v9187_v12 = vld [vmem:[#allocation2 + $0x212] sm:$0xff]  ;;  %v10026_v46 = vld [vmem:[#allocation2 + $0x21b] sm:$0xff] }
 0x292   : > { %7453 = vst.msk [vmem:[#allocation3 + $0x180] sm:$0xff] %vm2552_vm1, %v7389_v5  ;;  %v6557_v50 = vadd.f32 %v6454_v48, %v5911_v10  ;;  %v6746_v28 = vld [vmem:[#allocation3 + $0x198] sm:$0xff]  ;;  %13096 = vmatprep.mubr.msk.f32.mxu1 %vm2552_vm1, %v9180_v0  ;;  %v5919_v10 = vld [vmem:[#allocation3 + $0x1f0] sm:$0xff] }
 0x293   : > { %6622 = vst.msk [vmem:[#allocation3 + $0x1b8] sm:$0xff] %vm2552_vm1, %v6558_v18  ;;  %v7392_v29 = vadd.f32 %v15489_v32, %v6746_v28  ;;  %v6745_v20 = vld [vmem:[#allocation3 + $0x190] sm:$0xff]  ;;  %v15531_v16 = vpop.f32.mrb[152].mxu0  ;;  %v9188_v0 = vld [vmem:[#allocation2 + $0x21a] sm:$0xff] }
 0x294   : > { %6621 = vst.msk [vmem:[#allocation3 + $0x1b0] sm:$0xff] %vm2552_vm1, %v6557_v50  ;;  %v7391_v8 = vadd.f32 %v15493_v14, %v6745_v20  ;;  %v12739_v55 = vpop.f32.mrb[152].mxu1  ;;  %v15535_v33 = vpop.f32.mrb[153].mxu0  ;;  %13195 = vmatmul.mubr.msk.f32.gmra.mrb[2].mxu0 %vm2552_vm1, %v10019_v26  ;;  %v5920_v42 = vld [vmem:[#allocation3 + $0x1f8] sm:$0xff]  ;;  %v10027_v26 = vld [vmem:[#allocation2 + $0x223] sm:$0xff] }
 0x295   : > { %7456 = vst.msk [vmem:[#allocation3 + $0x198] sm:$0xff] %vm2552_vm1, %v7392_v29  ;;  %v6560_v13 = vadd.f32 %v12739_v55, %v5914_v53  ;;  %v6464_v24 = vpop.f32.mrb[153].mxu1  ;;  %13097 = vmatmul.mubr.msk.f32.gmra.mrb[2].mxu1 %vm2552_vm1, %v9181_v22  ;;  %13197 = vmatprep.mubr.msk.f32.mxu0 %vm2552_vm1, %v10020_v31  ;;  %v9189_v22 = vld [vmem:[#allocation2 + $0x222] sm:$0xff]  ;;  %v10028_v31 = vld [vmem:[#allocation2 + $0x233] sm:$0xff] }
 0x296   : > { %7455 = vst.msk [vmem:[#allocation3 + $0x190] sm:$0xff] %vm2552_vm1, %v7391_v8  ;;  %v6559_v2 = vadd.f32 %v6464_v24, %v5913_v9  ;;  %v6748_v35 = vld [vmem:[#allocation3 + $0x1a8] sm:$0xff]  ;;  %13099 = vmatprep.mubr.msk.f32.mxu1 %vm2552_vm1, %v9182_v6  ;;  %v9190_v6 = vld [vmem:[#allocation2 + $0x232] sm:$0xff]  ;;  %v7533_v9 = vld [vmem:[#allocation3] sm:$0xff] }
 0x297   : > { %6624 = vst.msk [vmem:[#allocation3 + $0x1c8] sm:$0xff] %vm2552_vm1, %v6560_v13  ;;  %v7394_v34 = vadd.f32 %v15503_v40, %v6748_v35  ;;  %v6747_v37 = vld [vmem:[#allocation3 + $0x1a0] sm:$0xff]  ;;  %v15545_v32 = vpop.f32.mrb[154].mxu0  ;;  %v7534_v53 = vld [vmem:[#allocation3 + $0x8] sm:$0xff] }
 0x298   : > { %6623 = vst.msk [vmem:[#allocation3 + $0x1c0] sm:$0xff] %vm2552_vm1, %v6559_v2  ;;  %v7393_v41 = vadd.f32 %v15507_v58, %v6747_v37  ;;  %v12742_v63 = vpop.f32.mrb[154].mxu1  ;;  %v15549_v14 = vpop.f32.mrb[155].mxu0  ;;  %13198 = vmatmul.mubr.msk.f32.gmra.mrb[4].mxu0 %vm2552_vm1, %v10021_v30  ;;  %v10029_v30 = vld [vmem:[#allocation2 + $0x23b] sm:$0xff] }
 0x299   : > { %7458 = vst.msk [vmem:[#allocation3 + $0x1a8] sm:$0xff] %vm2552_vm1, %v7394_v34  ;;  %v6562_v45 = vadd.f32 %v12742_v63, %v5916_v43  ;;  %v6474_v57 = vpop.f32.mrb[155].mxu1  ;;  %13100 = vmatmul.mubr.msk.f32.gmra.mrb[4].mxu1 %vm2552_vm1, %v9183_v59  ;;  %13200 = vmatprep.mubr.msk.f32.mxu0 %vm2552_vm1, %v10022_v61  ;;  %v9191_v59 = vld [vmem:[#allocation2 + $0x23a] sm:$0xff]  ;;  %v10030_v61 = vld [vmem:[#allocation2 + $0x243] sm:$0xff] }
 0x29a   : > { %7457 = vst.msk [vmem:[#allocation3 + $0x1a0] sm:$0xff] %vm2552_vm1, %v7393_v41  ;;  %v6561_v49 = vadd.f32 %v6474_v57, %v5915_v52  ;;  %v6750_v27 = vld [vmem:[#allocation3 + $0x1b8] sm:$0xff]  ;;  %13102 = vmatprep.mubr.msk.f32.mxu1 %vm2552_vm1, %v9184_v19  ;;  %v9192_v19 = vld [vmem:[#allocation2 + $0x242] sm:$0xff]  ;;  %v7535_v52 = vld [vmem:[#allocation3 + $0x10] sm:$0xff] }
 0x29b   : > { %6626 = vst.msk [vmem:[#allocation3 + $0x1d8] sm:$0xff] %vm2552_vm1, %v6562_v45  ;;  %v7396_v4 = vadd.f32 %v15517_v17, %v6750_v27  ;;  %v6749_v54 = vld [vmem:[#allocation3 + $0x1b0] sm:$0xff]  ;;  %v15559_v40 = vpop.f32.mrb[156].mxu0  ;;  %v7536_v43 = vld [vmem:[#allocation3 + $0x18] sm:$0xff] }
 0x29c   : > { %6625 = vst.msk [vmem:[#allocation3 + $0x1d0] sm:$0xff] %vm2552_vm1, %v6561_v49  ;;  %v7395_v7 = vadd.f32 %v15521_v21, %v6749_v54  ;;  %v12745_v60 = vpop.f32.mrb[156].mxu1  ;;  %v15563_v58 = vpop.f32.mrb[157].mxu0  ;;  %13201 = vmatmul.mubr.msk.f32.gmra.mrb[6].mxu0 %vm2552_vm1, %v10023_v25  ;;  %v10031_v25 = vld [vmem:[#allocation2 + $0x24b] sm:$0xff] }
 0x29d   : > { %7460 = vst.msk [vmem:[#allocation3 + $0x1b8] sm:$0xff] %vm2552_vm1, %v7396_v4  ;;  %v6564_v15 = vadd.f32 %v12745_v60, %v5918_v56  ;;  %v6484_v11 = vpop.f32.mrb[157].mxu1  ;;  %13103 = vmatmul.mubr.msk.f32.gmra.mrb[6].mxu1 %vm2552_vm1, %v9185_v51  ;;  %13203 = vmatprep.mubr.msk.f32.mxu0 %vm2552_vm1, %v10024_v38  ;;  %v9193_v51 = vld [vmem:[#allocation2 + $0x24a] sm:$0xff]  ;;  %v10032_v38 = vld [vmem:[#allocation2 + $0x25b] sm:$0xff] }
 0x29e   : > { %7459 = vst.msk [vmem:[#allocation3 + $0x1b0] sm:$0xff] %vm2552_vm1, %v7395_v7  ;;  %v6563_v3 = vadd.f32 %v6484_v11, %v5917_v39  ;;  %v6752_v62 = vld [vmem:[#allocation3 + $0x1c8] sm:$0xff]  ;;  %13105 = vmatprep.mubr.msk.f32.mxu1 %vm2552_vm1, %v9186_v36  ;;  %v9194_v36 = vld [vmem:[#allocation2 + $0x25a] sm:$0xff] }
 0x29f   : > { %6628 = vst.msk [vmem:[#allocation3 + $0x1e8] sm:$0xff] %vm2552_vm1, %v6564_v15  ;;  %v7398_v44 = vadd.f32 %v15531_v16, %v6752_v62  ;;  %v6751_v1 = vld [vmem:[#allocation3 + $0x1c0] sm:$0xff]  ;;  %v15573_v17 = vpop.f32.mrb[158].mxu0  ;;  %v7538_v56 = vld [vmem:[#allocation3 + $0x28] sm:$0xff] }
 0x2a0   : > { %6627 = vst.msk [vmem:[#allocation3 + $0x1e0] sm:$0xff] %vm2552_vm1, %v6563_v3  ;;  %v7397_v5 = vadd.f32 %v15535_v33, %v6751_v1  ;;  %v12748_v23 = vpop.f32.mrb[158].mxu1  ;;  %v15577_v21 = vpop.f32.mrb[159].mxu0  ;;  %13204 = vmatmul.mubr.msk.f32.gmra.mrb[8].mxu0 %vm2552_vm1, %v10025_v47  ;;  %v7537_v39 = vld [vmem:[#allocation3 + $0x20] sm:$0xff] }
 0x2a1   : > { %7462 = vst.msk [vmem:[#allocation3 + $0x1c8] sm:$0xff] %vm2552_vm1, %v7398_v44  ;;  %v6566_v18 = vadd.f32 %v12748_v23, %v5920_v42  ;;  %v6494_v48 = vpop.f32.mrb[159].mxu1  ;;  %13106 = vmatmul.mubr.msk.f32.gmra.mrb[8].mxu1 %vm2552_vm1, %v9187_v12  ;;  %13206 = vmatprep.mubr.msk.f32.mxu0 %vm2552_vm1, %v10026_v46  ;;  %v9195_v12 = vld [vmem:[#allocation2 + $0x262] sm:$0xff]  ;;  %v10034_v46 = vld [vmem:[#allocation2 + $0x26b] sm:$0xff]  ;;  %v7540_v42 = vld [vmem:[#allocation3 + $0x38] sm:$0xff] }
 0x2a2   : > { %7461 = vst.msk [vmem:[#allocation3 + $0x1c0] sm:$0xff] %vm2552_vm1, %v7397_v5  ;;  %v6565_v50 = vadd.f32 %v6494_v48, %v5919_v10  ;;  %v6754_v28 = vld [vmem:[#allocation3 + $0x1d8] sm:$0xff]  ;;  %13108 = vmatprep.mubr.msk.f32.mxu1 %vm2552_vm1, %v9188_v0  ;;  %v10033_v47 = vld [vmem:[#allocation2 + $0x263] sm:$0xff]  ;;  %v7539_v10 = vld [vmem:[#allocation3 + $0x30] sm:$0xff] }
 0x2a3   : > { %6630 = vst.msk [vmem:[#allocation3 + $0x1f8] sm:$0xff] %vm2552_vm1, %v6566_v18  ;;  %v7400_v29 = vadd.f32 %v15545_v32, %v6754_v28  ;;  %v6753_v20 = vld [vmem:[#allocation3 + $0x1d0] sm:$0xff]  ;;  %v15587_v16 = vpop.f32.mrb[160].mxu0 }
 0x2a4   : > { %6629 = vst.msk [vmem:[#allocation3 + $0x1f0] sm:$0xff] %vm2552_vm1, %v6565_v50  ;;  %v7399_v8 = vadd.f32 %v15549_v14, %v6753_v20  ;;  %v12851_v55 = vpop.f32.mrb[160].mxu1  ;;  %v15591_v33 = vpop.f32.mrb[161].mxu0  ;;  %13207 = vmatmul.mubr.msk.f32.gmra.mrb[10].mxu0 %vm2552_vm1, %v10027_v26  ;;  %v9196_v0 = vld [vmem:[#allocation2 + $0x26a] sm:$0xff]  ;;  %v10035_v26 = vld [vmem:[#allocation2 + $0x273] sm:$0xff] }
 0x2a5   : > { %7464 = vst.msk [vmem:[#allocation3 + $0x1d8] sm:$0xff] %vm2552_vm1, %v7400_v29  ;;  %v8180_v13 = vadd.f32 %v12851_v55, %v7534_v53  ;;  %v7860_v24 = vpop.f32.mrb[161].mxu1  ;;  %13109 = vmatmul.mubr.msk.f32.gmra.mrb[10].mxu1 %vm2552_vm1, %v9189_v22  ;;  %13209 = vmatprep.mubr.msk.f32.mxu0 %vm2552_vm1, %v10028_v31  ;;  %v9197_v22 = vld [vmem:[#allocation2 + $0x272] sm:$0xff]  ;;  %v10036_v31 = vld [vmem:[#allocation2 + $0x283] sm:$0xff] }
 0x2a6   : > { %7463 = vst.msk [vmem:[#allocation3 + $0x1d0] sm:$0xff] %vm2552_vm1, %v7399_v8  ;;  %v6756_v2 = vld [vmem:[#allocation3 + $0x1e8] sm:$0xff]  ;;  %v8179_v35 = vadd.f32 %v7860_v24, %v7533_v9  ;;  %13111 = vmatprep.mubr.msk.f32.mxu1 %vm2552_vm1, %v9190_v6  ;;  %v7541_v9 = vld [vmem:[#allocation3 + $0x40] sm:$0xff] }
 0x2a7   : > { %8244 = vst.msk [vmem:[#allocation3 + $0x8] sm:$0xff] %vm2552_vm1, %v8180_v13  ;;  %v7402_v34 = vadd.f32 %v15559_v40, %v6756_v2  ;;  %v6755_v37 = vld [vmem:[#allocation3 + $0x1e0] sm:$0xff]  ;;  %v15601_v32 = vpop.f32.mrb[162].mxu0  ;;  %v7542_v53 = vld [vmem:[#allocation3 + $0x48] sm:$0xff] }
 0x2a8   : > { %8243 = vst.msk [vmem:[#allocation3] sm:$0xff] %vm2552_vm1, %v8179_v35  ;;  %v7401_v41 = vadd.f32 %v15563_v58, %v6755_v37  ;;  %v12854_v63 = vpop.f32.mrb[162].mxu1  ;;  %v15605_v14 = vpop.f32.mrb[163].mxu0  ;;  %13210 = vmatmul.mubr.msk.f32.gmra.mrb[12].mxu0 %vm2552_vm1, %v10029_v30  ;;  %v9198_v6 = vld [vmem:[#allocation2 + $0x282] sm:$0xff]  ;;  %v10037_v30 = vld [vmem:[#allocation2 + $0x28b] sm:$0xff] }
 0x2a9   : > { %7466 = vst.msk [vmem:[#allocation3 + $0x1e8] sm:$0xff] %vm2552_vm1, %v7402_v34  ;;  %v8182_v45 = vadd.f32 %v12854_v63, %v7536_v43  ;;  %v7870_v57 = vpop.f32.mrb[163].mxu1  ;;  %13112 = vmatmul.mubr.msk.f32.gmra.mrb[12].mxu1 %vm2552_vm1, %v9191_v59  ;;  %13212 = vmatprep.mubr.msk.f32.mxu0 %vm2552_vm1, %v10030_v61  ;;  %v9199_v59 = vld [vmem:[#allocation2 + $0x28a] sm:$0xff]  ;;  %v10038_v61 = vld [vmem:[#allocation2 + $0x293] sm:$0xff] }
 0x2aa   : > { %7465 = vst.msk [vmem:[#allocation3 + $0x1e0] sm:$0xff] %vm2552_vm1, %v7401_v41  ;;  %v6758_v49 = vld [vmem:[#allocation3 + $0x1f8] sm:$0xff]  ;;  %v8181_v27 = vadd.f32 %v7870_v57, %v7535_v52  ;;  %13114 = vmatprep.mubr.msk.f32.mxu1 %vm2552_vm1, %v9192_v19  ;;  %v7543_v52 = vld [vmem:[#allocation3 + $0x50] sm:$0xff] }
 0x2ab   : > { %8246 = vst.msk [vmem:[#allocation3 + $0x18] sm:$0xff] %vm2552_vm1, %v8182_v45  ;;  %v7404_v4 = vadd.f32 %v15573_v17, %v6758_v49  ;;  %v6757_v54 = vld [vmem:[#allocation3 + $0x1f0] sm:$0xff]  ;;  %v15615_v40 = vpop.f32.mrb[164].mxu0  ;;  %v7544_v43 = vld [vmem:[#allocation3 + $0x58] sm:$0xff] }
 0x2ac   : > { %8245 = vst.msk [vmem:[#allocation3 + $0x10] sm:$0xff] %vm2552_vm1, %v8181_v27  ;;  %v7403_v7 = vadd.f32 %v15577_v21, %v6757_v54  ;;  %v12857_v60 = vpop.f32.mrb[164].mxu1  ;;  %v15619_v58 = vpop.f32.mrb[165].mxu0  ;;  %13213 = vmatmul.mubr.msk.f32.gmra.mrb[14].mxu0 %vm2552_vm1, %v10031_v25  ;;  %v9200_v19 = vld [vmem:[#allocation2 + $0x292] sm:$0xff]  ;;  %v10039_v25 = vld [vmem:[#allocation2 + $0x29b] sm:$0xff] }
 0x2ad   : > { %7468 = vst.msk [vmem:[#allocation3 + $0x1f8] sm:$0xff] %vm2552_vm1, %v7404_v4  ;;  %v8184_v15 = vadd.f32 %v12857_v60, %v7538_v56  ;;  %v7880_v11 = vpop.f32.mrb[165].mxu1  ;;  %13115 = vmatmul.mubr.msk.f32.gmra.mrb[14].mxu1 %vm2552_vm1, %v9193_v51  ;;  %13215 = vmatprep.mubr.msk.f32.mxu0 %vm2552_vm1, %v10032_v38  ;;  %v9201_v51 = vld [vmem:[#allocation2 + $0x29a] sm:$0xff]  ;;  %v10040_v38 = vld [vmem:[#allocation2 + $0x2ab] sm:$0xff] }
 0x2ae   : > { %7467 = vst.msk [vmem:[#allocation3 + $0x1f0] sm:$0xff] %vm2552_vm1, %v7403_v7  ;;  %v8183_v3 = vadd.f32 %v7880_v11, %v7537_v39  ;;  %v8373_v62 = vld [vmem:[#allocation3 + $0x8] sm:$0xff]  ;;  %13117 = vmatprep.mubr.msk.f32.mxu1 %vm2552_vm1, %v9194_v36  ;;  %v7545_v39 = vld [vmem:[#allocation3 + $0x60] sm:$0xff] }
 0x2af   : > { %8248 = vst.msk [vmem:[#allocation3 + $0x28] sm:$0xff] %vm2552_vm1, %v8184_v15  ;;  %v9019_v44 = vadd.f32 %v15587_v16, %v8373_v62  ;;  %v8372_v1 = vld [vmem:[#allocation3] sm:$0xff]  ;;  %v15629_v17 = vpop.f32.mrb[166].mxu0  ;;  %v9202_v36 = vld [vmem:[#allocation2 + $0x2aa] sm:$0xff] }
 0x2b0   : > { %8247 = vst.msk [vmem:[#allocation3 + $0x20] sm:$0xff] %vm2552_vm1, %v8183_v3  ;;  %v9018_v5 = vadd.f32 %v15591_v33, %v8372_v1  ;;  %v12860_v23 = vpop.f32.mrb[166].mxu1  ;;  %v15633_v21 = vpop.f32.mrb[167].mxu0  ;;  %13216 = vmatmul.mubr.msk.f32.gmra.mrb[16].mxu0 %vm2552_vm1, %v10033_v47  ;;  %v7546_v56 = vld [vmem:[#allocation3 + $0x68] sm:$0xff]  ;;  %v10041_v47 = vld [vmem:[#allocation2 + $0x2b3] sm:$0xff] }
 0x2b1   : > { %9083 = vst.msk [vmem:[#allocation3 + $0x8] sm:$0xff] %vm2552_vm1, %v9019_v44  ;;  %v8186_v18 = vadd.f32 %v12860_v23, %v7540_v42  ;;  %v7890_v48 = vpop.f32.mrb[167].mxu1  ;;  %13118 = vmatmul.mubr.msk.f32.gmra.mrb[16].mxu1 %vm2552_vm1, %v9195_v12  ;;  %13218 = vmatprep.mubr.msk.f32.mxu0 %vm2552_vm1, %v10034_v46  ;;  %v9203_v12 = vld [vmem:[#allocation2 + $0x2b2] sm:$0xff]  ;;  %v10042_v46 = vld [vmem:[#allocation2 + $0x2bb] sm:$0xff] }
 0x2b2   : > { %9082 = vst.msk [vmem:[#allocation3] sm:$0xff] %vm2552_vm1, %v9018_v5  ;;  %v8185_v50 = vadd.f32 %v7890_v48, %v7539_v10  ;;  %v8375_v28 = vld [vmem:[#allocation3 + $0x18] sm:$0xff]  ;;  %13120 = vmatprep.mubr.msk.f32.mxu1 %vm2552_vm1, %v9196_v0  ;;  %v7547_v10 = vld [vmem:[#allocation3 + $0x70] sm:$0xff] }
 0x2b3   : > { %8250 = vst.msk [vmem:[#allocation3 + $0x38] sm:$0xff] %vm2552_vm1, %v8186_v18  ;;  %v9021_v29 = vadd.f32 %v15601_v32, %v8375_v28  ;;  %v8374_v20 = vld [vmem:[#allocation3 + $0x10] sm:$0xff]  ;;  %v15643_v16 = vpop.f32.mrb[168].mxu0  ;;  %v9204_v0 = vld [vmem:[#allocation2 + $0x2ba] sm:$0xff] }
 0x2b4   : > { %8249 = vst.msk [vmem:[#allocation3 + $0x30] sm:$0xff] %vm2552_vm1, %v8185_v50  ;;  %v9020_v8 = vadd.f32 %v15605_v14, %v8374_v20  ;;  %v12863_v55 = vpop.f32.mrb[168].mxu1  ;;  %v15647_v33 = vpop.f32.mrb[169].mxu0  ;;  %13219 = vmatmul.mubr.msk.f32.gmra.mrb[18].mxu0 %vm2552_vm1, %v10035_v26  ;;  %v7548_v42 = vld [vmem:[#allocation3 + $0x78] sm:$0xff]  ;;  %v10043_v26 = vld [vmem:[#allocation2 + $0x2c3] sm:$0xff] }
 0x2b5   : > { %9085 = vst.msk [vmem:[#allocation3 + $0x18] sm:$0xff] %vm2552_vm1, %v9021_v29  ;;  %v8188_v13 = vadd.f32 %v12863_v55, %v7542_v53  ;;  %v7900_v24 = vpop.f32.mrb[169].mxu1  ;;  %13121 = vmatmul.mubr.msk.f32.gmra.mrb[18].mxu1 %vm2552_vm1, %v9197_v22  ;;  %13221 = vmatprep.mubr.msk.f32.mxu0 %vm2552_vm1, %v10036_v31  ;;  %v9205_v22 = vld [vmem:[#allocation2 + $0x2c2] sm:$0xff]  ;;  %v10044_v31 = vld [vmem:[#allocation2 + $0x2d3] sm:$0xff] }
 0x2b6   : > { %9084 = vst.msk [vmem:[#allocation3 + $0x10] sm:$0xff] %vm2552_vm1, %v9020_v8  ;;  %v8187_v2 = vadd.f32 %v7900_v24, %v7541_v9  ;;  %v8377_v35 = vld [vmem:[#allocation3 + $0x28] sm:$0xff]  ;;  %13123 = vmatprep.mubr.msk.f32.mxu1 %vm2552_vm1, %v9198_v6  ;;  %v9206_v6 = vld [vmem:[#allocation2 + $0x2d2] sm:$0xff]  ;;  %v7549_v9 = vld [vmem:[#allocation3 + $0x80] sm:$0xff] }
 0x2b7   : > { %8252 = vst.msk [vmem:[#allocation3 + $0x48] sm:$0xff] %vm2552_vm1, %v8188_v13  ;;  %v9023_v34 = vadd.f32 %v15615_v40, %v8377_v35  ;;  %v8376_v37 = vld [vmem:[#allocation3 + $0x20] sm:$0xff]  ;;  %v15657_v32 = vpop.f32.mrb[170].mxu0  ;;  %v7550_v53 = vld [vmem:[#allocation3 + $0x88] sm:$0xff] }
 0x2b8   : > { %8251 = vst.msk [vmem:[#allocation3 + $0x40] sm:$0xff] %vm2552_vm1, %v8187_v2  ;;  %v9022_v41 = vadd.f32 %v15619_v58, %v8376_v37  ;;  %v12866_v63 = vpop.f32.mrb[170].mxu1  ;;  %v15661_v14 = vpop.f32.mrb[171].mxu0  ;;  %13222 = vmatmul.mubr.msk.f32.gmra.mrb[20].mxu0 %vm2552_vm1, %v10037_v30  ;;  %v10045_v30 = vld [vmem:[#allocation2 + $0x2db] sm:$0xff] }
 0x2b9   : > { %9087 = vst.msk [vmem:[#allocation3 + $0x28] sm:$0xff] %vm2552_vm1, %v9023_v34  ;;  %v8190_v45 = vadd.f32 %v12866_v63, %v7544_v43  ;;  %v7910_v57 = vpop.f32.mrb[171].mxu1  ;;  %13124 = vmatmul.mubr.msk.f32.gmra.mrb[20].mxu1 %vm2552_vm1, %v9199_v59  ;;  %13224 = vmatprep.mubr.msk.f32.mxu0 %vm2552_vm1, %v10038_v61  ;;  %v9207_v59 = vld [vmem:[#allocation2 + $0x2da] sm:$0xff]  ;;  %v10046_v61 = vld [vmem:[#allocation2 + $0x2e3] sm:$0xff] }
 0x2ba   : > { %9086 = vst.msk [vmem:[#allocation3 + $0x20] sm:$0xff] %vm2552_vm1, %v9022_v41  ;;  %v8189_v49 = vadd.f32 %v7910_v57, %v7543_v52  ;;  %v8379_v27 = vld [vmem:[#allocation3 + $0x38] sm:$0xff]  ;;  %13126 = vmatprep.mubr.msk.f32.mxu1 %vm2552_vm1, %v9200_v19  ;;  %v9208_v19 = vld [vmem:[#allocation2 + $0x2e2] sm:$0xff]  ;;  %v7551_v52 = vld [vmem:[#allocation3 + $0x90] sm:$0xff] }
 0x2bb   : > { %8254 = vst.msk [vmem:[#allocation3 + $0x58] sm:$0xff] %vm2552_vm1, %v8190_v45  ;;  %v9025_v4 = vadd.f32 %v15629_v17, %v8379_v27  ;;  %v8378_v54 = vld [vmem:[#allocation3 + $0x30] sm:$0xff]  ;;  %v15671_v40 = vpop.f32.mrb[172].mxu0  ;;  %v7552_v43 = vld [vmem:[#allocation3 + $0x98] sm:$0xff] }
 0x2bc   : > { %8253 = vst.msk [vmem:[#allocation3 + $0x50] sm:$0xff] %vm2552_vm1, %v8189_v49  ;;  %v9024_v7 = vadd.f32 %v15633_v21, %v8378_v54  ;;  %v12869_v60 = vpop.f32.mrb[172].mxu1  ;;  %v15675_v58 = vpop.f32.mrb[173].mxu0  ;;  %13225 = vmatmul.mubr.msk.f32.gmra.mrb[22].mxu0 %vm2552_vm1, %v10039_v25  ;;  %v10047_v25 = vld [vmem:[#allocation2 + $0x2eb] sm:$0xff] }
 0x2bd   : > { %9089 = vst.msk [vmem:[#allocation3 + $0x38] sm:$0xff] %vm2552_vm1, %v9025_v4  ;;  %v8192_v15 = vadd.f32 %v12869_v60, %v7546_v56  ;;  %v7920_v11 = vpop.f32.mrb[173].mxu1  ;;  %13127 = vmatmul.mubr.msk.f32.gmra.mrb[22].mxu1 %vm2552_vm1, %v9201_v51  ;;  %13227 = vmatprep.mubr.msk.f32.mxu0 %vm2552_vm1, %v10040_v38  ;;  %v9209_v51 = vld [vmem:[#allocation2 + $0x2ea] sm:$0xff] }
 0x2be   : > { %9088 = vst.msk [vmem:[#allocation3 + $0x30] sm:$0xff] %vm2552_vm1, %v9024_v7  ;;  %v8191_v3 = vadd.f32 %v7920_v11, %v7545_v39  ;;  %v8381_v62 = vld [vmem:[#allocation3 + $0x48] sm:$0xff]  ;;  %13129 = vmatprep.mubr.msk.f32.mxu1 %vm2552_vm1, %v9202_v36 }
 0x2bf   : > { %8256 = vst.msk [vmem:[#allocation3 + $0x68] sm:$0xff] %vm2552_vm1, %v8192_v15  ;;  %v9027_v44 = vadd.f32 %v15643_v16, %v8381_v62  ;;  %v8380_v1 = vld [vmem:[#allocation3 + $0x40] sm:$0xff]  ;;  %v15685_v17 = vpop.f32.mrb[174].mxu0  ;;  %v7554_v38 = vld [vmem:[#allocation3 + $0xa8] sm:$0xff] }
 0x2c0   : > { %8255 = vst.msk [vmem:[#allocation3 + $0x60] sm:$0xff] %vm2552_vm1, %v8191_v3  ;;  %v9026_v5 = vadd.f32 %v15647_v33, %v8380_v1  ;;  %v12872_v23 = vpop.f32.mrb[174].mxu1  ;;  %v8769_v21 = vpop.f32.mrb[175].mxu0  ;;  %13228 = vmatmul.mubr.msk.f32.gmra.mrb[24].mxu0 %vm2552_vm1, %v10041_v47  ;;  %v7556_v47 = vld [vmem:[#allocation3 + $0xb8] sm:$0xff] }
 0x2c1   : > { %9091 = vst.msk [vmem:[#allocation3 + $0x48] sm:$0xff] %vm2552_vm1, %v9027_v44  ;;  %v8194_v18 = vadd.f32 %v12872_v23, %v7548_v42  ;;  %v7930_v48 = vpop.f32.mrb[175].mxu1  ;;  %13130 = vmatmul.mubr.msk.f32.gmra.mrb[24].mxu1 %vm2552_vm1, %v9203_v12  ;;  %13230 = vmatprep.mubr.msk.f32.mxu0 %vm2552_vm1, %v10042_v46  ;;  %v7555_v46 = vld [vmem:[#allocation3 + $0xb0] sm:$0xff] }
 0x2c2   : > { %9090 = vst.msk [vmem:[#allocation3 + $0x40] sm:$0xff] %vm2552_vm1, %v9026_v5  ;;  %v8193_v50 = vadd.f32 %v7930_v48, %v7547_v10  ;;  %v8383_v28 = vld [vmem:[#allocation3 + $0x58] sm:$0xff]  ;;  %13132 = vmatprep.mubr.msk.f32.mxu1 %vm2552_vm1, %v9204_v0 }
 0x2c3   : > { %8258 = vst.msk [vmem:[#allocation3 + $0x78] sm:$0xff] %vm2552_vm1, %v8194_v18  ;;  %v9029_v29 = vadd.f32 %v15657_v32, %v8383_v28  ;;  %v8382_v20 = vld [vmem:[#allocation3 + $0x50] sm:$0xff]  ;;  %v12973_v16 = vpop.f32.mrb[176].mxu0 }
 0x2c4   : > { %8257 = vst.msk [vmem:[#allocation3 + $0x70] sm:$0xff] %vm2552_vm1, %v8193_v50  ;;  %v9028_v8 = vadd.f32 %v15661_v14, %v8382_v20  ;;  %v12875_v55 = vpop.f32.mrb[176].mxu1  ;;  %v8779_v33 = vpop.f32.mrb[177].mxu0  ;;  %13231 = vmatmul.mubr.msk.f32.gmra.mrb[26].mxu0 %vm2552_vm1, %v10043_v26  ;;  %v7557_v26 = vld [vmem:[#allocation3 + $0xc0] sm:$0xff] }
 0x2c5   : > { %9093 = vst.msk [vmem:[#allocation3 + $0x58] sm:$0xff] %vm2552_vm1, %v9029_v29  ;;  %v8196_v13 = vadd.f32 %v12875_v55, %v7550_v53  ;;  %v7940_v24 = vpop.f32.mrb[177].mxu1  ;;  %13133 = vmatmul.mubr.msk.f32.gmra.mrb[26].mxu1 %vm2552_vm1, %v9205_v22  ;;  %13233 = vmatprep.mubr.msk.f32.mxu0 %vm2552_vm1, %v10044_v31 }
 0x2c6   : > { %9092 = vst.msk [vmem:[#allocation3 + $0x50] sm:$0xff] %vm2552_vm1, %v9028_v8  ;;  %v8195_v2 = vadd.f32 %v7940_v24, %v7549_v9  ;;  %v8385_v35 = vld [vmem:[#allocation3 + $0x68] sm:$0xff]  ;;  %13135 = vmatprep.mubr.msk.f32.mxu1 %vm2552_vm1, %v9206_v6 }
 0x2c7   : > { %8260 = vst.msk [vmem:[#allocation3 + $0x88] sm:$0xff] %vm2552_vm1, %v8196_v13  ;;  %v9031_v34 = vadd.f32 %v15671_v40, %v8385_v35  ;;  %v8384_v37 = vld [vmem:[#allocation3 + $0x60] sm:$0xff]  ;;  %v12976_v32 = vpop.f32.mrb[178].mxu0 }
 0x2c8   : > { %8259 = vst.msk [vmem:[#allocation3 + $0x80] sm:$0xff] %vm2552_vm1, %v8195_v2  ;;  %v9030_v41 = vadd.f32 %v15675_v58, %v8384_v37  ;;  %v12878_v63 = vpop.f32.mrb[178].mxu1  ;;  %v8789_v14 = vpop.f32.mrb[179].mxu0  ;;  %13234 = vmatmul.mubr.msk.f32.gmra.mrb[28].mxu0 %vm2552_vm1, %v10045_v30  ;;  %v7553_v40 = vld [vmem:[#allocation3 + $0xa0] sm:$0xff] }
 0x2c9   : > { %9095 = vst.msk [vmem:[#allocation3 + $0x68] sm:$0xff] %vm2552_vm1, %v9031_v34  ;;  %v8198_v45 = vadd.f32 %v12878_v63, %v7552_v43  ;;  %v7950_v57 = vpop.f32.mrb[179].mxu1  ;;  %13136 = vmatmul.mubr.msk.f32.gmra.mrb[28].mxu1 %vm2552_vm1, %v9207_v59  ;;  %13236 = vmatprep.mubr.msk.f32.mxu0 %vm2552_vm1, %v10046_v61  ;;  %v7562_v61 = vld [vmem:[#allocation3 + $0xe8] sm:$0xff] }
 0x2ca   : > { %9094 = vst.msk [vmem:[#allocation3 + $0x60] sm:$0xff] %vm2552_vm1, %v9030_v41  ;;  %v8197_v49 = vadd.f32 %v7950_v57, %v7551_v52  ;;  %v8387_v27 = vld [vmem:[#allocation3 + $0x78] sm:$0xff]  ;;  %13138 = vmatprep.mubr.msk.f32.mxu1 %vm2552_vm1, %v9208_v19 }
 0x2cb   : > { %8262 = vst.msk [vmem:[#allocation3 + $0x98] sm:$0xff] %vm2552_vm1, %v8198_v45  ;;  %v9033_v4 = vadd.f32 %v15685_v17, %v8387_v27  ;;  %v8386_v54 = vld [vmem:[#allocation3 + $0x70] sm:$0xff]  ;;  %v12979_v56 = vpop.f32.mrb[180].mxu0 }
 0x2cc   : > { %8261 = vst.msk [vmem:[#allocation3 + $0x90] sm:$0xff] %vm2552_vm1, %v8197_v49  ;;  %v9032_v36 = vadd.f32 %v8769_v21, %v8386_v54  ;;  %v12881_v7 = vpop.f32.mrb[180].mxu1  ;;  %v8799_v39 = vpop.f32.mrb[181].mxu0  ;;  %13237 = vmatmul.mubr.msk.f32.gmra.mrb[30].mxu0 %vm2552_vm1, %v10047_v25  ;;  %v7558_v21 = vld [vmem:[#allocation3 + $0xc8] sm:$0xff]  ;;  %v7564_v25 = vld [vmem:[#allocation3 + $0xf8] sm:$0xff] }
 0x2cd   : > { %9097 = vst.msk [vmem:[#allocation3 + $0x78] sm:$0xff] %vm2552_vm1, %v9033_v4  ;;  %v8200_v60 = vadd.f32 %v12881_v7, %v7554_v38  ;;  %v7960_v15 = vpop.f32.mrb[181].mxu1  ;;  %13139 = vmatmul.mubr.msk.f32.gmra.mrb[30].mxu1 %vm2552_vm1, %v9209_v51  ;;  %v7563_v38 = vld [vmem:[#allocation3 + $0xf0] sm:$0xff] }
 0x2ce   : > { %9096 = vst.msk [vmem:[#allocation3 + $0x70] sm:$0xff] %vm2552_vm1, %v9032_v36  ;;  %v8199_v11 = vadd.f32 %v7960_v15, %v7553_v40  ;;  %v8389_v58 = vld [vmem:[#allocation3 + $0x88] sm:$0xff] }
 0x2cf   : > { %8264 = vst.msk [vmem:[#allocation3 + $0xa8] sm:$0xff] %vm2552_vm1, %v8200_v60  ;;  %v9035_v3 = vadd.f32 %v12973_v16, %v8389_v58  ;;  %v8388_v62 = vld [vmem:[#allocation3 + $0x80] sm:$0xff]  ;;  %v12982_v1 = vpop.f32.mrb[182].mxu0  ;;  %v7560_v16 = vld [vmem:[#allocation3 + $0xd8] sm:$0xff]  ;;  %v7566_v58 = vld [vmem:[#allocation3 + $0x108] sm:$0xff] }
 0x2d0   : > { %8263 = vst.msk [vmem:[#allocation3 + $0xa0] sm:$0xff] %vm2552_vm1, %v8199_v11  ;;  %v9034_v12 = vadd.f32 %v8779_v33, %v8388_v62  ;;  %v12884_v44 = vpop.f32.mrb[182].mxu1  ;;  %v8809_v42 = vpop.f32.mrb[183].mxu0  ;;  %v7559_v33 = vld [vmem:[#allocation3 + $0xd0] sm:$0xff] }
 0x2d1   : > { %9099 = vst.msk [vmem:[#allocation3 + $0x88] sm:$0xff] %vm2552_vm1, %v9035_v3  ;;  %v8202_v0 = vadd.f32 %v12884_v44, %v7556_v47  ;;  %v7970_v5 = vpop.f32.mrb[183].mxu1  ;;  %v7565_v47 = vld [vmem:[#allocation3 + $0x100] sm:$0xff] }
 0x2d2   : > { %9098 = vst.msk [vmem:[#allocation3 + $0x80] sm:$0xff] %vm2552_vm1, %v9034_v12  ;;  %v8201_v23 = vadd.f32 %v7970_v5, %v7555_v46  ;;  %v8391_v17 = vld [vmem:[#allocation3 + $0x98] sm:$0xff] }
 0x2d3   : > { %8266 = vst.msk [vmem:[#allocation3 + $0xb8] sm:$0xff] %vm2552_vm1, %v8202_v0  ;;  %v9037_v18 = vadd.f32 %v12976_v32, %v8391_v17  ;;  %v8390_v10 = vld [vmem:[#allocation3 + $0x90] sm:$0xff]  ;;  %v12985_v28 = vpop.f32.mrb[184].mxu0  ;;  %v7561_v32 = vld [vmem:[#allocation3 + $0xe0] sm:$0xff]  ;;  %v7568_v17 = vld [vmem:[#allocation3 + $0x118] sm:$0xff] }
 0x2d4   : > { %8265 = vst.msk [vmem:[#allocation3 + $0xb0] sm:$0xff] %vm2552_vm1, %v8201_v23  ;;  %v9036_v48 = vadd.f32 %v8789_v14, %v8390_v10  ;;  %v12887_v50 = vpop.f32.mrb[184].mxu1  ;;  %v8819_v20 = vpop.f32.mrb[185].mxu0 }
 0x2d5   : > { %9101 = vst.msk [vmem:[#allocation3 + $0x98] sm:$0xff] %vm2552_vm1, %v9037_v18  ;;  %v8204_v22 = vadd.f32 %v12887_v50, %v7558_v21  ;;  %v7980_v29 = vpop.f32.mrb[185].mxu1  ;;  %v7567_v21 = vld [vmem:[#allocation3 + $0x110] sm:$0xff] }
 0x2d6   : > { %9100 = vst.msk [vmem:[#allocation3 + $0x90] sm:$0xff] %vm2552_vm1, %v9036_v48  ;;  %v8203_v6 = vadd.f32 %v7980_v29, %v7557_v26  ;;  %v8393_v31 = vld [vmem:[#allocation3 + $0xa8] sm:$0xff] }
 0x2d7   : > { %8268 = vst.msk [vmem:[#allocation3 + $0xc8] sm:$0xff] %vm2552_vm1, %v8204_v22  ;;  %v9039_v8 = vadd.f32 %v12979_v56, %v8393_v31  ;;  %v8392_v53 = vld [vmem:[#allocation3 + $0xa0] sm:$0xff]  ;;  %v12988_v9 = vpop.f32.mrb[186].mxu0  ;;  %v7570_v31 = vld [vmem:[#allocation3 + $0x128] sm:$0xff] }
 0x2d8   : > { %8267 = vst.msk [vmem:[#allocation3 + $0xc0] sm:$0xff] %vm2552_vm1, %v8203_v6  ;;  %v9038_v55 = vadd.f32 %v8799_v39, %v8392_v53  ;;  %v12890_v13 = vpop.f32.mrb[186].mxu1  ;;  %v8829_v35 = vpop.f32.mrb[187].mxu0 }
 0x2d9   : > { %9103 = vst.msk [vmem:[#allocation3 + $0xa8] sm:$0xff] %vm2552_vm1, %v9039_v8  ;;  %v8206_v24 = vadd.f32 %v12890_v13, %v7560_v16  ;;  %v7990_v2 = vpop.f32.mrb[187].mxu1  ;;  %v7569_v16 = vld [vmem:[#allocation3 + $0x120] sm:$0xff] }
 0x2da   : > { %9102 = vst.msk [vmem:[#allocation3 + $0xa0] sm:$0xff] %vm2552_vm1, %v9038_v55  ;;  %v8205_v59 = vadd.f32 %v7990_v2, %v7559_v33  ;;  %v8395_v30 = vld [vmem:[#allocation3 + $0xb8] sm:$0xff] }
 0x2db   : > { %8270 = vst.msk [vmem:[#allocation3 + $0xd8] sm:$0xff] %vm2552_vm1, %v8206_v24  ;;  %v9041_v34 = vadd.f32 %v12982_v1, %v8395_v30  ;;  %v8394_v37 = vld [vmem:[#allocation3 + $0xb0] sm:$0xff]  ;;  %v12991_v43 = vpop.f32.mrb[188].mxu0  ;;  %v7572_v30 = vld [vmem:[#allocation3 + $0x138] sm:$0xff] }
 0x2dc   : > { %8269 = vst.msk [vmem:[#allocation3 + $0xd0] sm:$0xff] %vm2552_vm1, %v8205_v59  ;;  %v9040_v19 = vadd.f32 %v8809_v42, %v8394_v37  ;;  %v12893_v41 = vpop.f32.mrb[188].mxu1  ;;  %v8839_v52 = vpop.f32.mrb[189].mxu0 }
 0x2dd   : > { %9105 = vst.msk [vmem:[#allocation3 + $0xb8] sm:$0xff] %vm2552_vm1, %v9041_v34  ;;  %v8208_v63 = vadd.f32 %v12893_v41, %v7562_v61  ;;  %v8000_v45 = vpop.f32.mrb[189].mxu1  ;;  %v7571_v61 = vld [vmem:[#allocation3 + $0x130] sm:$0xff] }
 0x2de   : > { %9104 = vst.msk [vmem:[#allocation3 + $0xb0] sm:$0xff] %vm2552_vm1, %v9040_v19  ;;  %v8207_v57 = vadd.f32 %v8000_v45, %v7561_v32  ;;  %v8397_v14 = vld [vmem:[#allocation3 + $0xc8] sm:$0xff] }
 0x2df   : > { %8272 = vst.msk [vmem:[#allocation3 + $0xe8] sm:$0xff] %vm2552_vm1, %v8208_v63  ;;  %v9043_v49 = vadd.f32 %v12985_v28, %v8397_v14  ;;  %v8396_v27 = vld [vmem:[#allocation3 + $0xc0] sm:$0xff]  ;;  %v12994_v54 = vpop.f32.mrb[190].mxu0  ;;  %v7574_v14 = vld [vmem:[#allocation3 + $0x148] sm:$0xff] }
 0x2e0   : > { %8271 = vst.msk [vmem:[#allocation3 + $0xe0] sm:$0xff] %vm2552_vm1, %v8207_v57  ;;  %v9042_v51 = vadd.f32 %v8819_v20, %v8396_v27  ;;  %v12896_v4 = vpop.f32.mrb[190].mxu1  ;;  %v8849_v56 = vpop.f32.mrb[191].mxu0 }
 0x2e1   : > { %9107 = vst.msk [vmem:[#allocation3 + $0xc8] sm:$0xff] %vm2552_vm1, %v9043_v49  ;;  %v8210_v36 = vadd.f32 %v12896_v4, %v7564_v25  ;;  %v8010_v7 = vpop.f32.mrb[191].mxu1  ;;  %v7573_v25 = vld [vmem:[#allocation3 + $0x140] sm:$0xff] }
 0x2e2   : > { %9106 = vst.msk [vmem:[#allocation3 + $0xc0] sm:$0xff] %vm2552_vm1, %v9042_v51  ;;  %v8209_v60 = vadd.f32 %v8010_v7, %v7563_v38  ;;  %v8399_v40 = vld [vmem:[#allocation3 + $0xd8] sm:$0xff] }
 0x2e3   : > { %8274 = vst.msk [vmem:[#allocation3 + $0xf8] sm:$0xff] %vm2552_vm1, %v8210_v36  ;;  %v9045_v15 = vadd.f32 %v12988_v9, %v8399_v40  ;;  %v8398_v39 = vld [vmem:[#allocation3 + $0xd0] sm:$0xff]  ;;  %v12997_v62 = vpop.f32.mrb[192].mxu0  ;;  %v7576_v40 = vld [vmem:[#allocation3 + $0x158] sm:$0xff] }
 0x2e4   : > { %8273 = vst.msk [vmem:[#allocation3 + $0xf0] sm:$0xff] %vm2552_vm1, %v8209_v60  ;;  %v9044_v11 = vadd.f32 %v8829_v35, %v8398_v39  ;;  %v12899_v3 = vpop.f32.mrb[192].mxu1  ;;  %v8859_v1 = vpop.f32.mrb[193].mxu0 }
 0x2e5   : > { %9109 = vst.msk [vmem:[#allocation3 + $0xd8] sm:$0xff] %vm2552_vm1, %v9045_v15  ;;  %v8212_v12 = vadd.f32 %v12899_v3, %v7566_v58  ;;  %v8020_v44 = vpop.f32.mrb[193].mxu1  ;;  %v7575_v58 = vld [vmem:[#allocation3 + $0x150] sm:$0xff] }
 0x2e6   : > { %9108 = vst.msk [vmem:[#allocation3 + $0xd0] sm:$0xff] %vm2552_vm1, %v9044_v11  ;;  %v8211_v0 = vadd.f32 %v8020_v44, %v7565_v47  ;;  %v8401_v46 = vld [vmem:[#allocation3 + $0xe8] sm:$0xff] }
 0x2e7   : > { %8276 = vst.msk [vmem:[#allocation3 + $0x108] sm:$0xff] %vm2552_vm1, %v8212_v12  ;;  %v9047_v5 = vadd.f32 %v12991_v43, %v8401_v46  ;;  %v8400_v42 = vld [vmem:[#allocation3 + $0xe0] sm:$0xff]  ;;  %v13000_v10 = vpop.f32.mrb[194].mxu0  ;;  %v7578_v46 = vld [vmem:[#allocation3 + $0x168] sm:$0xff] }
 0x2e8   : > { %8275 = vst.msk [vmem:[#allocation3 + $0x100] sm:$0xff] %vm2552_vm1, %v8211_v0  ;;  %v9046_v23 = vadd.f32 %v8839_v52, %v8400_v42  ;;  %v12902_v18 = vpop.f32.mrb[194].mxu1  ;;  %v8869_v28 = vpop.f32.mrb[195].mxu0 }
 0x2e9   : > { %9111 = vst.msk [vmem:[#allocation3 + $0xe8] sm:$0xff] %vm2552_vm1, %v9047_v5  ;;  %v8214_v48 = vadd.f32 %v12902_v18, %v7568_v17  ;;  %v8030_v50 = vpop.f32.mrb[195].mxu1  ;;  %v7577_v17 = vld [vmem:[#allocation3 + $0x160] sm:$0xff] }
 0x2ea   : > { %9110 = vst.msk [vmem:[#allocation3 + $0xe0] sm:$0xff] %vm2552_vm1, %v9046_v23  ;;  %v8213_v22 = vadd.f32 %v8030_v50, %v7567_v21  ;;  %v8403_v26 = vld [vmem:[#allocation3 + $0xf8] sm:$0xff] }
 0x2eb   : > { %8278 = vst.msk [vmem:[#allocation3 + $0x118] sm:$0xff] %vm2552_vm1, %v8214_v48  ;;  %v9049_v29 = vadd.f32 %v12994_v54, %v8403_v26  ;;  %v8402_v20 = vld [vmem:[#allocation3 + $0xf0] sm:$0xff]  ;;  %v13003_v53 = vpop.f32.mrb[196].mxu0  ;;  %v7580_v26 = vld [vmem:[#allocation3 + $0x178] sm:$0xff] }
 0x2ec   : > { %8277 = vst.msk [vmem:[#allocation3 + $0x110] sm:$0xff] %vm2552_vm1, %v8213_v22  ;;  %v9048_v6 = vadd.f32 %v8849_v56, %v8402_v20  ;;  %v12905_v8 = vpop.f32.mrb[196].mxu1  ;;  %v8879_v9 = vpop.f32.mrb[197].mxu0 }
 0x2ed   : > { %9113 = vst.msk [vmem:[#allocation3 + $0xf8] sm:$0xff] %vm2552_vm1, %v9049_v29  ;;  %v8216_v55 = vadd.f32 %v12905_v8, %v7570_v31  ;;  %v8040_v13 = vpop.f32.mrb[197].mxu1  ;;  %v7579_v31 = vld [vmem:[#allocation3 + $0x170] sm:$0xff] }
 0x2ee   : > { %9112 = vst.msk [vmem:[#allocation3 + $0xf0] sm:$0xff] %vm2552_vm1, %v9048_v6  ;;  %v8215_v24 = vadd.f32 %v8040_v13, %v7569_v16  ;;  %v8405_v33 = vld [vmem:[#allocation3 + $0x108] sm:$0xff] }
 0x2ef   : > { %8280 = vst.msk [vmem:[#allocation3 + $0x128] sm:$0xff] %vm2552_vm1, %v8216_v55  ;;  %v9051_v2 = vadd.f32 %v12997_v62, %v8405_v33  ;;  %v8404_v35 = vld [vmem:[#allocation3 + $0x100] sm:$0xff]  ;;  %v13006_v37 = vpop.f32.mrb[198].mxu0  ;;  %v7582_v33 = vld [vmem:[#allocation3 + $0x188] sm:$0xff] }
 0x2f0   : > { %8279 = vst.msk [vmem:[#allocation3 + $0x120] sm:$0xff] %vm2552_vm1, %v8215_v24  ;;  %v9050_v59 = vadd.f32 %v8859_v1, %v8404_v35  ;;  %v12908_v34 = vpop.f32.mrb[198].mxu1  ;;  %v8889_v43 = vpop.f32.mrb[199].mxu0 }
 0x2f1   : > { %9115 = vst.msk [vmem:[#allocation3 + $0x108] sm:$0xff] %vm2552_vm1, %v9051_v2  ;;  %v8218_v19 = vadd.f32 %v12908_v34, %v7572_v30  ;;  %v8050_v41 = vpop.f32.mrb[199].mxu1  ;;  %v7581_v30 = vld [vmem:[#allocation3 + $0x180] sm:$0xff] }
 0x2f2   : > { %9114 = vst.msk [vmem:[#allocation3 + $0x100] sm:$0xff] %vm2552_vm1, %v9050_v59  ;;  %v8217_v63 = vadd.f32 %v8050_v41, %v7571_v61  ;;  %v8407_v32 = vld [vmem:[#allocation3 + $0x118] sm:$0xff] }
 0x2f3   : > { %8282 = vst.msk [vmem:[#allocation3 + $0x138] sm:$0xff] %vm2552_vm1, %v8218_v19  ;;  %v9053_v45 = vadd.f32 %v13000_v10, %v8407_v32  ;;  %v8406_v52 = vld [vmem:[#allocation3 + $0x110] sm:$0xff]  ;;  %v13009_v27 = vpop.f32.mrb[200].mxu0  ;;  %v7584_v32 = vld [vmem:[#allocation3 + $0x198] sm:$0xff] }
 0x2f4   : > { %8281 = vst.msk [vmem:[#allocation3 + $0x130] sm:$0xff] %vm2552_vm1, %v8217_v63  ;;  %v9052_v57 = vadd.f32 %v8869_v28, %v8406_v52  ;;  %v12911_v49 = vpop.f32.mrb[200].mxu1  ;;  %v8899_v54 = vpop.f32.mrb[201].mxu0 }
 0x2f5   : > { %9117 = vst.msk [vmem:[#allocation3 + $0x118] sm:$0xff] %vm2552_vm1, %v9053_v45  ;;  %v8220_v51 = vadd.f32 %v12911_v49, %v7574_v14  ;;  %v8060_v4 = vpop.f32.mrb[201].mxu1  ;;  %v7583_v14 = vld [vmem:[#allocation3 + $0x190] sm:$0xff] }
 0x2f6   : > { %9116 = vst.msk [vmem:[#allocation3 + $0x110] sm:$0xff] %vm2552_vm1, %v9052_v57  ;;  %v8219_v36 = vadd.f32 %v8060_v4, %v7573_v25  ;;  %v8409_v38 = vld [vmem:[#allocation3 + $0x128] sm:$0xff] }
 0x2f7   : > { %8284 = vst.msk [vmem:[#allocation3 + $0x148] sm:$0xff] %vm2552_vm1, %v8220_v51  ;;  %v9055_v7 = vadd.f32 %v13003_v53, %v8409_v38  ;;  %v8408_v56 = vld [vmem:[#allocation3 + $0x120] sm:$0xff]  ;;  %v13012_v39 = vpop.f32.mrb[202].mxu0  ;;  %v7586_v38 = vld [vmem:[#allocation3 + $0x1a8] sm:$0xff] }
 0x2f8   : > { %8283 = vst.msk [vmem:[#allocation3 + $0x140] sm:$0xff] %vm2552_vm1, %v8219_v36  ;;  %v9054_v60 = vadd.f32 %v8879_v9, %v8408_v56  ;;  %v12914_v15 = vpop.f32.mrb[202].mxu1  ;;  %v8909_v62 = vpop.f32.mrb[203].mxu0 }
 0x2f9   : > { %9119 = vst.msk [vmem:[#allocation3 + $0x128] sm:$0xff] %vm2552_vm1, %v9055_v7  ;;  %v8222_v11 = vadd.f32 %v12914_v15, %v7576_v40  ;;  %v8070_v3 = vpop.f32.mrb[203].mxu1  ;;  %v7585_v40 = vld [vmem:[#allocation3 + $0x1a0] sm:$0xff] }
 0x2fa   : > { %9118 = vst.msk [vmem:[#allocation3 + $0x120] sm:$0xff] %vm2552_vm1, %v9054_v60  ;;  %v8221_v12 = vadd.f32 %v8070_v3, %v7575_v58  ;;  %v8411_v47 = vld [vmem:[#allocation3 + $0x138] sm:$0xff] }
 0x2fb   : > { %8286 = vst.msk [vmem:[#allocation3 + $0x158] sm:$0xff] %vm2552_vm1, %v8222_v11  ;;  %v9057_v44 = vadd.f32 %v13006_v37, %v8411_v47  ;;  %v8410_v1 = vld [vmem:[#allocation3 + $0x130] sm:$0xff]  ;;  %v13015_v42 = vpop.f32.mrb[204].mxu0  ;;  %v7588_v47 = vld [vmem:[#allocation3 + $0x1b8] sm:$0xff] }
 0x2fc   : > { %8285 = vst.msk [vmem:[#allocation3 + $0x150] sm:$0xff] %vm2552_vm1, %v8221_v12  ;;  %v9056_v0 = vadd.f32 %v8889_v43, %v8410_v1  ;;  %v12917_v5 = vpop.f32.mrb[204].mxu1  ;;  %v8919_v10 = vpop.f32.mrb[205].mxu0 }
 0x2fd   : > { %9121 = vst.msk [vmem:[#allocation3 + $0x138] sm:$0xff] %vm2552_vm1, %v9057_v44  ;;  %v8224_v23 = vadd.f32 %v12917_v5, %v7578_v46  ;;  %v8080_v18 = vpop.f32.mrb[205].mxu1  ;;  %v7587_v46 = vld [vmem:[#allocation3 + $0x1b0] sm:$0xff] }
 0x2fe   : > { %9120 = vst.msk [vmem:[#allocation3 + $0x130] sm:$0xff] %vm2552_vm1, %v9056_v0  ;;  %v8223_v48 = vadd.f32 %v8080_v18, %v7577_v17  ;;  %v8413_v21 = vld [vmem:[#allocation3 + $0x148] sm:$0xff] }
 0x2ff   : > { %8288 = vst.msk [vmem:[#allocation3 + $0x168] sm:$0xff] %vm2552_vm1, %v8224_v23  ;;  %v9059_v50 = vadd.f32 %v13009_v27, %v8413_v21  ;;  %v8412_v28 = vld [vmem:[#allocation3 + $0x140] sm:$0xff]  ;;  %v13018_v20 = vpop.f32.mrb[206].mxu0  ;;  %v7590_v21 = vld [vmem:[#allocation3 + $0x1c8] sm:$0xff] }
 0x300   : > { %8287 = vst.msk [vmem:[#allocation3 + $0x160] sm:$0xff] %vm2552_vm1, %v8223_v48  ;;  %v9058_v22 = vadd.f32 %v8899_v54, %v8412_v28  ;;  %v12920_v29 = vpop.f32.mrb[206].mxu1  ;;  %v8929_v53 = vpop.f32.mrb[207].mxu0 }
 0x301   : > { %9123 = vst.msk [vmem:[#allocation3 + $0x148] sm:$0xff] %vm2552_vm1, %v9059_v50  ;;  %v8226_v6 = vadd.f32 %v12920_v29, %v7580_v26  ;;  %v8090_v8 = vpop.f32.mrb[207].mxu1  ;;  %v7589_v26 = vld [vmem:[#allocation3 + $0x1c0] sm:$0xff] }
 0x302   : > { %9122 = vst.msk [vmem:[#allocation3 + $0x140] sm:$0xff] %vm2552_vm1, %v9058_v22  ;;  %v8225_v55 = vadd.f32 %v8090_v8, %v7579_v31  ;;  %v8415_v16 = vld [vmem:[#allocation3 + $0x158] sm:$0xff] }
 0x303   : > { %8290 = vst.msk [vmem:[#allocation3 + $0x178] sm:$0xff] %vm2552_vm1, %v8226_v6  ;;  %v9061_v13 = vadd.f32 %v13012_v39, %v8415_v16  ;;  %v8414_v9 = vld [vmem:[#allocation3 + $0x150] sm:$0xff]  ;;  %v13021_v35 = vpop.f32.mrb[208].mxu0  ;;  %v7592_v16 = vld [vmem:[#allocation3 + $0x1d8] sm:$0xff] }
 0x304   : > { %8289 = vst.msk [vmem:[#allocation3 + $0x170] sm:$0xff] %vm2552_vm1, %v8225_v55  ;;  %v9060_v24 = vadd.f32 %v8909_v62, %v8414_v9  ;;  %v12923_v2 = vpop.f32.mrb[208].mxu1  ;;  %v8939_v37 = vpop.f32.mrb[209].mxu0 }
 0x305   : > { %9125 = vst.msk [vmem:[#allocation3 + $0x158] sm:$0xff] %vm2552_vm1, %v9061_v13  ;;  %v8228_v59 = vadd.f32 %v12923_v2, %v7582_v33  ;;  %v8100_v34 = vpop.f32.mrb[209].mxu1  ;;  %v7591_v33 = vld [vmem:[#allocation3 + $0x1d0] sm:$0xff] }
 0x306   : > { %9124 = vst.msk [vmem:[#allocation3 + $0x150] sm:$0xff] %vm2552_vm1, %v9060_v24  ;;  %v8227_v19 = vadd.f32 %v8100_v34, %v7581_v30  ;;  %v8417_v61 = vld [vmem:[#allocation3 + $0x168] sm:$0xff] }
 0x307   : > { %8292 = vst.msk [vmem:[#allocation3 + $0x188] sm:$0xff] %vm2552_vm1, %v8228_v59  ;;  %v9063_v41 = vadd.f32 %v13015_v42, %v8417_v61  ;;  %v8416_v43 = vld [vmem:[#allocation3 + $0x160] sm:$0xff]  ;;  %v13024_v52 = vpop.f32.mrb[210].mxu0  ;;  %v7594_v61 = vld [vmem:[#allocation3 + $0x1e8] sm:$0xff] }
 0x308   : > { %8291 = vst.msk [vmem:[#allocation3 + $0x180] sm:$0xff] %vm2552_vm1, %v8227_v19  ;;  %v9062_v63 = vadd.f32 %v8919_v10, %v8416_v43  ;;  %v12926_v45 = vpop.f32.mrb[210].mxu1  ;;  %v8949_v27 = vpop.f32.mrb[211].mxu0 }
 0x309   : > { %9127 = vst.msk [vmem:[#allocation3 + $0x168] sm:$0xff] %vm2552_vm1, %v9063_v41  ;;  %v8230_v57 = vadd.f32 %v12926_v45, %v7584_v32  ;;  %v8110_v49 = vpop.f32.mrb[211].mxu1  ;;  %v7593_v32 = vld [vmem:[#allocation3 + $0x1e0] sm:$0xff] }
 0x30a   : > { %9126 = vst.msk [vmem:[#allocation3 + $0x160] sm:$0xff] %vm2552_vm1, %v9062_v63  ;;  %v8229_v51 = vadd.f32 %v8110_v49, %v7583_v14  ;;  %v8419_v25 = vld [vmem:[#allocation3 + $0x178] sm:$0xff] }
 0x30b   : > { %8294 = vst.msk [vmem:[#allocation3 + $0x198] sm:$0xff] %vm2552_vm1, %v8230_v57  ;;  %v9065_v4 = vadd.f32 %v13018_v20, %v8419_v25  ;;  %v8418_v54 = vld [vmem:[#allocation3 + $0x170] sm:$0xff]  ;;  %v13027_v56 = vpop.f32.mrb[212].mxu0  ;;  %v7596_v25 = vld [vmem:[#allocation3 + $0x1f8] sm:$0xff] }
 0x30c   : > { %8293 = vst.msk [vmem:[#allocation3 + $0x190] sm:$0xff] %vm2552_vm1, %v8229_v51  ;;  %v9064_v36 = vadd.f32 %v8929_v53, %v8418_v54  ;;  %v12929_v7 = vpop.f32.mrb[212].mxu1  ;;  %v8959_v39 = vpop.f32.mrb[213].mxu0 }
 0x30d   : > { %9129 = vst.msk [vmem:[#allocation3 + $0x178] sm:$0xff] %vm2552_vm1, %v9065_v4  ;;  %v8232_v60 = vadd.f32 %v12929_v7, %v7586_v38  ;;  %v8120_v15 = vpop.f32.mrb[213].mxu1  ;;  %v7595_v38 = vld [vmem:[#allocation3 + $0x1f0] sm:$0xff] }
 0x30e   : > { %9128 = vst.msk [vmem:[#allocation3 + $0x170] sm:$0xff] %vm2552_vm1, %v9064_v36  ;;  %v8231_v11 = vadd.f32 %v8120_v15, %v7585_v40  ;;  %v8421_v58 = vld [vmem:[#allocation3 + $0x188] sm:$0xff] }
 0x30f   : > { %8296 = vst.msk [vmem:[#allocation3 + $0x1a8] sm:$0xff] %vm2552_vm1, %v8232_v60  ;;  %v9067_v3 = vadd.f32 %v13021_v35, %v8421_v58  ;;  %v8420_v62 = vld [vmem:[#allocation3 + $0x180] sm:$0xff]  ;;  %v13030_v1 = vpop.f32.mrb[214].mxu0  ;;  %v9211_v58 = vld [vmem:[#allocation3 + $0x8] sm:$0xff] }
 0x310   : > { %8295 = vst.msk [vmem:[#allocation3 + $0x1a0] sm:$0xff] %vm2552_vm1, %v8231_v11  ;;  %v9066_v12 = vadd.f32 %v8939_v37, %v8420_v62  ;;  %v12932_v44 = vpop.f32.mrb[214].mxu1  ;;  %v8969_v42 = vpop.f32.mrb[215].mxu0 }
 0x311   : > { %9131 = vst.msk [vmem:[#allocation3 + $0x188] sm:$0xff] %vm2552_vm1, %v9067_v3  ;;  %v8234_v0 = vadd.f32 %v12932_v44, %v7588_v47  ;;  %v8130_v5 = vpop.f32.mrb[215].mxu1  ;;  %v9210_v47 = vld [vmem:[#allocation3] sm:$0xff] }
 0x312   : > { %9130 = vst.msk [vmem:[#allocation3 + $0x180] sm:$0xff] %vm2552_vm1, %v9066_v12  ;;  %v8233_v23 = vadd.f32 %v8130_v5, %v7587_v46  ;;  %v8423_v17 = vld [vmem:[#allocation3 + $0x198] sm:$0xff] }
 0x313   : > { %8298 = vst.msk [vmem:[#allocation3 + $0x1b8] sm:$0xff] %vm2552_vm1, %v8234_v0  ;;  %v9069_v18 = vadd.f32 %v13024_v52, %v8423_v17  ;;  %v8422_v10 = vld [vmem:[#allocation3 + $0x190] sm:$0xff]  ;;  %v13033_v28 = vpop.f32.mrb[216].mxu0  ;;  %v9213_v17 = vld [vmem:[#allocation3 + $0x18] sm:$0xff] }
 0x314   : > { %8297 = vst.msk [vmem:[#allocation3 + $0x1b0] sm:$0xff] %vm2552_vm1, %v8233_v23  ;;  %v9068_v48 = vadd.f32 %v8949_v27, %v8422_v10  ;;  %v12935_v50 = vpop.f32.mrb[216].mxu1  ;;  %v8979_v20 = vpop.f32.mrb[217].mxu0 }
 0x315   : > { %9133 = vst.msk [vmem:[#allocation3 + $0x198] sm:$0xff] %vm2552_vm1, %v9069_v18  ;;  %v8236_v22 = vadd.f32 %v12935_v50, %v7590_v21  ;;  %v8140_v29 = vpop.f32.mrb[217].mxu1  ;;  %v9212_v21 = vld [vmem:[#allocation3 + $0x10] sm:$0xff] }
 0x316   : > { %9132 = vst.msk [vmem:[#allocation3 + $0x190] sm:$0xff] %vm2552_vm1, %v9068_v48  ;;  %v8235_v6 = vadd.f32 %v8140_v29, %v7589_v26  ;;  %v8425_v31 = vld [vmem:[#allocation3 + $0x1a8] sm:$0xff] }
 0x317   : > { %8300 = vst.msk [vmem:[#allocation3 + $0x1c8] sm:$0xff] %vm2552_vm1, %v8236_v22  ;;  %v9071_v8 = vadd.f32 %v13027_v56, %v8425_v31  ;;  %v8424_v53 = vld [vmem:[#allocation3 + $0x1a0] sm:$0xff]  ;;  %v13036_v9 = vpop.f32.mrb[218].mxu0  ;;  %v9215_v31 = vld [vmem:[#allocation3 + $0x28] sm:$0xff] }
 0x318   : > { %8299 = vst.msk [vmem:[#allocation3 + $0x1c0] sm:$0xff] %vm2552_vm1, %v8235_v6  ;;  %v9070_v55 = vadd.f32 %v8959_v39, %v8424_v53  ;;  %v12938_v13 = vpop.f32.mrb[218].mxu1  ;;  %v8989_v35 = vpop.f32.mrb[219].mxu0 }
 0x319   : > { %9135 = vst.msk [vmem:[#allocation3 + $0x1a8] sm:$0xff] %vm2552_vm1, %v9071_v8  ;;  %v8238_v24 = vadd.f32 %v12938_v13, %v7592_v16  ;;  %v8150_v2 = vpop.f32.mrb[219].mxu1  ;;  %v9214_v16 = vld [vmem:[#allocation3 + $0x20] sm:$0xff] }
 0x31a   : > { %9134 = vst.msk [vmem:[#allocation3 + $0x1a0] sm:$0xff] %vm2552_vm1, %v9070_v55  ;;  %v8237_v59 = vadd.f32 %v8150_v2, %v7591_v33  ;;  %v8427_v30 = vld [vmem:[#allocation3 + $0x1b8] sm:$0xff] }
 0x31b   : > { %8302 = vst.msk [vmem:[#allocation3 + $0x1d8] sm:$0xff] %vm2552_vm1, %v8238_v24  ;;  %v9073_v34 = vadd.f32 %v13030_v1, %v8427_v30  ;;  %v8426_v37 = vld [vmem:[#allocation3 + $0x1b0] sm:$0xff]  ;;  %v13039_v43 = vpop.f32.mrb[220].mxu0  ;;  %v9217_v30 = vld [vmem:[#allocation3 + $0x38] sm:$0xff] }
 0x31c   : > { %8301 = vst.msk [vmem:[#allocation3 + $0x1d0] sm:$0xff] %vm2552_vm1, %v8237_v59  ;;  %v9072_v19 = vadd.f32 %v8969_v42, %v8426_v37  ;;  %v12941_v41 = vpop.f32.mrb[220].mxu1  ;;  %v8999_v52 = vpop.f32.mrb[221].mxu0 }
 0x31d   : > { %9137 = vst.msk [vmem:[#allocation3 + $0x1b8] sm:$0xff] %vm2552_vm1, %v9073_v34  ;;  %v8240_v63 = vadd.f32 %v12941_v41, %v7594_v61  ;;  %v8160_v45 = vpop.f32.mrb[221].mxu1  ;;  %v9216_v61 = vld [vmem:[#allocation3 + $0x30] sm:$0xff] }
 0x31e   : > { %9136 = vst.msk [vmem:[#allocation3 + $0x1b0] sm:$0xff] %vm2552_vm1, %v9072_v19  ;;  %v8239_v57 = vadd.f32 %v8160_v45, %v7593_v32  ;;  %v8429_v14 = vld [vmem:[#allocation3 + $0x1c8] sm:$0xff] }
 0x31f   : > { %8304 = vst.msk [vmem:[#allocation3 + $0x1e8] sm:$0xff] %vm2552_vm1, %v8240_v63  ;;  %v9075_v49 = vadd.f32 %v13033_v28, %v8429_v14  ;;  %v8428_v27 = vld [vmem:[#allocation3 + $0x1c0] sm:$0xff]  ;;  %v13042_v54 = vpop.f32.mrb[222].mxu0  ;;  %v9219_v14 = vld [vmem:[#allocation3 + $0x48] sm:$0xff] }
 0x320   : > { %8303 = vst.msk [vmem:[#allocation3 + $0x1e0] sm:$0xff] %vm2552_vm1, %v8239_v57  ;;  %v9074_v51 = vadd.f32 %v8979_v20, %v8428_v27  ;;  %v12944_v4 = vpop.f32.mrb[222].mxu1  ;;  %v9009_v56 = vpop.f32.mrb[223].mxu0 }
 0x321   : > { %9139 = vst.msk [vmem:[#allocation3 + $0x1c8] sm:$0xff] %vm2552_vm1, %v9075_v49  ;;  %v8242_v36 = vadd.f32 %v12944_v4, %v7596_v25  ;;  %v8170_v7 = vpop.f32.mrb[223].mxu1  ;;  %v9218_v25 = vld [vmem:[#allocation3 + $0x40] sm:$0xff] }
 0x322   : > { %9138 = vst.msk [vmem:[#allocation3 + $0x1c0] sm:$0xff] %vm2552_vm1, %v9074_v51  ;;  %v8241_v60 = vadd.f32 %v8170_v7, %v7595_v38  ;;  %v8431_v40 = vld [vmem:[#allocation3 + $0x1d8] sm:$0xff] }
 0x323   : > { %8306 = vst.msk [vmem:[#allocation3 + $0x1f8] sm:$0xff] %vm2552_vm1, %v8242_v36  ;;  %v9077_v15 = vadd.f32 %v13036_v9, %v8431_v40  ;;  %v8430_v39 = vld [vmem:[#allocation3 + $0x1d0] sm:$0xff]  ;;  %v13145_v62 = vpop.f32.mrb[224].mxu0  ;;  %v15841_v36 = vld [vmem:[%s16180_s3] ss:$0 sm:$0xff] }
 0x324   : > { %8305 = vst.msk [vmem:[#allocation3 + $0x1f0] sm:$0xff] %vm2552_vm1, %v8241_v60  ;;  %v9076_v11 = vadd.f32 %v8989_v35, %v8430_v39  ;;  %v13047_v3 = vpop.f32.mrb[224].mxu1  ;;  %v10375_v1 = vpop.f32.mrb[225].mxu0  ;;  %v9221_v39 = vld [vmem:[#allocation3 + $0x58] sm:$0xff] }
 0x325   : > { %9141 = vst.msk [vmem:[#allocation3 + $0x1d8] sm:$0xff] %vm2552_vm1, %v9077_v15  ;;  %v9857_v12 = vadd.f32 %v13047_v3, %v9211_v58  ;;  %v9537_v44 = vpop.f32.mrb[225].mxu1 }
 0x326   : > { %9140 = vst.msk [vmem:[#allocation3 + $0x1d0] sm:$0xff] %vm2552_vm1, %v9076_v11  ;;  %v8433_v0 = vld [vmem:[#allocation3 + $0x1e8] sm:$0xff]  ;;  %v9856_v46 = vadd.f32 %v9537_v44, %v9210_v47  ;;  %v9220_v47 = vld [vmem:[#allocation3 + $0x50] sm:$0xff] }
 0x327   : > { %9921 = vst.msk [vmem:[#allocation3 + $0x8] sm:$0xff] %vm2552_vm1, %v9857_v12  ;;  %v9079_v5 = vadd.f32 %v13039_v43, %v8433_v0  ;;  %v8432_v42 = vld [vmem:[#allocation3 + $0x1e0] sm:$0xff]  ;;  %v13148_v10 = vpop.f32.mrb[226].mxu0 }
 0x328   : > { %9920 = vst.msk [vmem:[#allocation3] sm:$0xff] %vm2552_vm1, %v9856_v46  ;;  %v9078_v23 = vadd.f32 %v8999_v52, %v8432_v42  ;;  %v13050_v18 = vpop.f32.mrb[226].mxu1  ;;  %v10385_v28 = vpop.f32.mrb[227].mxu0 }
 0x329   : > { %9143 = vst.msk [vmem:[#allocation3 + $0x1e8] sm:$0xff] %vm2552_vm1, %v9079_v5  ;;  %v9859_v48 = vadd.f32 %v13050_v18, %v9213_v17  ;;  %v9547_v50 = vpop.f32.mrb[227].mxu1 }
 0x32a   : > { %9142 = vst.msk [vmem:[#allocation3 + $0x1e0] sm:$0xff] %vm2552_vm1, %v9078_v23  ;;  %v8435_v22 = vld [vmem:[#allocation3 + $0x1f8] sm:$0xff]  ;;  %v9858_v26 = vadd.f32 %v9547_v50, %v9212_v21 }
 0x32b   : > { %9923 = vst.msk [vmem:[#allocation3 + $0x18] sm:$0xff] %vm2552_vm1, %v9859_v48  ;;  %v9081_v29 = vadd.f32 %v13042_v54, %v8435_v22  ;;  %v8434_v20 = vld [vmem:[#allocation3 + $0x1f0] sm:$0xff]  ;;  %v13151_v53 = vpop.f32.mrb[228].mxu0 }
 0x32c   : > { %9922 = vst.msk [vmem:[#allocation3 + $0x10] sm:$0xff] %vm2552_vm1, %v9858_v26  ;;  %v9080_v6 = vadd.f32 %v9009_v56, %v8434_v20  ;;  %v13053_v8 = vpop.f32.mrb[228].mxu1  ;;  %v10395_v9 = vpop.f32.mrb[229].mxu0  ;;  %v9222_v26 = vld [vmem:[#allocation3 + $0x60] sm:$0xff] }
 0x32d   : > { %9145 = vst.msk [vmem:[#allocation3 + $0x1f8] sm:$0xff] %vm2552_vm1, %v9081_v29  ;;  %v9861_v55 = vadd.f32 %v13053_v8, %v9215_v31  ;;  %v9557_v13 = vpop.f32.mrb[229].mxu1 }
 0x32e   : > { %9144 = vst.msk [vmem:[#allocation3 + $0x1f0] sm:$0xff] %vm2552_vm1, %v9080_v6  ;;  %v9860_v24 = vadd.f32 %v9557_v13, %v9214_v16  ;;  %v10049_v33 = vld [vmem:[#allocation3 + $0x8] sm:$0xff] }
 0x32f   : > { %9925 = vst.msk [vmem:[#allocation3 + $0x28] sm:$0xff] %vm2552_vm1, %v9861_v55  ;;  %v10695_v2 = vadd.f32 %v13145_v62, %v10049_v33  ;;  %v10048_v35 = vld [vmem:[#allocation3] sm:$0xff]  ;;  %v13154_v37 = vpop.f32.mrb[230].mxu0 }
 0x330   : > { %9924 = vst.msk [vmem:[#allocation3 + $0x20] sm:$0xff] %vm2552_vm1, %v9860_v24  ;;  %v10694_v59 = vadd.f32 %v10375_v1, %v10048_v35  ;;  %v13056_v34 = vpop.f32.mrb[230].mxu1  ;;  %v10405_v43 = vpop.f32.mrb[231].mxu0 }
 0x331   : > { %10759 = vst.msk [vmem:[#allocation3 + $0x8] sm:$0xff] %vm2552_vm1, %v10695_v2  ;;  %v9863_v19 = vadd.f32 %v13056_v34, %v9217_v30  ;;  %v9567_v41 = vpop.f32.mrb[231].mxu1  ;;  %v9224_v30 = vld [vmem:[#allocation3 + $0x70] sm:$0xff] }
 0x332   : > { %10758 = vst.msk [vmem:[#allocation3] sm:$0xff] %vm2552_vm1, %v10694_v59  ;;  %v9862_v63 = vadd.f32 %v9567_v41, %v9216_v61  ;;  %v10051_v32 = vld [vmem:[#allocation3 + $0x18] sm:$0xff] }
 0x333   : > { %9927 = vst.msk [vmem:[#allocation3 + $0x38] sm:$0xff] %vm2552_vm1, %v9863_v19  ;;  %v10697_v45 = vadd.f32 %v13148_v10, %v10051_v32  ;;  %v10050_v52 = vld [vmem:[#allocation3 + $0x10] sm:$0xff]  ;;  %v13157_v27 = vpop.f32.mrb[232].mxu0  ;;  %v9223_v10 = vld [vmem:[#allocation3 + $0x68] sm:$0xff] }
 0x334   : > { %9926 = vst.msk [vmem:[#allocation3 + $0x30] sm:$0xff] %vm2552_vm1, %v9862_v63  ;;  %v10696_v57 = vadd.f32 %v10385_v28, %v10050_v52  ;;  %v13059_v49 = vpop.f32.mrb[232].mxu1  ;;  %v10415_v54 = vpop.f32.mrb[233].mxu0  ;;  %v9227_v52 = vld [vmem:[#allocation3 + $0x88] sm:$0xff] }
 0x335   : > { %10761 = vst.msk [vmem:[#allocation3 + $0x18] sm:$0xff] %vm2552_vm1, %v10697_v45  ;;  %v9865_v51 = vadd.f32 %v13059_v49, %v9219_v14  ;;  %v9577_v4 = vpop.f32.mrb[233].mxu1 }
 0x336   : > { %10760 = vst.msk [vmem:[#allocation3 + $0x10] sm:$0xff] %vm2552_vm1, %v10696_v57  ;;  %v9864_v38 = vadd.f32 %v9577_v4, %v9218_v25  ;;  %v10053_v7 = vld [vmem:[#allocation3 + $0x28] sm:$0xff]  ;;  %v9226_v25 = vld [vmem:[#allocation3 + $0x80] sm:$0xff] }
 0x337   : > { %9929 = vst.msk [vmem:[#allocation3 + $0x48] sm:$0xff] %vm2552_vm1, %v9865_v51  ;;  %v10699_v56 = vadd.f32 %v13151_v53, %v10053_v7  ;;  %v10052_v60 = vld [vmem:[#allocation3 + $0x20] sm:$0xff]  ;;  %v13160_v58 = vpop.f32.mrb[234].mxu0 }
 0x338   : > { %v10823_v40 = vld [vmem:[#allocation3 + $0x8] sm:$0xff]  ;;  %9928 = vst.msk [vmem:[#allocation3 + $0x40] sm:$0xff] %vm2552_vm1, %v9864_v38  ;;  %v10698_v15 = vadd.f32 %v10395_v9, %v10052_v60  ;;  %v13062_v11 = vpop.f32.mrb[234].mxu1  ;;  %v10425_v1 = vpop.f32.mrb[235].mxu0  ;;  %v9225_v9 = vld [vmem:[#allocation3 + $0x78] sm:$0xff] }
 0x339   : > { %v10894_v3 = vadd.f32 %v15841_v36, %v10823_v40  ;;  %v10822_v62 = vld [vmem:[#allocation3] sm:$0xff]  ;;  %10763 = vst.msk [vmem:[#allocation3 + $0x28] sm:$0xff] %vm2552_vm1, %v10699_v56  ;;  %v9867_v12 = vadd.f32 %v13062_v11, %v9221_v39  ;;  %v9587_v44 = vpop.f32.mrb[235].mxu1  ;;  %v9229_v11 = vld [vmem:[#allocation3 + $0x98] sm:$0xff] }
 0x33a   : > { %v10893_v0 = vadd.f32 %v15841_v36, %v10822_v62  ;;  %10762 = vst.msk [vmem:[#allocation3 + $0x20] sm:$0xff] %vm2552_vm1, %v10698_v15  ;;  %v9866_v46 = vadd.f32 %v9587_v44, %v9220_v47  ;;  %v10055_v5 = vld [vmem:[#allocation3 + $0x38] sm:$0xff]  ;;  %v9228_v44 = vld [vmem:[#allocation3 + $0x90] sm:$0xff] }
 0x33b   : > { %10958 = vst.msk [vmem:[%s15848_s9 + $0x8] sm:$0xff] %vm2552_vm1, %v10894_v3  ;;  %9931 = vst.msk [vmem:[#allocation3 + $0x58] sm:$0xff] %vm2552_vm1, %v9867_v12  ;;  %v10701_v42 = vadd.f32 %v13154_v37, %v10055_v5  ;;  %v10054_v23 = vld [vmem:[#allocation3 + $0x30] sm:$0xff]  ;;  %v13163_v21 = vpop.f32.mrb[236].mxu0 }
 0x33c   : > { %10957 = vst.msk [vmem:[%s15848_s9] sm:$0xff] %vm2552_vm1, %v10893_v0  ;;  %v10825_v17 = vld [vmem:[#allocation3 + $0x18] sm:$0xff]  ;;  %9930 = vst.msk [vmem:[#allocation3 + $0x50] sm:$0xff] %vm2552_vm1, %v9866_v46  ;;  %v10700_v18 = vadd.f32 %v10405_v43, %v10054_v23  ;;  %v13065_v48 = vpop.f32.mrb[236].mxu1  ;;  %v10435_v20 = vpop.f32.mrb[237].mxu0 }
 0x33d   : > { %v10896_v50 = vadd.f32 %v15841_v36, %v10825_v17  ;;  %v10824_v28 = vld [vmem:[#allocation3 + $0x10] sm:$0xff]  ;;  %10765 = vst.msk [vmem:[#allocation3 + $0x38] sm:$0xff] %vm2552_vm1, %v10701_v42  ;;  %v9869_v22 = vadd.f32 %v13065_v48, %v9223_v10  ;;  %v9597_v29 = vpop.f32.mrb[237].mxu1  ;;  %v9231_v48 = vld [vmem:[#allocation3 + $0xa8] sm:$0xff] }
 0x33e   : > { %v10895_v6 = vadd.f32 %v15841_v36, %v10824_v28  ;;  %10764 = vst.msk [vmem:[#allocation3 + $0x30] sm:$0xff] %vm2552_vm1, %v10700_v18  ;;  %v9868_v31 = vadd.f32 %v9597_v29, %v9222_v26  ;;  %v10057_v8 = vld [vmem:[#allocation3 + $0x48] sm:$0xff]  ;;  %v9230_v29 = vld [vmem:[#allocation3 + $0xa0] sm:$0xff] }
 0x33f   : > { %10960 = vst.msk [vmem:[%s15848_s9 + $0x18] sm:$0xff] %vm2552_vm1, %v10896_v50  ;;  %9933 = vst.msk [vmem:[#allocation3 + $0x68] sm:$0xff] %vm2552_vm1, %v9869_v22  ;;  %v10703_v53 = vadd.f32 %v13157_v27, %v10057_v8  ;;  %v10056_v55 = vld [vmem:[#allocation3 + $0x40] sm:$0xff]  ;;  %v13166_v33 = vpop.f32.mrb[238].mxu0 }
 0x340   : > { %10959 = vst.msk [vmem:[%s15848_s9 + $0x10] sm:$0xff] %vm2552_vm1, %v10895_v6  ;;  %v10827_v16 = vld [vmem:[#allocation3 + $0x28] sm:$0xff]  ;;  %9932 = vst.msk [vmem:[#allocation3 + $0x60] sm:$0xff] %vm2552_vm1, %v9868_v31  ;;  %v10702_v13 = vadd.f32 %v10415_v54, %v10056_v55  ;;  %v13068_v24 = vpop.f32.mrb[238].mxu1  ;;  %v10445_v37 = vpop.f32.mrb[239].mxu0 }
 0x341   : > { %v10898_v2 = vadd.f32 %v15841_v36, %v10827_v16  ;;  %v10826_v35 = vld [vmem:[#allocation3 + $0x20] sm:$0xff]  ;;  %10767 = vst.msk [vmem:[#allocation3 + $0x48] sm:$0xff] %vm2552_vm1, %v10703_v53  ;;  %v9871_v59 = vadd.f32 %v13068_v24, %v9225_v9  ;;  %v9607_v34 = vpop.f32.mrb[239].mxu1  ;;  %v9233_v24 = vld [vmem:[#allocation3 + $0xb8] sm:$0xff] }
 0x342   : > { %v10897_v19 = vadd.f32 %v15841_v36, %v10826_v35  ;;  %10766 = vst.msk [vmem:[#allocation3 + $0x40] sm:$0xff] %vm2552_vm1, %v10702_v13  ;;  %v9870_v61 = vadd.f32 %v9607_v34, %v9224_v30  ;;  %v10059_v41 = vld [vmem:[#allocation3 + $0x58] sm:$0xff]  ;;  %v9232_v34 = vld [vmem:[#allocation3 + $0xb0] sm:$0xff] }
 0x343   : > { %10962 = vst.msk [vmem:[%s15848_s9 + $0x28] sm:$0xff] %vm2552_vm1, %v10898_v2  ;;  %9935 = vst.msk [vmem:[#allocation3 + $0x78] sm:$0xff] %vm2552_vm1, %v9871_v59  ;;  %v10705_v43 = vadd.f32 %v13160_v58, %v10059_v41  ;;  %v10058_v63 = vld [vmem:[#allocation3 + $0x50] sm:$0xff]  ;;  %v13169_v14 = vpop.f32.mrb[240].mxu0 }
 0x344   : > { %10961 = vst.msk [vmem:[%s15848_s9 + $0x20] sm:$0xff] %vm2552_vm1, %v10897_v19  ;;  %v10829_v32 = vld [vmem:[#allocation3 + $0x38] sm:$0xff]  ;;  %9934 = vst.msk [vmem:[#allocation3 + $0x70] sm:$0xff] %vm2552_vm1, %v9870_v61  ;;  %v10704_v45 = vadd.f32 %v10425_v1, %v10058_v63  ;;  %v13071_v57 = vpop.f32.mrb[240].mxu1  ;;  %v10455_v54 = vpop.f32.mrb[241].mxu0 }
 0x345   : > { %v10900_v49 = vadd.f32 %v15841_v36, %v10829_v32  ;;  %v10828_v27 = vld [vmem:[#allocation3 + $0x30] sm:$0xff]  ;;  %10769 = vst.msk [vmem:[#allocation3 + $0x58] sm:$0xff] %vm2552_vm1, %v10705_v43  ;;  %v9873_v51 = vadd.f32 %v13071_v57, %v9227_v52  ;;  %v9617_v4 = vpop.f32.mrb[241].mxu1  ;;  %v9235_v57 = vld [vmem:[#allocation3 + $0xc8] sm:$0xff] }
 0x346   : > { %v10899_v38 = vadd.f32 %v15841_v36, %v10828_v27  ;;  %10768 = vst.msk [vmem:[#allocation3 + $0x50] sm:$0xff] %vm2552_vm1, %v10704_v45  ;;  %v9872_v7 = vadd.f32 %v9617_v4, %v9226_v25  ;;  %v10061_v56 = vld [vmem:[#allocation3 + $0x68] sm:$0xff]  ;;  %v9234_v4 = vld [vmem:[#allocation3 + $0xc0] sm:$0xff] }
 0x347   : > { %10964 = vst.msk [vmem:[%s15848_s9 + $0x38] sm:$0xff] %vm2552_vm1, %v10900_v49  ;;  %9937 = vst.msk [vmem:[#allocation3 + $0x88] sm:$0xff] %vm2552_vm1, %v9873_v51  ;;  %v10707_v60 = vadd.f32 %v13163_v21, %v10061_v56  ;;  %v10060_v40 = vld [vmem:[#allocation3 + $0x60] sm:$0xff]  ;;  %v13172_v3 = vpop.f32.mrb[242].mxu0 }
 0x348   : > { %10963 = vst.msk [vmem:[%s15848_s9 + $0x30] sm:$0xff] %vm2552_vm1, %v10899_v38  ;;  %v10831_v15 = vld [vmem:[#allocation3 + $0x48] sm:$0xff]  ;;  %9936 = vst.msk [vmem:[#allocation3 + $0x80] sm:$0xff] %vm2552_vm1, %v9872_v7  ;;  %v10706_v39 = vadd.f32 %v10435_v20, %v10060_v40  ;;  %v13074_v58 = vpop.f32.mrb[242].mxu1  ;;  %v10465_v0 = vpop.f32.mrb[243].mxu0 }
 0x349   : > { %v10902_v62 = vadd.f32 %v15841_v36, %v10831_v15  ;;  %v10830_v12 = vld [vmem:[#allocation3 + $0x40] sm:$0xff]  ;;  %10771 = vst.msk [vmem:[#allocation3 + $0x68] sm:$0xff] %vm2552_vm1, %v10707_v60  ;;  %v9875_v47 = vadd.f32 %v13074_v58, %v9229_v11  ;;  %v9627_v1 = vpop.f32.mrb[243].mxu1  ;;  %v9237_v58 = vld [vmem:[#allocation3 + $0xd8] sm:$0xff] }
 0x34a   : > { %v10901_v46 = vadd.f32 %v15841_v36, %v10830_v12  ;;  %10770 = vst.msk [vmem:[#allocation3 + $0x60] sm:$0xff] %vm2552_vm1, %v10706_v39  ;;  %v9874_v5 = vadd.f32 %v9627_v1, %v9228_v44  ;;  %v10063_v42 = vld [vmem:[#allocation3 + $0x78] sm:$0xff]  ;;  %v9236_v1 = vld [vmem:[#allocation3 + $0xd0] sm:$0xff] }
 0x34b   : > { %10966 = vst.msk [vmem:[%s15848_s9 + $0x48] sm:$0xff] %vm2552_vm1, %v10902_v62  ;;  %9939 = vst.msk [vmem:[#allocation3 + $0x98] sm:$0xff] %vm2552_vm1, %v9875_v47  ;;  %v10709_v23 = vadd.f32 %v13166_v33, %v10063_v42  ;;  %v10062_v17 = vld [vmem:[#allocation3 + $0x70] sm:$0xff]  ;;  %v13175_v50 = vpop.f32.mrb[244].mxu0 }
 0x34c   : > { %10965 = vst.msk [vmem:[%s15848_s9 + $0x40] sm:$0xff] %vm2552_vm1, %v10901_v46  ;;  %v10833_v18 = vld [vmem:[#allocation3 + $0x58] sm:$0xff]  ;;  %9938 = vst.msk [vmem:[#allocation3 + $0x90] sm:$0xff] %vm2552_vm1, %v9874_v5  ;;  %v10708_v10 = vadd.f32 %v10445_v37, %v10062_v17  ;;  %v13077_v21 = vpop.f32.mrb[244].mxu1  ;;  %v10475_v6 = vpop.f32.mrb[245].mxu0 }
 0x34d   : > { %v10904_v28 = vadd.f32 %v15841_v36, %v10833_v18  ;;  %v10832_v22 = vld [vmem:[#allocation3 + $0x50] sm:$0xff]  ;;  %10773 = vst.msk [vmem:[#allocation3 + $0x78] sm:$0xff] %vm2552_vm1, %v10709_v23  ;;  %v9877_v26 = vadd.f32 %v13077_v21, %v9231_v48  ;;  %v9637_v20 = vpop.f32.mrb[245].mxu1  ;;  %v9239_v21 = vld [vmem:[#allocation3 + $0xe8] sm:$0xff] }
 0x34e   : > { %v10903_v31 = vadd.f32 %v15841_v36, %v10832_v22  ;;  %10772 = vst.msk [vmem:[#allocation3 + $0x70] sm:$0xff] %vm2552_vm1, %v10708_v10  ;;  %v9876_v8 = vadd.f32 %v9637_v20, %v9230_v29  ;;  %v10065_v53 = vld [vmem:[#allocation3 + $0x88] sm:$0xff]  ;;  %v9238_v20 = vld [vmem:[#allocation3 + $0xe0] sm:$0xff] }
 0x34f   : > { %10968 = vst.msk [vmem:[%s15848_s9 + $0x58] sm:$0xff] %vm2552_vm1, %v10904_v28  ;;  %9941 = vst.msk [vmem:[#allocation3 + $0xa8] sm:$0xff] %vm2552_vm1, %v9877_v26  ;;  %v10711_v55 = vadd.f32 %v13169_v14, %v10065_v53  ;;  %v10064_v16 = vld [vmem:[#allocation3 + $0x80] sm:$0xff]  ;;  %v13178_v2 = vpop.f32.mrb[246].mxu0 }
 0x350   : > { %10967 = vst.msk [vmem:[%s15848_s9 + $0x50] sm:$0xff] %vm2552_vm1, %v10903_v31  ;;  %v10835_v13 = vld [vmem:[#allocation3 + $0x68] sm:$0xff]  ;;  %9940 = vst.msk [vmem:[#allocation3 + $0xa0] sm:$0xff] %vm2552_vm1, %v9876_v8  ;;  %v10710_v9 = vadd.f32 %v10455_v54, %v10064_v16  ;;  %v13080_v33 = vpop.f32.mrb[246].mxu1  ;;  %v10485_v19 = vpop.f32.mrb[247].mxu0 }
 0x351   : > { %v10906_v35 = vadd.f32 %v15841_v36, %v10835_v13  ;;  %v10834_v59 = vld [vmem:[#allocation3 + $0x60] sm:$0xff]  ;;  %10775 = vst.msk [vmem:[#allocation3 + $0x88] sm:$0xff] %vm2552_vm1, %v10711_v55  ;;  %v9879_v30 = vadd.f32 %v13080_v33, %v9233_v24  ;;  %v9647_v37 = vpop.f32.mrb[247].mxu1  ;;  %v9241_v33 = vld [vmem:[#allocation3 + $0xf8] sm:$0xff] }
 0x352   : > { %v10905_v61 = vadd.f32 %v15841_v36, %v10834_v59  ;;  %10774 = vst.msk [vmem:[#allocation3 + $0x80] sm:$0xff] %vm2552_vm1, %v10710_v9  ;;  %v9878_v41 = vadd.f32 %v9647_v37, %v9232_v34  ;;  %v10067_v43 = vld [vmem:[#allocation3 + $0x98] sm:$0xff]  ;;  %v9240_v37 = vld [vmem:[#allocation3 + $0xf0] sm:$0xff] }
 0x353   : > { %10970 = vst.msk [vmem:[%s15848_s9 + $0x68] sm:$0xff] %vm2552_vm1, %v10906_v35  ;;  %9943 = vst.msk [vmem:[#allocation3 + $0xb8] sm:$0xff] %vm2552_vm1, %v9879_v30  ;;  %v10713_v63 = vadd.f32 %v13172_v3, %v10067_v43  ;;  %v10066_v32 = vld [vmem:[#allocation3 + $0x90] sm:$0xff]  ;;  %v13181_v49 = vpop.f32.mrb[248].mxu0 }
 0x354   : > { %10969 = vst.msk [vmem:[%s15848_s9 + $0x60] sm:$0xff] %vm2552_vm1, %v10905_v61  ;;  %v10837_v45 = vld [vmem:[#allocation3 + $0x78] sm:$0xff]  ;;  %9942 = vst.msk [vmem:[#allocation3 + $0xb0] sm:$0xff] %vm2552_vm1, %v9878_v41  ;;  %v10712_v52 = vadd.f32 %v10465_v0, %v10066_v32  ;;  %v13083_v14 = vpop.f32.mrb[248].mxu1  ;;  %v10495_v38 = vpop.f32.mrb[249].mxu0 }
 0x355   : > { %v10908_v27 = vadd.f32 %v15841_v36, %v10837_v45  ;;  %v10836_v51 = vld [vmem:[#allocation3 + $0x70] sm:$0xff]  ;;  %10777 = vst.msk [vmem:[#allocation3 + $0x98] sm:$0xff] %vm2552_vm1, %v10713_v63  ;;  %v9881_v25 = vadd.f32 %v13083_v14, %v9235_v57  ;;  %v9657_v54 = vpop.f32.mrb[249].mxu1  ;;  %v9243_v14 = vld [vmem:[#allocation3 + $0x108] sm:$0xff] }
 0x356   : > { %v10907_v7 = vadd.f32 %v15841_v36, %v10836_v51  ;;  %10776 = vst.msk [vmem:[#allocation3 + $0x90] sm:$0xff] %vm2552_vm1, %v10712_v52  ;;  %v9880_v56 = vadd.f32 %v9657_v54, %v9234_v4  ;;  %v10069_v60 = vld [vmem:[#allocation3 + $0xa8] sm:$0xff]  ;;  %v9242_v54 = vld [vmem:[#allocation3 + $0x100] sm:$0xff] }
 0x357   : > { %10972 = vst.msk [vmem:[%s15848_s9 + $0x78] sm:$0xff] %vm2552_vm1, %v10908_v27  ;;  %9945 = vst.msk [vmem:[#allocation3 + $0xc8] sm:$0xff] %vm2552_vm1, %v9881_v25  ;;  %v10715_v40 = vadd.f32 %v13175_v50, %v10069_v60  ;;  %v10068_v15 = vld [vmem:[#allocation3 + $0xa0] sm:$0xff]  ;;  %v13184_v62 = vpop.f32.mrb[250].mxu0 }
 0x358   : > { %10971 = vst.msk [vmem:[%s15848_s9 + $0x70] sm:$0xff] %vm2552_vm1, %v10907_v7  ;;  %v10839_v39 = vld [vmem:[#allocation3 + $0x88] sm:$0xff]  ;;  %9944 = vst.msk [vmem:[#allocation3 + $0xc0] sm:$0xff] %vm2552_vm1, %v9880_v56  ;;  %v10714_v11 = vadd.f32 %v10475_v6, %v10068_v15  ;;  %v13086_v3 = vpop.f32.mrb[250].mxu1  ;;  %v10505_v46 = vpop.f32.mrb[251].mxu0 }
 0x359   : > { %v10910_v12 = vadd.f32 %v15841_v36, %v10839_v39  ;;  %v10838_v47 = vld [vmem:[#allocation3 + $0x80] sm:$0xff]  ;;  %10779 = vst.msk [vmem:[#allocation3 + $0xa8] sm:$0xff] %vm2552_vm1, %v10715_v40  ;;  %v9883_v44 = vadd.f32 %v13086_v3, %v9237_v58  ;;  %v9667_v0 = vpop.f32.mrb[251].mxu1  ;;  %v9245_v3 = vld [vmem:[#allocation3 + $0x118] sm:$0xff] }
 0x35a   : > { %v10909_v5 = vadd.f32 %v15841_v36, %v10838_v47  ;;  %10778 = vst.msk [vmem:[#allocation3 + $0xa0] sm:$0xff] %vm2552_vm1, %v10714_v11  ;;  %v9882_v42 = vadd.f32 %v9667_v0, %v9236_v1  ;;  %v10071_v23 = vld [vmem:[#allocation3 + $0xb8] sm:$0xff]  ;;  %v9244_v0 = vld [vmem:[#allocation3 + $0x110] sm:$0xff] }
 0x35b   : > { %10974 = vst.msk [vmem:[%s15848_s9 + $0x88] sm:$0xff] %vm2552_vm1, %v10910_v12  ;;  %9947 = vst.msk [vmem:[#allocation3 + $0xd8] sm:$0xff] %vm2552_vm1, %v9883_v44  ;;  %v10717_v17 = vadd.f32 %v13178_v2, %v10071_v23  ;;  %v10070_v18 = vld [vmem:[#allocation3 + $0xb0] sm:$0xff]  ;;  %v13187_v28 = vpop.f32.mrb[252].mxu0 }
 0x35c   : > { %10973 = vst.msk [vmem:[%s15848_s9 + $0x80] sm:$0xff] %vm2552_vm1, %v10909_v5  ;;  %v10841_v10 = vld [vmem:[#allocation3 + $0x98] sm:$0xff]  ;;  %9946 = vst.msk [vmem:[#allocation3 + $0xd0] sm:$0xff] %vm2552_vm1, %v9882_v42  ;;  %v10716_v48 = vadd.f32 %v10485_v19, %v10070_v18  ;;  %v13089_v50 = vpop.f32.mrb[252].mxu1  ;;  %v10515_v31 = vpop.f32.mrb[253].mxu0 }
 0x35d   : > { %v10912_v22 = vadd.f32 %v15841_v36, %v10841_v10  ;;  %v10840_v26 = vld [vmem:[#allocation3 + $0x90] sm:$0xff]  ;;  %10781 = vst.msk [vmem:[#allocation3 + $0xb8] sm:$0xff] %vm2552_vm1, %v10717_v17  ;;  %v9885_v29 = vadd.f32 %v13089_v50, %v9239_v21  ;;  %v9677_v6 = vpop.f32.mrb[253].mxu1  ;;  %v9247_v50 = vld [vmem:[#allocation3 + $0x128] sm:$0xff] }
 0x35e   : > { %v10911_v8 = vadd.f32 %v15841_v36, %v10840_v26  ;;  %10780 = vst.msk [vmem:[#allocation3 + $0xb0] sm:$0xff] %vm2552_vm1, %v10716_v48  ;;  %v9884_v53 = vadd.f32 %v9677_v6, %v9238_v20  ;;  %v10073_v55 = vld [vmem:[#allocation3 + $0xc8] sm:$0xff]  ;;  %v9246_v6 = vld [vmem:[#allocation3 + $0x120] sm:$0xff] }
 0x35f   : > { %10976 = vst.msk [vmem:[%s15848_s9 + $0x98] sm:$0xff] %vm2552_vm1, %v10912_v22  ;;  %9949 = vst.msk [vmem:[#allocation3 + $0xe8] sm:$0xff] %vm2552_vm1, %v9885_v29  ;;  %v10719_v16 = vadd.f32 %v13181_v49, %v10073_v55  ;;  %v10072_v13 = vld [vmem:[#allocation3 + $0xc0] sm:$0xff]  ;;  %v13190_v35 = vpop.f32.mrb[254].mxu0 }
 0x360   : > { %10975 = vst.msk [vmem:[%s15848_s9 + $0x90] sm:$0xff] %vm2552_vm1, %v10911_v8  ;;  %v10843_v9 = vld [vmem:[#allocation3 + $0xa8] sm:$0xff]  ;;  %9948 = vst.msk [vmem:[#allocation3 + $0xe0] sm:$0xff] %vm2552_vm1, %v9884_v53  ;;  %v10718_v24 = vadd.f32 %v10495_v38, %v10072_v13  ;;  %v13092_v2 = vpop.f32.mrb[254].mxu1  ;;  %v10525_v61 = vpop.f32.mrb[255].mxu0 }
 0x361   : > { %v10914_v59 = vadd.f32 %v15841_v36, %v10843_v9  ;;  %v10842_v30 = vld [vmem:[#allocation3 + $0xa0] sm:$0xff]  ;;  %10783 = vst.msk [vmem:[#allocation3 + $0xc8] sm:$0xff] %vm2552_vm1, %v10719_v16  ;;  %v9887_v34 = vadd.f32 %v13092_v2, %v9241_v33  ;;  %v9687_v19 = vpop.f32.mrb[255].mxu1  ;;  %v9249_v2 = vld [vmem:[#allocation3 + $0x138] sm:$0xff] }
 0x362   : > { %v10913_v41 = vadd.f32 %v15841_v36, %v10842_v30  ;;  %10782 = vst.msk [vmem:[#allocation3 + $0xc0] sm:$0xff] %vm2552_vm1, %v10718_v24  ;;  %v9886_v43 = vadd.f32 %v9687_v19, %v9240_v37  ;;  %v10075_v63 = vld [vmem:[#allocation3 + $0xd8] sm:$0xff]  ;;  %v9248_v19 = vld [vmem:[#allocation3 + $0x130] sm:$0xff] }
 0x363   : > { %10978 = vst.msk [vmem:[%s15848_s9 + $0xa8] sm:$0xff] %vm2552_vm1, %v10914_v59  ;;  %9951 = vst.msk [vmem:[#allocation3 + $0xf8] sm:$0xff] %vm2552_vm1, %v9887_v34  ;;  %v10721_v32 = vadd.f32 %v13184_v62, %v10075_v63  ;;  %v10074_v45 = vld [vmem:[#allocation3 + $0xd0] sm:$0xff]  ;;  %v13193_v27 = vpop.f32.mrb[0].mxu0 }
 0x364   : > { %10977 = vst.msk [vmem:[%s15848_s9 + $0xa0] sm:$0xff] %vm2552_vm1, %v10913_v41  ;;  %v10845_v52 = vld [vmem:[#allocation3 + $0xb8] sm:$0xff]  ;;  %9950 = vst.msk [vmem:[#allocation3 + $0xf0] sm:$0xff] %vm2552_vm1, %v9886_v43  ;;  %v10720_v57 = vadd.f32 %v10505_v46, %v10074_v45  ;;  %v13095_v49 = vpop.f32.mrb[0].mxu1  ;;  %v10535_v7 = vpop.f32.mrb[1].mxu0 }
 0x365   : > { %v10916_v51 = vadd.f32 %v15841_v36, %v10845_v52  ;;  %v10844_v25 = vld [vmem:[#allocation3 + $0xb0] sm:$0xff]  ;;  %10785 = vst.msk [vmem:[#allocation3 + $0xd8] sm:$0xff] %vm2552_vm1, %v10721_v32  ;;  %v9889_v4 = vadd.f32 %v13095_v49, %v9243_v14  ;;  %v9697_v38 = vpop.f32.mrb[1].mxu1  ;;  %v9251_v49 = vld [vmem:[#allocation3 + $0x148] sm:$0xff] }
 0x366   : > { %v10915_v56 = vadd.f32 %v15841_v36, %v10844_v25  ;;  %10784 = vst.msk [vmem:[#allocation3 + $0xd0] sm:$0xff] %vm2552_vm1, %v10720_v57  ;;  %v9888_v60 = vadd.f32 %v9697_v38, %v9242_v54  ;;  %v10077_v40 = vld [vmem:[#allocation3 + $0xe8] sm:$0xff]  ;;  %v9250_v38 = vld [vmem:[#allocation3 + $0x140] sm:$0xff] }
 0x367   : > { %10980 = vst.msk [vmem:[%s15848_s9 + $0xb8] sm:$0xff] %vm2552_vm1, %v10916_v51  ;;  %9953 = vst.msk [vmem:[#allocation3 + $0x108] sm:$0xff] %vm2552_vm1, %v9889_v4  ;;  %v10723_v15 = vadd.f32 %v13187_v28, %v10077_v40  ;;  %v10076_v39 = vld [vmem:[#allocation3 + $0xe0] sm:$0xff]  ;;  %v13196_v12 = vpop.f32.mrb[2].mxu0 }
 0x368   : > { %10979 = vst.msk [vmem:[%s15848_s9 + $0xb0] sm:$0xff] %vm2552_vm1, %v10915_v56  ;;  %v10847_v11 = vld [vmem:[#allocation3 + $0xc8] sm:$0xff]  ;;  %9952 = vst.msk [vmem:[#allocation3 + $0x100] sm:$0xff] %vm2552_vm1, %v9888_v60  ;;  %v10722_v58 = vadd.f32 %v10515_v31, %v10076_v39  ;;  %v13098_v62 = vpop.f32.mrb[2].mxu1  ;;  %v10545_v5 = vpop.f32.mrb[3].mxu0 }
 0x369   : > { %v10918_v47 = vadd.f32 %v15841_v36, %v10847_v11  ;;  %v10846_v44 = vld [vmem:[#allocation3 + $0xc0] sm:$0xff]  ;;  %10787 = vst.msk [vmem:[#allocation3 + $0xe8] sm:$0xff] %vm2552_vm1, %v10723_v15  ;;  %v9891_v1 = vadd.f32 %v13098_v62, %v9245_v3  ;;  %v9707_v46 = vpop.f32.mrb[3].mxu1  ;;  %v9253_v62 = vld [vmem:[#allocation3 + $0x158] sm:$0xff] }
 0x36a   : > { %v10917_v42 = vadd.f32 %v15841_v36, %v10846_v44  ;;  %10786 = vst.msk [vmem:[#allocation3 + $0xe0] sm:$0xff] %vm2552_vm1, %v10722_v58  ;;  %v9890_v23 = vadd.f32 %v9707_v46, %v9244_v0  ;;  %v10079_v17 = vld [vmem:[#allocation3 + $0xf8] sm:$0xff]  ;;  %v9252_v46 = vld [vmem:[#allocation3 + $0x150] sm:$0xff] }
 0x36b   : > { %10982 = vst.msk [vmem:[%s15848_s9 + $0xc8] sm:$0xff] %vm2552_vm1, %v10918_v47  ;;  %9955 = vst.msk [vmem:[#allocation3 + $0x118] sm:$0xff] %vm2552_vm1, %v9891_v1  ;;  %v10725_v18 = vadd.f32 %v13190_v35, %v10079_v17  ;;  %v10078_v10 = vld [vmem:[#allocation3 + $0xf0] sm:$0xff]  ;;  %v13199_v22 = vpop.f32.mrb[4].mxu0 }
 0x36c   : > { %10981 = vst.msk [vmem:[%s15848_s9 + $0xc0] sm:$0xff] %vm2552_vm1, %v10917_v42  ;;  %v10849_v48 = vld [vmem:[#allocation3 + $0xd8] sm:$0xff]  ;;  %9954 = vst.msk [vmem:[#allocation3 + $0x110] sm:$0xff] %vm2552_vm1, %v9890_v23  ;;  %v10724_v21 = vadd.f32 %v10525_v61, %v10078_v10  ;;  %v13101_v28 = vpop.f32.mrb[4].mxu1  ;;  %v10555_v8 = vpop.f32.mrb[5].mxu0 }
 0x36d   : > { %v10920_v26 = vadd.f32 %v15841_v36, %v10849_v48  ;;  %v10848_v29 = vld [vmem:[#allocation3 + $0xd0] sm:$0xff]  ;;  %10789 = vst.msk [vmem:[#allocation3 + $0xf8] sm:$0xff] %vm2552_vm1, %v10725_v18  ;;  %v9893_v20 = vadd.f32 %v13101_v28, %v9247_v50  ;;  %v9717_v31 = vpop.f32.mrb[5].mxu1  ;;  %v9255_v28 = vld [vmem:[#allocation3 + $0x168] sm:$0xff] }
 0x36e   : > { %v10919_v53 = vadd.f32 %v15841_v36, %v10848_v29  ;;  %10788 = vst.msk [vmem:[#allocation3 + $0xf0] sm:$0xff] %vm2552_vm1, %v10724_v21  ;;  %v9892_v55 = vadd.f32 %v9717_v31, %v9246_v6  ;;  %v10081_v16 = vld [vmem:[#allocation3 + $0x108] sm:$0xff]  ;;  %v9254_v31 = vld [vmem:[#allocation3 + $0x160] sm:$0xff] }
 0x36f   : > { %10984 = vst.msk [vmem:[%s15848_s9 + $0xd8] sm:$0xff] %vm2552_vm1, %v10920_v26  ;;  %9957 = vst.msk [vmem:[#allocation3 + $0x128] sm:$0xff] %vm2552_vm1, %v9893_v20  ;;  %v10727_v13 = vadd.f32 %v13193_v27, %v10081_v16  ;;  %v10080_v9 = vld [vmem:[#allocation3 + $0x100] sm:$0xff]  ;;  %v13202_v59 = vpop.f32.mrb[6].mxu0 }
 0x370   : > { %10983 = vst.msk [vmem:[%s15848_s9 + $0xd0] sm:$0xff] %vm2552_vm1, %v10919_v53  ;;  %v10851_v24 = vld [vmem:[#allocation3 + $0xe8] sm:$0xff]  ;;  %9956 = vst.msk [vmem:[#allocation3 + $0x120] sm:$0xff] %vm2552_vm1, %v9892_v55  ;;  %v10726_v33 = vadd.f32 %v10535_v7, %v10080_v9  ;;  %v13104_v35 = vpop.f32.mrb[6].mxu1  ;;  %v10565_v41 = vpop.f32.mrb[7].mxu0 }
 0x371   : > { %v10922_v30 = vadd.f32 %v15841_v36, %v10851_v24  ;;  %v10850_v34 = vld [vmem:[#allocation3 + $0xe0] sm:$0xff]  ;;  %10791 = vst.msk [vmem:[#allocation3 + $0x108] sm:$0xff] %vm2552_vm1, %v10727_v13  ;;  %v9895_v37 = vadd.f32 %v13104_v35, %v9249_v2  ;;  %v9727_v61 = vpop.f32.mrb[7].mxu1  ;;  %v9257_v35 = vld [vmem:[#allocation3 + $0x178] sm:$0xff] }
 0x372   : > { %v10921_v43 = vadd.f32 %v15841_v36, %v10850_v34  ;;  %10790 = vst.msk [vmem:[#allocation3 + $0x100] sm:$0xff] %vm2552_vm1, %v10726_v33  ;;  %v9894_v63 = vadd.f32 %v9727_v61, %v9248_v19  ;;  %v10083_v32 = vld [vmem:[#allocation3 + $0x118] sm:$0xff]  ;;  %v9256_v61 = vld [vmem:[#allocation3 + $0x170] sm:$0xff] }
 0x373   : > { %10986 = vst.msk [vmem:[%s15848_s9 + $0xe8] sm:$0xff] %vm2552_vm1, %v10922_v30  ;;  %9959 = vst.msk [vmem:[#allocation3 + $0x138] sm:$0xff] %vm2552_vm1, %v9895_v37  ;;  %v10729_v45 = vadd.f32 %v13196_v12, %v10083_v32  ;;  %v10082_v52 = vld [vmem:[#allocation3 + $0x110] sm:$0xff]  ;;  %v13205_v51 = vpop.f32.mrb[8].mxu0 }
 0x374   : > { %10985 = vst.msk [vmem:[%s15848_s9 + $0xe0] sm:$0xff] %vm2552_vm1, %v10921_v43  ;;  %v10853_v57 = vld [vmem:[#allocation3 + $0xf8] sm:$0xff]  ;;  %9958 = vst.msk [vmem:[#allocation3 + $0x130] sm:$0xff] %vm2552_vm1, %v9894_v63  ;;  %v10728_v14 = vadd.f32 %v10545_v5, %v10082_v52  ;;  %v13107_v27 = vpop.f32.mrb[8].mxu1  ;;  %v10575_v56 = vpop.f32.mrb[9].mxu0 }
 0x375   : > { %v10924_v25 = vadd.f32 %v15841_v36, %v10853_v57  ;;  %v10852_v4 = vld [vmem:[#allocation3 + $0xf0] sm:$0xff]  ;;  %10793 = vst.msk [vmem:[#allocation3 + $0x118] sm:$0xff] %vm2552_vm1, %v10729_v45  ;;  %v9897_v54 = vadd.f32 %v13107_v27, %v9251_v49  ;;  %v9737_v7 = vpop.f32.mrb[9].mxu1  ;;  %v9259_v27 = vld [vmem:[#allocation3 + $0x188] sm:$0xff] }
 0x376   : > { %v10923_v60 = vadd.f32 %v15841_v36, %v10852_v4  ;;  %10792 = vst.msk [vmem:[#allocation3 + $0x110] sm:$0xff] %vm2552_vm1, %v10728_v14  ;;  %v9896_v40 = vadd.f32 %v9737_v7, %v9250_v38  ;;  %v10085_v15 = vld [vmem:[#allocation3 + $0x128] sm:$0xff]  ;;  %v9258_v7 = vld [vmem:[#allocation3 + $0x180] sm:$0xff] }
 0x377   : > { %10988 = vst.msk [vmem:[%s15848_s9 + $0xf8] sm:$0xff] %vm2552_vm1, %v10924_v25  ;;  %9961 = vst.msk [vmem:[#allocation3 + $0x148] sm:$0xff] %vm2552_vm1, %v9897_v54  ;;  %v10731_v39 = vadd.f32 %v13199_v22, %v10085_v15  ;;  %v10084_v11 = vld [vmem:[#allocation3 + $0x120] sm:$0xff]  ;;  %v13208_v47 = vpop.f32.mrb[10].mxu0 }
 0x378   : > { %10987 = vst.msk [vmem:[%s15848_s9 + $0xf0] sm:$0xff] %vm2552_vm1, %v10923_v60  ;;  %v10855_v58 = vld [vmem:[#allocation3 + $0x108] sm:$0xff]  ;;  %9960 = vst.msk [vmem:[#allocation3 + $0x140] sm:$0xff] %vm2552_vm1, %v9896_v40  ;;  %v10730_v3 = vadd.f32 %v10555_v8, %v10084_v11  ;;  %v13110_v12 = vpop.f32.mrb[10].mxu1  ;;  %v10585_v42 = vpop.f32.mrb[11].mxu0 }
 0x379   : > { %v10926_v44 = vadd.f32 %v15841_v36, %v10855_v58  ;;  %v10854_v1 = vld [vmem:[#allocation3 + $0x100] sm:$0xff]  ;;  %10795 = vst.msk [vmem:[#allocation3 + $0x128] sm:$0xff] %vm2552_vm1, %v10731_v39  ;;  %v9899_v0 = vadd.f32 %v13110_v12, %v9253_v62  ;;  %v9747_v5 = vpop.f32.mrb[11].mxu1  ;;  %v9261_v12 = vld [vmem:[#allocation3 + $0x198] sm:$0xff] }
 0x37a   : > { %v10925_v23 = vadd.f32 %v15841_v36, %v10854_v1  ;;  %10794 = vst.msk [vmem:[#allocation3 + $0x120] sm:$0xff] %vm2552_vm1, %v10730_v3  ;;  %v9898_v17 = vadd.f32 %v9747_v5, %v9252_v46  ;;  %v10087_v18 = vld [vmem:[#allocation3 + $0x138] sm:$0xff]  ;;  %v9260_v5 = vld [vmem:[#allocation3 + $0x190] sm:$0xff] }
 0x37b   : > { %10990 = vst.msk [vmem:[%s15848_s9 + $0x108] sm:$0xff] %vm2552_vm1, %v10926_v44  ;;  %9963 = vst.msk [vmem:[#allocation3 + $0x158] sm:$0xff] %vm2552_vm1, %v9899_v0  ;;  %v10733_v10 = vadd.f32 %v13202_v59, %v10087_v18  ;;  %v10086_v48 = vld [vmem:[#allocation3 + $0x130] sm:$0xff]  ;;  %v13211_v26 = vpop.f32.mrb[12].mxu0 }
 0x37c   : > { %10989 = vst.msk [vmem:[%s15848_s9 + $0x100] sm:$0xff] %vm2552_vm1, %v10925_v23  ;;  %v10857_v21 = vld [vmem:[#allocation3 + $0x118] sm:$0xff]  ;;  %9962 = vst.msk [vmem:[#allocation3 + $0x150] sm:$0xff] %vm2552_vm1, %v9898_v17  ;;  %v10732_v50 = vadd.f32 %v10565_v41, %v10086_v48  ;;  %v13113_v22 = vpop.f32.mrb[12].mxu1  ;;  %v10595_v53 = vpop.f32.mrb[13].mxu0 }
 0x37d   : > { %v10928_v29 = vadd.f32 %v15841_v36, %v10857_v21  ;;  %v10856_v20 = vld [vmem:[#allocation3 + $0x110] sm:$0xff]  ;;  %10797 = vst.msk [vmem:[#allocation3 + $0x138] sm:$0xff] %vm2552_vm1, %v10733_v10  ;;  %v9901_v6 = vadd.f32 %v13113_v22, %v9255_v28  ;;  %v9757_v8 = vpop.f32.mrb[13].mxu1  ;;  %v9263_v22 = vld [vmem:[#allocation3 + $0x1a8] sm:$0xff] }
 0x37e   : > { %v10927_v55 = vadd.f32 %v15841_v36, %v10856_v20  ;;  %10796 = vst.msk [vmem:[#allocation3 + $0x130] sm:$0xff] %vm2552_vm1, %v10732_v50  ;;  %v9900_v16 = vadd.f32 %v9757_v8, %v9254_v31  ;;  %v10089_v13 = vld [vmem:[#allocation3 + $0x148] sm:$0xff]  ;;  %v9262_v8 = vld [vmem:[#allocation3 + $0x1a0] sm:$0xff] }
 0x37f   : > { %10992 = vst.msk [vmem:[%s15848_s9 + $0x118] sm:$0xff] %vm2552_vm1, %v10928_v29  ;;  %9965 = vst.msk [vmem:[#allocation3 + $0x168] sm:$0xff] %vm2552_vm1, %v9901_v6  ;;  %v10735_v9 = vadd.f32 %v13205_v51, %v10089_v13  ;;  %v10088_v24 = vld [vmem:[#allocation3 + $0x140] sm:$0xff]  ;;  %v13214_v30 = vpop.f32.mrb[14].mxu0 }
 0x380   : > { %10991 = vst.msk [vmem:[%s15848_s9 + $0x110] sm:$0xff] %vm2552_vm1, %v10927_v55  ;;  %v10859_v33 = vld [vmem:[#allocation3 + $0x128] sm:$0xff]  ;;  %9964 = vst.msk [vmem:[#allocation3 + $0x160] sm:$0xff] %vm2552_vm1, %v9900_v16  ;;  %v10734_v2 = vadd.f32 %v10575_v56, %v10088_v24  ;;  %v13116_v59 = vpop.f32.mrb[14].mxu1  ;;  %v10605_v43 = vpop.f32.mrb[15].mxu0 }
 0x381   : > { %v10930_v34 = vadd.f32 %v15841_v36, %v10859_v33  ;;  %v10858_v37 = vld [vmem:[#allocation3 + $0x120] sm:$0xff]  ;;  %10799 = vst.msk [vmem:[#allocation3 + $0x148] sm:$0xff] %vm2552_vm1, %v10735_v9  ;;  %v9903_v19 = vadd.f32 %v13116_v59, %v9257_v35  ;;  %v9767_v41 = vpop.f32.mrb[15].mxu1  ;;  %v9265_v59 = vld [vmem:[#allocation3 + $0x1b8] sm:$0xff] }
 0x382   : > { %v10929_v63 = vadd.f32 %v15841_v36, %v10858_v37  ;;  %10798 = vst.msk [vmem:[#allocation3 + $0x140] sm:$0xff] %vm2552_vm1, %v10734_v2  ;;  %v9902_v32 = vadd.f32 %v9767_v41, %v9256_v61  ;;  %v10091_v45 = vld [vmem:[#allocation3 + $0x158] sm:$0xff]  ;;  %v9264_v41 = vld [vmem:[#allocation3 + $0x1b0] sm:$0xff] }
 0x383   : > { %10994 = vst.msk [vmem:[%s15848_s9 + $0x128] sm:$0xff] %vm2552_vm1, %v10930_v34  ;;  %9967 = vst.msk [vmem:[#allocation3 + $0x178] sm:$0xff] %vm2552_vm1, %v9903_v19  ;;  %v10737_v52 = vadd.f32 %v13208_v47, %v10091_v45  ;;  %v10090_v57 = vld [vmem:[#allocation3 + $0x150] sm:$0xff]  ;;  %v13217_v25 = vpop.f32.mrb[16].mxu0 }
 0x384   : > { %10993 = vst.msk [vmem:[%s15848_s9 + $0x120] sm:$0xff] %vm2552_vm1, %v10929_v63  ;;  %v10861_v14 = vld [vmem:[#allocation3 + $0x138] sm:$0xff]  ;;  %9966 = vst.msk [vmem:[#allocation3 + $0x170] sm:$0xff] %vm2552_vm1, %v9902_v32  ;;  %v10736_v49 = vadd.f32 %v10585_v42, %v10090_v57  ;;  %v13119_v51 = vpop.f32.mrb[16].mxu1  ;;  %v10615_v60 = vpop.f32.mrb[17].mxu0 }
 0x385   : > { %v10932_v4 = vadd.f32 %v15841_v36, %v10861_v14  ;;  %v10860_v54 = vld [vmem:[#allocation3 + $0x130] sm:$0xff]  ;;  %10801 = vst.msk [vmem:[#allocation3 + $0x158] sm:$0xff] %vm2552_vm1, %v10737_v52  ;;  %v9905_v38 = vadd.f32 %v13119_v51, %v9259_v27  ;;  %v9777_v56 = vpop.f32.mrb[17].mxu1  ;;  %v9267_v51 = vld [vmem:[#allocation3 + $0x1c8] sm:$0xff] }
 0x386   : > { %v10931_v40 = vadd.f32 %v15841_v36, %v10860_v54  ;;  %10800 = vst.msk [vmem:[#allocation3 + $0x150] sm:$0xff] %vm2552_vm1, %v10736_v49  ;;  %v9904_v15 = vadd.f32 %v9777_v56, %v9258_v7  ;;  %v10093_v39 = vld [vmem:[#allocation3 + $0x168] sm:$0xff]  ;;  %v9266_v56 = vld [vmem:[#allocation3 + $0x1c0] sm:$0xff] }
 0x387   : > { %10996 = vst.msk [vmem:[%s15848_s9 + $0x138] sm:$0xff] %vm2552_vm1, %v10932_v4  ;;  %9969 = vst.msk [vmem:[#allocation3 + $0x188] sm:$0xff] %vm2552_vm1, %v9905_v38  ;;  %v10739_v11 = vadd.f32 %v13211_v26, %v10093_v39  ;;  %v10092_v58 = vld [vmem:[#allocation3 + $0x160] sm:$0xff]  ;;  %v13220_v44 = vpop.f32.mrb[18].mxu0 }
 0x388   : > { %10995 = vst.msk [vmem:[%s15848_s9 + $0x130] sm:$0xff] %vm2552_vm1, %v10931_v40  ;;  %v10863_v3 = vld [vmem:[#allocation3 + $0x148] sm:$0xff]  ;;  %9968 = vst.msk [vmem:[#allocation3 + $0x180] sm:$0xff] %vm2552_vm1, %v9904_v15  ;;  %v10738_v62 = vadd.f32 %v10595_v53, %v10092_v58  ;;  %v13122_v47 = vpop.f32.mrb[18].mxu1  ;;  %v10625_v23 = vpop.f32.mrb[19].mxu0 }
 0x389   : > { %v10934_v1 = vadd.f32 %v15841_v36, %v10863_v3  ;;  %v10862_v0 = vld [vmem:[#allocation3 + $0x140] sm:$0xff]  ;;  %10803 = vst.msk [vmem:[#allocation3 + $0x168] sm:$0xff] %vm2552_vm1, %v10739_v11  ;;  %v9907_v46 = vadd.f32 %v13122_v47, %v9261_v12  ;;  %v9787_v42 = vpop.f32.mrb[19].mxu1  ;;  %v9269_v47 = vld [vmem:[#allocation3 + $0x1d8] sm:$0xff] }
 0x38a   : > { %v10933_v17 = vadd.f32 %v15841_v36, %v10862_v0  ;;  %10802 = vst.msk [vmem:[#allocation3 + $0x160] sm:$0xff] %vm2552_vm1, %v10738_v62  ;;  %v9906_v18 = vadd.f32 %v9787_v42, %v9260_v5  ;;  %v10095_v10 = vld [vmem:[#allocation3 + $0x178] sm:$0xff]  ;;  %v16084_v4 = vld [vmem:[%s16180_s3] ss:$0 sm:$0xff]  ;;  %v9268_v42 = vld [vmem:[#allocation3 + $0x1d0] sm:$0xff] }
 0x38b   : > { %10998 = vst.msk [vmem:[%s15848_s9 + $0x148] sm:$0xff] %vm2552_vm1, %v10934_v1  ;;  %9971 = vst.msk [vmem:[#allocation3 + $0x198] sm:$0xff] %vm2552_vm1, %v9907_v46  ;;  %v10741_v48 = vadd.f32 %v13214_v30, %v10095_v10  ;;  %v10094_v21 = vld [vmem:[#allocation3 + $0x170] sm:$0xff]  ;;  %v13223_v29 = vpop.f32.mrb[20].mxu0 }
 0x38c   : > { %10997 = vst.msk [vmem:[%s15848_s9 + $0x140] sm:$0xff] %vm2552_vm1, %v10933_v17  ;;  %v10865_v50 = vld [vmem:[#allocation3 + $0x158] sm:$0xff]  ;;  %9970 = vst.msk [vmem:[#allocation3 + $0x190] sm:$0xff] %vm2552_vm1, %v9906_v18  ;;  %v10740_v28 = vadd.f32 %v10605_v43, %v10094_v21  ;;  %v13125_v26 = vpop.f32.mrb[20].mxu1  ;;  %v10635_v55 = vpop.f32.mrb[21].mxu0 }
 0x38d   : > { %v10936_v20 = vadd.f32 %v15841_v36, %v10865_v50  ;;  %v10864_v6 = vld [vmem:[#allocation3 + $0x150] sm:$0xff]  ;;  %10805 = vst.msk [vmem:[#allocation3 + $0x178] sm:$0xff] %vm2552_vm1, %v10741_v48  ;;  %v9909_v31 = vadd.f32 %v13125_v26, %v9263_v22  ;;  %v9797_v53 = vpop.f32.mrb[21].mxu1  ;;  %v9271_v26 = vld [vmem:[#allocation3 + $0x1e8] sm:$0xff] }
 0x38e   : > { %v10935_v16 = vadd.f32 %v15841_v36, %v10864_v6  ;;  %10804 = vst.msk [vmem:[#allocation3 + $0x170] sm:$0xff] %vm2552_vm1, %v10740_v28  ;;  %v9908_v13 = vadd.f32 %v9797_v53, %v9262_v8  ;;  %v10097_v9 = vld [vmem:[#allocation3 + $0x188] sm:$0xff]  ;;  %v9270_v53 = vld [vmem:[#allocation3 + $0x1e0] sm:$0xff] }
 0x38f   : > { %11000 = vst.msk [vmem:[%s15848_s9 + $0x158] sm:$0xff] %vm2552_vm1, %v10936_v20  ;;  %9973 = vst.msk [vmem:[#allocation3 + $0x1a8] sm:$0xff] %vm2552_vm1, %v9909_v31  ;;  %v10743_v24 = vadd.f32 %v13217_v25, %v10097_v9  ;;  %v10096_v33 = vld [vmem:[#allocation3 + $0x180] sm:$0xff]  ;;  %v13226_v34 = vpop.f32.mrb[22].mxu0 }
 0x390   : > { %10999 = vst.msk [vmem:[%s15848_s9 + $0x150] sm:$0xff] %vm2552_vm1, %v10935_v16  ;;  %v10867_v2 = vld [vmem:[#allocation3 + $0x168] sm:$0xff]  ;;  %9972 = vst.msk [vmem:[#allocation3 + $0x1a0] sm:$0xff] %vm2552_vm1, %v9908_v13  ;;  %v10742_v35 = vadd.f32 %v10615_v60, %v10096_v33  ;;  %v13128_v30 = vpop.f32.mrb[22].mxu1  ;;  %v10645_v63 = vpop.f32.mrb[23].mxu0 }
 0x391   : > { %v10938_v37 = vadd.f32 %v15841_v36, %v10867_v2  ;;  %v10866_v19 = vld [vmem:[#allocation3 + $0x160] sm:$0xff]  ;;  %10807 = vst.msk [vmem:[#allocation3 + $0x188] sm:$0xff] %vm2552_vm1, %v10743_v24  ;;  %v9911_v61 = vadd.f32 %v13128_v30, %v9265_v59  ;;  %v9807_v43 = vpop.f32.mrb[23].mxu1  ;;  %v9273_v30 = vld [vmem:[#allocation3 + $0x1f8] sm:$0xff] }
 0x392   : > { %v10937_v32 = vadd.f32 %v15841_v36, %v10866_v19  ;;  %10806 = vst.msk [vmem:[#allocation3 + $0x180] sm:$0xff] %vm2552_vm1, %v10742_v35  ;;  %v9910_v45 = vadd.f32 %v9807_v43, %v9264_v41  ;;  %v10099_v52 = vld [vmem:[#allocation3 + $0x198] sm:$0xff]  ;;  %v9272_v43 = vld [vmem:[#allocation3 + $0x1f0] sm:$0xff] }
 0x393   : > { %11002 = vst.msk [vmem:[%s15848_s9 + $0x168] sm:$0xff] %vm2552_vm1, %v10938_v37  ;;  %9975 = vst.msk [vmem:[#allocation3 + $0x1b8] sm:$0xff] %vm2552_vm1, %v9911_v61  ;;  %v10745_v57 = vadd.f32 %v13220_v44, %v10099_v52  ;;  %v10098_v14 = vld [vmem:[#allocation3 + $0x190] sm:$0xff]  ;;  %v13229_v36 = vpop.f32.mrb[24].mxu0 }
 0x394   : > { %11001 = vst.msk [vmem:[%s15848_s9 + $0x160] sm:$0xff] %vm2552_vm1, %v10937_v32  ;;  %v10869_v49 = vld [vmem:[#allocation3 + $0x178] sm:$0xff]  ;;  %9974 = vst.msk [vmem:[#allocation3 + $0x1b0] sm:$0xff] %vm2552_vm1, %v9910_v45  ;;  %v10744_v27 = vadd.f32 %v10625_v23, %v10098_v14  ;;  %v13131_v25 = vpop.f32.mrb[24].mxu1  ;;  %v10655_v40 = vpop.f32.mrb[25].mxu0 }
 0x395   : > { %v10940_v54 = vadd.f32 %v16084_v4, %v10869_v49  ;;  %v10868_v38 = vld [vmem:[#allocation3 + $0x170] sm:$0xff]  ;;  %10809 = vst.msk [vmem:[#allocation3 + $0x198] sm:$0xff] %vm2552_vm1, %v10745_v57  ;;  %v9913_v7 = vadd.f32 %v13131_v25, %v9267_v51  ;;  %v9817_v60 = vpop.f32.mrb[25].mxu1 }
 0x396   : > { %v10939_v15 = vadd.f32 %v16084_v4, %v10868_v38  ;;  %10808 = vst.msk [vmem:[#allocation3 + $0x190] sm:$0xff] %vm2552_vm1, %v10744_v27  ;;  %v9912_v39 = vadd.f32 %v9817_v60, %v9266_v56  ;;  %v10101_v11 = vld [vmem:[#allocation3 + $0x1a8] sm:$0xff] }
 0x397   : > { %11004 = vst.msk [vmem:[%s15848_s9 + $0x178] sm:$0xff] %vm2552_vm1, %v10940_v54  ;;  %9977 = vst.msk [vmem:[#allocation3 + $0x1c8] sm:$0xff] %vm2552_vm1, %v9913_v7  ;;  %v10747_v58 = vadd.f32 %v13223_v29, %v10101_v11  ;;  %v10100_v3 = vld [vmem:[#allocation3 + $0x1a0] sm:$0xff]  ;;  %v13232_v1 = vpop.f32.mrb[26].mxu0 }
 0x398   : > { %11003 = vst.msk [vmem:[%s15848_s9 + $0x170] sm:$0xff] %vm2552_vm1, %v10939_v15  ;;  %v10871_v62 = vld [vmem:[#allocation3 + $0x188] sm:$0xff]  ;;  %9976 = vst.msk [vmem:[#allocation3 + $0x1c0] sm:$0xff] %vm2552_vm1, %v9912_v39  ;;  %v10746_v12 = vadd.f32 %v10635_v55, %v10100_v3  ;;  %v13134_v44 = vpop.f32.mrb[26].mxu1  ;;  %v10665_v17 = vpop.f32.mrb[27].mxu0 }
 0x399   : > { %v10942_v0 = vadd.f32 %v16084_v4, %v10871_v62  ;;  %v10870_v46 = vld [vmem:[#allocation3 + $0x180] sm:$0xff]  ;;  %10811 = vst.msk [vmem:[#allocation3 + $0x1a8] sm:$0xff] %vm2552_vm1, %v10747_v58  ;;  %v9915_v5 = vadd.f32 %v13134_v44, %v9269_v47  ;;  %v9827_v23 = vpop.f32.mrb[27].mxu1 }
 0x39a   : > { %v10941_v18 = vadd.f32 %v16084_v4, %v10870_v46  ;;  %10810 = vst.msk [vmem:[#allocation3 + $0x1a0] sm:$0xff] %vm2552_vm1, %v10746_v12  ;;  %v9914_v10 = vadd.f32 %v9827_v23, %v9268_v42  ;;  %v10103_v48 = vld [vmem:[#allocation3 + $0x1b8] sm:$0xff] }
 0x39b   : > { %11006 = vst.msk [vmem:[%s15848_s9 + $0x188] sm:$0xff] %vm2552_vm1, %v10942_v0  ;;  %9979 = vst.msk [vmem:[#allocation3 + $0x1d8] sm:$0xff] %vm2552_vm1, %v9915_v5  ;;  %v10749_v21 = vadd.f32 %v13226_v34, %v10103_v48  ;;  %v10102_v50 = vld [vmem:[#allocation3 + $0x1b0] sm:$0xff]  ;;  %v13235_v20 = vpop.f32.mrb[28].mxu0 }
 0x39c   : > { %11005 = vst.msk [vmem:[%s15848_s9 + $0x180] sm:$0xff] %vm2552_vm1, %v10941_v18  ;;  %v10873_v28 = vld [vmem:[#allocation3 + $0x198] sm:$0xff]  ;;  %9978 = vst.msk [vmem:[#allocation3 + $0x1d0] sm:$0xff] %vm2552_vm1, %v9914_v10  ;;  %v10748_v22 = vadd.f32 %v10645_v63, %v10102_v50  ;;  %v13137_v29 = vpop.f32.mrb[28].mxu1  ;;  %v10675_v16 = vpop.f32.mrb[29].mxu0 }
 0x39d   : > { %v10944_v6 = vadd.f32 %v16084_v4, %v10873_v28  ;;  %v10872_v31 = vld [vmem:[#allocation3 + $0x190] sm:$0xff]  ;;  %10813 = vst.msk [vmem:[#allocation3 + $0x1b8] sm:$0xff] %vm2552_vm1, %v10749_v21  ;;  %v9917_v8 = vadd.f32 %v13137_v29, %v9271_v26  ;;  %v9837_v55 = vpop.f32.mrb[29].mxu1 }
 0x39e   : > { %v10943_v13 = vadd.f32 %v16084_v4, %v10872_v31  ;;  %10812 = vst.msk [vmem:[#allocation3 + $0x1b0] sm:$0xff] %vm2552_vm1, %v10748_v22  ;;  %v9916_v9 = vadd.f32 %v9837_v55, %v9270_v53  ;;  %v10105_v24 = vld [vmem:[#allocation3 + $0x1c8] sm:$0xff] }
 0x39f   : > { %11008 = vst.msk [vmem:[%s15848_s9 + $0x198] sm:$0xff] %vm2552_vm1, %v10944_v6  ;;  %9981 = vst.msk [vmem:[#allocation3 + $0x1e8] sm:$0xff] %vm2552_vm1, %v9917_v8  ;;  %v10751_v33 = vadd.f32 %v13229_v36, %v10105_v24  ;;  %v10104_v2 = vld [vmem:[#allocation3 + $0x1c0] sm:$0xff]  ;;  %v13238_v37 = vpop.f32.mrb[30].mxu0 }
 0x3a0   : > { %11007 = vst.msk [vmem:[%s15848_s9 + $0x190] sm:$0xff] %vm2552_vm1, %v10943_v13  ;;  %v10875_v35 = vld [vmem:[#allocation3 + $0x1a8] sm:$0xff]  ;;  %9980 = vst.msk [vmem:[#allocation3 + $0x1e0] sm:$0xff] %vm2552_vm1, %v9916_v9  ;;  %v10750_v59 = vadd.f32 %v10655_v40, %v10104_v2  ;;  %v13140_v34 = vpop.f32.mrb[30].mxu1  ;;  %v10685_v32 = vpop.f32.mrb[31].mxu0 }
 0x3a1   : > { %v10946_v19 = vadd.f32 %v16084_v4, %v10875_v35  ;;  %v10874_v61 = vld [vmem:[#allocation3 + $0x1a0] sm:$0xff]  ;;  %10815 = vst.msk [vmem:[#allocation3 + $0x1c8] sm:$0xff] %vm2552_vm1, %v10751_v33  ;;  %v9919_v41 = vadd.f32 %v13140_v34, %v9273_v30  ;;  %v9847_v63 = vpop.f32.mrb[31].mxu1 }
 0x3a2   : > { %v10945_v45 = vadd.f32 %v16084_v4, %v10874_v61  ;;  %10814 = vst.msk [vmem:[#allocation3 + $0x1c0] sm:$0xff] %vm2552_vm1, %v10750_v59  ;;  %v9918_v52 = vadd.f32 %v9847_v63, %v9272_v43  ;;  %v10107_v57 = vld [vmem:[#allocation3 + $0x1d8] sm:$0xff] }
 0x3a3   : > { %11010 = vst.msk [vmem:[%s15848_s9 + $0x1a8] sm:$0xff] %vm2552_vm1, %v10946_v19  ;;  %9983 = vst.msk [vmem:[#allocation3 + $0x1f8] sm:$0xff] %vm2552_vm1, %v9919_v41  ;;  %v10753_v14 = vadd.f32 %v13232_v1, %v10107_v57  ;;  %v10106_v49 = vld [vmem:[#allocation3 + $0x1d0] sm:$0xff] }
 0x3a4   : > { %11009 = vst.msk [vmem:[%s15848_s9 + $0x1a0] sm:$0xff] %vm2552_vm1, %v10945_v45  ;;  %v10877_v27 = vld [vmem:[#allocation3 + $0x1b8] sm:$0xff]  ;;  %9982 = vst.msk [vmem:[#allocation3 + $0x1f0] sm:$0xff] %vm2552_vm1, %v9918_v52  ;;  %v10752_v51 = vadd.f32 %v10665_v17, %v10106_v49 }
 0x3a5   : > { %v10948_v25 = vadd.f32 %v16084_v4, %v10877_v27  ;;  %v10876_v36 = vld [vmem:[#allocation3 + $0x1b0] sm:$0xff]  ;;  %10817 = vst.msk [vmem:[#allocation3 + $0x1d8] sm:$0xff] %vm2552_vm1, %v10753_v14 }
 0x3a6   : > { %v10947_v54 = vadd.f32 %v16084_v4, %v10876_v36  ;;  %10816 = vst.msk [vmem:[#allocation3 + $0x1d0] sm:$0xff] %vm2552_vm1, %v10752_v51  ;;  %v10109_v38 = vld [vmem:[#allocation3 + $0x1e8] sm:$0xff] }
 0x3a7   : > { %11012 = vst.msk [vmem:[%s15848_s9 + $0x1b8] sm:$0xff] %vm2552_vm1, %v10948_v25  ;;  %v10755_v7 = vadd.f32 %v13235_v20, %v10109_v38  ;;  %v10108_v56 = vld [vmem:[#allocation3 + $0x1e0] sm:$0xff] }
 0x3a8   : > { %11011 = vst.msk [vmem:[%s15848_s9 + $0x1b0] sm:$0xff] %vm2552_vm1, %v10947_v54  ;;  %v10879_v60 = vld [vmem:[#allocation3 + $0x1c8] sm:$0xff]  ;;  %v10754_v40 = vadd.f32 %v10675_v16, %v10108_v56 }
 0x3a9   : > { %v10950_v15 = vadd.f32 %v16084_v4, %v10879_v60  ;;  %v10878_v39 = vld [vmem:[#allocation3 + $0x1c0] sm:$0xff]  ;;  %10819 = vst.msk [vmem:[#allocation3 + $0x1e8] sm:$0xff] %vm2552_vm1, %v10755_v7 }
 0x3aa   : > { %v10949_v11 = vadd.f32 %v16084_v4, %v10878_v39  ;;  %10818 = vst.msk [vmem:[#allocation3 + $0x1e0] sm:$0xff] %vm2552_vm1, %v10754_v40  ;;  %v10111_v58 = vld [vmem:[#allocation3 + $0x1f8] sm:$0xff] }
 0x3ab   : > { %11014 = vst.msk [vmem:[%s15848_s9 + $0x1c8] sm:$0xff] %vm2552_vm1, %v10950_v15  ;;  %v10757_v3 = vadd.f32 %v13238_v37, %v10111_v58  ;;  %v10110_v62 = vld [vmem:[#allocation3 + $0x1f0] sm:$0xff] }
 0x3ac   : > { %11013 = vst.msk [vmem:[%s15848_s9 + $0x1c0] sm:$0xff] %vm2552_vm1, %v10949_v11  ;;  %v10881_v12 = vld [vmem:[#allocation3 + $0x1d8] sm:$0xff]  ;;  %v10756_v47 = vadd.f32 %v10685_v32, %v10110_v62 }
 0x3ad   : > { %v10952_v44 = vadd.f32 %v16084_v4, %v10881_v12  ;;  %v10880_v1 = vld [vmem:[#allocation3 + $0x1d0] sm:$0xff]  ;;  %10821 = vst.msk [vmem:[#allocation3 + $0x1f8] sm:$0xff] %vm2552_vm1, %v10757_v3 }
 0x3ae   : > { %v10951_v0 = vadd.f32 %v16084_v4, %v10880_v1  ;;  %10820 = vst.msk [vmem:[#allocation3 + $0x1f0] sm:$0xff] %vm2552_vm1, %v10756_v47 }
 0x3af   : > { %11016 = vst.msk [vmem:[%s15848_s9 + $0x1d8] sm:$0xff] %vm2552_vm1, %v10952_v44 }
 0x3b0   : > { %11015 = vst.msk [vmem:[%s15848_s9 + $0x1d0] sm:$0xff] %vm2552_vm1, %v10951_v0  ;;  %v10883_v46 = vld [vmem:[#allocation3 + $0x1e8] sm:$0xff] }
 0x3b1   : > { %v10954_v5 = vadd.f32 %v16084_v4, %v10883_v46  ;;  %v10882_v42 = vld [vmem:[#allocation3 + $0x1e0] sm:$0xff] }
 0x3b2   : > { %v10953_v23 = vadd.f32 %v16084_v4, %v10882_v42 }
 0x3b3   : > { %11018 = vst.msk [vmem:[%s15848_s9 + $0x1e8] sm:$0xff] %vm2552_vm1, %v10954_v5 }
 0x3b4   : > { %11017 = vst.msk [vmem:[%s15848_s9 + $0x1e0] sm:$0xff] %vm2552_vm1, %v10953_v23  ;;  %v10885_v17 = vld [vmem:[#allocation3 + $0x1f8] sm:$0xff] }
 0x3b5   : > { %v10956_v18 = vadd.f32 %v16084_v4, %v10885_v17  ;;  %v10884_v10 = vld [vmem:[#allocation3 + $0x1f0] sm:$0xff] }
 0x3b6   : > { %v10955_v48 = vadd.f32 %v16084_v4, %v10884_v10 }
 0x3b7   : > { %11020 = vst.msk [vmem:[%s15848_s9 + $0x1f8] sm:$0xff] %vm2552_vm1, %v10956_v18 }
 0x3b8   : > { %11019 = vst.msk [vmem:[%s15848_s9 + $0x1f0] sm:$0xff] %vm2552_vm1, %v10955_v48 }
 0x3b9 PF: > { %s14_s19 = sadd.s32 1, %s13340_s19   ;;  %s16184_s15 = smov %s13332_s17 }
 0x3ba   : > { %p11_p9 = scmp.ge.s32.totalorder %s14_s19, 6   ;;  %s16185_s16 = smov %s13336_s18 }
 0x3bb   : > { %s16186_s17 = smov %s16189_s20  ;;  %s16187_s18 = smov %s16193_s21 }
 0x3bc   :  { %13 = sbr.rel (!%p11_p9) target bundleno = 3 (0x3), region = 81 }

</bundles_post_ra>
